<compile_context>
chip_gen: v6e
topology: v6e:2x2x1
jax: 0.10.0
libtpu: 0.0.40
codegen_flags: <defaults>
</compile_context>

<pallas_src>
import functools

import jax
import jax.numpy as jnp
from jax.experimental import pallas as pl
from jax.experimental.pallas import tpu as pltpu


def _primary_caps_reshape_kernel(dim, in_ref, out_ref):
    # in_ref:  (B_TILE, CAPS_TILE, dim * hw)   lane-dense load
    # out_ref: (B_TILE, CAPS_TILE, hw * dim)   lane-dense store
    x = in_ref[...]
    b, ct, dh = x.shape
    hw = dh // dim
    x = x.reshape(b, ct, dim, hw)          # split the dense row
    x = jnp.swapaxes(x, -1, -2)            # (b, ct, hw, dim)  -- XLU transpose
    out_ref[...] = x.reshape(b, ct, hw * dim)


def _target_block_bytes():
    """Per-generation block-size target (4x block = double-buffered in+out
    must stay under the scoped-VMEM default: 16 MiB v5e, 32 MiB v6e/v7x)."""
    try:
        kind = jax.devices()[0].device_kind.lower()
    except Exception:  # pragma: no cover - defensive
        return 2 << 20
    if "v7" in kind or "7x" in kind:
        return 6 << 20          # 3.2 TB/s HBM: big blocks amortize step cost
    if "v6" in kind:
        return 4 << 20
    if "v5" in kind:
        return 3 << 20          # keep 4x block under the 16 MiB scoped default
    return 2 << 20              # unknown / older generation: safe everywhere


def _choose_tiles(n, caps, per_cap_bytes, target_bytes,
                  min_block_bytes=1 << 20, desired_steps=4):
    """Pick (b_tile, caps_tile): exact divisors (no ragged/padded blocks).

    Preference order:
      1. >= desired_steps grid steps AND blocks >= ~1 MiB (roofline knee,
         megacore sharding + prefetch/writeback overlap),
      2. else >= 2 steps with blocks >= ~512 KiB,
      3. else just the largest block <= target (don't over-split tiny work;
         per-step overhead ~0.35 us dominates small blocks).
    Within a class, prefer the largest block.
    """
    b_divs = [d for d in range(1, n + 1) if n % d == 0]
    # (8,128) rule: caps_tile (2nd-minor dim of the block) must be a multiple
    # of 8 or equal the full caps extent.
    c_divs = [d for d in range(1, caps + 1)
              if caps % d == 0 and (d % 8 == 0 or d == caps)]

    best = None
    for b in b_divs:
        for c in c_divs:
            block = b * c * per_cap_bytes
            if block > target_bytes:
                continue
            steps = (n // b) * (caps // c)
            if steps >= desired_steps and block >= min_block_bytes:
                cls = 2
            elif steps >= 2 and block >= (min_block_bytes // 2):
                cls = 1
            else:
                cls = 0
            key = (cls, block)
            if best is None or key > best[0]:
                best = (key, (b, c))
    if best is None:
        # Even the smallest legal block exceeds the target; take it anyway.
        return 1, min(c_divs)
    return best[1]


def primary_caps_reshape(x, output_caps: int, output_dim: int):
    n, c, h, w = x.shape
    assert c == output_caps * output_dim, "channel dim must be caps * dim"
    hw = h * w
    in_row = output_dim * hw                 # lane-dense input row per capsule
    out_row = hw * output_dim                # lane-dense output row per capsule

    # Free, layout-preserving reshape in HBM (identical bytes, row-major):
    #   (N, caps*dim, H, W) -> (N, caps, dim*H*W)
    x_in = x.reshape(n, output_caps, in_row)

    per_cap_bytes = in_row * x.dtype.itemsize
    target = _target_block_bytes()
    b_tile, c_tile = _choose_tiles(n, output_caps, per_cap_bytes, target)
    grid = (n // b_tile, output_caps // c_tile)
    block_bytes = b_tile * c_tile * per_cap_bytes

    params = {"dimension_semantics": ("parallel", "parallel")}
    if 4 * block_bytes > (12 << 20):
        # Pathological case only (huge dim*hw with unsplittable caps): make
        # sure double-buffered in+out still fits the scoped-VMEM limit.
        params["vmem_limit_bytes"] = int(4 * block_bytes + (8 << 20))

    total_bytes = x.size * x.dtype.itemsize

    y = pl.pallas_call(
        functools.partial(_primary_caps_reshape_kernel, output_dim),
        out_shape=jax.ShapeDtypeStruct((n, output_caps, out_row), x.dtype),
        grid=grid,
        in_specs=[
            # Last dim equals the full array extent -> (8,128) rule satisfied;
            # caps_tile is a multiple of 8 (or full) by construction.
            pl.BlockSpec((b_tile, c_tile, in_row), lambda i, j: (i, j, 0)),
        ],
        out_specs=pl.BlockSpec((b_tile, c_tile, out_row),
                               lambda i, j: (i, j, 0)),
        compiler_params=pltpu.CompilerParams(**params),
        # Pure bandwidth op: read everything once, write everything once.
        cost_estimate=pl.CostEstimate(flops=0, transcendentals=0,
                                      bytes_accessed=2 * total_bytes),
    )(x_in)

    # Free reshape back to the PyTorch output shape (identical HBM layout:
    # output_dim is already the fastest-varying axis of y).
    return y.reshape(n, output_caps * hw, output_dim)


def _reference(x, output_caps, output_dim):
    n, c, h, w = x.shape
    y = x.reshape(n, output_caps, output_dim, h, w)
    y = jnp.transpose(y, (0, 1, 3, 4, 2))            # movedim(2, -1)
    return y.reshape(n, output_caps * h * w, output_dim)


if __name__ == "__main__":
    # Small shapes consistent with a primary-capsule layer.
    batch = 2
    output_caps = 8
    output_dim = 4
    H = W = 16
    C = output_caps * output_dim                     # 32

    key = jax.random.PRNGKey(0)
    x = jax.random.normal(key, (batch, C, H, W), dtype=jnp.float32)

    out = primary_caps_reshape(x, output_caps, output_dim)
    out = jax.block_until_ready(out)

    ref = _reference(x, output_caps, output_dim)
    assert out.shape == (batch, output_caps * H * W, output_dim), out.shape
    assert bool(jnp.array_equal(out, ref)), "mismatch vs reference"

    print("KERNEL_OK")
</pallas_src>

<mosaic_0001>
module attributes {stable_mosaic.version = 11 : i64} {
  func.func @_primary_caps_reshape_kernel(%arg0: i32, %arg1: i32, %arg2: memref<2x8x1024xf32, #tpu.memory_space<vmem>>, %arg3: memref<2x8x1024xf32, #tpu.memory_space<vmem>>) attributes {dimension_semantics = [#tpu.dimension_semantics<parallel>, #tpu.dimension_semantics<parallel>], iteration_bounds = array<i64: 1, 1>, scalar_prefetch = 0 : i64, scratch_operands = 0 : i64, tpu.core_type = #tpu.core_type<tc>, window_params = [{transform_indices = @transform_0, window_bounds = array<i64: 2, 8, 1024>}, {transform_indices = @transform_1, window_bounds = array<i64: 2, 8, 1024>}]} {
    %c0 = arith.constant 0 : index
    %c0_0 = arith.constant 0 : index
    %c0_1 = arith.constant 0 : index
    %0 = vector.load %arg2[%c0, %c0_0, %c0_1] : memref<2x8x1024xf32, #tpu.memory_space<vmem>>, vector<2x8x1024xf32>
    %1 = vector.shape_cast %0 : vector<2x8x1024xf32> to vector<2x8x4x256xf32>
    %2 = tpu.transpose %1, [0, 1, 3, 2] : vector<2x8x4x256xf32> -> vector<2x8x256x4xf32>
    %3 = vector.shape_cast %2 : vector<2x8x256x4xf32> to vector<2x8x1024xf32>
    %c0_2 = arith.constant 0 : index
    %c0_3 = arith.constant 0 : index
    %c0_4 = arith.constant 0 : index
    %4 = vector.load %arg3[%c0_2, %c0_3, %c0_4] : memref<2x8x1024xf32, #tpu.memory_space<vmem>>, vector<2x8x1024xf32>
    tpu.vector_store %arg3[%c0_2, %c0_3, %c0_4], %3 {strides = array<i32>} : memref<2x8x1024xf32, #tpu.memory_space<vmem>>, vector<2x8x1024xf32>,
    return
  }
  func.func @transform_0(%arg0: i32, %arg1: i32) -> (i32, i32, i32) {
    %c0_i32 = arith.constant 0 : i32
    %c0_i32_0 = arith.constant 0 : i32
    return %arg0, %arg1, %c0_i32 : i32, i32, i32
  }
  func.func @transform_1(%arg0: i32, %arg1: i32) -> (i32, i32, i32) {
    %c0_i32 = arith.constant 0 : i32
    %c0_i32_0 = arith.constant 0 : i32
    return %arg0, %arg1, %c0_i32 : i32, i32, i32
  }
}

</mosaic_0001>

<bundles_post_ra>
// kernel: tpu_custom_call.1
= control target key start
LH: loop header
LB: loop body
LE: loop exit
PB: predicated region body
PF: predicated region fallthrough
CT: control target
= control target key end

     0   :  { %6 = vsyncpa [#allocation3], 0  ;;  %s22492_s0 = inlined_call_operand.hbm [shape: f32[2,8,1024], index: 0, kind: input, shape index: {}]   ;;  %s22493_s1 = inlined_call_operand.hbm [shape: f32[2,8,1024], index: 1, kind: output, shape index: {}]  }
   0x1   :  { %7 = vsyncpa [#allocation4], 0  ;;  %s12800_s6 = smov [#allocation2]  }
   0x2   :  { %s13_s7 = sshll.u32 %s12800_s6, 4  ;;  %s14_s7 = int_to_ptr.vmem [resolvable:$true] %s13_s7 }
   0x3   :  { %s12764_s8 = scalar_lea.vmem %s14_s7, 2048  ;;  %p12769_p1 = scmp.lt.s32.totalorder %s14_s7, %s14_s7 }
   0x4   :  { %p12765_p0 = scmp.ne.s32.totalorder %s14_s7, %s12764_s8  ;;  %p12770_p2 = scmp.lt.s32.totalorder %s12764_s8, %s12764_s8 }
   0x6   :  { %p12771_p3 = por %p12770_p2, %p12769_p1 }
   0x8   :  { %p12772_p4 = pnand %p12771_p3, %p12765_p0 }
   0xa   :  { %12775 = shalt.err (!%p12772_p4)
}
   0xb   :  { %s23718_s9 = smov 1024   ;;  %s12802_s10 = smov 64  }
   0xc   :  { %19 = dma.hbm_to_vmem [thread:$0]  %s22492_s0, 2048, %s14_s7, [#allocation3], %s23718_s9, %s23718_s9, %s12802_s10  }
   0xd   :  { %12796 = dma.done.wait [#allocation3], 2048  }
   0xe   :  { %12797 = vsyncadd [#allocation3], 4294965248  ;;  %v92_v0 = vlaneseq  ;;  %v12803_v1 = vmov 1983009808   ;;  %v12804_v5 = vmov 1934713408  }
   0xf   :  { %v90_v2 = vunpack.c.l.s4 %v12803_v1  ;;  %v122_v6 = vunpack.c.l.s4 %v12804_v5  ;;  %v12852_v7 = vld [vmem:[#allocation2] sm:$0xff]  ;;  %v12854_v8 = vld [vmem:[#allocation2 + $0x8] sm:$0xff]  ;;  %v12856_v9 = vld [vmem:[#allocation2 + $0x10] sm:$0xff]  ;;  %s12805_s0 = smov 4   ;;  %s12806_s13 = smov 12   ;;  %vm12119_vm0 = vcmask 31744  }
  0x10   :  { %v93_v4 = vshrl.u32 %v92_v0, 7  ;;  %v12860_v11 = vld [vmem:[#allocation2 + $0x18] sm:$0xff]  ;;  %v12862_v12 = vld [vmem:[#allocation2 + $0x20] sm:$0xff]  ;;  %v12864_v13 = vld [vmem:[#allocation2 + $0x28] sm:$0xff]  ;;  %s12807_s14 = smov 16   ;;  %s12808_s15 = smov 8  }
  0x11   :  { %v91_v3 = vunpack.c.0.s8 %v90_v2  ;;  %v123_v14 = vunpack.c.0.s8 %v122_v6  ;;  %v12866_v15 = vld [vmem:[#allocation2 + $0x30] sm:$0xff]  ;;  %v12868_v16 = vld [vmem:[#allocation2 + $0x38] sm:$0xff]  ;;  %v12679_v17 = vcombine.low %v12852_v7, %v12862_v12  ;;  %v12680_v18 = vcombine.low %v12854_v8, %v12864_v13  ;;  %s12809_s16 = smov 20   ;;  %s12810_s17 = smov 24  }
  0x12   :  { %v12683_v19 = vcombine.high %v12852_v7, %v12862_v12  ;;  %v12684_v20 = vcombine.high %v12854_v8, %v12864_v13  ;;  %v12681_v21 = vcombine.low %v12856_v9, %v12866_v15  ;;  %v12682_v22 = vcombine.low %v12860_v11, %v12868_v16  ;;  %s12811_s18 = smov 28   ;;  %s12812_s19 = smov 32  }
  0x13   :  { %v12858_v10 = vsub.s32 %v91_v3, %v93_v4  ;;  %v12685_v23 = vcombine.high %v12856_v9, %v12866_v15  ;;  %v12686_v24 = vcombine.high %v12860_v11, %v12868_v16  ;;  %v12890_v29 = vsub.s32 %v123_v14, %v93_v4  ;;  %s12813_s20 = smov 36   ;;  %s12814_s21 = smov 40  }
  0x14   :  { %s23817_s22 = smov 44   ;;  %s12816_s23 = smov 48   ;;  %vm23801_vm1 = vcmask 64512   ;;  %vm23802_vm2 = vcmask 97280   ;;  %vm23806_vm3 = vcmask 130048   ;;  %vm23782_vm4 = vcmask 162816  }
  0x15   :  { %v95_v25 = vrot.slane %v12679_v17, %v12858_v10  ;;  %v102_v26 = vrot.slane %v12680_v18, %v12858_v10  ;;  %v111_v27 = vrot.slane %v12681_v21, %v12858_v10  ;;  %v118_v28 = vrot.slane %v12682_v22, %v12858_v10  ;;  %23826 = vst [vmem:[#allocation8_spill] sm:$0xff] %v12890_v29  ;;  %s12817_s24 = smov 52   ;;  %s12818_s25 = smov 56  }
  0x16   :  { %s23813_s26 = smov 60   ;;  %s12820_s27 = smov 68   ;;  %vm23803_vm5 = vcmask 195584   ;;  %vm23784_vm6 = vcmask 228352   ;;  %vm23783_vm7 = vcmask 261120   ;;  %vm23785_vm8 = vcmask 293888  }
  0x17   :  { %v119_v30 = vcombine.low %v95_v25, %v111_v27  ;;  %v135_v31 = vcombine.low %v102_v26, %v118_v28  ;;  %v136_v32 = vcombine.high %v102_v26, %v118_v28  ;;  %v120_v33 = vcombine.high %v95_v25, %v111_v27  ;;  %s23811_s28 = smov 72   ;;  %s12822_s29 = smov 76  }
  0x18   :  { %v12964_v27 = vrot.slane %v12684_v20, %v12858_v10  ;;  %v12970_v28 = vrot.slane %v12686_v24, %v12858_v10  ;;  %s12823_s30 = smov 80   ;;  %s23807_s2 = smov 84   ;;  %vm23786_vm9 = vcmask 326656   ;;  %vm23787_vm10 = vcmask 359424  }
  0x19   :  { %v127_v34 = vrot.slane %v119_v30, %v12890_v29  ;;  %v143_v35 = vrot.slane %v135_v31, %v12890_v29  ;;  %v150_v36 = vrot.slane %v136_v32, %v12890_v29  ;;  %v134_v37 = vrot.slane %v120_v33, %v12890_v29  ;;  %s12825_s3 = smov 88   ;;  %s23804_s4 = smov 92  }
  0x1a   :  { %v12976_v30 = vrot.slane %v12683_v19, %v12858_v10  ;;  %v12982_v31 = vrot.slane %v12685_v23, %v12858_v10  ;;  %v203_v11 = vcombine.low %v12964_v27, %v12970_v28  ;;  %s12827_s5 = smov 96   ;;  %s23796_s6 = smov 100   ;;  %vm23788_vm11 = vcmask 392192  }
  0x1b   :  { %v152_v38 = vcombine.high %v127_v34, %v143_v35  ;;  %v151_v39 = vcombine.low %v127_v34, %v143_v35  ;;  %v153_v40 = vcombine.low %v134_v37, %v150_v36  ;;  %v12696_v41 = vcombine.high %v143_v35, %v143_v35  ;;  %s12829_s7 = smov 104   ;;  %s12830_s8 = smov 108  }
  0x1c   :  { %v12695_v42 = vcombine.low %v143_v35, %v143_v35  ;;  %v154_v43 = vcombine.high %v134_v37, %v150_v36  ;;  %v12697_v44 = vcombine.low %v150_v36, %v150_v36  ;;  %v12698_v18 = vcombine.high %v150_v36, %v150_v36  ;;  %s23723_s11 = smov 112   ;;  %s12832_s12 = smov 116  }
  0x1d   :  { %471 = vxpose.xlu1.b32.start.end [1/1] (short) %v152_v38, 128  ;;  %407 = vxpose.xlu0.b32.start.end [1/1] (short) %v151_v39, 128  ;;  %v187_v16 = vcombine.low %v12976_v30, %v12982_v31  ;;  %v12997_v12 = vrot.slane %v203_v11, %v12890_v29  ;;  %s12833_s9 = smov 120   ;;  %vm23789_vm12 = vcmask 424960   ;;  %vm23790_vm13 = vcmask 457728  }
  0x1e   :  { %vm23791_vm14 = vcmask 490496   ;;  %vm23792_vm15 = vcmask 523264  }
  0x1f   :  { %v13000_v9 = vrot.slane %v187_v16, %v12890_v29 }
  0x5a   :  { %503 = vxpose.xlu1.b32.start.end [1/1] (short) %v12696_v41, 128  ;;  %439 = vxpose.xlu0.b32.start.end [1/1] (short) %v12695_v42, 128 }
  0x97   :  { %567 = vxpose.xlu1.b32.start.end [1/1] (short) %v12697_v44, 128  ;;  %535 = vxpose.xlu0.b32.start.end [1/1] (short) %v153_v40, 128 }
  0x99   :  { %v12896_v45 = vpop.trf.xlu1  ;;  %v12898_v46 = vpop.trf.xlu0 }
  0x9d   :  { %v12900_v47 = vpop.trf.xlu1  ;;  %v12902_v48 = vpop.trf.xlu0 }
  0xa1   :  { %v12904_v49 = vpop.trf.xlu1  ;;  %v12906_v50 = vpop.trf.xlu0 }
  0xa5   :  { %v12908_v51 = vpop.trf.xlu1  ;;  %v12910_v52 = vpop.trf.xlu0 }
  0xa9   :  { %v12912_v53 = vpop.trf.xlu1  ;;  %v12914_v54 = vpop.trf.xlu0 }
  0xad   :  { %v12916_v55 = vpop.trf.xlu1  ;;  %v12918_v56 = vpop.trf.xlu0 }
  0xb1   :  { %v12920_v57 = vpop.trf.xlu1  ;;  %v12922_v58 = vpop.trf.xlu0 }
  0xb2   :  { %23827 = vst [vmem:[#allocation9_spill] sm:$0xff] %v12920_v57 }
  0xb5   :  { %v12924_v59 = vpop.trf.xlu1  ;;  %v12926_v60 = vpop.trf.xlu0 }
  0xb6   :  { %23828 = vst [vmem:[#allocation10_spill] sm:$0xff] %v12924_v59  ;;  %23829 = vst [vmem:[#allocation11_spill] sm:$0xff] %v12926_v60 }
  0xb9   :  { %v12928_v61 = vpop.trf.xlu1  ;;  %v12930_v62 = vpop.trf.xlu0 }
  0xba   :  { %23830 = vst [vmem:[#allocation12_spill] sm:$0xff] %v12928_v61  ;;  %23831 = vst [vmem:[#allocation13_spill] sm:$0xff] %v12930_v62 }
  0xbd   :  { %v12932_v63 = vpop.trf.xlu1  ;;  %v12934_v0 = vpop.trf.xlu0 }
  0xbe   :  { %23832 = vst [vmem:[#allocation14_spill] sm:$0xff] %v12932_v63  ;;  %23833 = vst [vmem:[#allocation15_spill] sm:$0xff] %v12934_v0 }
  0xc1   :  { %v12936_v1 = vpop.trf.xlu1  ;;  %v12938_v2 = vpop.trf.xlu0 }
  0xc2   :  { %23834 = vst [vmem:[#allocation16_spill] sm:$0xff] %v12936_v1  ;;  %23835 = vst [vmem:[#allocation17_spill] sm:$0xff] %v12938_v2  ;;  %v23873_v1 = vcombine.high %v13000_v9, %v12997_v12 }
  0xc5   :  { %v12940_v3 = vpop.trf.xlu1  ;;  %v12942_v4 = vpop.trf.xlu0 }
  0xc6   :  { %23836 = vst [vmem:[#allocation18_spill] sm:$0xff] %v12940_v3  ;;  %23837 = vst [vmem:[#allocation19_spill] sm:$0xff] %v12942_v4 }
  0xc9   :  { %v12944_v5 = vpop.trf.xlu1  ;;  %v12946_v6 = vpop.trf.xlu0 }
  0xca   :  { %23838 = vst [vmem:[#allocation20_spill] sm:$0xff] %v12944_v5  ;;  %23839 = vst [vmem:[#allocation21_spill] sm:$0xff] %v12946_v6 }
  0xcd   :  { %v12948_v14 = vpop.trf.xlu1  ;;  %v12950_v17 = vpop.trf.xlu0 }
  0xce   :  { %23840 = vst [vmem:[#allocation22_spill] sm:$0xff] %v12948_v14  ;;  %23841 = vst [vmem:[#allocation23_spill] sm:$0xff] %v12950_v17  ;;  %v219_v17 = vcombine.low %v13000_v9, %v12997_v12 }
  0xd1   :  { %v12952_v21 = vpop.trf.xlu1  ;;  %v12954_v22 = vpop.trf.xlu0 }
  0xd2   :  { %23842 = vst [vmem:[#allocation24_spill] sm:$0xff] %v12952_v21  ;;  %23843 = vst [vmem:[#allocation25_spill] sm:$0xff] %v12954_v22  ;;  %v12699_v22 = vcombine.low %v12997_v12, %v12997_v12 }
  0xd4   :  { %631 = vxpose.xlu1.b32.start.end [1/1] (short) %v12698_v18, 128  ;;  %599 = vxpose.xlu0.b32.start.end [1/1] (short) %v154_v43, 128 }
  0xd5   :  { %v12956_v25 = vpop.trf.xlu1  ;;  %v12958_v26 = vpop.trf.xlu0 }
  0xd6   :  { %23844 = vst [vmem:[#allocation26_spill] sm:$0xff] %v12956_v25  ;;  %23845 = vst [vmem:[#allocation27_spill] sm:$0xff] %v12958_v26 }
  0xd9   :  { %v12984_v8 = vpop.trf.xlu1  ;;  %v12986_v13 = vpop.trf.xlu0 }
  0xdd   :  { %v12992_v20 = vpop.trf.xlu1  ;;  %v12994_v7 = vpop.trf.xlu0 }
  0xe1   :  { %v13004_v19 = vpop.trf.xlu1  ;;  %v13006_v23 = vpop.trf.xlu0 }
  0xe5   :  { %v13008_v24 = vpop.trf.xlu1  ;;  %v13010_v32 = vpop.trf.xlu0 }
  0xe9   :  { %v13012_v33 = vpop.trf.xlu1  ;;  %v13014_v34 = vpop.trf.xlu0 }
  0xed   :  { %v13016_v35 = vpop.trf.xlu1  ;;  %v13018_v36 = vpop.trf.xlu0 }
  0xf1   :  { %v13020_v37 = vpop.trf.xlu1  ;;  %v13022_v38 = vpop.trf.xlu0 }
  0xf2   :  { %23846 = vst [vmem:[#allocation28_spill] sm:$0xff] %v13020_v37  ;;  %23847 = vst [vmem:[#allocation29_spill] sm:$0xff] %v13022_v38 }
  0xf5   :  { %v13024_v39 = vpop.trf.xlu1  ;;  %v13026_v40 = vpop.trf.xlu0 }
  0xf6   :  { %23848 = vst [vmem:[#allocation30_spill] sm:$0xff] %v13024_v39  ;;  %23849 = vst [vmem:[#allocation31_spill] sm:$0xff] %v13026_v40 }
  0xf9   :  { %v13028_v41 = vpop.trf.xlu1  ;;  %v13030_v42 = vpop.trf.xlu0 }
  0xfa   :  { %23850 = vst [vmem:[#allocation32_spill] sm:$0xff] %v13028_v41  ;;  %23851 = vst [vmem:[#allocation33_spill] sm:$0xff] %v13030_v42 }
  0xfd   :  { %v13032_v43 = vpop.trf.xlu1  ;;  %v13034_v44 = vpop.trf.xlu0 }
  0xfe   :  { %23852 = vst [vmem:[#allocation34_spill] sm:$0xff] %v13032_v43  ;;  %23853 = vst [vmem:[#allocation35_spill] sm:$0xff] %v13034_v44 }
 0x101   :  { %v13036_v18 = vpop.trf.xlu1  ;;  %v13038_v11 = vpop.trf.xlu0 }
 0x102   :  { %23854 = vst [vmem:[#allocation36_spill] sm:$0xff] %v13036_v18  ;;  %23855 = vst [vmem:[#allocation37_spill] sm:$0xff] %v13038_v11 }
 0x105   :  { %v13040_v16 = vpop.trf.xlu1  ;;  %v13042_v15 = vpop.trf.xlu0 }
 0x106   :  { %23856 = vst [vmem:[#allocation38_spill] sm:$0xff] %v13040_v16 }
 0x109   :  { %v13044_v25 = vpop.trf.xlu1  ;;  %v13046_v26 = vpop.trf.xlu0 }
 0x10a   :  { %23857 = vst [vmem:[#allocation39_spill] sm:$0xff] %v13044_v25 }
 0x10d   :  { %v13048_v21 = vpop.trf.xlu1  ;;  %v13050_v14 = vpop.trf.xlu0 }
 0x10e   :  { %23858 = vst [vmem:[#allocation40_spill] sm:$0xff] %v13048_v21 }
 0x111   :  { %v13056_v5 = vpop.trf.xlu1  ;;  %v13058_v3 = vpop.trf.xlu0  ;;  %695 = vxpose.xlu1.b32.start.end [1/1] (short) %v12699_v22, 128  ;;  %663 = vxpose.xlu0.b32.start.end [1/1] (short) %v219_v17, 128  ;;  %v12700_v17 = vcombine.high %v12997_v12, %v12997_v12  ;;  %v188_v12 = vcombine.high %v12976_v30, %v12982_v31 }
 0x112   :  { %23859 = vst [vmem:[#allocation41_spill] sm:$0xff] %v13056_v5  ;;  %23860 = vst [vmem:[#allocation42_spill] sm:$0xff] %v13058_v3 }
 0x115   :  { %v13060_v6 = vpop.trf.xlu1  ;;  %v13062_v25 = vpop.trf.xlu0 }
 0x116   :  { %23861 = vst [vmem:[#allocation43_spill] sm:$0xff] %v13060_v6  ;;  %23862 = vst [vmem:[#allocation44_spill] sm:$0xff] %v13062_v25 }
 0x119   :  { %v13064_v4 = vpop.trf.xlu1  ;;  %v13066_v21 = vpop.trf.xlu0 }
 0x11a   :  { %v23878_v30 = vcombine.high %v12986_v13, %v13064_v4 }
 0x11c   :  { %v13215_v31 = vrot.slane %v23878_v30, %v12858_v10 }
 0x11d   :  { %v13072_v18 = vpop.trf.xlu1  ;;  %v13074_v5 = vpop.trf.xlu0 }
 0x121   :  { %v13080_v6 = vpop.trf.xlu1  ;;  %v13082_v3 = vpop.trf.xlu0 }
 0x125   :  { %v13088_v63 = vpop.trf.xlu1  ;;  %v13090_v2 = vpop.trf.xlu0 }
 0x129   :  { %v13096_v43 = vpop.trf.xlu1  ;;  %v13098_v0 = vpop.trf.xlu0 }
 0x12d   :  { %v13104_v61 = vpop.trf.xlu1  ;;  %v13106_v41 = vpop.trf.xlu0 }
 0x131   :  { %v13112_v62 = vpop.trf.xlu1  ;;  %v13114_v59 = vpop.trf.xlu0 }
 0x132   :  { %23863 = vst [vmem:[#allocation45_spill] sm:$0xff] %v13112_v62 }
 0x135   :  { %v13120_v39 = vpop.trf.xlu1  ;;  %v13122_v57 = vpop.trf.xlu0 }
 0x136   :  { %23864 = vst [vmem:[#allocation46_spill] sm:$0xff] %v13120_v39 }
 0x139   :  { %v13128_v60 = vpop.trf.xlu1  ;;  %v13130_v37 = vpop.trf.xlu0 }
 0x13a   :  { %23865 = vst [vmem:[#allocation47_spill] sm:$0xff] %v13128_v60 }
 0x13d   :  { %v13136_v62 = vpop.trf.xlu1  ;;  %v13138_v38 = vpop.trf.xlu0 }
 0x13e   :  { %23866 = vst [vmem:[#allocation48_spill] sm:$0xff] %v13136_v62 }
 0x141   :  { %v13144_v39 = vpop.trf.xlu1  ;;  %v13146_v40 = vpop.trf.xlu0 }
 0x142   :  { %23867 = vst [vmem:[#allocation49_spill] sm:$0xff] %v13144_v39 }
 0x145   :  { %v13152_v60 = vpop.trf.xlu1  ;;  %v13154_v42 = vpop.trf.xlu0 }
 0x146   :  { %23868 = vst [vmem:[#allocation50_spill] sm:$0xff] %v13152_v60  ;;  %23869 = vst [vmem:[#allocation51_spill] sm:$0xff] %v13154_v42  ;;  %v1431_v42 = vcombine.low %v12898_v46, %v13066_v21 }
 0x149   :  { %v13160_v62 = vpop.trf.xlu1  ;;  %v13162_v44 = vpop.trf.xlu0 }
 0x14a   :  { %23870 = vst [vmem:[#allocation52_spill] sm:$0xff] %v13160_v62  ;;  %23871 = vst [vmem:[#allocation53_spill] sm:$0xff] %v13162_v44  ;;  %v1432_v62 = vcombine.high %v12898_v46, %v13066_v21  ;;  %v13224_v21 = vrot.slane %v188_v12, %v12890_v29  ;;  %v1703_v12 = vcombine.low %v12906_v50, %v13082_v3 }
 0x14d   :  { %v13168_v39 = vpop.trf.xlu1  ;;  %v13170_v11 = vpop.trf.xlu0 }
 0x14e   :  { %23872 = vst [vmem:[#allocation54_spill] sm:$0xff] %v13170_v11 }
 0x151   :  { %v13178_v44 = vpop.trf.xlu1  ;;  %v13180_v60 = vpop.trf.xlu0  ;;  %759 = vxpose.xlu1.b32.start.end [1/1] (short) %v12700_v17, 128  ;;  %727 = vxpose.xlu0.b32.start.end [1/1] (short) %v23873_v1, 128  ;;  %v204_v17 = vcombine.high %v12964_v27, %v12970_v28  ;;  %v23876_v1 = vcombine.low %v12986_v13, %v13064_v4  ;;  %v13239_v13 = vrot.slane %v1432_v62, %v12858_v10 }
 0x153   :  { %v13203_v9 = vrot.slane %v23876_v1, %v12858_v10  ;;  %v13218_v1 = vrot.slane %v1431_v42, %v12858_v10  ;;  %v13221_v46 = vrot.slane %v204_v17, %v12890_v29  ;;  %23883 = vst [vmem:[#allocation62_spill] sm:$0xff] %v13239_v13  ;;  %v1567_v42 = vcombine.low %v12902_v48, %v13074_v5 }
 0x155   :  { %v13185_v16 = vpop.trf.xlu1  ;;  %v13187_v11 = vpop.trf.xlu0  ;;  %23877 = vst [vmem:[#allocation57_spill] sm:$0xff] %v13203_v9  ;;  %23879 = vst [vmem:[#allocation58_spill] sm:$0xff] %v13218_v1 }
 0x156   :  { %23874 = vst [vmem:[#allocation55_spill] sm:$0xff] %v13185_v16  ;;  %23875 = vst [vmem:[#allocation56_spill] sm:$0xff] %v13187_v11 }
 0x159   :  { %v647_v11 = vpop.trf.xlu1  ;;  %v615_v22 = vpop.trf.xlu0 }
 0x15a   :  { %v3623_v16 = vcombine.low %v12984_v8, %v647_v11  ;;  %v3624_v25 = vcombine.high %v12984_v8, %v647_v11  ;;  %v1447_v27 = vcombine.low %v12896_v45, %v615_v22  ;;  %v1448_v28 = vcombine.high %v12896_v45, %v615_v22 }
 0x15b   :  { %v1568_v22 = vcombine.high %v12902_v48, %v13074_v5  ;;  %v13276_v5 = vrot.slane %v1567_v42, %v12858_v10 }
 0x15c   :  { %v13227_v8 = vrot.slane %v3623_v16, %v12858_v10  ;;  %v13230_v45 = vrot.slane %v3624_v25, %v12858_v10  ;;  %v13233_v11 = vrot.slane %v1447_v27, %v12858_v10  ;;  %v13236_v4 = vrot.slane %v1448_v28, %v12858_v10 }
 0x15d   :  { %v648_v16 = vpop.trf.xlu1  ;;  %v616_v17 = vpop.trf.xlu0  ;;  %v23884_v27 = vcombine.low %v12994_v7, %v13072_v18  ;;  %v23885_v28 = vcombine.high %v12994_v7, %v13072_v18  ;;  %v13279_v30 = vrot.slane %v1568_v22, %v12858_v10  ;;  %v1704_v25 = vcombine.high %v12906_v50, %v13082_v3 }
 0x15e   :  { %23880 = vst [vmem:[#allocation59_spill] sm:$0xff] %v13227_v8  ;;  %23881 = vst [vmem:[#allocation60_spill] sm:$0xff] %v13233_v11  ;;  %v3759_v13 = vcombine.low %v12992_v20, %v648_v16  ;;  %v3760_v7 = vcombine.high %v12992_v20, %v648_v16  ;;  %v1583_v18 = vcombine.low %v12900_v47, %v616_v17 }
 0x15f   :  { %23882 = vst [vmem:[#allocation61_spill] sm:$0xff] %v13236_v4  ;;  %v13267_v62 = vrot.slane %v23884_v27, %v12858_v10  ;;  %v13273_v48 = vrot.slane %v23885_v28, %v12858_v10  ;;  %23886 = vst [vmem:[#allocation63_spill] sm:$0xff] %v13279_v30  ;;  %v1584_v42 = vcombine.high %v12900_v47, %v616_v17 }
 0x160   :  { %v13294_v50 = vrot.slane %v3759_v13, %v12858_v10  ;;  %v13297_v3 = vrot.slane %v3760_v7, %v12858_v10  ;;  %v13300_v20 = vrot.slane %v1583_v18, %v12858_v10  ;;  %v23890_v7 = vcombine.low %v13006_v23, %v13080_v6 }
 0x161   :  { %v649_v27 = vpop.trf.xlu1  ;;  %v617_v4 = vpop.trf.xlu0  ;;  %v13303_v16 = vrot.slane %v1584_v42, %v12858_v10  ;;  %v23891_v42 = vcombine.high %v13006_v23, %v13080_v6  ;;  %v23894_v30 = vcombine.low %v13010_v32, %v13088_v63 }
 0x162   :  { %v3895_v28 = vcombine.low %v13004_v19, %v649_v27  ;;  %v3896_v22 = vcombine.high %v13004_v19, %v649_v27  ;;  %v1719_v11 = vcombine.low %v12904_v49, %v617_v4  ;;  %v1720_v1 = vcombine.high %v12904_v49, %v617_v4 }
 0x163   :  { %23887 = vst [vmem:[#allocation64_spill] sm:$0xff] %v13303_v16  ;;  %v13337_v18 = vrot.slane %v23890_v7, %v12858_v10  ;;  %v1840_v27 = vcombine.high %v12910_v52, %v13090_v2  ;;  %v13375_v23 = vrot.slane %v23894_v30, %v12858_v10 }
 0x164   :  { %v13306_v47 = vrot.slane %v3895_v28, %v12858_v10  ;;  %v13309_v19 = vrot.slane %v3896_v22, %v12858_v10  ;;  %v13312_v49 = vrot.slane %v1719_v11, %v12858_v10  ;;  %v13315_v4 = vrot.slane %v1720_v1, %v12858_v10 }
 0x165   :  { %v650_v13 = vpop.trf.xlu1  ;;  %v618_v17 = vpop.trf.xlu0  ;;  %v13343_v11 = vrot.slane %v23891_v42, %v12858_v10  ;;  %v13346_v1 = vrot.slane %v1703_v12, %v12858_v10  ;;  %v13349_v28 = vrot.slane %v1704_v25, %v12858_v10  ;;  %v1839_v22 = vcombine.low %v12910_v52, %v13090_v2 }
 0x166   :  { %23888 = vst [vmem:[#allocation65_spill] sm:$0xff] %v13312_v49  ;;  %23889 = vst [vmem:[#allocation66_spill] sm:$0xff] %v13315_v4  ;;  %v23895_v25 = vcombine.high %v13010_v32, %v13088_v63  ;;  %v4031_v52 = vcombine.low %v13008_v24, %v650_v13  ;;  %v13388_v2 = vrot.slane %v1840_v27, %v12858_v10 }
 0x167   :  { %23892 = vst [vmem:[#allocation67_spill] sm:$0xff] %v13346_v1  ;;  %23893 = vst [vmem:[#allocation68_spill] sm:$0xff] %v13349_v28  ;;  %v13385_v6 = vrot.slane %v1839_v22, %v12858_v10  ;;  %v1975_v42 = vcombine.low %v12914_v54, %v13098_v0  ;;  %v4032_v30 = vcombine.high %v13008_v24, %v650_v13 }
 0x168   :  { %v13381_v12 = vrot.slane %v23895_v25, %v12858_v10  ;;  %v13394_v49 = vrot.slane %v4031_v52, %v12858_v10  ;;  %v1855_v63 = vcombine.low %v12908_v51, %v618_v17  ;;  %v1856_v32 = vcombine.high %v12908_v51, %v618_v17 }
 0x169   :  { %v651_v7 = vpop.trf.xlu1  ;;  %v619_v16 = vpop.trf.xlu0  ;;  %v23896_v27 = vcombine.low %v13014_v34, %v13096_v43  ;;  %v1976_v24 = vcombine.high %v12914_v54, %v13098_v0  ;;  %v13408_v13 = vrot.slane %v4032_v30, %v12858_v10 }
 0x16a   :  { %v4167_v22 = vcombine.low %v13012_v33, %v651_v7  ;;  %v4168_v52 = vcombine.high %v13012_v33, %v651_v7  ;;  %v13416_v17 = vrot.slane %v1855_v63, %v12858_v10  ;;  %v1991_v54 = vcombine.low %v12912_v53, %v619_v16 }
 0x16b   :  { %v13403_v25 = vrot.slane %v23896_v27, %v12858_v10  ;;  %23898 = vst [vmem:[#allocation70_spill] sm:$0xff] %v13408_v13  ;;  %v13419_v27 = vrot.slane %v1856_v32, %v12858_v10  ;;  %v1992_v1 = vcombine.high %v12912_v53, %v619_v16  ;;  %v13454_v53 = vrot.slane %v1975_v42, %v12858_v10 }
 0x16c   :  { %v13426_v33 = vrot.slane %v4167_v22, %v12858_v10  ;;  %v13429_v7 = vrot.slane %v4168_v52, %v12858_v10  ;;  %v23901_v22 = vcombine.high %v13014_v34, %v13096_v43  ;;  %v13457_v16 = vrot.slane %v1976_v24, %v12858_v10 }
 0x16d   :  { %v652_v4 = vpop.trf.xlu1  ;;  %v620_v28 = vpop.trf.xlu0  ;;  %23897 = vst [vmem:[#allocation69_spill] sm:$0xff] %v13403_v25  ;;  %23903 = vst [vmem:[#allocation74_spill] sm:$0xff] %v13454_v53  ;;  %v2111_v63 = vcombine.low %v12918_v56, %v13106_v41  ;;  %v2112_v42 = vcombine.high %v12918_v56, %v13106_v41  ;;  %v13472_v32 = vrot.slane %v1991_v54, %v12858_v10 }
 0x16e   :  { %23899 = vst [vmem:[#allocation71_spill] sm:$0xff] %v13426_v33  ;;  %23900 = vst [vmem:[#allocation72_spill] sm:$0xff] %v13429_v7  ;;  %v13443_v0 = vrot.slane %v23901_v22, %v12858_v10  ;;  %v13475_v24 = vrot.slane %v1992_v1, %v12858_v10  ;;  %v23907_v43 = vcombine.low %v13018_v36, %v13104_v61 }
 0x16f   :  { %23904 = vst [vmem:[#allocation75_spill] sm:$0xff] %v13457_v16  ;;  %23905 = vst [vmem:[#allocation76_spill] sm:$0xff] %v13472_v32  ;;  %v23909_v52 = vcombine.high %v13018_v36, %v13104_v61  ;;  %v4303_v56 = vcombine.low %v13016_v35, %v652_v4  ;;  %v4304_v41 = vcombine.high %v13016_v35, %v652_v4  ;;  %v23917_v16 = vld [vmem:[#allocation28_spill] sm:$0xff]  ;;  %v23919_v32 = vld [vmem:[#allocation45_spill] sm:$0xff] }
 0x170   :  { %23902 = vst [vmem:[#allocation73_spill] sm:$0xff] %v13443_v0  ;;  %23906 = vst [vmem:[#allocation77_spill] sm:$0xff] %v13475_v24  ;;  %v13481_v34 = vrot.slane %v23907_v43, %v12858_v10  ;;  %v2127_v35 = vcombine.low %v12916_v55, %v620_v28  ;;  %v2128_v4 = vcombine.high %v12916_v55, %v620_v28  ;;  %v23918_v0 = vld [vmem:[#allocation29_spill] sm:$0xff] }
 0x171   :  { %v653_v30 = vpop.trf.xlu1  ;;  %v13431_v51 = vpop.trf.xlu0  ;;  %v13487_v7 = vrot.slane %v23909_v52, %v12858_v10  ;;  %v13500_v61 = vrot.slane %v4303_v56, %v12858_v10  ;;  %v13503_v36 = vrot.slane %v4304_v41, %v12858_v10  ;;  %v13512_v54 = vrot.slane %v2111_v63, %v12858_v10 }
 0x172   :  { %23908 = vst [vmem:[#allocation78_spill] sm:$0xff] %v13481_v34  ;;  %v13515_v43 = vrot.slane %v2112_v42, %v12858_v10  ;;  %v2247_v56 = vcombine.low %v12922_v58, %v13114_v59  ;;  %v2248_v41 = vcombine.high %v12922_v58, %v13114_v59  ;;  %v13530_v42 = vrot.slane %v2127_v35, %v12858_v10  ;;  %v23924_v35 = vld [vmem:[#allocation11_spill] sm:$0xff]  ;;  %v23927_v34 = vld [vmem:[#allocation9_spill] sm:$0xff] }
 0x173   :  { %23910 = vst [vmem:[#allocation79_spill] sm:$0xff] %v13487_v7  ;;  %23911 = vst [vmem:[#allocation80_spill] sm:$0xff] %v13500_v61  ;;  %v13533_v24 = vrot.slane %v2128_v4, %v12858_v10  ;;  %v4439_v58 = vcombine.low %v23917_v16, %v653_v30  ;;  %v4440_v59 = vcombine.high %v23917_v16, %v653_v30 }
 0x174   :  { %23912 = vst [vmem:[#allocation81_spill] sm:$0xff] %v13503_v36  ;;  %23913 = vst [vmem:[#allocation82_spill] sm:$0xff] %v13512_v54  ;;  %v23920_v55 = vcombine.low %v23918_v0, %v23919_v32  ;;  %v23922_v63 = vcombine.high %v23918_v0, %v23919_v32  ;;  %v2383_v4 = vcombine.low %v23924_v35, %v13122_v57 }
 0x175   :  { %v13463_v22 = vpop.trf.xlu1  ;;  %v13465_v13 = vpop.trf.xlu0  ;;  %23914 = vst [vmem:[#allocation83_spill] sm:$0xff] %v13515_v43  ;;  %23915 = vst [vmem:[#allocation84_spill] sm:$0xff] %v13530_v42  ;;  %v13564_v32 = vrot.slane %v4439_v58, %v12858_v10  ;;  %v2263_v53 = vcombine.low %v23927_v34, %v13431_v51  ;;  %v2264_v30 = vcombine.high %v23927_v34, %v13431_v51 }
 0x176   :  { %23916 = vst [vmem:[#allocation85_spill] sm:$0xff] %v13533_v24  ;;  %v13541_v61 = vrot.slane %v23920_v55, %v12858_v10  ;;  %v13547_v28 = vrot.slane %v23922_v63, %v12858_v10  ;;  %v13567_v63 = vrot.slane %v4440_v59, %v12858_v10  ;;  %v13574_v16 = vrot.slane %v2247_v56, %v12858_v10  ;;  %v23933_v24 = vld [vmem:[#allocation31_spill] sm:$0xff] }
 0x177   :  { %23925 = vst [vmem:[#allocation45_spill] sm:$0xff] %v13564_v32  ;;  %v13577_v55 = vrot.slane %v2248_v41, %v12858_v10  ;;  %v2384_v0 = vcombine.high %v23924_v35, %v13122_v57  ;;  %v13594_v41 = vrot.slane %v2263_v53, %v12858_v10  ;;  %v13597_v57 = vrot.slane %v2264_v30, %v12858_v10  ;;  %v23932_v35 = vld [vmem:[#allocation30_spill] sm:$0xff] }
 0x178   :  { %23921 = vst [vmem:[#allocation28_spill] sm:$0xff] %v13541_v61  ;;  %23923 = vst [vmem:[#allocation29_spill] sm:$0xff] %v13547_v28  ;;  %v4575_v58 = vcombine.low %v23932_v35, %v13463_v22  ;;  %v4576_v59 = vcombine.high %v23932_v35, %v13463_v22  ;;  %v23934_v32 = vld [vmem:[#allocation46_spill] sm:$0xff]  ;;  %v13616_v30 = vrot.slane %v2383_v4, %v12858_v10 }
 0x179   :  { %v13507_v52 = vpop.trf.xlu1  ;;  %v13509_v1 = vpop.trf.xlu0  ;;  %23926 = vst [vmem:[#allocation11_spill] sm:$0xff] %v13567_v63  ;;  %23928 = vst [vmem:[#allocation9_spill] sm:$0xff] %v13574_v16  ;;  %v23935_v51 = vcombine.low %v23933_v24, %v23934_v32  ;;  %v23937_v53 = vcombine.high %v23933_v24, %v23934_v32  ;;  %v23940_v61 = vld [vmem:[#allocation10_spill] sm:$0xff]  ;;  %v23945_v24 = vld [vmem:[#allocation13_spill] sm:$0xff] }
 0x17a   :  { %23929 = vst [vmem:[#allocation86_spill] sm:$0xff] %v13577_v55  ;;  %23930 = vst [vmem:[#allocation87_spill] sm:$0xff] %v13594_v41  ;;  %v2399_v43 = vcombine.low %v23940_v61, %v13465_v13  ;;  %v13629_v32 = vrot.slane %v4575_v58, %v12858_v10  ;;  %v13632_v4 = vrot.slane %v4576_v59, %v12858_v10 }
 0x17b   :  { %23931 = vst [vmem:[#allocation88_spill] sm:$0xff] %v13597_v57  ;;  %v13607_v63 = vrot.slane %v23935_v51, %v12858_v10  ;;  %v13613_v28 = vrot.slane %v23937_v53, %v12858_v10  ;;  %23939 = vst [vmem:[#allocation46_spill] sm:$0xff] %v13616_v30  ;;  %v2400_v53 = vcombine.high %v23940_v61, %v13465_v13  ;;  %v23946_v57 = vld [vmem:[#allocation32_spill] sm:$0xff] }
 0x17c   :  { %23941 = vst [vmem:[#allocation10_spill] sm:$0xff] %v13629_v32  ;;  %23942 = vst [vmem:[#allocation89_spill] sm:$0xff] %v13632_v4  ;;  %v13637_v22 = vrot.slane %v2399_v43, %v12858_v10  ;;  %v13644_v51 = vrot.slane %v2384_v0, %v12858_v10  ;;  %v2519_v58 = vcombine.low %v23945_v24, %v13130_v37  ;;  %v23948_v43 = vld [vmem:[#allocation33_spill] sm:$0xff]  ;;  %v23949_v32 = vld [vmem:[#allocation47_spill] sm:$0xff] }
 0x17d   :  { %v13551_v36 = vpop.trf.xlu1  ;;  %v13553_v7 = vpop.trf.xlu0  ;;  %23936 = vst [vmem:[#allocation30_spill] sm:$0xff] %v13607_v63  ;;  %23938 = vst [vmem:[#allocation31_spill] sm:$0xff] %v13613_v28  ;;  %v2520_v59 = vcombine.high %v23945_v24, %v13130_v37  ;;  %v4711_v55 = vcombine.low %v23946_v57, %v13507_v52  ;;  %v13661_v41 = vrot.slane %v2400_v53, %v12858_v10  ;;  %v23957_v30 = vld [vmem:[#allocation12_spill] sm:$0xff] }
 0x17e   :  { %23943 = vst [vmem:[#allocation90_spill] sm:$0xff] %v13637_v22  ;;  %23944 = vst [vmem:[#allocation91_spill] sm:$0xff] %v13644_v51  ;;  %v4712_v13 = vcombine.high %v23946_v57, %v13507_v52  ;;  %v23950_v63 = vcombine.low %v23948_v43, %v23949_v32  ;;  %v23952_v53 = vcombine.high %v23948_v43, %v23949_v32  ;;  %v23959_v43 = vld [vmem:[#allocation34_spill] sm:$0xff]  ;;  %v23965_v51 = vld [vmem:[#allocation48_spill] sm:$0xff] }
 0x17f   :  { %23947 = vst [vmem:[#allocation13_spill] sm:$0xff] %v13661_v41  ;;  %v12701_v24 = vcombine.low %v13221_v46, %v13221_v46  ;;  %v221_v52 = vcombine.low %v13224_v21, %v13221_v46  ;;  %v13690_v57 = vrot.slane %v2519_v58, %v12858_v10  ;;  %v2535_v28 = vcombine.low %v23957_v30, %v13509_v1 }
 0x180   :  { %v13673_v61 = vrot.slane %v23950_v63, %v12858_v10  ;;  %v13679_v0 = vrot.slane %v23952_v53, %v12858_v10  ;;  %v13693_v63 = vrot.slane %v2520_v59, %v12858_v10  ;;  %v13700_v53 = vrot.slane %v4711_v55, %v12858_v10  ;;  %v23958_v59 = vld [vmem:[#allocation15_spill] sm:$0xff] }
 0x181   :  { %v13589_v34 = vpop.trf.xlu1  ;;  %v13591_v56 = vpop.trf.xlu0  ;;  %v13703_v22 = vrot.slane %v4712_v13, %v12858_v10  ;;  %v2536_v58 = vcombine.high %v23957_v30, %v13509_v1  ;;  %v2655_v16 = vcombine.low %v23958_v59, %v13138_v38  ;;  %v2656_v32 = vcombine.high %v23958_v59, %v13138_v38  ;;  %v23964_v1 = vld [vmem:[#allocation35_spill] sm:$0xff] }
 0x182   :  { %23951 = vst [vmem:[#allocation32_spill] sm:$0xff] %v13673_v61  ;;  %23953 = vst [vmem:[#allocation33_spill] sm:$0xff] %v13679_v0  ;;  %v4847_v41 = vcombine.low %v23959_v43, %v13551_v36  ;;  %v4848_v55 = vcombine.high %v23959_v43, %v13551_v36  ;;  %v13730_v59 = vrot.slane %v2535_v28, %v12858_v10 }
 0x183   :  { %23954 = vst [vmem:[#allocation47_spill] sm:$0xff] %v13693_v63  ;;  %23955 = vst [vmem:[#allocation92_spill] sm:$0xff] %v13700_v53  ;;  %v13733_v36 = vrot.slane %v2536_v58, %v12858_v10  ;;  %v23966_v30 = vcombine.low %v23964_v1, %v23965_v51  ;;  %v23968_v28 = vcombine.high %v23964_v1, %v23965_v51  ;;  %v23970_v58 = vld [vmem:[#allocation17_spill] sm:$0xff] }
 0x184   :  { %23956 = vst [vmem:[#allocation93_spill] sm:$0xff] %v13703_v22  ;;  %23960 = vst [vmem:[#allocation12_spill] sm:$0xff] %v13730_v59  ;;  %v13736_v43 = vrot.slane %v4847_v41, %v12858_v10  ;;  %v13739_v13 = vrot.slane %v4848_v55, %v12858_v10  ;;  %v2791_v53 = vcombine.low %v23970_v58, %v13146_v40  ;;  %v23972_v1 = vld [vmem:[#allocation37_spill] sm:$0xff] }
 0x185   :  { %v13639_v42 = vpop.trf.xlu1  ;;  %v13641_v35 = vpop.trf.xlu0  ;;  %23961 = vst [vmem:[#allocation15_spill] sm:$0xff] %v13733_v36  ;;  %v13745_v22 = vrot.slane %v23966_v30, %v12858_v10  ;;  %v13751_v0 = vrot.slane %v23968_v28, %v12858_v10  ;;  %v13776_v61 = vrot.slane %v2655_v16, %v12858_v10  ;;  %v13779_v30 = vrot.slane %v2656_v32, %v12858_v10  ;;  %v23973_v51 = vld [vmem:[#allocation49_spill] sm:$0xff] }
 0x186   :  { %23962 = vst [vmem:[#allocation34_spill] sm:$0xff] %v13736_v43  ;;  %23963 = vst [vmem:[#allocation94_spill] sm:$0xff] %v13739_v13  ;;  %v23974_v43 = vcombine.low %v23972_v1, %v23973_v51  ;;  %v23976_v41 = vcombine.high %v23972_v1, %v23973_v51  ;;  %v2792_v16 = vcombine.high %v23970_v58, %v13146_v40 }
 0x187   :  { %23967 = vst [vmem:[#allocation35_spill] sm:$0xff] %v13745_v22  ;;  %23969 = vst [vmem:[#allocation48_spill] sm:$0xff] %v13751_v0 }
 0x188   :  { %23971 = vst [vmem:[#allocation17_spill] sm:$0xff] %v13779_v30  ;;  %v13785_v28 = vrot.slane %v23974_v43, %v12858_v10  ;;  %v13791_v13 = vrot.slane %v23976_v41, %v12858_v10  ;;  %v23979_v43 = vld [vmem:[#allocation36_spill] sm:$0xff] }
 0x189   :  { %v13681_v4 = vpop.trf.xlu1  ;;  %v13683_v37 = vpop.trf.xlu0  ;;  %v4983_v22 = vcombine.low %v23979_v43, %v13589_v34  ;;  %v4984_v51 = vcombine.high %v23979_v43, %v13589_v34  ;;  %v23980_v41 = vld [vmem:[#allocation16_spill] sm:$0xff] }
 0x18a   :  { %23975 = vst [vmem:[#allocation37_spill] sm:$0xff] %v13785_v28  ;;  %23977 = vst [vmem:[#allocation49_spill] sm:$0xff] %v13791_v13  ;;  %v2807_v1 = vcombine.low %v23980_v41, %v13591_v56  ;;  %v2808_v40 = vcombine.high %v23980_v41, %v13591_v56  ;;  %v24001_v13 = vld [vmem:[#allocation18_spill] sm:$0xff] }
 0x18b   :  { %v13825_v43 = vrot.slane %v4983_v22, %v12858_v10  ;;  %v13828_v56 = vrot.slane %v4984_v51, %v12858_v10  ;;  %v13863_v51 = vrot.slane %v2792_v16, %v12858_v10  ;;  %v23999_v16 = vld [vmem:[#allocation53_spill] sm:$0xff] }
 0x18c   :  { %v13831_v41 = vrot.slane %v2807_v1, %v12858_v10  ;;  %v23992_v1 = vld [vmem:[#allocation50_spill] sm:$0xff] }
 0x18d   :  { %v13725_v54 = vpop.trf.xlu1  ;;  %v13727_v38 = vpop.trf.xlu0  ;;  %23983 = vst [vmem:[#allocation36_spill] sm:$0xff] %v13825_v43  ;;  %23984 = vst [vmem:[#allocation16_spill] sm:$0xff] %v13828_v56  ;;  %v23996_v43 = vld [vmem:[#allocation19_spill] sm:$0xff] }
 0x18e   :  { %23991 = vst [vmem:[#allocation100_spill] sm:$0xff] %v13863_v51 }
 0x191   :  { %v13771_v33 = vpop.trf.xlu1  ;;  %v13773_v55 = vpop.trf.xlu0  ;;  %823 = vxpose.xlu1.b32.start.end [1/1] (short) %v12701_v24, 128  ;;  %791 = vxpose.xlu0.b32.start.end [1/1] (short) %v221_v52, 128  ;;  %v13796_v24 = vrot.slane %v2791_v53, %v12858_v10  ;;  %v23978_v52 = vld [vmem:[#allocation14_spill] sm:$0xff] }
 0x192   :  { %v2671_v32 = vcombine.low %v23978_v52, %v13553_v7  ;;  %v2672_v0 = vcombine.high %v23978_v52, %v13553_v7  ;;  %v23981_v53 = vld [vmem:[#allocation38_spill] sm:$0xff] }
 0x193   :  { %v5119_v58 = vcombine.low %v23981_v53, %v13639_v42  ;;  %v5120_v36 = vcombine.high %v23981_v53, %v13639_v42  ;;  %23985 = vst [vmem:[#allocation38_spill] sm:$0xff] %v13831_v41  ;;  %v13834_v42 = vrot.slane %v2808_v40, %v12858_v10  ;;  %v23993_v40 = vcombine.low %v13042_v15, %v23992_v1 }
 0x194   :  { %v13819_v52 = vrot.slane %v2671_v32, %v12858_v10  ;;  %v13822_v34 = vrot.slane %v2672_v0, %v12858_v10  ;;  %v23997_v0 = vcombine.high %v13042_v15, %v23992_v1  ;;  %v24004_v1 = vld [vmem:[#allocation52_spill] sm:$0xff] }
 0x195   :  { %v13814_v63 = vpop.trf.xlu1  ;;  %v13816_v7 = vpop.trf.xlu0  ;;  %23986 = vst [vmem:[#allocation95_spill] sm:$0xff] %v13834_v42  ;;  %v13837_v53 = vrot.slane %v5119_v58, %v12858_v10  ;;  %v13840_v32 = vrot.slane %v5120_v36, %v12858_v10  ;;  %v23995_v58 = vld [vmem:[#allocation51_spill] sm:$0xff] }
 0x196   :  { %23982 = vst [vmem:[#allocation14_spill] sm:$0xff] %v13822_v34  ;;  %v13869_v34 = vrot.slane %v23993_v40, %v12858_v10  ;;  %v2927_v28 = vcombine.low %v23996_v43, %v23995_v58  ;;  %v2928_v36 = vcombine.high %v23996_v43, %v23995_v58  ;;  %v2943_v40 = vcombine.low %v24001_v13, %v13641_v35 }
 0x197   :  { %23987 = vst [vmem:[#allocation96_spill] sm:$0xff] %v13837_v53  ;;  %23988 = vst [vmem:[#allocation97_spill] sm:$0xff] %v13840_v32  ;;  %v24005_v58 = vcombine.low %v13046_v26, %v24004_v1  ;;  %v24009_v53 = vld [vmem:[#allocation20_spill] sm:$0xff] }
 0x198   :  { %23994 = vst [vmem:[#allocation50_spill] sm:$0xff] %v13869_v34  ;;  %v13906_v43 = vrot.slane %v2927_v28, %v12858_v10  ;;  %v13909_v15 = vrot.slane %v2928_v36, %v12858_v10  ;;  %v2944_v36 = vcombine.high %v24001_v13, %v13641_v35  ;;  %v3080_v13 = vcombine.high %v24009_v53, %v13683_v37 }
 0x199   :  { %v13858_v59 = vpop.trf.xlu1  ;;  %v13860_v22 = vpop.trf.xlu0  ;;  %v13917_v32 = vrot.slane %v24005_v58, %v12858_v10 }
 0x19a   :  { %23989 = vst [vmem:[#allocation98_spill] sm:$0xff] %v13858_v59  ;;  %23990 = vst [vmem:[#allocation99_spill] sm:$0xff] %v13860_v22  ;;  %v13879_v22 = vrot.slane %v23997_v0, %v12858_v10  ;;  %v24000_v59 = vld [vmem:[#allocation21_spill] sm:$0xff]  ;;  %v13944_v35 = vrot.slane %v2944_v36, %v12858_v10 }
 0x19b   :  { %v3063_v56 = vcombine.low %v24000_v59, %v23999_v16  ;;  %v3064_v0 = vcombine.high %v24000_v59, %v23999_v16  ;;  %24006 = vst [vmem:[#allocation21_spill] sm:$0xff] %v13917_v32  ;;  %v13931_v59 = vrot.slane %v2943_v40, %v12858_v10  ;;  %v24008_v16 = vld [vmem:[#allocation39_spill] sm:$0xff] }
 0x19c   :  { %23998 = vst [vmem:[#allocation51_spill] sm:$0xff] %v13879_v22  ;;  %v5255_v22 = vcombine.low %v24008_v16, %v13681_v4  ;;  %v5256_v58 = vcombine.high %v24008_v16, %v13681_v4 }
 0x19d   :  { %v13901_v41 = vpop.trf.xlu1  ;;  %v13903_v30 = vpop.trf.xlu0  ;;  %v13926_v28 = vrot.slane %v3063_v56, %v12858_v10 }
 0x19e   :  { %24002 = vst [vmem:[#allocation19_spill] sm:$0xff] %v13901_v41  ;;  %24003 = vst [vmem:[#allocation53_spill] sm:$0xff] %v13903_v30  ;;  %v24007_v41 = vcombine.high %v13046_v26, %v24004_v1  ;;  %v3079_v26 = vcombine.low %v24009_v53, %v13683_v37  ;;  %v24011_v1 = vld [vmem:[#allocation23_spill] sm:$0xff]  ;;  %v13957_v51 = vrot.slane %v5255_v22, %v12858_v10 }
 0x19f   :  { %v13981_v37 = vrot.slane %v3064_v0, %v12858_v10  ;;  %v24021_v22 = vcombine.low %v13050_v14, %v13168_v39 }
 0x1a0   :  { %v13923_v30 = vrot.slane %v24007_v41, %v12858_v10  ;;  %v24010_v41 = vld [vmem:[#allocation54_spill] sm:$0xff]  ;;  %24014 = vst [vmem:[#allocation39_spill] sm:$0xff] %v13957_v51  ;;  %v13967_v53 = vrot.slane %v3079_v26, %v12858_v10 }
 0x1a1   :  { %v3199_v34 = vcombine.low %v24011_v1, %v24010_v41  ;;  %v3200_v56 = vcombine.high %v24011_v1, %v24010_v41  ;;  %v13948_v40 = vpop.trf.xlu1  ;;  %v13950_v42 = vpop.trf.xlu0  ;;  %v13960_v41 = vrot.slane %v5256_v58, %v12858_v10  ;;  %v13970_v1 = vrot.slane %v3080_v13, %v12858_v10  ;;  %v24017_v58 = vld [vmem:[#allocation40_spill] sm:$0xff]  ;;  %24018 = vst [vmem:[#allocation23_spill] sm:$0xff] %v13981_v37 }
 0x1a2   :  { %24012 = vst [vmem:[#allocation18_spill] sm:$0xff] %v13948_v40  ;;  %24013 = vst [vmem:[#allocation52_spill] sm:$0xff] %v13950_v42  ;;  %v5391_v4 = vcombine.low %v24017_v58, %v13725_v54  ;;  %v5392_v36 = vcombine.high %v24017_v58, %v13725_v54  ;;  %v13995_v40 = vrot.slane %v24021_v22, %v12858_v10 }
 0x1a3   :  { %24015 = vst [vmem:[#allocation20_spill] sm:$0xff] %v13967_v53  ;;  %24016 = vst [vmem:[#allocation54_spill] sm:$0xff] %v13970_v1  ;;  %v24022_v54 = vcombine.high %v13050_v14, %v13168_v39  ;;  %v14008_v26 = vrot.slane %v3199_v34, %v12858_v10  ;;  %v24024_v39 = vld [vmem:[#allocation42_spill] sm:$0xff] }
 0x1a4   :  { %v5512_v58 = vcombine.high %v24024_v39, %v13178_v44  ;;  %v14022_v13 = vrot.slane %v5391_v4, %v12858_v10  ;;  %v14025_v34 = vrot.slane %v5392_v36, %v12858_v10  ;;  %v24027_v14 = vld [vmem:[#allocation22_spill] sm:$0xff] }
 0x1a5   :  { %v13987_v42 = vpop.trf.xlu1  ;;  %v13989_v16 = vpop.trf.xlu0  ;;  %v14001_v0 = vrot.slane %v24022_v54, %v12858_v10  ;;  %v5511_v54 = vcombine.low %v24024_v39, %v13178_v44  ;;  %v3215_v1 = vcombine.low %v24027_v14, %v13727_v38  ;;  %v3216_v37 = vcombine.high %v24027_v14, %v13727_v38  ;;  %v24032_v14 = vld [vmem:[#allocation41_spill] sm:$0xff] }
 0x1a6   :  { %24019 = vst [vmem:[#allocation40_spill] sm:$0xff] %v13987_v42  ;;  %24020 = vst [vmem:[#allocation101_spill] sm:$0xff] %v13989_v16  ;;  %v14011_v16 = vrot.slane %v3200_v56, %v12858_v10  ;;  %v24026_v56 = vld [vmem:[#allocation25_spill] sm:$0xff]  ;;  %v5528_v4 = vcombine.high %v24032_v14, %v13771_v33  ;;  %v14061_v39 = vrot.slane %v5512_v58, %v12858_v10 }
 0x1a7   :  { %24025 = vst [vmem:[#allocation42_spill] sm:$0xff] %v14025_v34  ;;  %v3335_v42 = vcombine.low %v24026_v56, %v13180_v60  ;;  %v3336_v22 = vcombine.high %v24026_v56, %v13180_v60  ;;  %v14048_v56 = vrot.slane %v3215_v1, %v12858_v10  ;;  %v14051_v38 = vrot.slane %v3216_v37, %v12858_v10 }
 0x1a8   :  { %24023 = vst [vmem:[#allocation102_spill] sm:$0xff] %v14011_v16  ;;  %v14058_v36 = vrot.slane %v5511_v54, %v12858_v10  ;;  %24034 = vst [vmem:[#allocation105_spill] sm:$0xff] %v14061_v39  ;;  %v14079_v58 = vrot.slane %v5528_v4, %v12858_v10  ;;  %v24053_v39 = vld [vmem:[#allocation26_spill] sm:$0xff] }
 0x1a9   :  { %v14035_v53 = vpop.trf.xlu1  ;;  %v14037_v44 = vpop.trf.xlu0  ;;  %24030 = vst [vmem:[#allocation103_spill] sm:$0xff] %v14048_v56  ;;  %24031 = vst [vmem:[#allocation104_spill] sm:$0xff] %v14051_v38  ;;  %v14086_v37 = vrot.slane %v3335_v42, %v12858_v10 }
 0x1aa   :  { %24028 = vst [vmem:[#allocation25_spill] sm:$0xff] %v14035_v53  ;;  %24029 = vst [vmem:[#allocation22_spill] sm:$0xff] %v14037_v44  ;;  %v5527_v44 = vcombine.low %v24032_v14, %v13771_v33  ;;  %v24039_v14 = vld [vmem:[#allocation24_spill] sm:$0xff]  ;;  %v14089_v53 = vrot.slane %v3336_v22, %v12858_v10 }
 0x1ab   :  { %24033 = vst [vmem:[#allocation41_spill] sm:$0xff] %v14058_v36  ;;  %24038 = vst [vmem:[#allocation109_spill] sm:$0xff] %v14079_v58  ;;  %v3351_v60 = vcombine.low %v24039_v14, %v13773_v55  ;;  %v3352_v1 = vcombine.high %v24039_v14, %v13773_v55  ;;  %v24049_v55 = vld [vmem:[#allocation44_spill] sm:$0xff]  ;;  %v3487_v36 = vcombine.low %v24053_v39, %v13816_v7 }
 0x1ac   :  { %v14076_v54 = vrot.slane %v5527_v44, %v12858_v10  ;;  %24040 = vst [vmem:[#allocation24_spill] sm:$0xff] %v14086_v37  ;;  %24041 = vst [vmem:[#allocation110_spill] sm:$0xff] %v14089_v53  ;;  %v35_v37 = vld [vmem:[#allocation2 + $0x60] sm:$0xff] }
 0x1ad   :  { %v14071_v34 = vpop.trf.xlu1  ;;  %v14073_v33 = vpop.trf.xlu0  ;;  %v14104_v22 = vrot.slane %v3351_v60, %v12858_v10  ;;  %v14107_v14 = vrot.slane %v3352_v1, %v12858_v10 }
 0x1ae   :  { %24035 = vst [vmem:[#allocation106_spill] sm:$0xff] %v14071_v34  ;;  %24036 = vst [vmem:[#allocation107_spill] sm:$0xff] %v14073_v33  ;;  %v24042_v34 = vld [vmem:[#allocation56_spill] sm:$0xff]  ;;  %v24043_v33 = vld [vmem:[#allocation27_spill] sm:$0xff] }
 0x1af   :  { %24037 = vst [vmem:[#allocation108_spill] sm:$0xff] %v14076_v54  ;;  %v3471_v38 = vcombine.low %v24043_v33, %v24042_v34  ;;  %v3472_v44 = vcombine.high %v24043_v33, %v24042_v34  ;;  %24044 = vst [vmem:[#allocation56_spill] sm:$0xff] %v14104_v22  ;;  %v24046_v34 = vld [vmem:[#allocation43_spill] sm:$0xff]  ;;  %v33_v22 = vld [vmem:[#allocation2 + $0x50] sm:$0xff] }
 0x1b0   :  { %24045 = vst [vmem:[#allocation27_spill] sm:$0xff] %v14107_v14  ;;  %v5663_v33 = vcombine.low %v24046_v34, %v13814_v63  ;;  %v5664_v4 = vcombine.high %v24046_v34, %v13814_v63  ;;  %v24050_v54 = vld [vmem:[#allocation55_spill] sm:$0xff]  ;;  %v3488_v63 = vcombine.high %v24053_v39, %v13816_v7  ;;  %v14148_v7 = vrot.slane %v3487_v36, %v12858_v10 }
 0x1b1   :  { %v14113_v56 = vpop.trf.xlu1  ;;  %v14115_v16 = vpop.trf.xlu0  ;;  %v24051_v42 = vcombine.low %v24049_v55, %v24050_v54  ;;  %v24052_v60 = vcombine.high %v24049_v55, %v24050_v54 }
 0x1b2   :  { %24047 = vst [vmem:[#allocation43_spill] sm:$0xff] %v14113_v56  ;;  %24048 = vst [vmem:[#allocation111_spill] sm:$0xff] %v14115_v16  ;;  %v14142_v55 = vrot.slane %v5663_v33, %v12858_v10  ;;  %v14151_v39 = vrot.slane %v3488_v63, %v12858_v10  ;;  %v14154_v16 = vrot.slane %v3471_v38, %v12858_v10 }
 0x1b3   :  { %v14121_v58 = vrot.slane %v24051_v42, %v12858_v10  ;;  %v14127_v1 = vrot.slane %v24052_v60, %v12858_v10  ;;  %v14145_v60 = vrot.slane %v5664_v4, %v12858_v10  ;;  %24054 = vst [vmem:[#allocation44_spill] sm:$0xff] %v14148_v7  ;;  %v14157_v42 = vrot.slane %v3472_v44, %v12858_v10 }
 0x1b4   :  { %24055 = vst [vmem:[#allocation55_spill] sm:$0xff] %v14151_v39  ;;  %24056 = vst [vmem:[#allocation26_spill] sm:$0xff] %v14154_v16  ;;  %v37_v39 = vld [vmem:[#allocation2 + $0x70] sm:$0xff] }
 0x1b5   :  { %24057 = vst [vmem:[#allocation112_spill] sm:$0xff] %v14157_v42  ;;  %v14159_v34 = vpop.trf.xlu1  ;;  %v14161_v54 = vpop.trf.xlu0 }
 0x1b6   :  { %24058 = vst [vmem:[#allocation113_spill] sm:$0xff] %v14159_v34  ;;  %24059 = vst [vmem:[#allocation114_spill] sm:$0xff] %v14161_v54 }
 0x1b9   :  { %v14179_v34 = vpop.trf.xlu1  ;;  %v14181_v36 = vpop.trf.xlu0 }
 0x1ba   :  { %24060 = vst [vmem:[#allocation115_spill] sm:$0xff] %v14179_v34  ;;  %24061 = vst [vmem:[#allocation116_spill] sm:$0xff] %v14181_v36  ;;  %v31_v36 = vld [vmem:[#allocation2 + $0x40] sm:$0xff] }
 0x1bd   :  { %v14183_v33 = vpop.trf.xlu1  ;;  %v14185_v56 = vpop.trf.xlu0 }
 0x1be   :  { %24062 = vst [vmem:[#allocation117_spill] sm:$0xff] %v14183_v33  ;;  %24063 = vst [vmem:[#allocation118_spill] sm:$0xff] %v14185_v56  ;;  %v12702_v33 = vcombine.high %v13221_v46, %v13221_v46 }
 0x1c1   :  { %v14187_v38 = vpop.trf.xlu1  ;;  %v14189_v44 = vpop.trf.xlu0 }
 0x1c2   :  { %24064 = vst [vmem:[#allocation119_spill] sm:$0xff] %v14187_v38  ;;  %24065 = vst [vmem:[#allocation120_spill] sm:$0xff] %v14189_v44  ;;  %v36_v44 = vld [vmem:[#allocation2 + $0x68] sm:$0xff] }
 0x1c5   :  { %v14191_v14 = vpop.trf.xlu1  ;;  %v14193_v63 = vpop.trf.xlu0 }
 0x1c6   :  { %24066 = vst [vmem:[#allocation121_spill] sm:$0xff] %v14191_v14  ;;  %24067 = vst [vmem:[#allocation122_spill] sm:$0xff] %v14193_v63  ;;  %v24074_v14 = vcombine.high %v13224_v21, %v13221_v46  ;;  %v12687_v46 = vcombine.low %v31_v36, %v35_v37  ;;  %v12689_v21 = vcombine.low %v33_v22, %v37_v39 }
 0x1c8   :  { %v14231_v16 = vrot.slane %v12687_v46, %v12858_v10 }
 0x1c9   :  { %v14195_v54 = vpop.trf.xlu1  ;;  %v14197_v53 = vpop.trf.xlu0 }
 0x1ca   :  { %24068 = vst [vmem:[#allocation123_spill] sm:$0xff] %v14195_v54  ;;  %24069 = vst [vmem:[#allocation124_spill] sm:$0xff] %v14197_v53  ;;  %v32_v53 = vld [vmem:[#allocation2 + $0x48] sm:$0xff] }
 0x1cd   :  { %v14199_v4 = vpop.trf.xlu1  ;;  %v14201_v34 = vpop.trf.xlu0 }
 0x1ce   :  { %24070 = vst [vmem:[#allocation125_spill] sm:$0xff] %v14199_v4  ;;  %24071 = vst [vmem:[#allocation126_spill] sm:$0xff] %v14201_v34  ;;  %v34_v4 = vld [vmem:[#allocation2 + $0x58] sm:$0xff] }
 0x1cf   :  { %v38_v34 = vld [vmem:[#allocation2 + $0x78] sm:$0xff] }
 0x1d0   :  { %v12690_v42 = vcombine.low %v34_v4, %v38_v34 }
 0x1d1   :  { %v14205_v56 = vpop.trf.xlu1  ;;  %v14207_v38 = vpop.trf.xlu0  ;;  %887 = vxpose.xlu1.b32.start.end [1/1] (short) %v12702_v33, 128  ;;  %855 = vxpose.xlu0.b32.start.end [1/1] (short) %v24074_v14, 128  ;;  %v12688_v33 = vcombine.low %v32_v53, %v36_v44 }
 0x1d2   :  { %24072 = vst [vmem:[#allocation127_spill] sm:$0xff] %v14205_v56  ;;  %24073 = vst [vmem:[#allocation128_spill] sm:$0xff] %v14207_v38  ;;  %v14228_v7 = vrot.slane %v12690_v42, %v12858_v10 }
 0x1d5   :  { %v14212_v63 = vpop.trf.xlu1  ;;  %v14214_v54 = vpop.trf.xlu0 }
 0x1d6   :  { %24075 = vst [vmem:[#allocation129_spill] sm:$0xff] %v14212_v63  ;;  %24076 = vst [vmem:[#allocation130_spill] sm:$0xff] %v14214_v54  ;;  %v14225_v54 = vrot.slane %v12688_v33, %v12858_v10 }
 0x1d8   :  { %v271_v22 = vcombine.low %v14225_v54, %v14228_v7 }
 0x1d9   :  { %v14216_v56 = vpop.trf.xlu1  ;;  %v14218_v38 = vpop.trf.xlu0 }
 0x1da   :  { %24077 = vst [vmem:[#allocation131_spill] sm:$0xff] %v14216_v56  ;;  %24078 = vst [vmem:[#allocation132_spill] sm:$0xff] %v14218_v38  ;;  %v14234_v56 = vrot.slane %v12689_v21, %v12858_v10  ;;  %v14249_v4 = vrot.slane %v271_v22, %v12890_v29 }
 0x1dc   :  { %v255_v34 = vcombine.low %v14231_v16, %v14234_v56 }
 0x1dd   :  { %v14220_v14 = vpop.trf.xlu1  ;;  %v14222_v63 = vpop.trf.xlu0 }
 0x1de   :  { %24079 = vst [vmem:[#allocation133_spill] sm:$0xff] %v14220_v14  ;;  %24080 = vst [vmem:[#allocation134_spill] sm:$0xff] %v14222_v63  ;;  %v14252_v36 = vrot.slane %v255_v34, %v12890_v29  ;;  %v24117_v14 = vld [vmem:[#allocation60_spill] sm:$0xff] }
 0x1e0   :  { %24085 = vst [vmem:[#allocation139_spill] sm:$0xff] %v14252_v36 }
 0x1e1   :  { %v14236_v53 = vpop.trf.xlu1  ;;  %v14238_v37 = vpop.trf.xlu0 }
 0x1e2   :  { %24081 = vst [vmem:[#allocation135_spill] sm:$0xff] %v14236_v53  ;;  %24082 = vst [vmem:[#allocation136_spill] sm:$0xff] %v14238_v37 }
 0x1e5   :  { %v14244_v39 = vpop.trf.xlu1  ;;  %v14246_v42 = vpop.trf.xlu0 }
 0x1e6   :  { %24083 = vst [vmem:[#allocation137_spill] sm:$0xff] %v14244_v39  ;;  %24084 = vst [vmem:[#allocation138_spill] sm:$0xff] %v14246_v42 }
 0x1e9   :  { %v14256_v33 = vpop.trf.xlu1  ;;  %v14258_v46 = vpop.trf.xlu0 }
 0x1ea   :  { %24086 = vst [vmem:[#allocation140_spill] sm:$0xff] %v14256_v33  ;;  %24087 = vst [vmem:[#allocation141_spill] sm:$0xff] %v14258_v46 }
 0x1ed   :  { %v14260_v21 = vpop.trf.xlu1  ;;  %v14262_v37 = vpop.trf.xlu0 }
 0x1ee   :  { %24088 = vst [vmem:[#allocation142_spill] sm:$0xff] %v14260_v21  ;;  %24089 = vst [vmem:[#allocation143_spill] sm:$0xff] %v14262_v37 }
 0x1f1   :  { %v14264_v39 = vpop.trf.xlu1  ;;  %v14266_v42 = vpop.trf.xlu0 }
 0x1f2   :  { %24090 = vst [vmem:[#allocation144_spill] sm:$0xff] %v14264_v39  ;;  %24091 = vst [vmem:[#allocation145_spill] sm:$0xff] %v14266_v42 }
 0x1f5   :  { %v14268_v22 = vpop.trf.xlu1  ;;  %v14270_v53 = vpop.trf.xlu0 }
 0x1f6   :  { %24092 = vst [vmem:[#allocation146_spill] sm:$0xff] %v14268_v22  ;;  %24093 = vst [vmem:[#allocation147_spill] sm:$0xff] %v14270_v53 }
 0x1f9   :  { %v14272_v34 = vpop.trf.xlu1  ;;  %v14274_v63 = vpop.trf.xlu0 }
 0x1fa   :  { %24094 = vst [vmem:[#allocation148_spill] sm:$0xff] %v14272_v34  ;;  %24095 = vst [vmem:[#allocation149_spill] sm:$0xff] %v14274_v63 }
 0x1fd   :  { %v14276_v44 = vpop.trf.xlu1  ;;  %v14278_v33 = vpop.trf.xlu0 }
 0x1fe   :  { %24096 = vst [vmem:[#allocation150_spill] sm:$0xff] %v14276_v44  ;;  %24097 = vst [vmem:[#allocation151_spill] sm:$0xff] %v14278_v33  ;;  %v12703_v44 = vcombine.low %v14249_v4, %v14249_v4 }
 0x201   :  { %v14280_v46 = vpop.trf.xlu1  ;;  %v14282_v21 = vpop.trf.xlu0 }
 0x202   :  { %24098 = vst [vmem:[#allocation152_spill] sm:$0xff] %v14280_v46  ;;  %24099 = vst [vmem:[#allocation153_spill] sm:$0xff] %v14282_v21  ;;  %v287_v46 = vcombine.low %v14252_v36, %v14249_v4 }
 0x205   :  { %v14284_v37 = vpop.trf.xlu1  ;;  %v14286_v39 = vpop.trf.xlu0 }
 0x206   :  { %24100 = vst [vmem:[#allocation154_spill] sm:$0xff] %v14284_v37  ;;  %24101 = vst [vmem:[#allocation155_spill] sm:$0xff] %v14286_v39 }
 0x209   :  { %v14288_v42 = vpop.trf.xlu1  ;;  %v14290_v22 = vpop.trf.xlu0 }
 0x20a   :  { %24102 = vst [vmem:[#allocation156_spill] sm:$0xff] %v14288_v42  ;;  %24103 = vst [vmem:[#allocation157_spill] sm:$0xff] %v14290_v22 }
 0x20d   :  { %v14292_v53 = vpop.trf.xlu1  ;;  %v14294_v34 = vpop.trf.xlu0 }
 0x20e   :  { %24104 = vst [vmem:[#allocation158_spill] sm:$0xff] %v14292_v53  ;;  %24105 = vst [vmem:[#allocation159_spill] sm:$0xff] %v14294_v34 }
 0x211   :  { %v14300_v33 = vpop.trf.xlu1  ;;  %v14302_v21 = vpop.trf.xlu0  ;;  %951 = vxpose.xlu1.b32.start.end [1/1] (short) %v12703_v44, 128  ;;  %919 = vxpose.xlu0.b32.start.end [1/1] (short) %v287_v46, 128  ;;  %v24112_v44 = vcombine.low %v13215_v31, %v13230_v45 }
 0x212   :  { %24106 = vst [vmem:[#allocation160_spill] sm:$0xff] %v14300_v33  ;;  %24107 = vst [vmem:[#allocation161_spill] sm:$0xff] %v14302_v21  ;;  %v24110_v33 = vcombine.high %v13203_v9, %v13227_v8  ;;  %v24116_v21 = vld [vmem:[#allocation58_spill] sm:$0xff]  ;;  %v24121_v8 = vld [vmem:[#allocation61_spill] sm:$0xff] }
 0x213   :  { %v14326_v46 = vrot.slane %v24112_v44, %v12890_v29  ;;  %v24118_v38 = vcombine.high %v24116_v21, %v24117_v14  ;;  %v24134_v21 = vcombine.low %v13276_v5, %v13300_v20 }
 0x214   :  { %v14320_v63 = vrot.slane %v24110_v33, %v12890_v29  ;;  %v24120_v33 = vld [vmem:[#allocation62_spill] sm:$0xff] }
 0x215   :  { %v14304_v39 = vpop.trf.xlu1  ;;  %v14306_v42 = vpop.trf.xlu0  ;;  %24113 = vst [vmem:[#allocation165_spill] sm:$0xff] %v14326_v46  ;;  %v14338_v36 = vrot.slane %v24118_v38, %v12890_v29  ;;  %v24122_v9 = vcombine.low %v24120_v33, %v24121_v8  ;;  %v24124_v44 = vcombine.high %v24120_v33, %v24121_v8  ;;  %v24130_v8 = vcombine.low %v13273_v48, %v13297_v3 }
 0x216   :  { %24108 = vst [vmem:[#allocation162_spill] sm:$0xff] %v14304_v39  ;;  %24109 = vst [vmem:[#allocation163_spill] sm:$0xff] %v14306_v42  ;;  %v24114_v42 = vcombine.high %v13215_v31, %v13230_v45  ;;  %v24126_v31 = vcombine.low %v13267_v62, %v13294_v50 }
 0x217   :  { %24111 = vst [vmem:[#allocation164_spill] sm:$0xff] %v14320_v63  ;;  %24119 = vst [vmem:[#allocation167_spill] sm:$0xff] %v14338_v36  ;;  %v14344_v63 = vrot.slane %v24122_v9, %v12890_v29  ;;  %v14350_v46 = vrot.slane %v24124_v44, %v12890_v29  ;;  %v24128_v9 = vcombine.high %v13267_v62, %v13294_v50 }
 0x218   :  { %v14332_v39 = vrot.slane %v24114_v42, %v12890_v29  ;;  %v14356_v45 = vrot.slane %v24126_v31, %v12890_v29  ;;  %v14372_v33 = vrot.slane %v24130_v8, %v12890_v29  ;;  %v24132_v44 = vcombine.high %v13273_v48, %v13297_v3  ;;  %v24139_v8 = vld [vmem:[#allocation64_spill] sm:$0xff] }
 0x219   :  { %v14308_v22 = vpop.trf.xlu1  ;;  %v14310_v53 = vpop.trf.xlu0  ;;  %24123 = vst [vmem:[#allocation62_spill] sm:$0xff] %v14344_v63  ;;  %24125 = vst [vmem:[#allocation61_spill] sm:$0xff] %v14350_v46  ;;  %v14366_v14 = vrot.slane %v24128_v9, %v12890_v29  ;;  %v24136_v62 = vcombine.high %v13276_v5, %v13300_v20  ;;  %v24138_v9 = vld [vmem:[#allocation63_spill] sm:$0xff]  ;;  %v24146_v5 = vcombine.low %v13343_v11, %v13309_v19 }
 0x21a   :  { %24115 = vst [vmem:[#allocation166_spill] sm:$0xff] %v14332_v39  ;;  %24127 = vst [vmem:[#allocation168_spill] sm:$0xff] %v14356_v45  ;;  %v14378_v31 = vrot.slane %v24132_v44, %v12890_v29  ;;  %v14384_v45 = vrot.slane %v24134_v21, %v12890_v29  ;;  %v24142_v48 = vcombine.high %v24138_v9, %v24139_v8 }
 0x21b   :  { %24129 = vst [vmem:[#allocation169_spill] sm:$0xff] %v14366_v14  ;;  %24131 = vst [vmem:[#allocation170_spill] sm:$0xff] %v14372_v33  ;;  %v14390_v50 = vrot.slane %v24136_v62, %v12890_v29  ;;  %v24140_v33 = vcombine.low %v24138_v9, %v24139_v8  ;;  %v24144_v21 = vcombine.high %v13337_v18, %v13306_v47  ;;  %v24150_v9 = vld [vmem:[#allocation67_spill] sm:$0xff]  ;;  %v24151_v8 = vld [vmem:[#allocation65_spill] sm:$0xff] }
 0x21c   :  { %24133 = vst [vmem:[#allocation171_spill] sm:$0xff] %v14378_v31  ;;  %24135 = vst [vmem:[#allocation172_spill] sm:$0xff] %v14384_v45  ;;  %v14402_v3 = vrot.slane %v24142_v48, %v12890_v29  ;;  %v14414_v20 = vrot.slane %v24146_v5, %v12890_v29  ;;  %v24152_v48 = vcombine.high %v24150_v9, %v24151_v8 }
 0x21d   :  { %v14312_v34 = vpop.trf.xlu1  ;;  %v14314_v37 = vpop.trf.xlu0  ;;  %24137 = vst [vmem:[#allocation173_spill] sm:$0xff] %v14390_v50  ;;  %v14396_v14 = vrot.slane %v24140_v33, %v12890_v29  ;;  %v14408_v44 = vrot.slane %v24144_v21, %v12890_v29  ;;  %v24148_v33 = vcombine.high %v13343_v11, %v13309_v19  ;;  %v24154_v21 = vld [vmem:[#allocation68_spill] sm:$0xff]  ;;  %v24160_v19 = vcombine.low %v13375_v23, %v13394_v49 }
 0x21e   :  { %24143 = vst [vmem:[#allocation64_spill] sm:$0xff] %v14402_v3  ;;  %24147 = vst [vmem:[#allocation175_spill] sm:$0xff] %v14414_v20  ;;  %v14426_v31 = vrot.slane %v24152_v48, %v12890_v29 }
 0x21f   :  { %24141 = vst [vmem:[#allocation63_spill] sm:$0xff] %v14396_v14  ;;  %24145 = vst [vmem:[#allocation174_spill] sm:$0xff] %v14408_v44  ;;  %v14420_v62 = vrot.slane %v24148_v33, %v12890_v29  ;;  %v24155_v44 = vld [vmem:[#allocation66_spill] sm:$0xff]  ;;  %v14444_v11 = vrot.slane %v24160_v19, %v12890_v29  ;;  %v24162_v33 = vcombine.high %v13375_v23, %v13394_v49 }
 0x220   :  { %24153 = vst [vmem:[#allocation67_spill] sm:$0xff] %v14426_v31  ;;  %v24156_v39 = vcombine.low %v24154_v21, %v24155_v44  ;;  %v24158_v5 = vcombine.high %v24154_v21, %v24155_v44  ;;  %v24169_v49 = vcombine.low %v13385_v6, %v13416_v17 }
 0x221   :  { %v14358_v38 = vpop.trf.xlu1  ;;  %v14360_v42 = vpop.trf.xlu0  ;;  %24149 = vst [vmem:[#allocation176_spill] sm:$0xff] %v14420_v62  ;;  %24161 = vst [vmem:[#allocation66_spill] sm:$0xff] %v14444_v11  ;;  %v14450_v48 = vrot.slane %v24162_v33, %v12890_v29 }
 0x222   :  { %v14432_v3 = vrot.slane %v24156_v39, %v12890_v29  ;;  %v14438_v20 = vrot.slane %v24158_v5, %v12890_v29  ;;  %v24164_v39 = vld [vmem:[#allocation70_spill] sm:$0xff]  ;;  %v14472_v23 = vrot.slane %v24169_v49, %v12890_v29 }
 0x223   :  { %24163 = vst [vmem:[#allocation177_spill] sm:$0xff] %v14450_v48  ;;  %v24165_v62 = vcombine.low %v13381_v12, %v24164_v39  ;;  %v24167_v5 = vcombine.high %v13381_v12, %v24164_v39  ;;  %v24175_v12 = vcombine.high %v13388_v2, %v13419_v27 }
 0x224   :  { %24157 = vst [vmem:[#allocation65_spill] sm:$0xff] %v14432_v3  ;;  %24159 = vst [vmem:[#allocation68_spill] sm:$0xff] %v14438_v20 }
 0x225   :  { %v14456_v3 = vrot.slane %v24165_v62, %v12890_v29  ;;  %v14458_v44 = vpop.trf.xlu1  ;;  %v14460_v21 = vpop.trf.xlu0  ;;  %v14466_v19 = vrot.slane %v24167_v5, %v12890_v29  ;;  %24170 = vst [vmem:[#allocation179_spill] sm:$0xff] %v14472_v23  ;;  %v24171_v62 = vcombine.high %v13385_v6, %v13416_v17  ;;  %v14490_v39 = vrot.slane %v24175_v12, %v12890_v29  ;;  %v24177_v5 = vld [vmem:[#allocation71_spill] sm:$0xff]  ;;  %v24180_v6 = vld [vmem:[#allocation73_spill] sm:$0xff]  ;;  %v24181_v17 = vld [vmem:[#allocation72_spill] sm:$0xff] }
 0x226   :  { %v24178_v49 = vcombine.high %v13403_v25, %v24177_v5  ;;  %v24191_v5 = vld [vmem:[#allocation77_spill] sm:$0xff] }
 0x227   :  { %24166 = vst [vmem:[#allocation70_spill] sm:$0xff] %v14456_v3  ;;  %24168 = vst [vmem:[#allocation178_spill] sm:$0xff] %v14466_v19  ;;  %v14478_v33 = vrot.slane %v24171_v62, %v12890_v29  ;;  %v24173_v3 = vcombine.low %v13388_v2, %v13419_v27  ;;  %v24182_v62 = vcombine.low %v24180_v6, %v24181_v17  ;;  %v24186_v2 = vld [vmem:[#allocation74_spill] sm:$0xff]  ;;  %v24187_v27 = vld [vmem:[#allocation76_spill] sm:$0xff] }
 0x228   :  { %24176 = vst [vmem:[#allocation182_spill] sm:$0xff] %v14490_v39  ;;  %v14496_v19 = vrot.slane %v24178_v49, %v12890_v29  ;;  %v24188_v12 = vcombine.high %v24186_v2, %v24187_v27  ;;  %v24190_v49 = vld [vmem:[#allocation75_spill] sm:$0xff]  ;;  %v24203_v2 = vld [vmem:[#allocation81_spill] sm:$0xff] }
 0x229   :  { %24172 = vst [vmem:[#allocation180_spill] sm:$0xff] %v14478_v33  ;;  %v14484_v48 = vrot.slane %v24173_v3, %v12890_v29  ;;  %v14502_v11 = vrot.slane %v24182_v62, %v12890_v29  ;;  %v24184_v3 = vcombine.high %v24180_v6, %v24181_v17  ;;  %v24192_v25 = vcombine.low %v24190_v49, %v24191_v5  ;;  %v24196_v6 = vld [vmem:[#allocation78_spill] sm:$0xff]  ;;  %v24197_v17 = vld [vmem:[#allocation80_spill] sm:$0xff] }
 0x22a   :  { %24179 = vst [vmem:[#allocation183_spill] sm:$0xff] %v14496_v19  ;;  %v14514_v39 = vrot.slane %v24188_v12, %v12890_v29  ;;  %v24194_v62 = vcombine.high %v24190_v49, %v24191_v5  ;;  %v24200_v12 = vcombine.high %v24196_v6, %v24197_v17 }
 0x22b   :  { %24174 = vst [vmem:[#allocation181_spill] sm:$0xff] %v14484_v48  ;;  %24183 = vst [vmem:[#allocation73_spill] sm:$0xff] %v14502_v11  ;;  %v14508_v48 = vrot.slane %v24184_v3, %v12890_v29  ;;  %v14520_v19 = vrot.slane %v24192_v25, %v12890_v29  ;;  %v24198_v3 = vcombine.low %v24196_v6, %v24197_v17  ;;  %v24202_v25 = vld [vmem:[#allocation79_spill] sm:$0xff]  ;;  %v14558_v6 = vpop.trf.xlu1  ;;  %v14560_v17 = vpop.trf.xlu0 }
 0x22c   :  { %24189 = vst [vmem:[#allocation184_spill] sm:$0xff] %v14514_v39  ;;  %v14526_v11 = vrot.slane %v24194_v62, %v12890_v29  ;;  %v14538_v27 = vrot.slane %v24200_v12, %v12890_v29  ;;  %v24206_v5 = vcombine.high %v24202_v25, %v24203_v2  ;;  %v24208_v62 = vld [vmem:[#allocation82_spill] sm:$0xff] }
 0x22d   :  { %24185 = vst [vmem:[#allocation72_spill] sm:$0xff] %v14508_v48  ;;  %24193 = vst [vmem:[#allocation75_spill] sm:$0xff] %v14520_v19  ;;  %v14532_v48 = vrot.slane %v24198_v3, %v12890_v29  ;;  %v24204_v19 = vcombine.low %v24202_v25, %v24203_v2  ;;  %v24209_v3 = vld [vmem:[#allocation84_spill] sm:$0xff]  ;;  %v24214_v2 = vld [vmem:[#allocation83_spill] sm:$0xff] }
 0x22e   :  { %24195 = vst [vmem:[#allocation77_spill] sm:$0xff] %v14526_v11  ;;  %24201 = vst [vmem:[#allocation80_spill] sm:$0xff] %v14538_v27  ;;  %v14550_v49 = vrot.slane %v24206_v5, %v12890_v29  ;;  %v24215_v25 = vld [vmem:[#allocation85_spill] sm:$0xff]  ;;  %v24220_v27 = vld [vmem:[#allocation28_spill] sm:$0xff] }
 0x22f   :  { %24199 = vst [vmem:[#allocation78_spill] sm:$0xff] %v14532_v48  ;;  %v14544_v39 = vrot.slane %v24204_v19, %v12890_v29  ;;  %v24210_v48 = vcombine.low %v24208_v62, %v24209_v3  ;;  %v24212_v19 = vcombine.high %v24208_v62, %v24209_v3  ;;  %v24216_v5 = vcombine.low %v24214_v2, %v24215_v25  ;;  %v24224_v62 = vld [vmem:[#allocation29_spill] sm:$0xff]  ;;  %v24225_v3 = vld [vmem:[#allocation11_spill] sm:$0xff] }
 0x230   :  { %24207 = vst [vmem:[#allocation81_spill] sm:$0xff] %v14550_v49 }
 0x231   :  { %24205 = vst [vmem:[#allocation79_spill] sm:$0xff] %v14544_v39  ;;  %v14556_v11 = vrot.slane %v24210_v48, %v12890_v29  ;;  %v14566_v12 = vrot.slane %v24212_v19, %v12890_v29  ;;  %v14572_v49 = vrot.slane %v24216_v5, %v12890_v29  ;;  %v24218_v48 = vcombine.high %v24214_v2, %v24215_v25  ;;  %v24230_v2 = vld [vmem:[#allocation9_spill] sm:$0xff]  ;;  %v24231_v25 = vld [vmem:[#allocation87_spill] sm:$0xff] }
 0x232   :  { %v24226_v19 = vcombine.low %v24224_v62, %v24225_v3  ;;  %v24228_v5 = vcombine.high %v24224_v62, %v24225_v3  ;;  %v24240_v62 = vld [vmem:[#allocation30_spill] sm:$0xff] }
 0x233   :  { %24211 = vst [vmem:[#allocation82_spill] sm:$0xff] %v14556_v11  ;;  %24213 = vst [vmem:[#allocation84_spill] sm:$0xff] %v14566_v12  ;;  %v14578_v39 = vrot.slane %v24218_v48, %v12890_v29  ;;  %v24221_v11 = vld [vmem:[#allocation45_spill] sm:$0xff]  ;;  %v24232_v48 = vcombine.high %v24230_v2, %v24231_v25  ;;  %v24241_v3 = vld [vmem:[#allocation10_spill] sm:$0xff] }
 0x234   :  { %24217 = vst [vmem:[#allocation83_spill] sm:$0xff] %v14572_v49  ;;  %v24222_v33 = vcombine.high %v24220_v27, %v24221_v11  ;;  %v14590_v12 = vrot.slane %v24226_v19, %v12890_v29  ;;  %v14596_v49 = vrot.slane %v24228_v5, %v12890_v29  ;;  %v24242_v5 = vcombine.low %v24240_v62, %v24241_v3 }
 0x235   :  { %24219 = vst [vmem:[#allocation85_spill] sm:$0xff] %v14578_v39  ;;  %v14602_v39 = vrot.slane %v24232_v48, %v12890_v29  ;;  %v24244_v48 = vcombine.high %v24240_v62, %v24241_v3 }
 0x236   :  { %v14584_v23 = vrot.slane %v24222_v33, %v12890_v29  ;;  %24227 = vst [vmem:[#allocation45_spill] sm:$0xff] %v14590_v12  ;;  %24229 = vst [vmem:[#allocation29_spill] sm:$0xff] %v14596_v49  ;;  %v24234_v33 = vld [vmem:[#allocation86_spill] sm:$0xff]  ;;  %v14620_v49 = vrot.slane %v24242_v5, %v12890_v29 }
 0x237   :  { %24233 = vst [vmem:[#allocation11_spill] sm:$0xff] %v14602_v39  ;;  %v14626_v39 = vrot.slane %v24244_v48, %v12890_v29  ;;  %v24253_v5 = vld [vmem:[#allocation90_spill] sm:$0xff]  ;;  %v24259_v48 = vld [vmem:[#allocation13_spill] sm:$0xff] }
 0x238   :  { %24223 = vst [vmem:[#allocation28_spill] sm:$0xff] %v14584_v23  ;;  %v24235_v23 = vld [vmem:[#allocation88_spill] sm:$0xff]  ;;  %24243 = vst [vmem:[#allocation86_spill] sm:$0xff] %v14620_v49 }
 0x239   :  { %v24236_v20 = vcombine.low %v24234_v33, %v24235_v23  ;;  %v24238_v19 = vcombine.high %v24234_v33, %v24235_v23  ;;  %24245 = vst [vmem:[#allocation88_spill] sm:$0xff] %v14626_v39 }
 0x23b   :  { %v14608_v31 = vrot.slane %v24236_v20, %v12890_v29  ;;  %v14614_v12 = vrot.slane %v24238_v19, %v12890_v29  ;;  %v24246_v20 = vld [vmem:[#allocation31_spill] sm:$0xff]  ;;  %v24252_v19 = vld [vmem:[#allocation46_spill] sm:$0xff] }
 0x23c   :  { %v24254_v49 = vcombine.low %v24252_v19, %v24253_v5  ;;  %v24256_v62 = vcombine.high %v24252_v19, %v24253_v5  ;;  %v24264_v19 = vld [vmem:[#allocation32_spill] sm:$0xff] }
 0x23d   :  { %24237 = vst [vmem:[#allocation9_spill] sm:$0xff] %v14608_v31  ;;  %24239 = vst [vmem:[#allocation87_spill] sm:$0xff] %v14614_v12  ;;  %v24247_v31 = vld [vmem:[#allocation89_spill] sm:$0xff]  ;;  %v24265_v5 = vld [vmem:[#allocation92_spill] sm:$0xff] }
 0x23e   :  { %v24248_v14 = vcombine.low %v24246_v20, %v24247_v31  ;;  %v24250_v23 = vcombine.high %v24246_v20, %v24247_v31  ;;  %v14644_v12 = vrot.slane %v24254_v49, %v12890_v29  ;;  %v14650_v3 = vrot.slane %v24256_v62, %v12890_v29  ;;  %v14658_v31 = vpop.trf.xlu1  ;;  %v14660_v20 = vpop.trf.xlu0 }
 0x23f   :  { %v24266_v62 = vcombine.high %v24264_v19, %v24265_v5  ;;  %v24280_v19 = vld [vmem:[#allocation15_spill] sm:$0xff] }
 0x240   :  { %v14632_v50 = vrot.slane %v24248_v14, %v12890_v29  ;;  %v14638_v33 = vrot.slane %v24250_v23, %v12890_v29  ;;  %24255 = vst [vmem:[#allocation31_spill] sm:$0xff] %v14644_v12  ;;  %24257 = vst [vmem:[#allocation89_spill] sm:$0xff] %v14650_v3  ;;  %v24258_v14 = vld [vmem:[#allocation91_spill] sm:$0xff]  ;;  %v24268_v3 = vld [vmem:[#allocation33_spill] sm:$0xff] }
 0x241   :  { %v24262_v49 = vcombine.high %v24258_v14, %v24259_v48 }
 0x242   :  { %24249 = vst [vmem:[#allocation30_spill] sm:$0xff] %v14632_v50  ;;  %24251 = vst [vmem:[#allocation10_spill] sm:$0xff] %v14638_v33  ;;  %v24260_v50 = vcombine.low %v24258_v14, %v24259_v48  ;;  %v14672_v33 = vrot.slane %v24266_v62, %v12890_v29  ;;  %v24274_v14 = vld [vmem:[#allocation12_spill] sm:$0xff] }
 0x243   :  { %v14666_v23 = vrot.slane %v24262_v49, %v12890_v29  ;;  %v24275_v48 = vcombine.low %v13690_v57, %v24274_v14  ;;  %v24277_v62 = vcombine.high %v13690_v57, %v24274_v14 }
 0x244   :  { %v14656_v39 = vrot.slane %v24260_v50, %v12890_v29  ;;  %24267 = vst [vmem:[#allocation91_spill] sm:$0xff] %v14672_v33  ;;  %v24269_v50 = vld [vmem:[#allocation93_spill] sm:$0xff] }
 0x245   :  { %24263 = vst [vmem:[#allocation90_spill] sm:$0xff] %v14666_v23  ;;  %v24272_v45 = vcombine.high %v24268_v3, %v24269_v50  ;;  %v14690_v49 = vrot.slane %v24275_v48, %v12890_v29  ;;  %v14696_v5 = vrot.slane %v24277_v62, %v12890_v29  ;;  %v24286_v48 = vld [vmem:[#allocation34_spill] sm:$0xff] }
 0x246   :  { %24261 = vst [vmem:[#allocation46_spill] sm:$0xff] %v14656_v39  ;;  %v24270_v39 = vcombine.low %v24268_v3, %v24269_v50  ;;  %v24285_v50 = vld [vmem:[#allocation35_spill] sm:$0xff]  ;;  %v24292_v62 = vld [vmem:[#allocation94_spill] sm:$0xff] }
 0x247   :  { %v14684_v46 = vrot.slane %v24272_v45, %v12890_v29  ;;  %24276 = vst [vmem:[#allocation93_spill] sm:$0xff] %v14690_v49  ;;  %24278 = vst [vmem:[#allocation12_spill] sm:$0xff] %v14696_v5  ;;  %v24289_v57 = vcombine.high %v24285_v50, %v24286_v48 }
 0x248   :  { %v14678_v12 = vrot.slane %v24270_v39, %v12890_v29  ;;  %v24279_v39 = vld [vmem:[#allocation47_spill] sm:$0xff] }
 0x249   :  { %24273 = vst [vmem:[#allocation33_spill] sm:$0xff] %v14684_v46  ;;  %v24283_v45 = vcombine.high %v24279_v39, %v24280_v19  ;;  %v24287_v46 = vcombine.low %v24285_v50, %v24286_v48  ;;  %v14720_v14 = vrot.slane %v24289_v57, %v12890_v29  ;;  %v24299_v50 = vcombine.high %v13776_v61, %v13819_v52  ;;  %v24302_v57 = vld [vmem:[#allocation14_spill] sm:$0xff] }
 0x24a   :  { %24271 = vst [vmem:[#allocation13_spill] sm:$0xff] %v14678_v12  ;;  %v24281_v12 = vcombine.low %v24279_v39, %v24280_v19 }
 0x24b   :  { %v14708_v3 = vrot.slane %v24283_v45, %v12890_v29  ;;  %v14714_v23 = vrot.slane %v24287_v46, %v12890_v29  ;;  %24290 = vst [vmem:[#allocation34_spill] sm:$0xff] %v14720_v14  ;;  %v24297_v46 = vcombine.low %v13776_v61, %v13819_v52  ;;  %v14744_v48 = vrot.slane %v24299_v50, %v12890_v29  ;;  %v24307_v61 = vld [vmem:[#allocation37_spill] sm:$0xff]  ;;  %v24308_v52 = vld [vmem:[#allocation36_spill] sm:$0xff] }
 0x24c   :  { %v14702_v33 = vrot.slane %v24281_v12, %v12890_v29  ;;  %v24291_v12 = vld [vmem:[#allocation48_spill] sm:$0xff]  ;;  %v24309_v50 = vcombine.high %v24307_v61, %v24308_v52 }
 0x24d   :  { %24284 = vst [vmem:[#allocation15_spill] sm:$0xff] %v14708_v3  ;;  %24288 = vst [vmem:[#allocation35_spill] sm:$0xff] %v14714_v23  ;;  %v24295_v19 = vcombine.high %v24291_v12, %v24292_v62  ;;  %v14738_v45 = vrot.slane %v24297_v46, %v12890_v29  ;;  %v14760_v46 = vpop.trf.xlu0  ;;  %v24311_v23 = vld [vmem:[#allocation49_spill] sm:$0xff] }
 0x24e   :  { %24282 = vst [vmem:[#allocation47_spill] sm:$0xff] %v14702_v33  ;;  %v24293_v33 = vcombine.low %v24291_v12, %v24292_v62  ;;  %24300 = vst [vmem:[#allocation186_spill] sm:$0xff] %v14744_v48 }
 0x24f   :  { %v14732_v39 = vrot.slane %v24295_v19, %v12890_v29  ;;  %24298 = vst [vmem:[#allocation185_spill] sm:$0xff] %v14738_v45  ;;  %v14758_v19 = vpop.trf.xlu1 }
 0x250   :  { %v14726_v5 = vrot.slane %v24293_v33, %v12890_v29  ;;  %v24301_v33 = vld [vmem:[#allocation17_spill] sm:$0xff] }
 0x251   :  { %24296 = vst [vmem:[#allocation94_spill] sm:$0xff] %v14732_v39  ;;  %v24305_v12 = vcombine.high %v24301_v33, %v24302_v57  ;;  %v14766_v39 = vrot.slane %v24309_v50, %v12890_v29  ;;  %v24320_v50 = vld [vmem:[#allocation100_spill] sm:$0xff] }
 0x252   :  { %24294 = vst [vmem:[#allocation48_spill] sm:$0xff] %v14726_v5  ;;  %v24303_v5 = vcombine.low %v24301_v33, %v24302_v57 }
 0x253   :  { %v14756_v62 = vrot.slane %v24305_v12, %v12890_v29  ;;  %24310 = vst [vmem:[#allocation37_spill] sm:$0xff] %v14766_v39  ;;  %v24317_v12 = vld [vmem:[#allocation38_spill] sm:$0xff]  ;;  %v24321_v39 = vld [vmem:[#allocation95_spill] sm:$0xff] }
 0x254   :  { %v14750_v14 = vrot.slane %v24303_v5, %v12890_v29  ;;  %v24312_v5 = vld [vmem:[#allocation16_spill] sm:$0xff]  ;;  %v24322_v3 = vcombine.low %v24320_v50, %v24321_v39 }
 0x255   :  { %24306 = vst [vmem:[#allocation14_spill] sm:$0xff] %v14756_v62  ;;  %v24315_v33 = vcombine.high %v24311_v23, %v24312_v5  ;;  %v24318_v62 = vcombine.high %v13796_v24, %v24317_v12 }
 0x256   :  { %24304 = vst [vmem:[#allocation17_spill] sm:$0xff] %v14750_v14  ;;  %v24313_v14 = vcombine.low %v24311_v23, %v24312_v5  ;;  %v14790_v63 = vrot.slane %v24322_v3, %v12890_v29  ;;  %v24326_v23 = vld [vmem:[#allocation50_spill] sm:$0xff]  ;;  %v24327_v5 = vld [vmem:[#allocation96_spill] sm:$0xff]  ;;  %v24332_v3 = vld [vmem:[#allocation51_spill] sm:$0xff] }
 0x257   :  { %v14778_v57 = vrot.slane %v24315_v33, %v12890_v29  ;;  %v14784_v45 = vrot.slane %v24318_v62, %v12890_v29  ;;  %v24328_v33 = vcombine.low %v24326_v23, %v24327_v5  ;;  %v24330_v62 = vcombine.high %v24326_v23, %v24327_v5 }
 0x258   :  { %v14772_v48 = vrot.slane %v24313_v14, %v12890_v29  ;;  %24323 = vst [vmem:[#allocation38_spill] sm:$0xff] %v14790_v63  ;;  %v24324_v14 = vcombine.high %v24320_v50, %v24321_v39  ;;  %v24333_v63 = vld [vmem:[#allocation97_spill] sm:$0xff]  ;;  %v24340_v23 = vcombine.high %v13906_v43, %v13931_v59 }
 0x259   :  { %24316 = vst [vmem:[#allocation49_spill] sm:$0xff] %v14778_v57  ;;  %24319 = vst [vmem:[#allocation16_spill] sm:$0xff] %v14784_v45  ;;  %v14802_v57 = vrot.slane %v24328_v33, %v12890_v29  ;;  %v14808_v45 = vrot.slane %v24330_v62, %v12890_v29  ;;  %v24334_v36 = vcombine.low %v24332_v3, %v24333_v63 }
 0x25a   :  { %24314 = vst [vmem:[#allocation36_spill] sm:$0xff] %v14772_v48  ;;  %v14796_v48 = vrot.slane %v24324_v14, %v12890_v29  ;;  %v24336_v39 = vcombine.high %v24332_v3, %v24333_v63  ;;  %v24338_v14 = vcombine.low %v13906_v43, %v13931_v59  ;;  %v14832_v5 = vrot.slane %v24340_v23, %v12890_v29  ;;  %v14858_v23 = vpop.trf.xlu1 }
 0x25b   :  { %24329 = vst [vmem:[#allocation95_spill] sm:$0xff] %v14802_v57  ;;  %24331 = vst [vmem:[#allocation50_spill] sm:$0xff] %v14808_v45  ;;  %v14814_v49 = vrot.slane %v24334_v36, %v12890_v29  ;;  %v24342_v36 = vcombine.low %v13909_v15, %v13944_v35  ;;  %v24344_v63 = vcombine.high %v13909_v15, %v13944_v35 }
 0x25c   :  { %24325 = vst [vmem:[#allocation100_spill] sm:$0xff] %v14796_v48  ;;  %v14820_v50 = vrot.slane %v24336_v39, %v12890_v29  ;;  %v14826_v33 = vrot.slane %v24338_v14, %v12890_v29  ;;  %24341 = vst [vmem:[#allocation187_spill] sm:$0xff] %v14832_v5  ;;  %v24346_v39 = vcombine.high %v13917_v32, %v13957_v51 }
 0x25d   :  { %24335 = vst [vmem:[#allocation96_spill] sm:$0xff] %v14814_v49  ;;  %v14838_v62 = vrot.slane %v24342_v36, %v12890_v29  ;;  %v14844_v3 = vrot.slane %v24344_v63, %v12890_v29  ;;  %v24348_v43 = vcombine.low %v13923_v30, %v13960_v41  ;;  %v14860_v36 = vpop.trf.xlu0  ;;  %v24350_v15 = vcombine.high %v13923_v30, %v13960_v41  ;;  %v24352_v63 = vld [vmem:[#allocation20_spill] sm:$0xff] }
 0x25e   :  { %24337 = vst [vmem:[#allocation51_spill] sm:$0xff] %v14820_v50  ;;  %24339 = vst [vmem:[#allocation97_spill] sm:$0xff] %v14826_v33  ;;  %v14850_v14 = vrot.slane %v24346_v39, %v12890_v29  ;;  %v24353_v39 = vcombine.low %v13926_v28, %v24352_v63 }
 0x25f   :  { %24343 = vst [vmem:[#allocation188_spill] sm:$0xff] %v14838_v62  ;;  %24345 = vst [vmem:[#allocation189_spill] sm:$0xff] %v14844_v3  ;;  %v14856_v59 = vrot.slane %v24348_v43, %v12890_v29  ;;  %v14866_v35 = vrot.slane %v24350_v15, %v12890_v29  ;;  %v24355_v43 = vcombine.high %v13926_v28, %v24352_v63 }
 0x260   :  { %24347 = vst [vmem:[#allocation190_spill] sm:$0xff] %v14850_v14  ;;  %v14872_v51 = vrot.slane %v24353_v39, %v12890_v29  ;;  %v24358_v14 = vld [vmem:[#allocation54_spill] sm:$0xff]  ;;  %v24363_v15 = vcombine.low %v13995_v40, %v14022_v13  ;;  %v24365_v28 = vcombine.high %v13995_v40, %v14022_v13 }
 0x261   :  { %24349 = vst [vmem:[#allocation191_spill] sm:$0xff] %v14856_v59  ;;  %24351 = vst [vmem:[#allocation192_spill] sm:$0xff] %v14866_v35  ;;  %v14878_v32 = vrot.slane %v24355_v43, %v12890_v29  ;;  %v24357_v59 = vld [vmem:[#allocation23_spill] sm:$0xff] }
 0x262   :  { %24354 = vst [vmem:[#allocation20_spill] sm:$0xff] %v14872_v51  ;;  %v24359_v50 = vcombine.low %v24357_v59, %v24358_v14  ;;  %v24361_v30 = vcombine.high %v24357_v59, %v24358_v14  ;;  %v14896_v39 = vrot.slane %v24363_v15, %v12890_v29  ;;  %v14902_v63 = vrot.slane %v24365_v28, %v12890_v29  ;;  %v24377_v28 = vld [vmem:[#allocation102_spill] sm:$0xff] }
 0x263   :  { %24356 = vst [vmem:[#allocation193_spill] sm:$0xff] %v14878_v32 }
 0x264   :  { %v14884_v49 = vrot.slane %v24359_v50, %v12890_v29  ;;  %v14890_v41 = vrot.slane %v24361_v30, %v12890_v29  ;;  %24364 = vst [vmem:[#allocation194_spill] sm:$0xff] %v14896_v39  ;;  %24366 = vst [vmem:[#allocation195_spill] sm:$0xff] %v14902_v63  ;;  %v24367_v50 = vld [vmem:[#allocation42_spill] sm:$0xff]  ;;  %v24372_v30 = vld [vmem:[#allocation103_spill] sm:$0xff] }
 0x265   :  { %v24368_v43 = vcombine.low %v14001_v0, %v24367_v50  ;;  %v24370_v14 = vcombine.high %v14001_v0, %v24367_v50  ;;  %v24373_v15 = vcombine.low %v14008_v26, %v24372_v30  ;;  %v24375_v40 = vcombine.high %v14008_v26, %v24372_v30 }
 0x266   :  { %24360 = vst [vmem:[#allocation23_spill] sm:$0xff] %v14884_v49  ;;  %24362 = vst [vmem:[#allocation54_spill] sm:$0xff] %v14890_v41  ;;  %v24385_v26 = vcombine.high %v14121_v58, %v14142_v55  ;;  %v24457_v41 = vld [vmem:[#allocation111_spill] sm:$0xff] }
 0x267   :  { %v14908_v35 = vrot.slane %v24368_v43, %v12890_v29  ;;  %v14914_v59 = vrot.slane %v24370_v14, %v12890_v29  ;;  %v14920_v39 = vrot.slane %v24373_v15, %v12890_v29  ;;  %v14926_v13 = vrot.slane %v24375_v40, %v12890_v29  ;;  %v24378_v43 = vld [vmem:[#allocation104_spill] sm:$0xff] }
 0x268   :  { %v24381_v0 = vcombine.high %v24377_v28, %v24378_v43  ;;  %v24383_v14 = vcombine.low %v14121_v58, %v14142_v55  ;;  %v14950_v30 = vrot.slane %v24385_v26, %v12890_v29  ;;  %v24391_v58 = vld [vmem:[#allocation26_spill] sm:$0xff]  ;;  %v24392_v55 = vld [vmem:[#allocation44_spill] sm:$0xff]  ;;  %v2279_v49 = vcombine.low %v24457_v41, %v14760_v46 }
 0x269   :  { %24369 = vst [vmem:[#allocation42_spill] sm:$0xff] %v14908_v35  ;;  %24371 = vst [vmem:[#allocation196_spill] sm:$0xff] %v14914_v59  ;;  %v24379_v35 = vcombine.low %v24377_v28, %v24378_v43  ;;  %v14958_v28 = vpop.trf.xlu1  ;;  %v14960_v43 = vpop.trf.xlu0  ;;  %v24393_v26 = vcombine.low %v24391_v58, %v24392_v55  ;;  %v24398_v59 = vld [vmem:[#allocation55_spill] sm:$0xff]  ;;  %v2280_v32 = vcombine.high %v24457_v41, %v14760_v46 }
 0x26a   :  { %24374 = vst [vmem:[#allocation103_spill] sm:$0xff] %v14920_v39  ;;  %24376 = vst [vmem:[#allocation197_spill] sm:$0xff] %v14926_v13  ;;  %v14938_v50 = vrot.slane %v24381_v0, %v12890_v29  ;;  %v14944_v15 = vrot.slane %v24383_v14, %v12890_v29  ;;  %v24389_v0 = vcombine.high %v14127_v1, %v14145_v60 }
 0x26b   :  { %v14932_v63 = vrot.slane %v24379_v35, %v12890_v29  ;;  %24386 = vst [vmem:[#allocation199_spill] sm:$0xff] %v14950_v30  ;;  %v24387_v35 = vcombine.low %v14127_v1, %v14145_v60  ;;  %v14972_v30 = vrot.slane %v24393_v26, %v12890_v29  ;;  %v15256_v5 = vrot.slane %v2280_v32, %v12858_v10 }
 0x26c   :  { %24382 = vst [vmem:[#allocation104_spill] sm:$0xff] %v14938_v50  ;;  %24384 = vst [vmem:[#allocation198_spill] sm:$0xff] %v14944_v15  ;;  %v14966_v14 = vrot.slane %v24389_v0, %v12890_v29  ;;  %v24397_v15 = vld [vmem:[#allocation112_spill] sm:$0xff]  ;;  %v24403_v0 = vcombine.low %v24150_v9, %v24151_v8 }
 0x26d   :  { %24380 = vst [vmem:[#allocation102_spill] sm:$0xff] %v14932_v63  ;;  %v14956_v40 = vrot.slane %v24387_v35, %v12890_v29  ;;  %24394 = vst [vmem:[#allocation26_spill] sm:$0xff] %v14972_v30  ;;  %v24395_v35 = vcombine.high %v24391_v58, %v24392_v55  ;;  %v24399_v45 = vcombine.low %v24397_v15, %v24398_v59  ;;  %v24410_v8 = vld [vmem:[#allocation24_spill] sm:$0xff] }
 0x26e   :  { %24390 = vst [vmem:[#allocation201_spill] sm:$0xff] %v14966_v14  ;;  %v24401_v1 = vcombine.high %v24397_v15, %v24398_v59  ;;  %v14996_v26 = vrot.slane %v24403_v0, %v12890_v29  ;;  %v24405_v58 = vcombine.low %v24230_v2, %v24231_v25  ;;  %v24409_v59 = vld [vmem:[#allocation98_spill] sm:$0xff] }
 0x26f   :  { %24388 = vst [vmem:[#allocation200_spill] sm:$0xff] %v14956_v40  ;;  %v14978_v40 = vrot.slane %v24395_v35, %v12890_v29  ;;  %v14984_v57 = vrot.slane %v24399_v45, %v12890_v29  ;;  %v24407_v45 = vcombine.low %v13796_v24, %v24317_v12  ;;  %v3639_v15 = vcombine.low %v24409_v59, %v14308_v22  ;;  %v24416_v24 = vld [vmem:[#allocation99_spill] sm:$0xff] }
 0x270   :  { %v14990_v60 = vrot.slane %v24401_v1, %v12890_v29  ;;  %24404 = vst [vmem:[#allocation202_spill] sm:$0xff] %v14996_v26  ;;  %v15002_v55 = vrot.slane %v24405_v58, %v12890_v29  ;;  %v3640_v9 = vcombine.high %v24409_v59, %v14308_v22  ;;  %v24411_v1 = vld [vmem:[#allocation56_spill] sm:$0xff]  ;;  %v1463_v12 = vcombine.low %v24416_v24, %v14310_v53  ;;  %v15028_v58 = vpop.trf.xlu1  ;;  %v24417_v22 = vld [vmem:[#allocation110_spill] sm:$0xff]  ;;  %v24418_v59 = vld [vmem:[#allocation27_spill] sm:$0xff] }
 0x271   :  { %24396 = vst [vmem:[#allocation44_spill] sm:$0xff] %v14978_v40  ;;  %24400 = vst [vmem:[#allocation112_spill] sm:$0xff] %v14984_v57  ;;  %v15008_v35 = vrot.slane %v24407_v45, %v12890_v29  ;;  %v24412_v0 = vcombine.low %v24410_v8, %v24411_v1  ;;  %v24414_v2 = vcombine.high %v24410_v8, %v24411_v1  ;;  %v15030_v45 = vpop.trf.xlu0 }
 0x272   :  { %24402 = vst [vmem:[#allocation55_spill] sm:$0xff] %v14990_v60  ;;  %24406 = vst [vmem:[#allocation203_spill] sm:$0xff] %v15002_v55  ;;  %v24419_v60 = vcombine.low %v24417_v22, %v24418_v59  ;;  %v24423_v1 = vcombine.low %v13337_v18, %v13306_v47  ;;  %v24474_v55 = vld [vmem:[#allocation118_spill] sm:$0xff] }
 0x273   :  { %24408 = vst [vmem:[#allocation204_spill] sm:$0xff] %v15008_v35  ;;  %v15018_v14 = vrot.slane %v24412_v0, %v12890_v29  ;;  %v15024_v25 = vrot.slane %v24414_v2, %v12890_v29  ;;  %v24421_v0 = vcombine.high %v24417_v22, %v24418_v59  ;;  %v24429_v22 = vld [vmem:[#allocation41_spill] sm:$0xff]  ;;  %v24430_v59 = vld [vmem:[#allocation108_spill] sm:$0xff]  ;;  %v2687_v26 = vcombine.low %v24474_v55, %v15030_v45 }
 0x274   :  { %v15036_v57 = vrot.slane %v24419_v60, %v12890_v29  ;;  %v15048_v2 = vrot.slane %v24423_v1, %v12890_v29  ;;  %v24427_v60 = vcombine.low %v24307_v61, %v24308_v52  ;;  %v24433_v47 = vcombine.high %v24429_v22, %v24430_v59  ;;  %v24435_v61 = vld [vmem:[#allocation105_spill] sm:$0xff] }
 0x275   :  { %24413 = vst [vmem:[#allocation98_spill] sm:$0xff] %v15018_v14  ;;  %24415 = vst [vmem:[#allocation24_spill] sm:$0xff] %v15024_v25  ;;  %v15042_v8 = vrot.slane %v24421_v0, %v12890_v29  ;;  %v24425_v25 = vcombine.low %v24220_v27, %v24221_v11  ;;  %v24431_v0 = vcombine.low %v24429_v22, %v24430_v59  ;;  %v24436_v52 = vld [vmem:[#allocation109_spill] sm:$0xff] }
 0x276   :  { %24420 = vst [vmem:[#allocation56_spill] sm:$0xff] %v15036_v57  ;;  %24424 = vst [vmem:[#allocation110_spill] sm:$0xff] %v15048_v2  ;;  %v15060_v57 = vrot.slane %v24427_v60, %v12890_v29  ;;  %v15072_v18 = vrot.slane %v24433_v47, %v12890_v29  ;;  %v1464_v11 = vcombine.high %v24416_v24, %v14310_v53  ;;  %v24442_v24 = vld [vmem:[#allocation19_spill] sm:$0xff]  ;;  %v24444_v27 = vld [vmem:[#allocation53_spill] sm:$0xff] }
 0x277   :  { %24422 = vst [vmem:[#allocation99_spill] sm:$0xff] %v15042_v8  ;;  %v15054_v14 = vrot.slane %v24425_v25, %v12890_v29  ;;  %v15066_v8 = vrot.slane %v24431_v0, %v12890_v29  ;;  %v24437_v25 = vcombine.low %v24435_v61, %v24436_v52  ;;  %v24439_v60 = vcombine.high %v24435_v61, %v24436_v52 }
 0x278   :  { %24428 = vst [vmem:[#allocation205_spill] sm:$0xff] %v15060_v57  ;;  %24434 = vst [vmem:[#allocation108_spill] sm:$0xff] %v15072_v18  ;;  %v15091_v22 = vrot.slane %v3639_v15, %v12858_v10  ;;  %v15094_v53 = vrot.slane %v3640_v9, %v12858_v10  ;;  %v3775_v59 = vcombine.low %v24442_v24, %v14312_v34  ;;  %v24445_v15 = vld [vmem:[#allocation18_spill] sm:$0xff]  ;;  %v15109_v9 = vpop.trf.xlu1  ;;  %v24447_v18 = vld [vmem:[#allocation40_spill] sm:$0xff] }
 0x279   :  { %24426 = vst [vmem:[#allocation27_spill] sm:$0xff] %v15054_v14  ;;  %24432 = vst [vmem:[#allocation41_spill] sm:$0xff] %v15066_v8  ;;  %v15082_v1 = vrot.slane %v24437_v25, %v12890_v29  ;;  %v15088_v0 = vrot.slane %v24439_v60, %v12890_v29  ;;  %v3776_v47 = vcombine.high %v24442_v24, %v14312_v34  ;;  %v24446_v34 = vld [vmem:[#allocation52_spill] sm:$0xff]  ;;  %v24448_v57 = vld [vmem:[#allocation101_spill] sm:$0xff] }
 0x27a   :  { %24441 = vst [vmem:[#allocation206_spill] sm:$0xff] %v15091_v22  ;;  %v15101_v25 = vrot.slane %v1463_v12, %v12858_v10  ;;  %v1599_v61 = vcombine.low %v24444_v27, %v14314_v37  ;;  %v1600_v52 = vcombine.high %v24444_v27, %v14314_v37  ;;  %v3911_v60 = vcombine.low %v24445_v15, %v14358_v38 }
 0x27b   :  { %24438 = vst [vmem:[#allocation105_spill] sm:$0xff] %v15082_v1  ;;  %24440 = vst [vmem:[#allocation109_spill] sm:$0xff] %v15088_v0  ;;  %v15111_v0 = vpop.trf.xlu0  ;;  %v3912_v1 = vcombine.high %v24445_v15, %v14358_v38  ;;  %v1735_v12 = vcombine.low %v24446_v34, %v14360_v42  ;;  %v1736_v24 = vcombine.high %v24446_v34, %v14360_v42  ;;  %v24449_v34 = vld [vmem:[#allocation25_spill] sm:$0xff] }
 0x27c   :  { %24443 = vst [vmem:[#allocation19_spill] sm:$0xff] %v15101_v25  ;;  %v4047_v8 = vcombine.low %v24447_v18, %v14458_v44  ;;  %v15122_v37 = vrot.slane %v1464_v11, %v12858_v10  ;;  %v4048_v27 = vcombine.high %v24447_v18, %v14458_v44  ;;  %v1871_v14 = vcombine.low %v24448_v57, %v14460_v21 }
 0x27d   :  { %v1872_v38 = vcombine.high %v24448_v57, %v14460_v21  ;;  %v15131_v15 = vrot.slane %v3775_v59, %v12858_v10  ;;  %v15134_v42 = vrot.slane %v3776_v47, %v12858_v10  ;;  %v4183_v2 = vcombine.low %v24449_v34, %v14558_v6  ;;  %v24451_v57 = vld [vmem:[#allocation22_spill] sm:$0xff]  ;;  %v15151_v47 = vpop.trf.xlu1 }
 0x27e   :  { %v4184_v11 = vcombine.high %v24449_v34, %v14558_v6  ;;  %v15141_v44 = vrot.slane %v1599_v61, %v12858_v10  ;;  %v15144_v18 = vrot.slane %v1600_v52, %v12858_v10  ;;  %v15147_v21 = vrot.slane %v3911_v60, %v12858_v10 }
 0x27f   :  { %v2007_v59 = vcombine.low %v24451_v57, %v14560_v17  ;;  %v15153_v40 = vpop.trf.xlu0  ;;  %v15156_v30 = vrot.slane %v3912_v1, %v12858_v10  ;;  %v15159_v6 = vrot.slane %v1735_v12, %v12858_v10  ;;  %v15162_v61 = vrot.slane %v1736_v24, %v12858_v10 }
 0x280   :  { %24450 = vst [vmem:[#allocation53_spill] sm:$0xff] %v15147_v21  ;;  %v15165_v52 = vrot.slane %v4047_v8, %v12858_v10  ;;  %v15168_v60 = vrot.slane %v4048_v27, %v12858_v10  ;;  %v15171_v34 = vrot.slane %v1871_v14, %v12858_v10  ;;  %v15174_v50 = vrot.slane %v1872_v38, %v12858_v10  ;;  %v24453_v8 = vld [vmem:[#allocation106_spill] sm:$0xff]  ;;  %v24455_v38 = vld [vmem:[#allocation107_spill] sm:$0xff] }
 0x281   :  { %v2008_v1 = vcombine.high %v24451_v57, %v14560_v17  ;;  %v15179_v12 = vrot.slane %v4183_v2, %v12858_v10  ;;  %v15182_v24 = vrot.slane %v4184_v11, %v12858_v10  ;;  %v4319_v63 = vcombine.low %v24453_v8, %v14658_v31  ;;  %v15193_v39 = vpop.trf.xlu1 }
 0x282   :  { %v4320_v27 = vcombine.high %v24453_v8, %v14658_v31  ;;  %v15189_v14 = vrot.slane %v2007_v59, %v12858_v10  ;;  %v2143_v13 = vcombine.low %v24455_v38, %v14660_v20  ;;  %v272_v2 = vcombine.high %v14225_v54, %v14228_v7  ;;  %v24456_v31 = vld [vmem:[#allocation43_spill] sm:$0xff]  ;;  %v24458_v54 = vld [vmem:[#allocation113_spill] sm:$0xff] }
 0x283   :  { %24452 = vst [vmem:[#allocation18_spill] sm:$0xff] %v15179_v12  ;;  %v15195_v17 = vpop.trf.xlu0  ;;  %v256_v11 = vcombine.high %v14231_v16, %v14234_v56  ;;  %v2144_v57 = vcombine.high %v24455_v38, %v14660_v20  ;;  %v4455_v59 = vcombine.low %v24456_v31, %v14758_v19  ;;  %v4456_v8 = vcombine.high %v24456_v31, %v14758_v19  ;;  %v24459_v56 = vld [vmem:[#allocation114_spill] sm:$0xff] }
 0x284   :  { %24454 = vst [vmem:[#allocation52_spill] sm:$0xff] %v15189_v14  ;;  %v4591_v7 = vcombine.low %v24458_v54, %v14858_v23  ;;  %v4592_v16 = vcombine.high %v24458_v54, %v14858_v23  ;;  %v2415_v20 = vcombine.low %v24459_v56, %v14860_v36  ;;  %v15218_v38 = vrot.slane %v2008_v1, %v12858_v10  ;;  %v24460_v23 = vld [vmem:[#allocation115_spill] sm:$0xff] }
 0x285   :  { %v15221_v19 = vrot.slane %v4319_v63, %v12858_v10  ;;  %v15224_v31 = vrot.slane %v4320_v27, %v12858_v10  ;;  %v2416_v46 = vcombine.high %v24459_v56, %v14860_v36  ;;  %v15229_v41 = vrot.slane %v2143_v13, %v12858_v10  ;;  %v15233_v3 = vpop.trf.xlu1 }
 0x286   :  { %v4727_v54 = vcombine.low %v24460_v23, %v14958_v28  ;;  %v15238_v1 = vrot.slane %v272_v2, %v12890_v29  ;;  %v15241_v63 = vrot.slane %v256_v11, %v12890_v29  ;;  %v15244_v27 = vrot.slane %v2144_v57, %v12858_v10 }
 0x287   :  { %v15235_v62 = vpop.trf.xlu0  ;;  %v15247_v36 = vrot.slane %v4455_v59, %v12858_v10  ;;  %v15250_v13 = vrot.slane %v4456_v8, %v12858_v10  ;;  %v15253_v56 = vrot.slane %v2279_v49, %v12858_v10  ;;  %v15259_v2 = vrot.slane %v4591_v7, %v12858_v10  ;;  %v24468_v49 = vld [vmem:[#allocation116_spill] sm:$0xff] }
 0x288   :  { %24461 = vst [vmem:[#allocation40_spill] sm:$0xff] %v15238_v1  ;;  %24462 = vst [vmem:[#allocation101_spill] sm:$0xff] %v15241_v63  ;;  %v15262_v11 = vrot.slane %v4592_v16, %v12858_v10  ;;  %v15265_v57 = vrot.slane %v2415_v20, %v12858_v10  ;;  %v15268_v59 = vrot.slane %v2416_v46, %v12858_v10  ;;  %v24471_v46 = vld [vmem:[#allocation139_spill] sm:$0xff] }
 0x289   :  { %24463 = vst [vmem:[#allocation25_spill] sm:$0xff] %v15247_v36  ;;  %24464 = vst [vmem:[#allocation22_spill] sm:$0xff] %v15253_v56  ;;  %v4728_v8 = vcombine.high %v24460_v23, %v14958_v28  ;;  %v2551_v35 = vcombine.low %v24468_v49, %v14960_v43  ;;  %v2552_v32 = vcombine.high %v24468_v49, %v14960_v43  ;;  %v15279_v16 = vpop.trf.xlu1  ;;  %v24476_v43 = vld [vmem:[#allocation120_spill] sm:$0xff] }
 0x28a   :  { %24465 = vst [vmem:[#allocation106_spill] sm:$0xff] %v15262_v11  ;;  %24466 = vst [vmem:[#allocation107_spill] sm:$0xff] %v15265_v57  ;;  %v15277_v7 = vrot.slane %v4727_v54, %v12858_v10  ;;  %v24470_v20 = vcombine.high %v14249_v4, %v14249_v4  ;;  %v24472_v28 = vcombine.high %v24471_v46, %v14249_v4  ;;  %v24473_v54 = vld [vmem:[#allocation117_spill] sm:$0xff]  ;;  %v24475_v4 = vld [vmem:[#allocation119_spill] sm:$0xff] }
 0x28b   :  { %24467 = vst [vmem:[#allocation43_spill] sm:$0xff] %v15268_v59  ;;  %v15281_v33 = vpop.trf.xlu0  ;;  %v4863_v49 = vcombine.low %v24473_v54, %v15028_v58  ;;  %v4864_v48 = vcombine.high %v24473_v54, %v15028_v58  ;;  %v4999_v46 = vcombine.low %v24475_v4, %v15109_v9  ;;  %v2823_v23 = vcombine.low %v24476_v43, %v15111_v0  ;;  %v24477_v58 = vld [vmem:[#allocation121_spill] sm:$0xff] }
 0x28c   :  { %24469 = vst [vmem:[#allocation111_spill] sm:$0xff] %v15277_v7  ;;  %1015 = vxpose.xlu1.b32.start.end [1/1] (short) %v24470_v20, 128  ;;  %983 = vxpose.xlu0.b32.start.end [1/1] (short) %v24472_v28, 128  ;;  %v2688_v20 = vcombine.high %v24474_v55, %v15030_v45  ;;  %v5000_v28 = vcombine.high %v24475_v4, %v15109_v9  ;;  %v24478_v55 = vld [vmem:[#allocation122_spill] sm:$0xff] }
 0x28d   :  { %v2824_v51 = vcombine.high %v24476_v43, %v15111_v0  ;;  %v5135_v54 = vcombine.low %v24477_v58, %v15151_v47  ;;  %v5136_v7 = vcombine.high %v24477_v58, %v15151_v47  ;;  %v2959_v45 = vcombine.low %v24478_v55, %v15153_v40  ;;  %v24480_v43 = vld [vmem:[#allocation123_spill] sm:$0xff]  ;;  %v15328_v11 = vpop.trf.xlu1 }
 0x28e   :  { %v2960_v59 = vcombine.high %v24478_v55, %v15153_v40  ;;  %v15318_v9 = vrot.slane %v4728_v8, %v12858_v10  ;;  %v15321_v4 = vrot.slane %v2551_v35, %v12858_v10  ;;  %v15324_v0 = vrot.slane %v2552_v32, %v12858_v10 }
 0x28f   :  { %v5271_v57 = vcombine.low %v24480_v43, %v15193_v39  ;;  %v15330_v47 = vpop.trf.xlu0  ;;  %v15333_v58 = vrot.slane %v4863_v49, %v12858_v10  ;;  %v15336_v40 = vrot.slane %v4864_v48, %v12858_v10  ;;  %v15339_v8 = vrot.slane %v2687_v26, %v12858_v10 }
 0x290   :  { %24479 = vst [vmem:[#allocation113_spill] sm:$0xff] %v15324_v0  ;;  %v15342_v35 = vrot.slane %v2688_v20, %v12858_v10  ;;  %v15345_v32 = vrot.slane %v4999_v46, %v12858_v10  ;;  %v15348_v55 = vrot.slane %v5000_v28, %v12858_v10  ;;  %v15351_v0 = vrot.slane %v2823_v23, %v12858_v10 }
 0x291   :  { %24481 = vst [vmem:[#allocation114_spill] sm:$0xff] %v15333_v58  ;;  %24482 = vst [vmem:[#allocation115_spill] sm:$0xff] %v15336_v40  ;;  %v15354_v49 = vrot.slane %v2824_v51, %v12858_v10  ;;  %v15357_v48 = vrot.slane %v5135_v54, %v12858_v10  ;;  %v15360_v26 = vrot.slane %v5136_v7, %v12858_v10  ;;  %v24494_v51 = vld [vmem:[#allocation124_spill] sm:$0xff]  ;;  %v903_v7 = vpop.trf.xlu1 }
 0x292   :  { %24483 = vst [vmem:[#allocation116_spill] sm:$0xff] %v15339_v8  ;;  %24484 = vst [vmem:[#allocation139_spill] sm:$0xff] %v15342_v35  ;;  %v15363_v20 = vrot.slane %v2959_v45, %v12858_v10  ;;  %v15366_v46 = vrot.slane %v2960_v59, %v12858_v10  ;;  %v5272_v28 = vcombine.high %v24480_v43, %v15193_v39  ;;  %v24496_v59 = vld [vmem:[#allocation132_spill] sm:$0xff]  ;;  %v24497_v39 = vld [vmem:[#allocation125_spill] sm:$0xff] }
 0x293   :  { %24485 = vst [vmem:[#allocation117_spill] sm:$0xff] %v15345_v32  ;;  %24486 = vst [vmem:[#allocation118_spill] sm:$0xff] %v15348_v55  ;;  %v15371_v23 = vrot.slane %v5271_v57, %v12858_v10  ;;  %v3096_v54 = vcombine.high %v24494_v51, %v15195_v17  ;;  %v5407_v57 = vcombine.low %v24497_v39, %v15233_v3  ;;  %v24513_v35 = vld [vmem:[#allocation135_spill] sm:$0xff] }
 0x294   :  { %24487 = vst [vmem:[#allocation119_spill] sm:$0xff] %v15351_v0  ;;  %24488 = vst [vmem:[#allocation120_spill] sm:$0xff] %v15354_v49  ;;  %v3095_v49 = vcombine.low %v24494_v51, %v15195_v17  ;;  %v5408_v43 = vcombine.high %v24497_v39, %v15233_v3  ;;  %v15402_v3 = vrot.slane %v5272_v28, %v12858_v10  ;;  %v24508_v39 = vld [vmem:[#allocation127_spill] sm:$0xff] }
 0x295   :  { %24489 = vst [vmem:[#allocation121_spill] sm:$0xff] %v15357_v48  ;;  %24490 = vst [vmem:[#allocation122_spill] sm:$0xff] %v15360_v26  ;;  %v871_v26 = vpop.trf.xlu0  ;;  %v24495_v48 = vld [vmem:[#allocation131_spill] sm:$0xff] }
 0x296   :  { %24491 = vst [vmem:[#allocation123_spill] sm:$0xff] %v15363_v20  ;;  %24492 = vst [vmem:[#allocation207_spill] sm:$0xff] %v15366_v46  ;;  %v3655_v45 = vcombine.low %v24495_v48, %v903_v7  ;;  %v3656_v20 = vcombine.high %v24495_v48, %v903_v7  ;;  %v1479_v46 = vcombine.low %v24496_v59, %v871_v26 }
 0x297   :  { %24493 = vst [vmem:[#allocation208_spill] sm:$0xff] %v15371_v23  ;;  %v1480_v0 = vcombine.high %v24496_v59, %v871_v26  ;;  %v24498_v23 = vld [vmem:[#allocation126_spill] sm:$0xff]  ;;  %24501 = vst [vmem:[#allocation132_spill] sm:$0xff] %v15402_v3  ;;  %v15405_v59 = vrot.slane %v3095_v49, %v12858_v10  ;;  %v15432_v28 = vrot.slane %v5408_v43, %v12858_v10 }
 0x298   :  { %v3231_v55 = vcombine.low %v24498_v23, %v15235_v62  ;;  %v3232_v17 = vcombine.high %v24498_v23, %v15235_v62  ;;  %v15390_v51 = vrot.slane %v3655_v45, %v12858_v10  ;;  %v15393_v48 = vrot.slane %v3656_v20, %v12858_v10  ;;  %v904_v23 = vpop.trf.xlu1  ;;  %v24512_v3 = vld [vmem:[#allocation134_spill] sm:$0xff] }
 0x299   :  { %v15396_v26 = vrot.slane %v1479_v46, %v12858_v10  ;;  %v15399_v7 = vrot.slane %v1480_v0, %v12858_v10  ;;  %24502 = vst [vmem:[#allocation125_spill] sm:$0xff] %v15405_v59  ;;  %v15408_v62 = vrot.slane %v3096_v54, %v12858_v10  ;;  %v872_v45 = vpop.trf.xlu0  ;;  %v15429_v0 = vrot.slane %v5407_v57, %v12858_v10  ;;  %v24509_v46 = vld [vmem:[#allocation128_spill] sm:$0xff] }
 0x29a   :  { %24499 = vst [vmem:[#allocation124_spill] sm:$0xff] %v15390_v51  ;;  %24505 = vst [vmem:[#allocation210_spill] sm:$0xff] %v15432_v28  ;;  %v15435_v49 = vrot.slane %v3231_v55, %v12858_v10  ;;  %v15438_v54 = vrot.slane %v3232_v17, %v12858_v10  ;;  %v5544_v20 = vcombine.high %v24508_v39, %v15279_v16  ;;  %v24510_v55 = vld [vmem:[#allocation129_spill] sm:$0xff] }
 0x29b   :  { %24500 = vst [vmem:[#allocation131_spill] sm:$0xff] %v15396_v26  ;;  %24503 = vst [vmem:[#allocation126_spill] sm:$0xff] %v15408_v62  ;;  %v5543_v62 = vcombine.low %v24508_v39, %v15279_v16  ;;  %v3367_v59 = vcombine.low %v24509_v46, %v15281_v33  ;;  %v3368_v57 = vcombine.high %v24509_v46, %v15281_v33 }
 0x29c   :  { %24504 = vst [vmem:[#allocation209_spill] sm:$0xff] %v15429_v0  ;;  %24506 = vst [vmem:[#allocation211_spill] sm:$0xff] %v15435_v49  ;;  %v905_v43 = vpop.trf.xlu1  ;;  %v5679_v49 = vcombine.low %v24510_v55, %v15328_v11  ;;  %v24511_v0 = vld [vmem:[#allocation133_spill] sm:$0xff]  ;;  %v1615_v32 = vcombine.low %v24512_v3, %v872_v45  ;;  %v5680_v16 = vcombine.high %v24510_v55, %v15328_v11 }
 0x29d   :  { %24507 = vst [vmem:[#allocation212_spill] sm:$0xff] %v15438_v54  ;;  %v873_v28 = vpop.trf.xlu0  ;;  %v3791_v17 = vcombine.low %v24511_v0, %v904_v23  ;;  %v3792_v54 = vcombine.high %v24511_v0, %v904_v23  ;;  %v1616_v39 = vcombine.high %v24512_v3, %v872_v45  ;;  %v3927_v8 = vcombine.low %v24513_v35, %v905_v43  ;;  %v24514_v23 = vld [vmem:[#allocation136_spill] sm:$0xff] }
 0x29e   :  { %v3928_v33 = vcombine.high %v24513_v35, %v905_v43  ;;  %v15465_v58 = vrot.slane %v1615_v32, %v12858_v10  ;;  %v1751_v0 = vcombine.low %v24514_v23, %v873_v28  ;;  %v1752_v35 = vcombine.high %v24514_v23, %v873_v28  ;;  %v24518_v23 = vld [vmem:[#allocation130_spill] sm:$0xff] }
 0x29f   :  { %v15459_v46 = vrot.slane %v3791_v17, %v12858_v10  ;;  %v15462_v40 = vrot.slane %v3792_v54, %v12858_v10  ;;  %v15469_v63 = vrot.slane %v1616_v39, %v12858_v10  ;;  %v15472_v11 = vrot.slane %v3927_v8, %v12858_v10 }
 0x2a0   :  { %v15475_v3 = vrot.slane %v3928_v33, %v12858_v10  ;;  %v906_v45 = vpop.trf.xlu1  ;;  %v3503_v8 = vcombine.low %v24518_v23, %v15330_v47  ;;  %v3504_v17 = vcombine.high %v24518_v23, %v15330_v47  ;;  %v15505_v28 = vrot.slane %v3367_v59, %v12858_v10  ;;  %v24523_v23 = vld [vmem:[#allocation137_spill] sm:$0xff]  ;;  %v24526_v59 = vld [vmem:[#allocation138_spill] sm:$0xff] }
 0x2a1   :  { %24515 = vst [vmem:[#allocation127_spill] sm:$0xff] %v15472_v11  ;;  %v874_v43 = vpop.trf.xlu0  ;;  %v3839_v54 = vcombine.low %v15131_v15, %v15459_v46  ;;  %v3840_v32 = vcombine.high %v15131_v15, %v15459_v46  ;;  %v3855_v55 = vcombine.low %v15134_v42, %v15462_v40  ;;  %v15495_v15 = vrot.slane %v5543_v62, %v12858_v10 }
 0x2a2   :  { %v15498_v46 = vrot.slane %v5544_v20, %v12858_v10  ;;  %24519 = vst [vmem:[#allocation133_spill] sm:$0xff] %v15505_v28  ;;  %v15508_v39 = vrot.slane %v3368_v57, %v12858_v10  ;;  %v15511_v33 = vrot.slane %v5679_v49, %v12858_v10  ;;  %v15514_v62 = vrot.slane %v5680_v16, %v12858_v10 }
 0x2a3   :  { %24516 = vst [vmem:[#allocation128_spill] sm:$0xff] %v15495_v15  ;;  %v15525_v49 = vrot.slane %v1751_v0, %v12858_v10  ;;  %v15528_v16 = vrot.slane %v1752_v35, %v12858_v10  ;;  %v15533_v15 = vrot.slane %v3503_v8, %v12858_v10  ;;  %v15536_v47 = vrot.slane %v3504_v17, %v12858_v10 }
 0x2a4   :  { %24517 = vst [vmem:[#allocation129_spill] sm:$0xff] %v15498_v46  ;;  %24520 = vst [vmem:[#allocation134_spill] sm:$0xff] %v15508_v39  ;;  %v907_v20 = vpop.trf.xlu1  ;;  %v1887_v39 = vcombine.low %v24526_v59, %v874_v43  ;;  %v1888_v0 = vcombine.high %v24526_v59, %v874_v43  ;;  %v24529_v8 = vcombine.low %v15094_v53, %v15393_v48 }
 0x2a5   :  { %24521 = vst [vmem:[#allocation135_spill] sm:$0xff] %v15511_v33  ;;  %24522 = vst [vmem:[#allocation136_spill] sm:$0xff] %v15514_v62  ;;  %v875_v46 = vpop.trf.xlu0  ;;  %v4063_v62 = vcombine.low %v24523_v23, %v906_v45  ;;  %v4064_v33 = vcombine.high %v24523_v23, %v906_v45  ;;  %v24527_v45 = vcombine.high %v15091_v22, %v15390_v51 }
 0x2a6   :  { %24524 = vst [vmem:[#allocation130_spill] sm:$0xff] %v15533_v15  ;;  %24525 = vst [vmem:[#allocation137_spill] sm:$0xff] %v15536_v47  ;;  %v15559_v15 = vrot.slane %v1887_v39, %v12858_v10  ;;  %v24533_v39 = vld [vmem:[#allocation140_spill] sm:$0xff]  ;;  %v15589_v22 = vrot.slane %v1888_v0, %v12858_v10 }
 0x2a7   :  { %v15552_v47 = vrot.slane %v4063_v62, %v12858_v10  ;;  %v15555_v57 = vrot.slane %v4064_v33, %v12858_v10  ;;  %v15565_v35 = vrot.slane %v24527_v45, %v12890_v29  ;;  %v15571_v62 = vrot.slane %v24529_v8, %v12890_v29 }
 0x2a8   :  { %v908_v23 = vpop.trf.xlu1  ;;  %v24531_v33 = vcombine.high %v15094_v53, %v15393_v48  ;;  %v4199_v59 = vcombine.low %v24533_v39, %v907_v20  ;;  %v1935_v53 = vcombine.low %v15171_v34, %v15559_v15  ;;  %v15619_v48 = vrot.slane %v3839_v54, %v12890_v29 }
 0x2a9   :  { %v15549_v17 = vpop.trf.xlu0  ;;  %24528 = vst [vmem:[#allocation138_spill] sm:$0xff] %v15565_v35  ;;  %24530 = vst [vmem:[#allocation213_spill] sm:$0xff] %v15571_v62  ;;  %v4111_v28 = vcombine.low %v15165_v52, %v15552_v47  ;;  %v4112_v45 = vcombine.high %v15165_v52, %v15552_v47  ;;  %v4127_v51 = vcombine.low %v15168_v60, %v15555_v57 }
 0x2aa   :  { %v15577_v43 = vrot.slane %v24531_v33, %v12890_v29  ;;  %v4128_v8 = vcombine.high %v15168_v60, %v15555_v57  ;;  %v4200_v33 = vcombine.high %v24533_v39, %v907_v20  ;;  %v24534_v47 = vcombine.high %v15101_v25, %v15396_v26  ;;  %24540 = vst [vmem:[#allocation217_spill] sm:$0xff] %v15619_v48 }
 0x2ab   :  { %v24536_v57 = vcombine.low %v15122_v37, %v15399_v7  ;;  %v24538_v20 = vcombine.high %v15122_v37, %v15399_v7  ;;  %v15622_v62 = vrot.slane %v3840_v32, %v12890_v29  ;;  %v15632_v25 = vrot.slane %v4199_v59, %v12858_v10  ;;  %v24544_v7 = vld [vmem:[#allocation141_spill] sm:$0xff]  ;;  %v24549_v59 = vld [vmem:[#allocation142_spill] sm:$0xff] }
 0x2ac   :  { %24532 = vst [vmem:[#allocation214_spill] sm:$0xff] %v15577_v43  ;;  %v15596_v43 = vpop.trf.xlu1  ;;  %v15604_v60 = vrot.slane %v24534_v47, %v12890_v29  ;;  %v15625_v47 = vrot.slane %v3855_v55, %v12890_v29  ;;  %v15635_v37 = vrot.slane %v4200_v33, %v12858_v10  ;;  %v2023_v54 = vcombine.low %v24544_v7, %v875_v46 }
 0x2ad   :  { %v15598_v52 = vpop.trf.xlu0  ;;  %v15610_v0 = vrot.slane %v24536_v57, %v12890_v29  ;;  %v15616_v39 = vrot.slane %v24538_v20, %v12890_v29  ;;  %24541 = vst [vmem:[#allocation218_spill] sm:$0xff] %v15622_v62  ;;  %24543 = vst [vmem:[#allocation220_spill] sm:$0xff] %v15632_v25  ;;  %v2024_v32 = vcombine.high %v24544_v7, %v875_v46 }
 0x2ae   :  { %24535 = vst [vmem:[#allocation140_spill] sm:$0xff] %v15604_v60  ;;  %24542 = vst [vmem:[#allocation219_spill] sm:$0xff] %v15625_v47  ;;  %v24545_v55 = vcombine.high %v15134_v42, %v15462_v40  ;;  %v24547_v57 = vcombine.low %v15141_v44, %v15465_v58  ;;  %v4335_v47 = vcombine.low %v24549_v59, %v908_v23 }
 0x2af   :  { %24537 = vst [vmem:[#allocation215_spill] sm:$0xff] %v15610_v0  ;;  %24539 = vst [vmem:[#allocation216_spill] sm:$0xff] %v15616_v39  ;;  %v4336_v33 = vcombine.high %v24549_v59, %v908_v23  ;;  %v4248_v42 = vcombine.high %v15179_v12, %v15632_v25  ;;  %v4263_v40 = vcombine.low %v15182_v24, %v15635_v37 }
 0x2b0   :  { %v15643_v20 = vrot.slane %v24545_v55, %v12890_v29  ;;  %v15649_v26 = vrot.slane %v24547_v57, %v12890_v29  ;;  %v15653_v62 = vpop.trf.xlu1  ;;  %v4264_v57 = vcombine.high %v15182_v24, %v15635_v37  ;;  %v15666_v7 = vrot.slane %v2023_v54, %v12858_v10 }
 0x2b1   :  { %v15655_v48 = vpop.trf.xlu0  ;;  %v15669_v23 = vrot.slane %v2024_v32, %v12858_v10  ;;  %v15672_v55 = vrot.slane %v4335_v47, %v12858_v10  ;;  %v15675_v59 = vrot.slane %v4336_v33, %v12858_v10  ;;  %v24551_v46 = vcombine.high %v15141_v44, %v15465_v58 }
 0x2b2   :  { %24546 = vst [vmem:[#allocation141_spill] sm:$0xff] %v15643_v20  ;;  %24548 = vst [vmem:[#allocation221_spill] sm:$0xff] %v15649_v26  ;;  %v24553_v24 = vcombine.low %v15144_v18, %v15469_v63  ;;  %v24555_v47 = vcombine.high %v15144_v18, %v15469_v63  ;;  %v24557_v32 = vcombine.high %v15147_v21, %v15472_v11 }
 0x2b3   :  { %24550 = vst [vmem:[#allocation142_spill] sm:$0xff] %v15666_v7  ;;  %v15681_v25 = vrot.slane %v24551_v46, %v12890_v29  ;;  %v2072_v58 = vcombine.high %v15189_v14, %v15666_v7  ;;  %v2087_v46 = vcombine.low %v15218_v38, %v15669_v23  ;;  %v2088_v18 = vcombine.high %v15218_v38, %v15669_v23 }
 0x2b4   :  { %v15687_v37 = vrot.slane %v24553_v24, %v12890_v29  ;;  %v15693_v54 = vrot.slane %v24555_v47, %v12890_v29  ;;  %v15699_v33 = vrot.slane %v24557_v32, %v12890_v29  ;;  %v15709_v63 = vpop.trf.xlu1  ;;  %v24559_v47 = vcombine.low %v15156_v30, %v15475_v3 }
 0x2b5   :  { %24552 = vst [vmem:[#allocation222_spill] sm:$0xff] %v15681_v25  ;;  %v15711_v24 = vpop.trf.xlu0  ;;  %v4383_v44 = vcombine.low %v15221_v19, %v15672_v55  ;;  %v24561_v38 = vcombine.high %v15156_v30, %v15475_v3  ;;  %v24567_v7 = vcombine.high %v15162_v61, %v15528_v16  ;;  %v15750_v30 = vrot.slane %v4111_v28, %v12890_v29  ;;  %v24574_v28 = vld [vmem:[#allocation144_spill] sm:$0xff] }
 0x2b6   :  { %24554 = vst [vmem:[#allocation223_spill] sm:$0xff] %v15687_v37  ;;  %24556 = vst [vmem:[#allocation224_spill] sm:$0xff] %v15693_v54  ;;  %v15717_v32 = vrot.slane %v24559_v47, %v12890_v29  ;;  %v24563_v47 = vcombine.high %v15159_v6, %v15525_v49  ;;  %v15753_v3 = vrot.slane %v4112_v45, %v12890_v29 }
 0x2b7   :  { %24558 = vst [vmem:[#allocation225_spill] sm:$0xff] %v15699_v33  ;;  %v15729_v23 = vrot.slane %v24561_v38, %v12890_v29  ;;  %v15747_v33 = vrot.slane %v24567_v7, %v12890_v29  ;;  %24569 = vst [vmem:[#allocation231_spill] sm:$0xff] %v15750_v30  ;;  %v15756_v38 = vrot.slane %v4127_v51, %v12890_v29 }
 0x2b8   :  { %24560 = vst [vmem:[#allocation226_spill] sm:$0xff] %v15717_v32  ;;  %v15735_v14 = vrot.slane %v24563_v47, %v12890_v29  ;;  %v24565_v32 = vcombine.low %v15162_v61, %v15528_v16  ;;  %24570 = vst [vmem:[#allocation232_spill] sm:$0xff] %v15753_v3  ;;  %v4400_v47 = vcombine.high %v15224_v31, %v15675_v59  ;;  %v15769_v45 = vpop.trf.xlu1 }
 0x2b9   :  { %24562 = vst [vmem:[#allocation227_spill] sm:$0xff] %v15729_v23  ;;  %24568 = vst [vmem:[#allocation230_spill] sm:$0xff] %v15747_v33  ;;  %v24573_v23 = vld [vmem:[#allocation143_spill] sm:$0xff]  ;;  %v4471_v7 = vcombine.low %v24574_v28, %v15596_v43  ;;  %v15771_v3 = vpop.trf.xlu0  ;;  %v15774_v51 = vrot.slane %v1935_v53, %v12890_v29  ;;  %v24578_v53 = vld [vmem:[#allocation146_spill] sm:$0xff] }
 0x2ba   :  { %24564 = vst [vmem:[#allocation228_spill] sm:$0xff] %v15735_v14  ;;  %v15741_v12 = vrot.slane %v24565_v32, %v12890_v29  ;;  %24571 = vst [vmem:[#allocation233_spill] sm:$0xff] %v15756_v38  ;;  %v15761_v32 = vrot.slane %v4128_v8, %v12890_v29  ;;  %v2159_v61 = vcombine.low %v24573_v23, %v15549_v17  ;;  %v24813_v14 = vld [vmem:[#allocation101_spill] sm:$0xff]  ;;  %v24816_v33 = vld [vmem:[#allocation119_spill] sm:$0xff] }
 0x2bb   :  { %v2160_v16 = vcombine.high %v24573_v23, %v15549_v17  ;;  %24575 = vst [vmem:[#allocation143_spill] sm:$0xff] %v15774_v51  ;;  %v4472_v8 = vcombine.high %v24574_v28, %v15596_v43  ;;  %v15787_v11 = vrot.slane %v4471_v7, %v12858_v10  ;;  %v4607_v21 = vcombine.low %v24578_v53, %v15653_v62 }
 0x2bc   :  { %24566 = vst [vmem:[#allocation229_spill] sm:$0xff] %v15741_v12  ;;  %24572 = vst [vmem:[#allocation234_spill] sm:$0xff] %v15761_v32  ;;  %v24576_v32 = vld [vmem:[#allocation145_spill] sm:$0xff]  ;;  %v2167_v17 = vrot.slane %v2159_v61, %v12858_v10 }
 0x2bd   :  { %v2295_v38 = vcombine.low %v24576_v32, %v15598_v52  ;;  %v2296_v30 = vcombine.high %v24576_v32, %v15598_v52  ;;  %v15784_v23 = vrot.slane %v2160_v16, %v12858_v10  ;;  %24577 = vst [vmem:[#allocation144_spill] sm:$0xff] %v15787_v11  ;;  %v15792_v20 = vrot.slane %v4472_v8, %v12858_v10  ;;  %v15808_v8 = vpop.trf.xlu1 }
 0x2be   :  { %v4608_v52 = vcombine.high %v24578_v53, %v15653_v62  ;;  %v2207_v32 = vcombine.low %v15229_v41, %v2167_v17  ;;  %v2208_v61 = vcombine.high %v15229_v41, %v2167_v17  ;;  %v4520_v62 = vcombine.high %v15247_v36, %v15787_v11 }
 0x2bf   :  { %v15795_v43 = vrot.slane %v2295_v38, %v12858_v10  ;;  %v15798_v28 = vrot.slane %v2296_v30, %v12858_v10  ;;  %v2223_v16 = vcombine.low %v15244_v27, %v15784_v23  ;;  %v2224_v7 = vcombine.high %v15244_v27, %v15784_v23  ;;  %v15810_v38 = vpop.trf.xlu0 }
 0x2c0   :  { %v4535_v53 = vcombine.low %v15250_v13, %v15792_v20  ;;  %v4536_v41 = vcombine.high %v15250_v13, %v15792_v20  ;;  %v24580_v27 = vcombine.high %v15171_v34, %v15559_v15  ;;  %v24582_v23 = vcombine.low %v15174_v50, %v15589_v22 }
 0x2c1   :  { %24579 = vst [vmem:[#allocation145_spill] sm:$0xff] %v15795_v43  ;;  %v24584_v11 = vcombine.high %v15174_v50, %v15589_v22  ;;  %v15839_v13 = vrot.slane %v4248_v42, %v12890_v29  ;;  %v15842_v20 = vrot.slane %v4263_v40, %v12890_v29  ;;  %v15845_v34 = vrot.slane %v4264_v57, %v12890_v29  ;;  %v15861_v40 = vpop.trf.xlu1 }
 0x2c2   :  { %v15824_v17 = vrot.slane %v24580_v27, %v12890_v29  ;;  %v15830_v30 = vrot.slane %v24582_v23, %v12890_v29  ;;  %v15848_v15 = vrot.slane %v2072_v58, %v12890_v29  ;;  %v2344_v50 = vcombine.high %v15253_v56, %v15795_v43  ;;  %v24590_v23 = vld [vmem:[#allocation147_spill] sm:$0xff] }
 0x2c3   :  { %v15836_v36 = vrot.slane %v24584_v11, %v12890_v29  ;;  %24586 = vst [vmem:[#allocation237_spill] sm:$0xff] %v15839_v13  ;;  %24587 = vst [vmem:[#allocation238_spill] sm:$0xff] %v15842_v20  ;;  %v2359_v22 = vcombine.low %v15256_v5, %v15798_v28  ;;  %v2360_v11 = vcombine.high %v15256_v5, %v15798_v28  ;;  %v15863_v57 = vpop.trf.xlu0  ;;  %v24591_v20 = vld [vmem:[#allocation148_spill] sm:$0xff] }
 0x2c4   :  { %24581 = vst [vmem:[#allocation146_spill] sm:$0xff] %v15824_v17  ;;  %24583 = vst [vmem:[#allocation235_spill] sm:$0xff] %v15830_v30  ;;  %v15859_v42 = vrot.slane %v4607_v21, %v12858_v10  ;;  %v15866_v58 = vrot.slane %v4608_v52, %v12858_v10  ;;  %v2431_v27 = vcombine.low %v24590_v23, %v15655_v48 }
 0x2c5   :  { %24585 = vst [vmem:[#allocation236_spill] sm:$0xff] %v15836_v36  ;;  %24588 = vst [vmem:[#allocation239_spill] sm:$0xff] %v15845_v34  ;;  %v2432_v34 = vcombine.high %v24590_v23, %v15655_v48  ;;  %v4743_v13 = vcombine.low %v24591_v20, %v15709_v63  ;;  %v15875_v5 = vrot.slane %v2087_v46, %v12890_v29  ;;  %v24595_v48 = vld [vmem:[#allocation106_spill] sm:$0xff]  ;;  %v15908_v56 = vpop.trf.xlu1  ;;  %v24916_v36 = vld [vmem:[#allocation25_spill] sm:$0xff] }
 0x2c6   :  { %24589 = vst [vmem:[#allocation240_spill] sm:$0xff] %v15848_v15  ;;  %v15878_v21 = vrot.slane %v2088_v18, %v12890_v29  ;;  %v15881_v28 = vrot.slane %v4383_v44, %v12890_v29  ;;  %v4655_v52 = vcombine.low %v15259_v2, %v15859_v42  ;;  %v4656_v35 = vcombine.high %v15259_v2, %v15859_v42  ;;  %v24780_v15 = vld [vmem:[#allocation22_spill] sm:$0xff] }
 0x2c7   :  { %24592 = vst [vmem:[#allocation147_spill] sm:$0xff] %v15875_v5  ;;  %v4671_v23 = vcombine.low %v24595_v48, %v15866_v58  ;;  %v4672_v43 = vcombine.high %v24595_v48, %v15866_v58  ;;  %v15892_v46 = vrot.slane %v2431_v27, %v12858_v10  ;;  %v24596_v44 = vcombine.high %v15221_v19, %v15672_v55  ;;  %v15910_v58 = vpop.trf.xlu0  ;;  %v24604_v48 = vld [vmem:[#allocation43_spill] sm:$0xff] }
 0x2c8   :  { %24593 = vst [vmem:[#allocation148_spill] sm:$0xff] %v15878_v21  ;;  %24594 = vst [vmem:[#allocation241_spill] sm:$0xff] %v15881_v28  ;;  %v15901_v28 = vrot.slane %v2432_v34, %v12858_v10  ;;  %v4744_v2 = vcombine.high %v24591_v20, %v15709_v63  ;;  %v15906_v42 = vrot.slane %v4743_v13, %v12858_v10  ;;  %v24603_v63 = vld [vmem:[#allocation107_spill] sm:$0xff] }
 0x2c9   :  { %v15898_v18 = vrot.slane %v24596_v44, %v12890_v29  ;;  %v24599_v27 = vcombine.low %v15224_v31, %v15675_v59  ;;  %v15919_v55 = vrot.slane %v4400_v47, %v12890_v29  ;;  %v15922_v34 = vrot.slane %v2207_v32, %v12890_v29  ;;  %v24606_v32 = vld [vmem:[#allocation111_spill] sm:$0xff] }
 0x2ca   :  { %24598 = vst [vmem:[#allocation242_spill] sm:$0xff] %v15906_v42  ;;  %v2479_v13 = vcombine.low %v24603_v63, %v15892_v46  ;;  %v2480_v20 = vcombine.high %v24603_v63, %v15892_v46  ;;  %v2495_v44 = vcombine.low %v24604_v48, %v15901_v28  ;;  %v2496_v31 = vcombine.high %v24604_v48, %v15901_v28  ;;  %v24607_v46 = vld [vmem:[#allocation149_spill] sm:$0xff]  ;;  %v15955_v48 = vpop.trf.xlu1 }
 0x2cb   :  { %24597 = vst [vmem:[#allocation106_spill] sm:$0xff] %v15898_v18  ;;  %v15916_v19 = vrot.slane %v24599_v27, %v12890_v29  ;;  %24601 = vst [vmem:[#allocation244_spill] sm:$0xff] %v15919_v55  ;;  %v15933_v59 = vrot.slane %v4744_v2, %v12858_v10  ;;  %v15936_v47 = vrot.slane %v2208_v61, %v12890_v29  ;;  %v15957_v27 = vpop.trf.xlu0  ;;  %v24614_v18 = vld [vmem:[#allocation150_spill] sm:$0xff] }
 0x2cc   :  { %24602 = vst [vmem:[#allocation245_spill] sm:$0xff] %v15922_v34  ;;  %v4792_v55 = vcombine.high %v24606_v32, %v15906_v42  ;;  %v2567_v63 = vcombine.low %v24607_v46, %v15711_v24  ;;  %v15948_v28 = vrot.slane %v2224_v7, %v12890_v29  ;;  %v15951_v2 = vrot.slane %v4520_v62, %v12890_v29  ;;  %v24781_v34 = vld [vmem:[#allocation145_spill] sm:$0xff] }
 0x2cd   :  { %24600 = vst [vmem:[#allocation243_spill] sm:$0xff] %v15916_v19  ;;  %24605 = vst [vmem:[#allocation107_spill] sm:$0xff] %v15936_v47  ;;  %v15945_v19 = vrot.slane %v2223_v16, %v12890_v29  ;;  %v4807_v61 = vcombine.low %v15318_v9, %v15933_v59  ;;  %v15960_v42 = vrot.slane %v4535_v53, %v12890_v29 }
 0x2ce   :  { %24609 = vst [vmem:[#allocation149_spill] sm:$0xff] %v15948_v28  ;;  %24610 = vst [vmem:[#allocation246_spill] sm:$0xff] %v15951_v2  ;;  %v15963_v32 = vrot.slane %v4536_v41, %v12890_v29  ;;  %v4808_v16 = vcombine.high %v15318_v9, %v15933_v59  ;;  %v2568_v7 = vcombine.high %v24607_v46, %v15711_v24 }
 0x2cf   :  { %24608 = vst [vmem:[#allocation43_spill] sm:$0xff] %v15945_v19  ;;  %24611 = vst [vmem:[#allocation247_spill] sm:$0xff] %v15960_v42  ;;  %v15970_v62 = vrot.slane %v2344_v50, %v12890_v29  ;;  %v15973_v2 = vrot.slane %v2567_v63, %v12858_v10  ;;  %v4879_v28 = vcombine.low %v24614_v18, %v15769_v45  ;;  %v24617_v50 = vld [vmem:[#allocation151_spill] sm:$0xff] }
 0x2d0   :  { %24612 = vst [vmem:[#allocation248_spill] sm:$0xff] %v15963_v32  ;;  %v4880_v53 = vcombine.high %v24614_v18, %v15769_v45  ;;  %v15980_v41 = vrot.slane %v2359_v22, %v12890_v29  ;;  %v15983_v9 = vrot.slane %v2360_v11, %v12890_v29  ;;  %v2582_v24 = vrot.slane %v2568_v7, %v12858_v10  ;;  %v15996_v22 = vpop.trf.xlu1  ;;  %v15998_v11 = vpop.trf.xlu0  ;;  %v24619_v7 = vld [vmem:[#allocation113_spill] sm:$0xff] }
 0x2d1   :  { %24613 = vst [vmem:[#allocation249_spill] sm:$0xff] %v15970_v62  ;;  %v2703_v59 = vcombine.low %v24617_v50, %v15771_v3  ;;  %v2615_v46 = vcombine.low %v15321_v4, %v15973_v2  ;;  %v2616_v63 = vcombine.high %v15321_v4, %v15973_v2  ;;  %v4887_v32 = vrot.slane %v4879_v28, %v12858_v10  ;;  %v24620_v2 = vld [vmem:[#allocation101_spill] sm:$0xff] }
 0x2d2   :  { %24615 = vst [vmem:[#allocation150_spill] sm:$0xff] %v15980_v41  ;;  %24616 = vst [vmem:[#allocation250_spill] sm:$0xff] %v15983_v9  ;;  %v15994_v45 = vrot.slane %v4880_v53, %v12858_v10  ;;  %v24618_v18 = vcombine.low %v15238_v1, %v15238_v1  ;;  %v2631_v42 = vcombine.low %v24619_v7, %v2582_v24 }
 0x2d3   :  { %v2632_v9 = vcombine.high %v24619_v7, %v2582_v24  ;;  %v2704_v4 = vcombine.high %v24617_v50, %v15771_v3  ;;  %v16008_v28 = vrot.slane %v2703_v59, %v12858_v10  ;;  %v24621_v53 = vcombine.low %v24620_v2, %v15238_v1  ;;  %v24627_v50 = vld [vmem:[#allocation115_spill] sm:$0xff] }
 0x2d4   :  { %1079 = vxpose.xlu1.b32.start.end [1/1] (short) %v24618_v18, 128  ;;  %v16014_v41 = vrot.slane %v4655_v52, %v12890_v29  ;;  %v16017_v62 = vrot.slane %v2615_v46, %v12890_v29  ;;  %v24624_v18 = vld [vmem:[#allocation114_spill] sm:$0xff]  ;;  %v16022_v7 = vrot.slane %v4656_v35, %v12890_v29  ;;  %v16025_v3 = vrot.slane %v4671_v23, %v12890_v29  ;;  %v16042_v23 = vpop.trf.xlu1 }
 0x2d5   :  { %1047 = vxpose.xlu0.b32.start.end [1/1] (short) %v24621_v53, 128  ;;  %v4927_v19 = vcombine.low %v24624_v18, %v4887_v32  ;;  %v4928_v24 = vcombine.high %v24624_v18, %v4887_v32  ;;  %v4943_v59 = vcombine.low %v24627_v50, %v15994_v45  ;;  %v4944_v52 = vcombine.high %v24627_v50, %v15994_v45  ;;  %v24634_v18 = vld [vmem:[#allocation139_spill] sm:$0xff] }
 0x2d6   :  { %24622 = vst [vmem:[#allocation151_spill] sm:$0xff] %v16014_v41  ;;  %24623 = vst [vmem:[#allocation113_spill] sm:$0xff] %v16017_v62  ;;  %v16032_v53 = vrot.slane %v4672_v43, %v12890_v29  ;;  %v16035_v46 = vrot.slane %v2479_v13, %v12890_v29  ;;  %v16040_v35 = vrot.slane %v2704_v4, %v12858_v10  ;;  %v24633_v43 = vld [vmem:[#allocation116_spill] sm:$0xff] }
 0x2d7   :  { %24625 = vst [vmem:[#allocation114_spill] sm:$0xff] %v16022_v7  ;;  %24626 = vst [vmem:[#allocation251_spill] sm:$0xff] %v16025_v3  ;;  %v16044_v3 = vpop.trf.xlu0  ;;  %v16047_v7 = vrot.slane %v2480_v20, %v12890_v29  ;;  %v16050_v45 = vrot.slane %v2495_v44, %v12890_v29  ;;  %v2751_v13 = vcombine.low %v24633_v43, %v16008_v28  ;;  %v24635_v41 = vld [vmem:[#allocation152_spill] sm:$0xff] }
 0x2d8   :  { %24628 = vst [vmem:[#allocation115_spill] sm:$0xff] %v16032_v53  ;;  %24629 = vst [vmem:[#allocation252_spill] sm:$0xff] %v16035_v46  ;;  %v2752_v50 = vcombine.high %v24633_v43, %v16008_v28  ;;  %v2767_v4 = vcombine.low %v24634_v18, %v16040_v35  ;;  %v2768_v53 = vcombine.high %v24634_v18, %v16040_v35  ;;  %v24638_v28 = vld [vmem:[#allocation153_spill] sm:$0xff] }
 0x2d9   :  { %24631 = vst [vmem:[#allocation253_spill] sm:$0xff] %v16047_v7  ;;  %24632 = vst [vmem:[#allocation254_spill] sm:$0xff] %v16050_v45  ;;  %v5015_v2 = vcombine.low %v24635_v41, %v15808_v8  ;;  %v5016_v20 = vcombine.high %v24635_v41, %v15808_v8  ;;  %v16065_v44 = vrot.slane %v2496_v31, %v12890_v29  ;;  %v16084_v41 = vpop.trf.xlu1 }
 0x2da   :  { %v16068_v1 = vrot.slane %v4792_v55, %v12890_v29  ;;  %v2839_v43 = vcombine.low %v24638_v28, %v15810_v38  ;;  %v2840_v32 = vcombine.high %v24638_v28, %v15810_v38  ;;  %v16075_v18 = vrot.slane %v4807_v61, %v12890_v29  ;;  %24642 = vst [vmem:[#allocation256_spill] sm:$0xff] %v16084_v41  ;;  %v24645_v61 = vld [vmem:[#allocation154_spill] sm:$0xff] }
 0x2db   :  { %24636 = vst [vmem:[#allocation116_spill] sm:$0xff] %v16065_v44  ;;  %v16078_v35 = vrot.slane %v4808_v16, %v12890_v29  ;;  %v16081_v8 = vrot.slane %v5015_v2, %v12858_v10  ;;  %v5030_v31 = vrot.slane %v5016_v20, %v12858_v10  ;;  %v16086_v55 = vpop.trf.xlu0  ;;  %v5151_v28 = vcombine.low %v24645_v61, %v15861_v40  ;;  %v24646_v2 = vld [vmem:[#allocation117_spill] sm:$0xff]  ;;  %v24647_v41 = vld [vmem:[#allocation118_spill] sm:$0xff]  ;;  %v24649_v44 = vld [vmem:[#allocation120_spill] sm:$0xff] }
 0x2dc   :  { %24637 = vst [vmem:[#allocation139_spill] sm:$0xff] %v16068_v1  ;;  %24639 = vst [vmem:[#allocation152_spill] sm:$0xff] %v16075_v18  ;;  %v16089_v1 = vrot.slane %v2839_v43, %v12858_v10  ;;  %v2854_v38 = vrot.slane %v2840_v32, %v12858_v10  ;;  %v5152_v16 = vcombine.high %v24645_v61, %v15861_v40  ;;  %v24648_v43 = vld [vmem:[#allocation119_spill] sm:$0xff] }
 0x2dd   :  { %24640 = vst [vmem:[#allocation153_spill] sm:$0xff] %v16078_v35  ;;  %24641 = vst [vmem:[#allocation255_spill] sm:$0xff] %v16081_v8  ;;  %v5064_v20 = vcombine.high %v24646_v2, %v16081_v8  ;;  %v5079_v18 = vcombine.low %v24647_v41, %v5030_v31  ;;  %v16109_v61 = vrot.slane %v2616_v63, %v12890_v29 }
 0x2de   :  { %24643 = vst [vmem:[#allocation257_spill] sm:$0xff] %v16086_v55  ;;  %24644 = vst [vmem:[#allocation258_spill] sm:$0xff] %v16089_v1  ;;  %v5080_v55 = vcombine.high %v24647_v41, %v5030_v31  ;;  %v2888_v32 = vcombine.high %v24648_v43, %v16089_v1  ;;  %v2903_v45 = vcombine.low %v24649_v44, %v2854_v38  ;;  %v16118_v41 = vpop.trf.xlu1 }
 0x2df   :  { %v2904_v40 = vcombine.high %v24649_v44, %v2854_v38  ;;  %24650 = vst [vmem:[#allocation154_spill] sm:$0xff] %v16109_v61  ;;  %v16112_v35 = vrot.slane %v2631_v42, %v12890_v29  ;;  %v16115_v8 = vrot.slane %v2632_v9, %v12890_v29  ;;  %v5159_v31 = vrot.slane %v5151_v28, %v12858_v10  ;;  %v16120_v62 = vpop.trf.xlu0  ;;  %v24658_v9 = vld [vmem:[#allocation121_spill] sm:$0xff] }
 0x2e0   :  { %24653 = vst [vmem:[#allocation259_spill] sm:$0xff] %v16118_v41  ;;  %24654 = vst [vmem:[#allocation260_spill] sm:$0xff] %v16120_v62  ;;  %v16123_v2 = vrot.slane %v4927_v19, %v12890_v29  ;;  %v16126_v44 = vrot.slane %v4928_v24, %v12890_v29  ;;  %v16129_v63 = vrot.slane %v4943_v59, %v12890_v29  ;;  %v24659_v41 = vld [vmem:[#allocation155_spill] sm:$0xff]  ;;  %v24660_v62 = vld [vmem:[#allocation122_spill] sm:$0xff] }
 0x2e1   :  { %24651 = vst [vmem:[#allocation118_spill] sm:$0xff] %v16112_v35  ;;  %24652 = vst [vmem:[#allocation120_spill] sm:$0xff] %v16115_v8  ;;  %v16132_v42 = vrot.slane %v5152_v16, %v12858_v10  ;;  %v5199_v38 = vcombine.low %v24658_v9, %v5159_v31  ;;  %v5200_v28 = vcombine.high %v24658_v9, %v5159_v31  ;;  %v24953_v35 = vld [vmem:[#allocation117_spill] sm:$0xff] }
 0x2e2   :  { %24655 = vst [vmem:[#allocation261_spill] sm:$0xff] %v16123_v2  ;;  %24656 = vst [vmem:[#allocation262_spill] sm:$0xff] %v16126_v44  ;;  %v2975_v1 = vcombine.low %v24659_v41, %v15863_v57  ;;  %v2976_v19 = vcombine.high %v24659_v41, %v15863_v57  ;;  %v16149_v31 = vrot.slane %v4944_v52, %v12890_v29  ;;  %v16156_v2 = vpop.trf.xlu1 }
 0x2e3   :  { %24657 = vst [vmem:[#allocation263_spill] sm:$0xff] %v16129_v63  ;;  %v5215_v24 = vcombine.low %v24660_v62, %v16132_v42  ;;  %v5216_v59 = vcombine.high %v24660_v62, %v16132_v42  ;;  %v24661_v63 = vld [vmem:[#allocation156_spill] sm:$0xff]  ;;  %v16152_v9 = vrot.slane %v2751_v13, %v12890_v29  ;;  %24664 = vst [vmem:[#allocation122_spill] sm:$0xff] %v16156_v2  ;;  %v16158_v43 = vpop.trf.xlu0  ;;  %v24669_v13 = vld [vmem:[#allocation123_spill] sm:$0xff] }
 0x2e4   :  { %v5287_v16 = vcombine.low %v24661_v63, %v15908_v56  ;;  %v5288_v44 = vcombine.high %v24661_v63, %v15908_v56  ;;  %24662 = vst [vmem:[#allocation121_spill] sm:$0xff] %v16149_v31  ;;  %v2983_v57 = vrot.slane %v2975_v1, %v12858_v10  ;;  %v2990_v41 = vrot.slane %v2976_v19, %v12858_v10  ;;  %v24670_v19 = vld [vmem:[#allocation207_spill] sm:$0xff] }
 0x2e5   :  { %24663 = vst [vmem:[#allocation155_spill] sm:$0xff] %v16152_v9  ;;  %24665 = vst [vmem:[#allocation156_spill] sm:$0xff] %v16158_v43  ;;  %v16161_v62 = vrot.slane %v2752_v50, %v12890_v29  ;;  %v16164_v42 = vrot.slane %v2767_v4, %v12890_v29  ;;  %v24671_v50 = vld [vmem:[#allocation208_spill] sm:$0xff]  ;;  %v24782_v51 = vcombine.low %v24780_v15, %v24781_v34  ;;  %v24817_v9 = vld [vmem:[#allocation258_spill] sm:$0xff] }
 0x2e6   :  { %v16167_v56 = vrot.slane %v5287_v16, %v12858_v10  ;;  %v16170_v52 = vrot.slane %v5288_v44, %v12858_v10  ;;  %v3023_v1 = vcombine.low %v24669_v13, %v2983_v57  ;;  %v3024_v63 = vcombine.high %v24669_v13, %v2983_v57  ;;  %v24672_v16 = vld [vmem:[#allocation132_spill] sm:$0xff] }
 0x2e7   :  { %24666 = vst [vmem:[#allocation264_spill] sm:$0xff] %v16161_v62  ;;  %24667 = vst [vmem:[#allocation265_spill] sm:$0xff] %v16164_v42  ;;  %v3039_v2 = vcombine.low %v24670_v19, %v2990_v41  ;;  %v3040_v43 = vcombine.high %v24670_v19, %v2990_v41  ;;  %v16185_v62 = vrot.slane %v2768_v53, %v12890_v29  ;;  %v16196_v19 = vpop.trf.xlu1  ;;  %v16198_v31 = vpop.trf.xlu0 }
 0x2e8   :  { %24668 = vst [vmem:[#allocation266_spill] sm:$0xff] %v16167_v56  ;;  %v5336_v4 = vcombine.high %v24671_v50, %v16167_v56  ;;  %v5351_v42 = vcombine.low %v24672_v16, %v16170_v52  ;;  %v5352_v44 = vcombine.high %v24672_v16, %v16170_v52  ;;  %v16188_v57 = vrot.slane %v5064_v20, %v12890_v29  ;;  %v24684_v50 = vld [vmem:[#allocation158_spill] sm:$0xff] }
 0x2e9   :  { %24673 = vst [vmem:[#allocation123_spill] sm:$0xff] %v16185_v62  ;;  %v16191_v41 = vrot.slane %v5079_v18, %v12890_v29  ;;  %v16194_v13 = vrot.slane %v5080_v55, %v12890_v29  ;;  %24677 = vst [vmem:[#allocation268_spill] sm:$0xff] %v16196_v19  ;;  %v16201_v56 = vrot.slane %v2888_v32, %v12890_v29  ;;  %v24683_v18 = vld [vmem:[#allocation157_spill] sm:$0xff] }
 0x2ea   :  { %24674 = vst [vmem:[#allocation207_spill] sm:$0xff] %v16188_v57  ;;  %24678 = vst [vmem:[#allocation269_spill] sm:$0xff] %v16198_v31  ;;  %v16204_v52 = vrot.slane %v2903_v45, %v12890_v29  ;;  %v16207_v53 = vrot.slane %v2904_v40, %v12890_v29  ;;  %v16210_v20 = vrot.slane %v5199_v38, %v12890_v29  ;;  %v24686_v40 = vld [vmem:[#allocation159_spill] sm:$0xff] }
 0x2eb   :  { %24675 = vst [vmem:[#allocation132_spill] sm:$0xff] %v16191_v41  ;;  %24676 = vst [vmem:[#allocation267_spill] sm:$0xff] %v16194_v13  ;;  %v3111_v55 = vcombine.low %v24683_v18, %v15910_v58  ;;  %v3112_v16 = vcombine.high %v24683_v18, %v15910_v58  ;;  %v5423_v31 = vcombine.low %v24684_v50, %v15955_v48 }
 0x2ec   :  { %24679 = vst [vmem:[#allocation270_spill] sm:$0xff] %v16201_v56  ;;  %24680 = vst [vmem:[#allocation271_spill] sm:$0xff] %v16204_v52  ;;  %v5424_v32 = vcombine.high %v24684_v50, %v15955_v48  ;;  %v16221_v45 = vrot.slane %v5200_v28, %v12890_v29  ;;  %v3247_v19 = vcombine.low %v24686_v40, %v15957_v27  ;;  %v16239_v28 = vpop.trf.xlu1  ;;  %v16241_v50 = vpop.trf.xlu0 }
 0x2ed   :  { %24681 = vst [vmem:[#allocation272_spill] sm:$0xff] %v16207_v53  ;;  %24682 = vst [vmem:[#allocation273_spill] sm:$0xff] %v16210_v20  ;;  %v3248_v38 = vcombine.high %v24686_v40, %v15957_v27  ;;  %v24687_v20 = vld [vmem:[#allocation160_spill] sm:$0xff]  ;;  %v3119_v58 = vrot.slane %v3111_v55, %v12858_v10  ;;  %v16231_v18 = vrot.slane %v3112_v16, %v12858_v10 }
 0x2ee   :  { %24685 = vst [vmem:[#allocation157_spill] sm:$0xff] %v16221_v45  ;;  %v5559_v13 = vcombine.low %v24687_v20, %v15996_v22  ;;  %v16234_v41 = vrot.slane %v5423_v31, %v12858_v10  ;;  %v16237_v48 = vrot.slane %v5424_v32, %v12858_v10  ;;  %24688 = vst [vmem:[#allocation158_spill] sm:$0xff] %v16239_v28  ;;  %v24691_v31 = vld [vmem:[#allocation125_spill] sm:$0xff]  ;;  %v24692_v28 = vld [vmem:[#allocation126_spill] sm:$0xff] }
 0x2ef   :  { %24689 = vst [vmem:[#allocation159_spill] sm:$0xff] %v16241_v50  ;;  %v16244_v27 = vrot.slane %v3247_v19, %v12858_v10  ;;  %v16247_v40 = vrot.slane %v3248_v38, %v12858_v10  ;;  %v5560_v55 = vcombine.high %v24687_v20, %v15996_v22  ;;  %v3159_v45 = vcombine.low %v24691_v31, %v3119_v58  ;;  %v24693_v50 = vld [vmem:[#allocation209_spill] sm:$0xff]  ;;  %v24694_v22 = vld [vmem:[#allocation210_spill] sm:$0xff] }
 0x2f0   :  { %v16252_v16 = vrot.slane %v5559_v13, %v12858_v10  ;;  %v3160_v32 = vcombine.high %v24691_v31, %v3119_v58  ;;  %v3175_v57 = vcombine.low %v24692_v28, %v16231_v18  ;;  %v16269_v58 = vrot.slane %v5215_v24, %v12890_v29  ;;  %v16280_v52 = vpop.trf.xlu1  ;;  %v16282_v53 = vpop.trf.xlu0 }
 0x2f1   :  { %v16272_v31 = vrot.slane %v5216_v59, %v12890_v29  ;;  %v16275_v19 = vrot.slane %v3023_v1, %v12890_v29  ;;  %v16278_v38 = vrot.slane %v3159_v45, %v12890_v29  ;;  %24699 = vst [vmem:[#allocation274_spill] sm:$0xff] %v16280_v52  ;;  %24700 = vst [vmem:[#allocation275_spill] sm:$0xff] %v16282_v53  ;;  %v12751_v45 = vld [vmem:[#allocation2 + $0x68] sm:$0xff] }
 0x2f2   :  { %24690 = vst [vmem:[#allocation160_spill] sm:$0xff] %v16252_v16  ;;  %24695 = vst [vmem:[#allocation125_spill] sm:$0xff] %v16269_v58  ;;  %v16285_v13 = vrot.slane %v3024_v63, %v12890_v29  ;;  %v16288_v20 = vrot.slane %v3039_v2, %v12890_v29  ;;  %v16291_v24 = vrot.slane %v3040_v43, %v12890_v29  ;;  %v24707_v63 = vld [vmem:[#allocation212_spill] sm:$0xff] }
 0x2f3   :  { %24696 = vst [vmem:[#allocation126_spill] sm:$0xff] %v16272_v31  ;;  %24697 = vst [vmem:[#allocation209_spill] sm:$0xff] %v16275_v19  ;;  %v16294_v59 = vrot.slane %v5336_v4, %v12890_v29  ;;  %v24706_v31 = vld [vmem:[#allocation211_spill] sm:$0xff]  ;;  %v3311_v58 = vcombine.low %v24707_v63, %v16247_v40  ;;  %v3312_v2 = vcombine.high %v24707_v63, %v16247_v40  ;;  %v24713_v40 = vld [vmem:[#allocation161_spill] sm:$0xff] }
 0x2f4   :  { %24698 = vst [vmem:[#allocation210_spill] sm:$0xff] %v16278_v38  ;;  %24701 = vst [vmem:[#allocation276_spill] sm:$0xff] %v16285_v13  ;;  %v3295_v52 = vcombine.low %v24706_v31, %v16244_v27  ;;  %v3296_v53 = vcombine.high %v24706_v31, %v16244_v27  ;;  %v16307_v43 = vrot.slane %v5560_v55, %v12858_v10  ;;  %v16324_v55 = vpop.trf.xlu1  ;;  %v16326_v38 = vpop.trf.xlu0  ;;  %v24719_v4 = vld [vmem:[#allocation162_spill] sm:$0xff] }
 0x2f5   :  { %24702 = vst [vmem:[#allocation277_spill] sm:$0xff] %v16288_v20  ;;  %24703 = vst [vmem:[#allocation278_spill] sm:$0xff] %v16291_v24  ;;  %v16314_v1 = vrot.slane %v5351_v42, %v12890_v29  ;;  %v16317_v27 = vrot.slane %v5352_v44, %v12890_v29  ;;  %v16320_v31 = vrot.slane %v3160_v32, %v12890_v29 }
 0x2f6   :  { %24704 = vst [vmem:[#allocation279_spill] sm:$0xff] %v16294_v59  ;;  %24708 = vst [vmem:[#allocation211_spill] sm:$0xff] %v16307_v43  ;;  %v3383_v63 = vcombine.low %v24713_v40, %v15998_v11  ;;  %v16329_v59 = vrot.slane %v3175_v57, %v12890_v29  ;;  %v3384_v32 = vcombine.high %v24713_v40, %v15998_v11  ;;  %v24720_v57 = vld [vmem:[#allocation163_spill] sm:$0xff]  ;;  %v12748_v43 = vld [vmem:[#allocation2 + $0x40] sm:$0xff] }
 0x2f7   :  { %24710 = vst [vmem:[#allocation212_spill] sm:$0xff] %v16314_v1  ;;  %24711 = vst [vmem:[#allocation280_spill] sm:$0xff] %v16317_v27  ;;  %v3519_v27 = vcombine.low %v24720_v57, %v16044_v3  ;;  %v3520_v44 = vcombine.high %v24720_v57, %v16044_v3  ;;  %v12749_v11 = vld [vmem:[#allocation2 + $0x60] sm:$0xff]  ;;  %v24729_v57 = vld [vmem:[#allocation130_spill] sm:$0xff]  ;;  %v16571_v47 = vrot.slane %v24782_v51, %v12890_v29 }
 0x2f8   :  { %24712 = vst [vmem:[#allocation281_spill] sm:$0xff] %v16320_v31  ;;  %24714 = vst [vmem:[#allocation161_spill] sm:$0xff] %v16324_v55  ;;  %v16338_v16 = vrot.slane %v3383_v63, %v12858_v10  ;;  %v5695_v55 = vcombine.low %v24719_v4, %v16042_v23  ;;  %v16347_v42 = vrot.slane %v3384_v32, %v12858_v10  ;;  %v12750_v63 = vld [vmem:[#allocation2 + $0x48] sm:$0xff]  ;;  %v16361_v24 = vpop.trf.xlu1  ;;  %v16363_v3 = vpop.trf.xlu0 }
 0x2f9   :  { %24715 = vst [vmem:[#allocation282_spill] sm:$0xff] %v16326_v38  ;;  %24716 = vst [vmem:[#allocation283_spill] sm:$0xff] %v16329_v59  ;;  %v5696_v38 = vcombine.high %v24719_v4, %v16042_v23  ;;  %v12691_v40 = vcombine.high %v12748_v43, %v12749_v11  ;;  %v12692_v1 = vcombine.high %v12750_v63, %v12751_v45  ;;  %v24722_v59 = vld [vmem:[#allocation133_spill] sm:$0xff] }
 0x2fa   :  { %24718 = vst [vmem:[#allocation284_spill] sm:$0xff] %v16338_v16  ;;  %24721 = vst [vmem:[#allocation162_spill] sm:$0xff] %v16347_v42  ;;  %v16356_v4 = vrot.slane %v5695_v55, %v12858_v10  ;;  %v3527_v11 = vrot.slane %v3519_v27, %v12858_v10  ;;  %v3534_v63 = vrot.slane %v3520_v44, %v12858_v10  ;;  %v24727_v55 = vld [vmem:[#allocation135_spill] sm:$0xff]  ;;  %v24730_v42 = vld [vmem:[#allocation137_spill] sm:$0xff] }
 0x2fb   :  { %v16359_v32 = vrot.slane %v5696_v38, %v12858_v10  ;;  %24724 = vst [vmem:[#allocation133_spill] sm:$0xff] %v16361_v24  ;;  %24725 = vst [vmem:[#allocation285_spill] sm:$0xff] %v16363_v3  ;;  %v24731_v23 = vcombine.high %v24692_v28, %v16231_v18  ;;  %v24733_v24 = vcombine.low %v24693_v50, %v16234_v41  ;;  %v12752_v3 = vld [vmem:[#allocation2 + $0x50] sm:$0xff] }
 0x2fc   :  { %v3567_v16 = vcombine.low %v24729_v57, %v3527_v11  ;;  %v3568_v45 = vcombine.high %v24729_v57, %v3527_v11  ;;  %v3583_v27 = vcombine.low %v24730_v42, %v3534_v63  ;;  %v3584_v44 = vcombine.high %v24730_v42, %v3534_v63  ;;  %v16407_v18 = vpop.trf.xlu1  ;;  %v16409_v28 = vpop.trf.xlu0  ;;  %24783 = vst [vmem:[#allocation22_spill] sm:$0xff] %v16571_v47 }
 0x2fd   :  { %24723 = vst [vmem:[#allocation163_spill] sm:$0xff] %v16359_v32  ;;  %v16387_v43 = vrot.slane %v24731_v23, %v12890_v29  ;;  %v16393_v38 = vrot.slane %v24733_v24, %v12890_v29  ;;  %v24735_v57 = vcombine.high %v24693_v50, %v16234_v41  ;;  %v24737_v42 = vcombine.low %v24694_v22, %v16237_v48 }
 0x2fe   :  { %24739 = vst [vmem:[#allocation287_spill] sm:$0xff] %v16407_v18  ;;  %24740 = vst [vmem:[#allocation288_spill] sm:$0xff] %v16409_v28  ;;  %v16412_v23 = vrot.slane %v3295_v52, %v12890_v29  ;;  %v16415_v24 = vrot.slane %v3296_v53, %v12890_v29  ;;  %v16418_v41 = vrot.slane %v3311_v58, %v12890_v29  ;;  %v12753_v28 = vld [vmem:[#allocation2 + $0x70] sm:$0xff]  ;;  %v12754_v52 = vld [vmem:[#allocation2 + $0x58] sm:$0xff] }
 0x2ff   :  { %24732 = vst [vmem:[#allocation135_spill] sm:$0xff] %v16387_v43  ;;  %24734 = vst [vmem:[#allocation130_spill] sm:$0xff] %v16393_v38  ;;  %v16399_v11 = vrot.slane %v24735_v57, %v12890_v29  ;;  %v16405_v63 = vrot.slane %v24737_v42, %v12890_v29  ;;  %v16421_v50 = vrot.slane %v3312_v2, %v12890_v29  ;;  %v24987_v58 = vld [vmem:[#allocation128_spill] sm:$0xff] }
 0x300   :  { %24741 = vst [vmem:[#allocation289_spill] sm:$0xff] %v16412_v23  ;;  %24742 = vst [vmem:[#allocation290_spill] sm:$0xff] %v16415_v24  ;;  %v16424_v57 = vrot.slane %v3567_v16, %v12890_v29  ;;  %v16427_v42 = vrot.slane %v12691_v40, %v12858_v10  ;;  %v12693_v18 = vcombine.high %v12752_v3, %v12753_v28  ;;  %v16438_v40 = vpop.trf.xlu1  ;;  %v16440_v31 = vpop.trf.xlu0 }
 0x301   :  { %24736 = vst [vmem:[#allocation137_spill] sm:$0xff] %v16399_v11  ;;  %24738 = vst [vmem:[#allocation286_spill] sm:$0xff] %v16405_v63  ;;  %v12755_v63 = vld [vmem:[#allocation2 + $0x78] sm:$0xff]  ;;  %v16430_v53 = vrot.slane %v12692_v1, %v12858_v10  ;;  %v16503_v2 = vrot.slane %v3584_v44, %v12890_v29  ;;  %v24811_v44 = vld [vmem:[#allocation40_spill] sm:$0xff]  ;;  %v24818_v26 = vcombine.low %v24816_v33, %v24817_v9 }
 0x302   :  { %24743 = vst [vmem:[#allocation291_spill] sm:$0xff] %v16418_v41  ;;  %24744 = vst [vmem:[#allocation292_spill] sm:$0xff] %v16421_v50  ;;  %v12694_v11 = vcombine.high %v12754_v52, %v12755_v63  ;;  %v16443_v3 = vrot.slane %v12693_v18, %v12858_v10  ;;  %v16482_v52 = vrot.slane %v3583_v27, %v12890_v29  ;;  %v24850_v41 = vld [vmem:[#allocation162_spill] sm:$0xff]  ;;  %v24988_v27 = vld [vmem:[#allocation160_spill] sm:$0xff] }
 0x303   :  { %24745 = vst [vmem:[#allocation293_spill] sm:$0xff] %v16424_v57  ;;  %24761 = vst [vmem:[#allocation298_spill] sm:$0xff] %v16503_v2  ;;  %v24812_v8 = vcombine.high %v24811_v44, %v24811_v44  ;;  %v24814_v7 = vcombine.high %v24813_v14, %v24811_v44  ;;  %v16653_v34 = vrot.slane %v24818_v26, %v12890_v29  ;;  %v24849_v26 = vld [vmem:[#allocation134_spill] sm:$0xff]  ;;  %v24917_v57 = vld [vmem:[#allocation144_spill] sm:$0xff] }
 0x304   :  { %v16446_v63 = vrot.slane %v12694_v11, %v12858_v10  ;;  %v16461_v11 = vrot.slane %v3568_v45, %v12890_v29  ;;  %v323_v1 = vcombine.low %v16427_v42, %v16443_v3  ;;  %v24754_v45 = vcombine.low %v15159_v6, %v15525_v49  ;;  %24756 = vst [vmem:[#allocation296_spill] sm:$0xff] %v16482_v52  ;;  %v16484_v25 = vpop.trf.xlu1  ;;  %v16486_v39 = vpop.trf.xlu0  ;;  %v24882_v52 = vld [vmem:[#allocation127_spill] sm:$0xff]  ;;  %v24993_v6 = vld [vmem:[#allocation129_spill] sm:$0xff] }
 0x305   :  { %24757 = vst [vmem:[#allocation297_spill] sm:$0xff] %v16486_v39  ;;  %24819 = vst [vmem:[#allocation40_spill] sm:$0xff] %v16653_v34  ;;  %v24851_v61 = vcombine.low %v24849_v26, %v24850_v41  ;;  %v24853_v33 = vcombine.high %v24849_v26, %v24850_v41  ;;  %v24954_v14 = vld [vmem:[#allocation255_spill] sm:$0xff] }
 0x306   :  { %24751 = vst [vmem:[#allocation294_spill] sm:$0xff] %v16461_v11  ;;  %v16479_v32 = vrot.slane %v24754_v45, %v12890_v29  ;;  %v339_v38 = vcombine.low %v16430_v53, %v16446_v63  ;;  %v16506_v37 = vrot.slane %v323_v1, %v12890_v29  ;;  %v24955_v9 = vcombine.low %v24953_v35, %v24954_v14 }
 0x307   :  { %v16743_v56 = vrot.slane %v24851_v61, %v12890_v29  ;;  %v16749_v50 = vrot.slane %v24853_v33, %v12890_v29 }
 0x308   :  { %24755 = vst [vmem:[#allocation295_spill] sm:$0xff] %v16479_v32  ;;  %v16520_v1 = vpop.trf.xlu1  ;;  %v16522_v45 = vpop.trf.xlu0  ;;  %v16533_v12 = vrot.slane %v339_v38, %v12890_v29 }
 0x309   :  { %24765 = vst [vmem:[#allocation299_spill] sm:$0xff] %v16520_v1  ;;  %24766 = vst [vmem:[#allocation300_spill] sm:$0xff] %v16522_v45 }
 0x30a   :  { %24852 = vst [vmem:[#allocation134_spill] sm:$0xff] %v16743_v56  ;;  %24854 = vst [vmem:[#allocation162_spill] sm:$0xff] %v16749_v50  ;;  %v24933_v56 = vld [vmem:[#allocation136_spill] sm:$0xff] }
 0x30c   :  { %v16557_v32 = vpop.trf.xlu1  ;;  %v16559_v30 = vpop.trf.xlu0 }
 0x30d   :  { %24776 = vst [vmem:[#allocation301_spill] sm:$0xff] %v16557_v32  ;;  %24777 = vst [vmem:[#allocation302_spill] sm:$0xff] %v16559_v30  ;;  %v324_v32 = vcombine.high %v16427_v42, %v16443_v3  ;;  %v25030_v42 = vcombine.high %v16506_v37, %v16533_v12  ;;  %v25031_v3 = vld [vmem:[#allocation256_spill] sm:$0xff] }
 0x30f   :  { %v17218_v45 = vrot.slane %v324_v32, %v12890_v29 }
 0x310   :  { %v16597_v54 = vpop.trf.xlu1  ;;  %v16599_v15 = vpop.trf.xlu0 }
 0x311   :  { %24793 = vst [vmem:[#allocation145_spill] sm:$0xff] %v16597_v54  ;;  %24794 = vst [vmem:[#allocation303_spill] sm:$0xff] %v16599_v15 }
 0x314   :  { %v16633_v47 = vpop.trf.xlu1  ;;  %v16635_v21 = vpop.trf.xlu0  ;;  %1143 = vxpose.xlu1.b32.start.end [1/1] (short) %v24812_v8, 128  ;;  %1111 = vxpose.xlu0.b32.start.end [1/1] (short) %v24814_v7, 128  ;;  %v24844_v8 = vld [vmem:[#allocation284_spill] sm:$0xff] }
 0x315   :  { %24809 = vst [vmem:[#allocation304_spill] sm:$0xff] %v16633_v47  ;;  %24810 = vst [vmem:[#allocation305_spill] sm:$0xff] %v16635_v21  ;;  %v24845_v23 = vcombine.low %v24722_v59, %v24844_v8  ;;  %v24847_v20 = vcombine.high %v24722_v59, %v24844_v8  ;;  %v24863_v8 = vcombine.high %v24694_v22, %v16237_v48 }
 0x317   :  { %v16731_v5 = vrot.slane %v24845_v23, %v12890_v29  ;;  %v16737_v43 = vrot.slane %v24847_v20, %v12890_v29  ;;  %v16789_v23 = vrot.slane %v24863_v8, %v12890_v29  ;;  %v24871_v8 = vcombine.low %v24727_v55, %v16356_v4 }
 0x318   :  { %v16677_v44 = vpop.trf.xlu1  ;;  %v16679_v62 = vpop.trf.xlu0 }
 0x319   :  { %24828 = vst [vmem:[#allocation101_spill] sm:$0xff] %v16677_v44  ;;  %24829 = vst [vmem:[#allocation119_spill] sm:$0xff] %v16679_v62  ;;  %v16809_v11 = vrot.slane %v24871_v8, %v12890_v29  ;;  %v24898_v8 = vcombine.high %v24727_v55, %v16356_v4  ;;  %v24994_v55 = vld [vmem:[#allocation211_spill] sm:$0xff] }
 0x31a   :  { %24846 = vst [vmem:[#allocation258_spill] sm:$0xff] %v16731_v5  ;;  %24848 = vst [vmem:[#allocation284_spill] sm:$0xff] %v16737_v43  ;;  %v24881_v5 = vld [vmem:[#allocation53_spill] sm:$0xff] }
 0x31b   :  { %24864 = vst [vmem:[#allocation306_spill] sm:$0xff] %v16789_v23  ;;  %24872 = vst [vmem:[#allocation307_spill] sm:$0xff] %v16809_v11  ;;  %v24883_v50 = vcombine.low %v24881_v5, %v24882_v52  ;;  %v16873_v22 = vrot.slane %v24898_v8, %v12890_v29  ;;  %v24995_v8 = vcombine.low %v24993_v6, %v24994_v55 }
 0x31c   :  { %v16713_v34 = vpop.trf.xlu1  ;;  %v16715_v17 = vpop.trf.xlu0 }
 0x31d   :  { %v16835_v13 = vrot.slane %v24883_v50, %v12890_v29  ;;  %24899 = vst [vmem:[#allocation127_spill] sm:$0xff] %v16873_v22 }
 0x31f   :  { %24884 = vst [vmem:[#allocation53_spill] sm:$0xff] %v16835_v13  ;;  %v24918_v13 = vcombine.low %v24916_v36, %v24917_v57  ;;  %v16995_v36 = vrot.slane %v24955_v9, %v12890_v29 }
 0x320   :  { %v16765_v26 = vpop.trf.xlu1  ;;  %v16767_v7 = vpop.trf.xlu0 }
 0x321   :  { %v16915_v5 = vrot.slane %v24918_v13, %v12890_v29  ;;  %24956 = vst [vmem:[#allocation136_spill] sm:$0xff] %v16995_v36  ;;  %v24989_v36 = vcombine.low %v24987_v58, %v24988_v27 }
 0x323   :  { %24919 = vst [vmem:[#allocation25_spill] sm:$0xff] %v16915_v5  ;;  %v24934_v5 = vld [vmem:[#allocation163_spill] sm:$0xff]  ;;  %v17075_v35 = vrot.slane %v24989_v36, %v12890_v29 }
 0x324   :  { %v16811_v61 = vpop.trf.xlu1  ;;  %v16813_v43 = vpop.trf.xlu0  ;;  %v24935_v46 = vcombine.low %v24933_v56, %v24934_v5  ;;  %v24970_v2 = vcombine.high %v24933_v56, %v24934_v5  ;;  %v24991_v56 = vcombine.high %v24987_v58, %v24988_v27 }
 0x325   :  { %24990 = vst [vmem:[#allocation117_spill] sm:$0xff] %v17075_v35 }
 0x326   :  { %v16953_v4 = vrot.slane %v24935_v46, %v12890_v29  ;;  %v17033_v59 = vrot.slane %v24970_v2, %v12890_v29  ;;  %v17081_v19 = vrot.slane %v24991_v56, %v12890_v29  ;;  %v17087_v2 = vrot.slane %v24995_v8, %v12890_v29 }
 0x327   :  { %v24997_v46 = vcombine.high %v24993_v6, %v24994_v55  ;;  %v12707_v56 = vcombine.low %v16533_v12, %v16533_v12 }
 0x328   :  { %v16849_v50 = vpop.trf.xlu1  ;;  %v16851_v52 = vpop.trf.xlu0  ;;  %24936 = vst [vmem:[#allocation144_spill] sm:$0xff] %v16953_v4  ;;  %24971 = vst [vmem:[#allocation163_spill] sm:$0xff] %v17033_v59 }
 0x329   :  { %24992 = vst [vmem:[#allocation255_spill] sm:$0xff] %v17081_v19  ;;  %24996 = vst [vmem:[#allocation128_spill] sm:$0xff] %v17087_v2  ;;  %v17093_v23 = vrot.slane %v24997_v46, %v12890_v29  ;;  %v355_v19 = vcombine.low %v16506_v37, %v16533_v12 }
 0x32b   :  { %24998 = vst [vmem:[#allocation160_spill] sm:$0xff] %v17093_v23 }
 0x32c   :  { %v16889_v48 = vpop.trf.xlu1  ;;  %v16891_v33 = vpop.trf.xlu0 }
 0x330   :  { %v16929_v13 = vpop.trf.xlu1  ;;  %v16931_v57 = vpop.trf.xlu0 }
 0x334   :  { %v16969_v60 = vpop.trf.xlu1  ;;  %v16971_v41 = vpop.trf.xlu0 }
 0x338   :  { %v17009_v14 = vpop.trf.xlu1  ;;  %v17011_v9 = vpop.trf.xlu0 }
 0x33c   :  { %v17049_v20 = vpop.trf.xlu1  ;;  %v17051_v51 = vpop.trf.xlu0 }
 0x340   :  { %v17101_v24 = vpop.trf.xlu1  ;;  %v17103_v38 = vpop.trf.xlu0 }
 0x341   :  { %25001 = vst [vmem:[#allocation129_spill] sm:$0xff] %v17101_v24  ;;  %25002 = vst [vmem:[#allocation211_spill] sm:$0xff] %v17103_v38  ;;  %v12708_v38 = vcombine.high %v16533_v12, %v16533_v12 }
 0x344   :  { %v17131_v2 = vpop.trf.xlu1  ;;  %v17133_v18 = vpop.trf.xlu0 }
 0x345   :  { %25009 = vst [vmem:[#allocation308_spill] sm:$0xff] %v17131_v2  ;;  %25010 = vst [vmem:[#allocation309_spill] sm:$0xff] %v17133_v18 }
 0x348   :  { %v17135_v5 = vpop.trf.xlu1  ;;  %v17137_v23 = vpop.trf.xlu0 }
 0x349   :  { %25011 = vst [vmem:[#allocation310_spill] sm:$0xff] %v17135_v5  ;;  %25012 = vst [vmem:[#allocation311_spill] sm:$0xff] %v17137_v23  ;;  %v340_v5 = vcombine.high %v16430_v53, %v16446_v63 }
 0x34c   :  { %v17139_v6 = vpop.trf.xlu1  ;;  %v17141_v35 = vpop.trf.xlu0 }
 0x34d   :  { %25013 = vst [vmem:[#allocation312_spill] sm:$0xff] %v17139_v6  ;;  %25014 = vst [vmem:[#allocation313_spill] sm:$0xff] %v17141_v35 }
 0x350   :  { %v17143_v22 = vpop.trf.xlu1  ;;  %v17145_v49 = vpop.trf.xlu0 }
 0x351   :  { %25015 = vst [vmem:[#allocation314_spill] sm:$0xff] %v17143_v22  ;;  %25016 = vst [vmem:[#allocation315_spill] sm:$0xff] %v17145_v49 }
 0x354   :  { %v17151_v59 = vpop.trf.xlu1  ;;  %v17153_v11 = vpop.trf.xlu0  ;;  %1175 = vxpose.xlu0.b32.start.end [1/1] (short) %v355_v19, 128  ;;  %1207 = vxpose.xlu1.b32.start.end [1/1] (short) %v12707_v56, 128 }
 0x355   :  { %25017 = vst [vmem:[#allocation316_spill] sm:$0xff] %v17151_v59  ;;  %25018 = vst [vmem:[#allocation317_spill] sm:$0xff] %v17153_v11 }
 0x358   :  { %v17155_v4 = vpop.trf.xlu1  ;;  %v17157_v46 = vpop.trf.xlu0 }
 0x359   :  { %25019 = vst [vmem:[#allocation318_spill] sm:$0xff] %v17155_v4  ;;  %25020 = vst [vmem:[#allocation319_spill] sm:$0xff] %v17157_v46 }
 0x35c   :  { %v1095_v27 = vpop.trf.xlu1  ;;  %v1063_v36 = vpop.trf.xlu0 }
 0x35d   :  { %v7959_v63 = vcombine.low %v25031_v3, %v1095_v27  ;;  %v7960_v32 = vcombine.high %v25031_v3, %v1095_v27 }
 0x35f   :  { %v17243_v12 = vrot.slane %v7959_v63, %v12858_v10  ;;  %v17246_v37 = vrot.slane %v7960_v32, %v12858_v10 }
 0x360   :  { %v17159_v58 = vpop.trf.xlu1  ;;  %v17161_v55 = vpop.trf.xlu0 }
 0x361   :  { %25037 = vst [vmem:[#allocation329_spill] sm:$0xff] %v17246_v37 }
 0x364   :  { %v17163_v8 = vpop.trf.xlu1  ;;  %v17165_v28 = vpop.trf.xlu0 }
 0x368   :  { %v17167_v0 = vpop.trf.xlu1  ;;  %v17169_v16 = vpop.trf.xlu0 }
 0x36c   :  { %v17171_v19 = vpop.trf.xlu1  ;;  %v17173_v56 = vpop.trf.xlu0 }
 0x370   :  { %v17175_v4 = vpop.trf.xlu1  ;;  %v17177_v46 = vpop.trf.xlu0 }
 0x374   :  { %v17179_v62 = vpop.trf.xlu1  ;;  %v17181_v11 = vpop.trf.xlu0 }
 0x378   :  { %v17183_v44 = vpop.trf.xlu1  ;;  %v17185_v59 = vpop.trf.xlu0 }
 0x37c   :  { %v17187_v49 = vpop.trf.xlu1  ;;  %v17189_v21 = vpop.trf.xlu0 }
 0x380   :  { %v17191_v47 = vpop.trf.xlu1  ;;  %v17193_v22 = vpop.trf.xlu0 }
 0x384   :  { %v17195_v15 = vpop.trf.xlu1  ;;  %v17197_v35 = vpop.trf.xlu0 }
 0x385   :  { %25021 = vst [vmem:[#allocation320_spill] sm:$0xff] %v17197_v35 }
 0x388   :  { %v17199_v6 = vpop.trf.xlu1  ;;  %v17201_v54 = vpop.trf.xlu0 }
 0x389   :  { %25022 = vst [vmem:[#allocation321_spill] sm:$0xff] %v17199_v6  ;;  %25023 = vst [vmem:[#allocation322_spill] sm:$0xff] %v17201_v54  ;;  %v25041_v6 = vld [vmem:[#allocation156_spill] sm:$0xff] }
 0x38a   :  { %v6055_v24 = vcombine.low %v25041_v6, %v17165_v28 }
 0x38c   :  { %v17203_v23 = vpop.trf.xlu1  ;;  %v17205_v30 = vpop.trf.xlu0 }
 0x38d   :  { %25024 = vst [vmem:[#allocation323_spill] sm:$0xff] %v17203_v23  ;;  %25025 = vst [vmem:[#allocation324_spill] sm:$0xff] %v17205_v30  ;;  %v17221_v23 = vrot.slane %v340_v5, %v12890_v29  ;;  %v25033_v29 = vld [vmem:[#allocation259_spill] sm:$0xff] }
 0x38e   :  { %25036 = vst [vmem:[#allocation259_spill] sm:$0xff] %v17243_v12 }
 0x390   :  { %v17211_v18 = vpop.trf.xlu1  ;;  %v17213_v2 = vpop.trf.xlu0 }
 0x391   :  { %25026 = vst [vmem:[#allocation325_spill] sm:$0xff] %v17211_v18  ;;  %25027 = vst [vmem:[#allocation326_spill] sm:$0xff] %v17213_v2  ;;  %v25032_v2 = vld [vmem:[#allocation257_spill] sm:$0xff] }
 0x392   :  { %v5783_v18 = vcombine.low %v25032_v2, %v1063_v36  ;;  %v5784_v5 = vcombine.high %v25032_v2, %v1063_v36  ;;  %v8096_v2 = vcombine.high %v25033_v29, %v17159_v58 }
 0x394   :  { %v17223_v30 = vpop.trf.xlu1  ;;  %v17225_v54 = vpop.trf.xlu0  ;;  %1239 = vxpose.xlu0.b32.start.end [1/1] (short) %v25030_v42, 128  ;;  %1271 = vxpose.xlu1.b32.start.end [1/1] (short) %v12708_v38, 128  ;;  %v17249_v38 = vrot.slane %v5783_v18, %v12858_v10  ;;  %v17252_v27 = vrot.slane %v5784_v5, %v12858_v10  ;;  %v25039_v42 = vld [vmem:[#allocation260_spill] sm:$0xff] }
 0x395   :  { %25028 = vst [vmem:[#allocation327_spill] sm:$0xff] %v17223_v30  ;;  %25029 = vst [vmem:[#allocation328_spill] sm:$0xff] %v17225_v54  ;;  %v8095_v30 = vcombine.low %v25033_v29, %v17159_v58  ;;  %v5919_v3 = vcombine.low %v25039_v42, %v17161_v55  ;;  %v5920_v63 = vcombine.high %v25039_v42, %v17161_v55  ;;  %v25040_v29 = vld [vmem:[#allocation122_spill] sm:$0xff] }
 0x396   :  { %v8232_v58 = vcombine.high %v25040_v29, %v17163_v8  ;;  %v6056_v55 = vcombine.high %v25041_v6, %v17165_v28  ;;  %v25046_v6 = vld [vmem:[#allocation268_spill] sm:$0xff] }
 0x397   :  { %v17257_v36 = vrot.slane %v8095_v30, %v12858_v10  ;;  %v8231_v30 = vcombine.low %v25040_v29, %v17163_v8  ;;  %v17288_v8 = vrot.slane %v8096_v2, %v12858_v10  ;;  %v17294_v28 = vrot.slane %v5920_v63, %v12858_v10 }
 0x398   :  { %v17238_v54 = vpop.trf.xlu1  ;;  %v17240_v1 = vpop.trf.xlu0  ;;  %v17318_v2 = vrot.slane %v8232_v58, %v12858_v10  ;;  %v17324_v63 = vrot.slane %v6056_v55, %v12858_v10  ;;  %v8368_v39 = vcombine.high %v25046_v6, %v17167_v0 }
 0x399   :  { %25034 = vst [vmem:[#allocation256_spill] sm:$0xff] %v17238_v54  ;;  %25035 = vst [vmem:[#allocation257_spill] sm:$0xff] %v17240_v1 }
 0x39a   :  { %25038 = vst [vmem:[#allocation330_spill] sm:$0xff] %v17257_v36  ;;  %25045 = vst [vmem:[#allocation331_spill] sm:$0xff] %v17288_v8 }
 0x39b   :  { %25048 = vst [vmem:[#allocation332_spill] sm:$0xff] %v17318_v2 }
 0x39c   :  { %v1159_v32 = vpop.trf.xlu1  ;;  %v1127_v53 = vpop.trf.xlu0 }
 0x39d   :  { %v7975_v18 = vcombine.low %v16713_v34, %v1159_v32  ;;  %v7976_v1 = vcombine.high %v16713_v34, %v1159_v32  ;;  %v5799_v5 = vcombine.low %v16715_v17, %v1127_v53  ;;  %v5800_v54 = vcombine.high %v16715_v17, %v1127_v53 }
 0x39e   :  { %v17291_v32 = vrot.slane %v5919_v3, %v12858_v10  ;;  %v17321_v3 = vrot.slane %v6055_v24, %v12858_v10 }
 0x39f   :  { %v17276_v42 = vrot.slane %v7975_v18, %v12858_v10  ;;  %v17279_v34 = vrot.slane %v7976_v1, %v12858_v10  ;;  %v17282_v17 = vrot.slane %v5799_v5, %v12858_v10  ;;  %v17285_v53 = vrot.slane %v5800_v54, %v12858_v10  ;;  %v25050_v5 = vld [vmem:[#allocation269_spill] sm:$0xff] }
 0x3a0   :  { %v8367_v18 = vcombine.low %v25046_v6, %v17167_v0  ;;  %v1160_v1 = vpop.trf.xlu1  ;;  %v1128_v29 = vpop.trf.xlu0  ;;  %v17315_v54 = vrot.slane %v8231_v30, %v12858_v10  ;;  %v6192_v30 = vcombine.high %v25050_v5, %v17169_v16 }
 0x3a1   :  { %25042 = vst [vmem:[#allocation260_spill] sm:$0xff] %v17276_v42  ;;  %25043 = vst [vmem:[#allocation122_spill] sm:$0xff] %v17279_v34  ;;  %v6191_v34 = vcombine.low %v25050_v5, %v17169_v16  ;;  %v8111_v24 = vcombine.low %v16765_v26, %v1160_v1  ;;  %v8112_v42 = vcombine.high %v16765_v26, %v1160_v1 }
 0x3a2   :  { %25044 = vst [vmem:[#allocation156_spill] sm:$0xff] %v17285_v53  ;;  %25047 = vst [vmem:[#allocation268_spill] sm:$0xff] %v17315_v54  ;;  %v17329_v35 = vrot.slane %v8367_v18, %v12858_v10  ;;  %v5935_v55 = vcombine.low %v16767_v7, %v1128_v29  ;;  %v5936_v12 = vcombine.high %v16767_v7, %v1128_v29 }
 0x3a3   :  { %v17344_v16 = vrot.slane %v8111_v24, %v12858_v10  ;;  %v17347_v5 = vrot.slane %v8112_v42, %v12858_v10  ;;  %v25058_v24 = vld [vmem:[#allocation158_spill] sm:$0xff] }
 0x3a4   :  { %25049 = vst [vmem:[#allocation333_spill] sm:$0xff] %v17329_v35  ;;  %v1161_v58 = vpop.trf.xlu1  ;;  %v1129_v37 = vpop.trf.xlu0  ;;  %v17350_v26 = vrot.slane %v5935_v55, %v12858_v10  ;;  %v17353_v1 = vrot.slane %v5936_v12, %v12858_v10  ;;  %v17384_v12 = vrot.slane %v8368_v39, %v12858_v10  ;;  %v8504_v55 = vcombine.high %v25058_v24, %v17171_v19  ;;  %v25060_v39 = vld [vmem:[#allocation274_spill] sm:$0xff] }
 0x3a5   :  { %v8247_v0 = vcombine.low %v16811_v61, %v1161_v58  ;;  %v8248_v6 = vcombine.high %v16811_v61, %v1161_v58  ;;  %v6071_v18 = vcombine.low %v16813_v43, %v1129_v37  ;;  %v6072_v53 = vcombine.high %v16813_v43, %v1129_v37  ;;  %25051 = vst [vmem:[#allocation269_spill] sm:$0xff] %v17344_v16 }
 0x3a6   :  { %25052 = vst [vmem:[#allocation334_spill] sm:$0xff] %v17347_v5  ;;  %25053 = vst [vmem:[#allocation335_spill] sm:$0xff] %v17353_v1  ;;  %v8503_v58 = vcombine.low %v25058_v24, %v17171_v19  ;;  %v8639_v8 = vcombine.low %v25060_v39, %v17175_v4  ;;  %v8640_v1 = vcombine.high %v25060_v39, %v17175_v4  ;;  %v25076_v39 = vld [vmem:[#allocation133_spill] sm:$0xff] }
 0x3a7   :  { %v17356_v7 = vrot.slane %v8247_v0, %v12858_v10  ;;  %v17359_v61 = vrot.slane %v8248_v6, %v12858_v10  ;;  %v17362_v43 = vrot.slane %v6071_v18, %v12858_v10  ;;  %v17365_v37 = vrot.slane %v6072_v53, %v12858_v10  ;;  %25057 = vst [vmem:[#allocation339_spill] sm:$0xff] %v17384_v12  ;;  %v25059_v0 = vld [vmem:[#allocation159_spill] sm:$0xff] }
 0x3a8   :  { %v1162_v42 = vpop.trf.xlu1  ;;  %v1130_v29 = vpop.trf.xlu0  ;;  %v6327_v5 = vcombine.low %v25059_v0, %v17173_v56  ;;  %v17393_v53 = vrot.slane %v6191_v34, %v12858_v10  ;;  %v17396_v6 = vrot.slane %v6192_v30, %v12858_v10  ;;  %v6328_v18 = vcombine.high %v25059_v0, %v17173_v56  ;;  %v25064_v0 = vld [vmem:[#allocation275_spill] sm:$0xff] }
 0x3a9   :  { %25054 = vst [vmem:[#allocation336_spill] sm:$0xff] %v17356_v7  ;;  %25055 = vst [vmem:[#allocation337_spill] sm:$0xff] %v17359_v61  ;;  %v17419_v24 = vrot.slane %v8503_v58, %v12858_v10  ;;  %v17422_v34 = vrot.slane %v8504_v55, %v12858_v10  ;;  %v8383_v56 = vcombine.low %v16849_v50, %v1162_v42 }
 0x3aa   :  { %25056 = vst [vmem:[#allocation338_spill] sm:$0xff] %v17365_v37  ;;  %v17425_v30 = vrot.slane %v6327_v5, %v12858_v10  ;;  %v17429_v61 = vrot.slane %v6328_v18, %v12858_v10  ;;  %v6463_v19 = vcombine.low %v25064_v0, %v17177_v46  ;;  %v8384_v58 = vcombine.high %v16849_v50, %v1162_v42 }
 0x3ab   :  { %25061 = vst [vmem:[#allocation158_spill] sm:$0xff] %v17419_v24  ;;  %25062 = vst [vmem:[#allocation159_spill] sm:$0xff] %v17422_v34  ;;  %v17439_v55 = vrot.slane %v8383_v56, %v12858_v10  ;;  %v6207_v5 = vcombine.low %v16851_v52, %v1130_v29  ;;  %v6208_v54 = vcombine.high %v16851_v52, %v1130_v29 }
 0x3ac   :  { %v1163_v16 = vpop.trf.xlu1  ;;  %v1131_v36 = vpop.trf.xlu0  ;;  %25063 = vst [vmem:[#allocation274_spill] sm:$0xff] %v17429_v61  ;;  %v17445_v37 = vrot.slane %v8639_v8, %v12858_v10  ;;  %v6464_v4 = vcombine.high %v25064_v0, %v17177_v46  ;;  %v17450_v50 = vrot.slane %v8384_v58, %v12858_v10  ;;  %v17482_v29 = vrot.slane %v8640_v1, %v12858_v10 }
 0x3ad   :  { %25065 = vst [vmem:[#allocation275_spill] sm:$0xff] %v17439_v55  ;;  %v8519_v18 = vcombine.low %v16889_v48, %v1163_v16  ;;  %v8520_v42 = vcombine.high %v16889_v48, %v1163_v16  ;;  %v17458_v52 = vrot.slane %v6207_v5, %v12858_v10  ;;  %v17461_v8 = vrot.slane %v6208_v54, %v12858_v10  ;;  %v25073_v54 = vld [vmem:[#allocation161_spill] sm:$0xff] }
 0x3ae   :  { %25066 = vst [vmem:[#allocation340_spill] sm:$0xff] %v17445_v37  ;;  %25067 = vst [vmem:[#allocation341_spill] sm:$0xff] %v17450_v50  ;;  %v6343_v46 = vcombine.low %v16891_v33, %v1131_v36  ;;  %v6344_v56 = vcombine.high %v16891_v33, %v1131_v36  ;;  %v17492_v5 = vrot.slane %v6464_v4, %v12858_v10 }
 0x3af   :  { %v17468_v48 = vrot.slane %v8519_v18, %v12858_v10  ;;  %v17471_v16 = vrot.slane %v8520_v42, %v12858_v10  ;;  %25070 = vst [vmem:[#allocation344_spill] sm:$0xff] %v17482_v29  ;;  %v17485_v18 = vrot.slane %v6463_v19, %v12858_v10  ;;  %v8775_v50 = vcombine.low %v25073_v54, %v17179_v62  ;;  %v25074_v19 = vld [vmem:[#allocation282_spill] sm:$0xff] }
 0x3b0   :  { %v1164_v2 = vpop.trf.xlu1  ;;  %v17436_v7 = vpop.trf.xlu0  ;;  %25072 = vst [vmem:[#allocation346_spill] sm:$0xff] %v17492_v5  ;;  %v8776_v1 = vcombine.high %v25073_v54, %v17179_v62  ;;  %v6599_v42 = vcombine.low %v25074_v19, %v17181_v11  ;;  %v6600_v33 = vcombine.high %v25074_v19, %v17181_v11  ;;  %v17515_v36 = vrot.slane %v6343_v46, %v12858_v10 }
 0x3b1   :  { %25068 = vst [vmem:[#allocation342_spill] sm:$0xff] %v17468_v48  ;;  %25069 = vst [vmem:[#allocation343_spill] sm:$0xff] %v17471_v16  ;;  %v17518_v62 = vrot.slane %v6344_v56, %v12858_v10  ;;  %v8911_v35 = vcombine.low %v25076_v39, %v17183_v44  ;;  %v8912_v4 = vcombine.high %v25076_v39, %v17183_v44 }
 0x3b2   :  { %25071 = vst [vmem:[#allocation345_spill] sm:$0xff] %v17485_v18  ;;  %v8655_v16 = vcombine.low %v16929_v13, %v1164_v2  ;;  %v8656_v34 = vcombine.high %v16929_v13, %v1164_v2  ;;  %v6479_v13 = vcombine.low %v16931_v57, %v17436_v7  ;;  %v6480_v2 = vcombine.high %v16931_v57, %v17436_v7  ;;  %v25269_v18 = vld [vmem:[#allocation60_spill] sm:$0xff] }
 0x3b3   :  { %25075 = vst [vmem:[#allocation161_spill] sm:$0xff] %v17518_v62  ;;  %v17551_v46 = vrot.slane %v8775_v50, %v12858_v10  ;;  %v17554_v19 = vrot.slane %v8776_v1, %v12858_v10  ;;  %v17578_v62 = vrot.slane %v6600_v33, %v12858_v10  ;;  %v17581_v57 = vrot.slane %v8911_v35, %v12858_v10  ;;  %v25091_v35 = vld [vmem:[#allocation287_spill] sm:$0xff] }
 0x3b4   :  { %v1165_v0 = vpop.trf.xlu1  ;;  %v17473_v58 = vpop.trf.xlu0  ;;  %v17537_v54 = vrot.slane %v8655_v16, %v12858_v10  ;;  %v17540_v44 = vrot.slane %v8656_v34, %v12858_v10  ;;  %v17557_v16 = vrot.slane %v6599_v42, %v12858_v10  ;;  %v25082_v34 = vld [vmem:[#allocation285_spill] sm:$0xff]  ;;  %v17570_v1 = vrot.slane %v6479_v13, %v12858_v10 }
 0x3b5   :  { %25079 = vst [vmem:[#allocation347_spill] sm:$0xff] %v17551_v46  ;;  %25080 = vst [vmem:[#allocation348_spill] sm:$0xff] %v17554_v19  ;;  %v6735_v11 = vcombine.low %v25082_v34, %v17185_v59  ;;  %v17573_v42 = vrot.slane %v6480_v2, %v12858_v10  ;;  %v8791_v61 = vcombine.low %v16969_v60, %v1165_v0 }
 0x3b6   :  { %25077 = vst [vmem:[#allocation282_spill] sm:$0xff] %v17537_v54  ;;  %25078 = vst [vmem:[#allocation133_spill] sm:$0xff] %v17540_v44  ;;  %v8792_v48 = vcombine.high %v16969_v60, %v1165_v0  ;;  %v17584_v7 = vrot.slane %v8912_v4, %v12858_v10  ;;  %v6736_v13 = vcombine.high %v25082_v34, %v17185_v59 }
 0x3b7   :  { %25081 = vst [vmem:[#allocation349_spill] sm:$0xff] %v17557_v16  ;;  %25083 = vst [vmem:[#allocation285_spill] sm:$0xff] %v17570_v1  ;;  %v17601_v33 = vrot.slane %v8791_v61, %v12858_v10  ;;  %v6615_v4 = vcombine.low %v16971_v41, %v17473_v58  ;;  %v6616_v34 = vcombine.high %v16971_v41, %v17473_v58  ;;  %v25092_v61 = vld [vmem:[#allocation288_spill] sm:$0xff] }
 0x3b8   :  { %v17508_v12 = vpop.trf.xlu1  ;;  %v17510_v55 = vpop.trf.xlu0  ;;  %25084 = vst [vmem:[#allocation350_spill] sm:$0xff] %v17573_v42  ;;  %25085 = vst [vmem:[#allocation351_spill] sm:$0xff] %v17578_v62  ;;  %v17604_v59 = vrot.slane %v8792_v48, %v12858_v10  ;;  %v17611_v60 = vrot.slane %v6735_v11, %v12858_v10  ;;  %v9047_v44 = vcombine.low %v25091_v35, %v17187_v49  ;;  %v25262_v42 = vld [vmem:[#allocation19_spill] sm:$0xff] }
 0x3b9   :  { %25086 = vst [vmem:[#allocation352_spill] sm:$0xff] %v17581_v57  ;;  %25087 = vst [vmem:[#allocation353_spill] sm:$0xff] %v17584_v7  ;;  %v9048_v0 = vcombine.high %v25091_v35, %v17187_v49  ;;  %v6871_v29 = vcombine.low %v25092_v61, %v17189_v21  ;;  %v17632_v49 = vrot.slane %v6615_v4, %v12858_v10 }
 0x3ba   :  { %25088 = vst [vmem:[#allocation354_spill] sm:$0xff] %v17601_v33  ;;  %25089 = vst [vmem:[#allocation355_spill] sm:$0xff] %v17604_v59  ;;  %v17635_v35 = vrot.slane %v6616_v34, %v12858_v10  ;;  %v8927_v48 = vcombine.low %v17009_v14, %v17508_v12  ;;  %v8928_v54 = vcombine.high %v17009_v14, %v17508_v12 }
 0x3bb   :  { %25090 = vst [vmem:[#allocation356_spill] sm:$0xff] %v17611_v60  ;;  %25093 = vst [vmem:[#allocation287_spill] sm:$0xff] %v17632_v49  ;;  %v17642_v41 = vrot.slane %v6736_v13, %v12858_v10  ;;  %v6872_v58 = vcombine.high %v25092_v61, %v17189_v21  ;;  %v6751_v59 = vcombine.low %v17011_v9, %v17510_v55 }
 0x3bc   :  { %v17546_v39 = vpop.trf.xlu1  ;;  %v17548_v56 = vpop.trf.xlu0  ;;  %25094 = vst [vmem:[#allocation288_spill] sm:$0xff] %v17635_v35  ;;  %v17659_v21 = vrot.slane %v8927_v48, %v12858_v10  ;;  %v17662_v13 = vrot.slane %v8928_v54, %v12858_v10  ;;  %v6752_v61 = vcombine.high %v17011_v9, %v17510_v55  ;;  %v17674_v14 = vrot.slane %v9047_v44, %v12858_v10 }
 0x3bd   :  { %25095 = vst [vmem:[#allocation357_spill] sm:$0xff] %v17642_v41  ;;  %v17667_v34 = vrot.slane %v6751_v59, %v12858_v10  ;;  %v17677_v12 = vrot.slane %v9048_v0, %v12858_v10  ;;  %v17680_v48 = vrot.slane %v6871_v29, %v12858_v10  ;;  %v9063_v54 = vcombine.low %v17049_v20, %v17546_v39 }
 0x3be   :  { %25096 = vst [vmem:[#allocation358_spill] sm:$0xff] %v17659_v21  ;;  %25097 = vst [vmem:[#allocation359_spill] sm:$0xff] %v17662_v13  ;;  %v17693_v0 = vrot.slane %v6752_v61, %v12858_v10  ;;  %v9064_v9 = vcombine.high %v17049_v20, %v17546_v39  ;;  %v17702_v55 = vrot.slane %v6872_v58, %v12858_v10  ;;  %v25106_v21 = vld [vmem:[#allocation320_spill] sm:$0xff]  ;;  %v25107_v39 = vld [vmem:[#allocation297_spill] sm:$0xff] }
 0x3bf   :  { %25098 = vst [vmem:[#allocation360_spill] sm:$0xff] %v17667_v34  ;;  %25099 = vst [vmem:[#allocation361_spill] sm:$0xff] %v17674_v14  ;;  %v9183_v59 = vcombine.low %v16438_v40, %v17191_v47  ;;  %v9184_v44 = vcombine.high %v16438_v40, %v17191_v47  ;;  %v7007_v61 = vcombine.low %v16440_v31, %v17193_v22  ;;  %v25108_v58 = vld [vmem:[#allocation129_spill] sm:$0xff] }
 0x3c0   :  { %v17588_v50 = vpop.trf.xlu1  ;;  %v17590_v2 = vpop.trf.xlu0  ;;  %25100 = vst [vmem:[#allocation362_spill] sm:$0xff] %v17677_v12  ;;  %25101 = vst [vmem:[#allocation363_spill] sm:$0xff] %v17680_v48  ;;  %v7008_v33 = vcombine.high %v16440_v31, %v17193_v22  ;;  %v9319_v20 = vcombine.low %v16484_v25, %v17195_v15  ;;  %v17723_v47 = vrot.slane %v9063_v54, %v12858_v10 }
 0x3c1   :  { %25102 = vst [vmem:[#allocation364_spill] sm:$0xff] %v17693_v0  ;;  %25103 = vst [vmem:[#allocation365_spill] sm:$0xff] %v17702_v55  ;;  %v17726_v40 = vrot.slane %v9064_v9, %v12858_v10  ;;  %v6887_v7 = vcombine.low %v17051_v51, %v17548_v56  ;;  %v6888_v31 = vcombine.high %v17051_v51, %v17548_v56  ;;  %v25129_v55 = vld [vmem:[#allocation309_spill] sm:$0xff] }
 0x3c2   :  { %25104 = vst [vmem:[#allocation366_spill] sm:$0xff] %v17723_v47  ;;  %v9320_v22 = vcombine.high %v16484_v25, %v17195_v15  ;;  %v7143_v57 = vcombine.low %v25107_v39, %v25106_v21  ;;  %v9199_v46 = vcombine.low %v25108_v58, %v17588_v50  ;;  %v9200_v54 = vcombine.high %v25108_v58, %v17588_v50 }
 0x3c3   :  { %25105 = vst [vmem:[#allocation367_spill] sm:$0xff] %v17726_v40  ;;  %v17753_v41 = vrot.slane %v6887_v7, %v12858_v10  ;;  %v17756_v50 = vrot.slane %v6888_v31, %v12858_v10  ;;  %v17765_v51 = vrot.slane %v9183_v59, %v12858_v10  ;;  %v17768_v25 = vrot.slane %v9184_v44, %v12858_v10  ;;  %v25127_v40 = vld [vmem:[#allocation211_spill] sm:$0xff] }
 0x3c4   :  { %v17627_v11 = vpop.trf.xlu1  ;;  %v17629_v37 = vpop.trf.xlu0  ;;  %v17759_v58 = vrot.slane %v9199_v46, %v12858_v10  ;;  %v17762_v0 = vrot.slane %v9200_v54, %v12858_v10  ;;  %v17771_v9 = vrot.slane %v7007_v61, %v12858_v10  ;;  %v7144_v7 = vcombine.high %v25107_v39, %v25106_v21 }
 0x3c5   :  { %25109 = vst [vmem:[#allocation320_spill] sm:$0xff] %v17753_v41  ;;  %25110 = vst [vmem:[#allocation297_spill] sm:$0xff] %v17756_v50  ;;  %v25116_v54 = vcombine.low %v17218_v45, %v17221_v23  ;;  %v17799_v59 = vrot.slane %v7008_v33, %v12858_v10  ;;  %v17802_v44 = vrot.slane %v9319_v20, %v12858_v10 }
 0x3c6   :  { %25111 = vst [vmem:[#allocation129_spill] sm:$0xff] %v17759_v58  ;;  %25112 = vst [vmem:[#allocation368_spill] sm:$0xff] %v17762_v0  ;;  %v17805_v61 = vrot.slane %v9320_v22, %v12858_v10  ;;  %v17808_v21 = vrot.slane %v7143_v57, %v12858_v10  ;;  %v25121_v39 = vcombine.low %v17221_v23, %v17221_v23  ;;  %v25125_v58 = vld [vmem:[#allocation322_spill] sm:$0xff] }
 0x3c7   :  { %25113 = vst [vmem:[#allocation369_spill] sm:$0xff] %v17765_v51  ;;  %25114 = vst [vmem:[#allocation370_spill] sm:$0xff] %v17768_v25  ;;  %v17814_v0 = vrot.slane %v7144_v7, %v12858_v10  ;;  %v25124_v25 = vld [vmem:[#allocation299_spill] sm:$0xff]  ;;  %v25126_v51 = vld [vmem:[#allocation300_spill] sm:$0xff]  ;;  %v7023_v57 = vcombine.low %v25127_v40, %v17590_v2  ;;  %v7024_v12 = vcombine.high %v25127_v40, %v17590_v2 }
 0x3c8   :  { %v17669_v4 = vpop.trf.xlu1  ;;  %v17671_v19 = vpop.trf.xlu0  ;;  %25115 = vst [vmem:[#allocation371_spill] sm:$0xff] %v17771_v9  ;;  %25117 = vst [vmem:[#allocation372_spill] sm:$0xff] %v17799_v59  ;;  %v7279_v22 = vcombine.low %v25126_v51, %v25125_v58  ;;  %v7159_v34 = vcombine.low %v25129_v55, %v17629_v37 }
 0x3c9   :  { %25118 = vst [vmem:[#allocation373_spill] sm:$0xff] %v17802_v44  ;;  %25119 = vst [vmem:[#allocation374_spill] sm:$0xff] %v17805_v61  ;;  %v17843_v40 = vrot.slane %v7023_v57, %v12858_v10  ;;  %v25146_v61 = vld [vmem:[#allocation302_spill] sm:$0xff] }
 0x3ca   :  { %25120 = vst [vmem:[#allocation375_spill] sm:$0xff] %v17808_v21  ;;  %25122 = vst [vmem:[#allocation376_spill] sm:$0xff] %v17814_v0  ;;  %v25159_v0 = vld [vmem:[#allocation303_spill] sm:$0xff] }
 0x3cc   :  { %v17710_v13 = vpop.trf.xlu1  ;;  %v17712_v29 = vpop.trf.xlu0 }
 0x3d0   :  { %v17748_v15 = vpop.trf.xlu1  ;;  %v17750_v56 = vpop.trf.xlu0 }
 0x3d4   :  { %v17791_v31 = vpop.trf.xlu1  ;;  %v17793_v46 = vpop.trf.xlu0  ;;  %1303 = vxpose.xlu0.b32.start.end [1/1] (short) %v25116_v54, 128  ;;  %1335 = vxpose.xlu1.b32.start.end [1/1] (short) %v25121_v39, 128  ;;  %v25123_v54 = vld [vmem:[#allocation321_spill] sm:$0xff]  ;;  %v25128_v39 = vld [vmem:[#allocation308_spill] sm:$0xff] }
 0x3d5   :  { %v9455_v33 = vcombine.low %v25124_v25, %v25123_v54  ;;  %v9456_v20 = vcombine.high %v25124_v25, %v25123_v54  ;;  %v9335_v50 = vcombine.low %v25128_v39, %v17627_v11  ;;  %v9336_v7 = vcombine.high %v25128_v39, %v17627_v11  ;;  %v25130_v54 = vld [vmem:[#allocation310_spill] sm:$0xff]  ;;  %25131 = vst [vmem:[#allocation321_spill] sm:$0xff] %v17843_v40 }
 0x3d6   :  { %v7160_v25 = vcombine.high %v25129_v55, %v17629_v37  ;;  %v9471_v60 = vcombine.low %v25130_v54, %v17669_v4  ;;  %v9472_v35 = vcombine.high %v25130_v54, %v17669_v4  ;;  %v17846_v11 = vrot.slane %v7024_v12, %v12858_v10 }
 0x3d7   :  { %v17849_v39 = vrot.slane %v9335_v50, %v12858_v10  ;;  %v17852_v37 = vrot.slane %v9336_v7, %v12858_v10  ;;  %v17855_v55 = vrot.slane %v7159_v34, %v12858_v10  ;;  %v17887_v7 = vrot.slane %v9455_v33, %v12858_v10 }
 0x3d8   :  { %v17838_v62 = vpop.trf.xlu1  ;;  %v17840_v2 = vpop.trf.xlu0  ;;  %25132 = vst [vmem:[#allocation299_spill] sm:$0xff] %v17846_v11  ;;  %v17858_v4 = vrot.slane %v7160_v25, %v12858_v10  ;;  %v17861_v54 = vrot.slane %v9471_v60, %v12858_v10  ;;  %v17864_v57 = vrot.slane %v9472_v35, %v12858_v10  ;;  %v7280_v34 = vcombine.high %v25126_v51, %v25125_v58  ;;  %v25141_v25 = vld [vmem:[#allocation323_spill] sm:$0xff]  ;;  %v25142_v11 = vld [vmem:[#allocation301_spill] sm:$0xff] }
 0x3d9   :  { %25133 = vst [vmem:[#allocation322_spill] sm:$0xff] %v17849_v39  ;;  %25134 = vst [vmem:[#allocation300_spill] sm:$0xff] %v17852_v37  ;;  %v9591_v59 = vcombine.low %v25142_v11, %v25141_v25  ;;  %v9592_v60 = vcombine.high %v25142_v11, %v25141_v25  ;;  %v17896_v35 = vrot.slane %v9456_v20, %v12858_v10  ;;  %v25145_v37 = vld [vmem:[#allocation324_spill] sm:$0xff]  ;;  %v25147_v51 = vld [vmem:[#allocation311_spill] sm:$0xff] }
 0x3da   :  { %25135 = vst [vmem:[#allocation211_spill] sm:$0xff] %v17855_v55  ;;  %25136 = vst [vmem:[#allocation308_spill] sm:$0xff] %v17858_v4  ;;  %v17899_v12 = vrot.slane %v7279_v22, %v12858_v10  ;;  %v7415_v39 = vcombine.low %v25146_v61, %v25145_v37  ;;  %v7295_v44 = vcombine.low %v25147_v51, %v17671_v19  ;;  %v25158_v4 = vld [vmem:[#allocation326_spill] sm:$0xff] }
 0x3db   :  { %25137 = vst [vmem:[#allocation309_spill] sm:$0xff] %v17861_v54  ;;  %25138 = vst [vmem:[#allocation310_spill] sm:$0xff] %v17864_v57  ;;  %v17926_v11 = vrot.slane %v7280_v34, %v12858_v10  ;;  %v17929_v20 = vrot.slane %v9591_v59, %v12858_v10  ;;  %v17932_v22 = vrot.slane %v9592_v60, %v12858_v10  ;;  %v25153_v57 = vld [vmem:[#allocation325_spill] sm:$0xff]  ;;  %v25156_v60 = vld [vmem:[#allocation312_spill] sm:$0xff] }
 0x3dc   :  { %v17882_v49 = vpop.trf.xlu1  ;;  %v17884_v50 = vpop.trf.xlu0  ;;  %25140 = vst [vmem:[#allocation378_spill] sm:$0xff] %v17887_v7  ;;  %25143 = vst [vmem:[#allocation323_spill] sm:$0xff] %v17896_v35  ;;  %v7416_v25 = vcombine.high %v25146_v61, %v25145_v37  ;;  %v17937_v33 = vrot.slane %v7415_v39, %v12858_v10  ;;  %v25154_v35 = vld [vmem:[#allocation145_spill] sm:$0xff]  ;;  %v7296_v34 = vcombine.high %v25147_v51, %v17671_v19 }
 0x3dd   :  { %25139 = vst [vmem:[#allocation377_spill] sm:$0xff] %v17882_v49  ;;  %25144 = vst [vmem:[#allocation301_spill] sm:$0xff] %v17899_v12  ;;  %v9727_v54 = vcombine.low %v25154_v35, %v25153_v57  ;;  %v9728_v7 = vcombine.high %v25154_v35, %v25153_v57  ;;  %v17946_v59 = vrot.slane %v7295_v44, %v12858_v10  ;;  %v25157_v39 = vld [vmem:[#allocation313_spill] sm:$0xff] }
 0x3de   :  { %25149 = vst [vmem:[#allocation302_spill] sm:$0xff] %v17926_v11  ;;  %25150 = vst [vmem:[#allocation311_spill] sm:$0xff] %v17929_v20  ;;  %v9608_v61 = vcombine.high %v25156_v60, %v17710_v13  ;;  %v7431_v37 = vcombine.low %v25157_v39, %v17712_v29  ;;  %v7551_v21 = vcombine.low %v25159_v0, %v25158_v4 }
 0x3df   :  { %25151 = vst [vmem:[#allocation379_spill] sm:$0xff] %v17932_v22  ;;  %25152 = vst [vmem:[#allocation380_spill] sm:$0xff] %v17937_v33  ;;  %v7552_v57 = vcombine.high %v25159_v0, %v25158_v4  ;;  %v17959_v19 = vrot.slane %v7296_v34, %v12858_v10  ;;  %v7432_v44 = vcombine.high %v25157_v39, %v17712_v29 }
 0x3e0   :  { %v17921_v55 = vpop.trf.xlu1  ;;  %v17923_v58 = vpop.trf.xlu0  ;;  %25155 = vst [vmem:[#allocation325_spill] sm:$0xff] %v17946_v59  ;;  %v17975_v0 = vrot.slane %v9608_v61, %v12858_v10  ;;  %v17982_v34 = vrot.slane %v7431_v37, %v12858_v10  ;;  %v25166_v61 = vld [vmem:[#allocation314_spill] sm:$0xff]  ;;  %v17996_v29 = vrot.slane %v7416_v25, %v12858_v10 }
 0x3e1   :  { %25148 = vst [vmem:[#allocation324_spill] sm:$0xff] %v17921_v55  ;;  %v9607_v55 = vcombine.low %v25156_v60, %v17710_v13  ;;  %25160 = vst [vmem:[#allocation145_spill] sm:$0xff] %v17959_v19  ;;  %v17985_v39 = vrot.slane %v7432_v44, %v12858_v10  ;;  %v9743_v13 = vcombine.low %v25166_v61, %v17748_v15 }
 0x3e2   :  { %25163 = vst [vmem:[#allocation326_spill] sm:$0xff] %v17975_v0  ;;  %25164 = vst [vmem:[#allocation303_spill] sm:$0xff] %v17982_v34  ;;  %v9744_v4 = vcombine.high %v25166_v61, %v17748_v15  ;;  %v18010_v19 = vrot.slane %v9728_v7, %v12858_v10  ;;  %v18017_v61 = vrot.slane %v7551_v21, %v12858_v10  ;;  %v25173_v7 = vld [vmem:[#allocation327_spill] sm:$0xff]  ;;  %v25174_v0 = vld [vmem:[#allocation304_spill] sm:$0xff] }
 0x3e3   :  { %v17972_v40 = vrot.slane %v9607_v55, %v12858_v10  ;;  %25165 = vst [vmem:[#allocation381_spill] sm:$0xff] %v17985_v39  ;;  %25167 = vst [vmem:[#allocation314_spill] sm:$0xff] %v17996_v29  ;;  %v18007_v55 = vrot.slane %v9727_v54, %v12858_v10  ;;  %v18020_v44 = vrot.slane %v7552_v57, %v12858_v10  ;;  %v25177_v57 = vld [vmem:[#allocation328_spill] sm:$0xff]  ;;  %v25179_v54 = vld [vmem:[#allocation315_spill] sm:$0xff] }
 0x3e4   :  { %v17963_v35 = vpop.trf.xlu1  ;;  %v17965_v51 = vpop.trf.xlu0  ;;  %25170 = vst [vmem:[#allocation384_spill] sm:$0xff] %v18010_v19  ;;  %25171 = vst [vmem:[#allocation385_spill] sm:$0xff] %v18017_v61  ;;  %v9863_v22 = vcombine.low %v25174_v0, %v25173_v7  ;;  %v9864_v15 = vcombine.high %v25174_v0, %v25173_v7  ;;  %v18031_v25 = vrot.slane %v9743_v13, %v12858_v10 }
 0x3e5   :  { %25161 = vst [vmem:[#allocation312_spill] sm:$0xff] %v17963_v35  ;;  %25162 = vst [vmem:[#allocation313_spill] sm:$0xff] %v17972_v40  ;;  %v18034_v21 = vrot.slane %v9744_v4, %v12858_v10  ;;  %v7567_v39 = vcombine.low %v25179_v54, %v17750_v56  ;;  %v7568_v29 = vcombine.high %v25179_v54, %v17750_v56  ;;  %v25183_v54 = vld [vmem:[#allocation316_spill] sm:$0xff] }
 0x3e6   :  { %25169 = vst [vmem:[#allocation383_spill] sm:$0xff] %v18007_v55  ;;  %25172 = vst [vmem:[#allocation386_spill] sm:$0xff] %v18020_v44  ;;  %v9879_v12 = vcombine.low %v25183_v54, %v17791_v31  ;;  %v9880_v13 = vcombine.high %v25183_v54, %v17791_v31  ;;  %v18067_v4 = vrot.slane %v9863_v22, %v12858_v10 }
 0x3e7   :  { %25175 = vst [vmem:[#allocation327_spill] sm:$0xff] %v18031_v25  ;;  %25176 = vst [vmem:[#allocation304_spill] sm:$0xff] %v18034_v21  ;;  %v18060_v56 = vrot.slane %v7568_v29, %v12858_v10  ;;  %v18070_v7 = vrot.slane %v9864_v15, %v12858_v10  ;;  %v25186_v25 = vld [vmem:[#allocation256_spill] sm:$0xff] }
 0x3e8   :  { %v18002_v35 = vpop.trf.xlu1  ;;  %v18004_v60 = vpop.trf.xlu0  ;;  %25184 = vst [vmem:[#allocation316_spill] sm:$0xff] %v18067_v4  ;;  %v18089_v55 = vrot.slane %v9879_v12, %v12858_v10 }
 0x3e9   :  { %25168 = vst [vmem:[#allocation382_spill] sm:$0xff] %v18002_v35  ;;  %v25178_v35 = vld [vmem:[#allocation305_spill] sm:$0xff]  ;;  %25182 = vst [vmem:[#allocation315_spill] sm:$0xff] %v18060_v56  ;;  %v25196_v56 = vld [vmem:[#allocation119_spill] sm:$0xff] }
 0x3ea   :  { %v7687_v11 = vcombine.low %v25178_v35, %v25177_v57  ;;  %v7688_v37 = vcombine.high %v25178_v35, %v25177_v57  ;;  %v18057_v57 = vrot.slane %v7567_v39, %v12858_v10  ;;  %25185 = vst [vmem:[#allocation387_spill] sm:$0xff] %v18070_v7  ;;  %v25187_v35 = vld [vmem:[#allocation101_spill] sm:$0xff]  ;;  %25190 = vst [vmem:[#allocation388_spill] sm:$0xff] %v18089_v55 }
 0x3eb   :  { %v9999_v21 = vcombine.low %v25187_v35, %v25186_v25  ;;  %v10000_v39 = vcombine.high %v25187_v35, %v25186_v25  ;;  %v18092_v25 = vrot.slane %v9880_v13, %v12858_v10  ;;  %v25192_v35 = vld [vmem:[#allocation317_spill] sm:$0xff] }
 0x3ec   :  { %v18044_v59 = vpop.trf.xlu1  ;;  %v18046_v0 = vpop.trf.xlu0  ;;  %25181 = vst [vmem:[#allocation305_spill] sm:$0xff] %v18057_v57  ;;  %v7703_v29 = vcombine.low %v25192_v35, %v17793_v46  ;;  %v7704_v19 = vcombine.high %v25192_v35, %v17793_v46  ;;  %v18099_v31 = vrot.slane %v7687_v11, %v12858_v10  ;;  %v18102_v22 = vrot.slane %v7688_v37, %v12858_v10 }
 0x3ed   :  { %25180 = vst [vmem:[#allocation328_spill] sm:$0xff] %v18044_v59  ;;  %25191 = vst [vmem:[#allocation389_spill] sm:$0xff] %v18092_v25  ;;  %v18131_v46 = vrot.slane %v9999_v21, %v12858_v10  ;;  %v18134_v11 = vrot.slane %v10000_v39, %v12858_v10 }
 0x3ee   :  { %25193 = vst [vmem:[#allocation317_spill] sm:$0xff] %v18099_v31  ;;  %25194 = vst [vmem:[#allocation390_spill] sm:$0xff] %v18102_v22  ;;  %v18117_v37 = vrot.slane %v7703_v29, %v12858_v10  ;;  %v18120_v35 = vrot.slane %v7704_v19, %v12858_v10  ;;  %v25204_v29 = vld [vmem:[#allocation319_spill] sm:$0xff] }
 0x3ef   :  { %25202 = vst [vmem:[#allocation392_spill] sm:$0xff] %v18131_v46  ;;  %25203 = vst [vmem:[#allocation393_spill] sm:$0xff] %v18134_v11  ;;  %v7839_v19 = vcombine.low %v25204_v29, %v17840_v2  ;;  %v7840_v25 = vcombine.high %v25204_v29, %v17840_v2 }
 0x3f0   :  { %v18084_v15 = vpop.trf.xlu1  ;;  %v18086_v54 = vpop.trf.xlu0  ;;  %25198 = vst [vmem:[#allocation119_spill] sm:$0xff] %v18120_v35 }
 0x3f1   :  { %25188 = vst [vmem:[#allocation256_spill] sm:$0xff] %v18084_v15  ;;  %25189 = vst [vmem:[#allocation101_spill] sm:$0xff] %v18086_v54  ;;  %v25195_v15 = vld [vmem:[#allocation257_spill] sm:$0xff]  ;;  %v18155_v2 = vrot.slane %v7839_v19, %v12858_v10  ;;  %v18158_v29 = vrot.slane %v7840_v25, %v12858_v10 }
 0x3f2   :  { %v7823_v44 = vcombine.low %v25196_v56, %v25195_v15  ;;  %v7824_v12 = vcombine.high %v25196_v56, %v25195_v15  ;;  %25197 = vst [vmem:[#allocation257_spill] sm:$0xff] %v18117_v37  ;;  %v25199_v56 = vld [vmem:[#allocation318_spill] sm:$0xff] }
 0x3f3   :  { %v10015_v15 = vcombine.low %v25199_v56, %v17838_v62  ;;  %v10016_v13 = vcombine.high %v25199_v56, %v17838_v62  ;;  %25207 = vst [vmem:[#allocation395_spill] sm:$0xff] %v18155_v2  ;;  %25208 = vst [vmem:[#allocation396_spill] sm:$0xff] %v18158_v29 }
 0x3f4   :  { %v18126_v61 = vpop.trf.xlu1  ;;  %v18128_v57 = vpop.trf.xlu0  ;;  %v18161_v62 = vrot.slane %v7823_v44, %v12858_v10  ;;  %v18164_v56 = vrot.slane %v7824_v12, %v12858_v10 }
 0x3f5   :  { %25200 = vst [vmem:[#allocation318_spill] sm:$0xff] %v18126_v61  ;;  %25201 = vst [vmem:[#allocation391_spill] sm:$0xff] %v18128_v57  ;;  %v18149_v39 = vrot.slane %v10015_v15, %v12858_v10  ;;  %v18152_v55 = vrot.slane %v10016_v13, %v12858_v10 }
 0x3f6   :  { %25209 = vst [vmem:[#allocation397_spill] sm:$0xff] %v18161_v62  ;;  %25210 = vst [vmem:[#allocation398_spill] sm:$0xff] %v18164_v56 }
 0x3f7   :  { %25205 = vst [vmem:[#allocation319_spill] sm:$0xff] %v18149_v39  ;;  %25206 = vst [vmem:[#allocation394_spill] sm:$0xff] %v18152_v55 }
 0x3f8   :  { %v18166_v7 = vpop.trf.xlu1  ;;  %v18168_v21 = vpop.trf.xlu0 }
 0x3f9   :  { %25211 = vst [vmem:[#allocation399_spill] sm:$0xff] %v18166_v7  ;;  %25212 = vst [vmem:[#allocation400_spill] sm:$0xff] %v18168_v21 }
 0x3fc   :  { %v18186_v7 = vpop.trf.xlu1  ;;  %v18188_v15 = vpop.trf.xlu0 }
 0x3fd   :  { %25213 = vst [vmem:[#allocation401_spill] sm:$0xff] %v18186_v7  ;;  %25214 = vst [vmem:[#allocation402_spill] sm:$0xff] %v18188_v15 }
 0x400   :  { %v18190_v25 = vpop.trf.xlu1  ;;  %v18192_v39 = vpop.trf.xlu0 }
 0x401   :  { %25215 = vst [vmem:[#allocation403_spill] sm:$0xff] %v18190_v25  ;;  %25216 = vst [vmem:[#allocation404_spill] sm:$0xff] %v18192_v39  ;;  %v12710_v25 = vcombine.high %v17221_v23, %v17221_v23 }
 0x404   :  { %v18194_v44 = vpop.trf.xlu1  ;;  %v18196_v12 = vpop.trf.xlu0 }
 0x405   :  { %25217 = vst [vmem:[#allocation405_spill] sm:$0xff] %v18194_v44  ;;  %25218 = vst [vmem:[#allocation406_spill] sm:$0xff] %v18196_v12 }
 0x408   :  { %v18198_v55 = vpop.trf.xlu1  ;;  %v18200_v19 = vpop.trf.xlu0 }
 0x409   :  { %25219 = vst [vmem:[#allocation407_spill] sm:$0xff] %v18198_v55  ;;  %25220 = vst [vmem:[#allocation408_spill] sm:$0xff] %v18200_v19  ;;  %v25227_v55 = vcombine.high %v17218_v45, %v17221_v23 }
 0x40c   :  { %v18202_v4 = vpop.trf.xlu1  ;;  %v18204_v11 = vpop.trf.xlu0 }
 0x40d   :  { %25221 = vst [vmem:[#allocation409_spill] sm:$0xff] %v18202_v4  ;;  %25222 = vst [vmem:[#allocation410_spill] sm:$0xff] %v18204_v11 }
 0x410   :  { %v18206_v13 = vpop.trf.xlu1  ;;  %v18208_v46 = vpop.trf.xlu0 }
 0x411   :  { %25223 = vst [vmem:[#allocation411_spill] sm:$0xff] %v18206_v13  ;;  %25224 = vst [vmem:[#allocation412_spill] sm:$0xff] %v18208_v46 }
 0x414   :  { %v18212_v61 = vpop.trf.xlu1  ;;  %v18214_v44 = vpop.trf.xlu0  ;;  %1367 = vxpose.xlu0.b32.start.end [1/1] (short) %v25227_v55, 128  ;;  %1399 = vxpose.xlu1.b32.start.end [1/1] (short) %v12710_v25, 128 }
 0x415   :  { %25225 = vst [vmem:[#allocation413_spill] sm:$0xff] %v18212_v61  ;;  %25226 = vst [vmem:[#allocation414_spill] sm:$0xff] %v18214_v44 }
 0x418   :  { %v18219_v29 = vpop.trf.xlu1  ;;  %v18221_v56 = vpop.trf.xlu0 }
 0x419   :  { %25228 = vst [vmem:[#allocation415_spill] sm:$0xff] %v18219_v29  ;;  %25229 = vst [vmem:[#allocation416_spill] sm:$0xff] %v18221_v56 }
 0x41c   :  { %v18223_v2 = vpop.trf.xlu1  ;;  %v18225_v13 = vpop.trf.xlu0 }
 0x41d   :  { %25230 = vst [vmem:[#allocation417_spill] sm:$0xff] %v18223_v2 }
 0x420   :  { %v18227_v62 = vpop.trf.xlu1  ;;  %v18229_v35 = vpop.trf.xlu0 }
 0x421   :  { %25231 = vst [vmem:[#allocation418_spill] sm:$0xff] %v18227_v62 }
 0x424   :  { %v18231_v61 = vpop.trf.xlu1  ;;  %v18233_v22 = vpop.trf.xlu0 }
 0x425   :  { %25232 = vst [vmem:[#allocation419_spill] sm:$0xff] %v18231_v61 }
 0x428   :  { %v18235_v37 = vpop.trf.xlu1  ;;  %v18237_v45 = vpop.trf.xlu0 }
 0x429   :  { %25233 = vst [vmem:[#allocation420_spill] sm:$0xff] %v18235_v37 }
 0x42c   :  { %v18239_v23 = vpop.trf.xlu1  ;;  %v18241_v55 = vpop.trf.xlu0 }
 0x42d   :  { %25234 = vst [vmem:[#allocation421_spill] sm:$0xff] %v18239_v23 }
 0x430   :  { %v18243_v25 = vpop.trf.xlu1  ;;  %v18245_v29 = vpop.trf.xlu0 }
 0x431   :  { %25235 = vst [vmem:[#allocation422_spill] sm:$0xff] %v18243_v25  ;;  %25236 = vst [vmem:[#allocation423_spill] sm:$0xff] %v18245_v29 }
 0x434   :  { %v18247_v56 = vpop.trf.xlu1  ;;  %v18249_v62 = vpop.trf.xlu0 }
 0x435   :  { %25237 = vst [vmem:[#allocation424_spill] sm:$0xff] %v18247_v56  ;;  %25238 = vst [vmem:[#allocation425_spill] sm:$0xff] %v18249_v62 }
 0x438   :  { %v18251_v31 = vpop.trf.xlu1  ;;  %v18253_v61 = vpop.trf.xlu0 }
 0x439   :  { %25239 = vst [vmem:[#allocation426_spill] sm:$0xff] %v18251_v31  ;;  %25240 = vst [vmem:[#allocation427_spill] sm:$0xff] %v18253_v61 }
 0x43c   :  { %v18255_v44 = vpop.trf.xlu1  ;;  %v18257_v37 = vpop.trf.xlu0 }
 0x43d   :  { %25241 = vst [vmem:[#allocation428_spill] sm:$0xff] %v18255_v44  ;;  %25242 = vst [vmem:[#allocation429_spill] sm:$0xff] %v18257_v37 }
 0x440   :  { %v18259_v46 = vpop.trf.xlu1  ;;  %v18261_v19 = vpop.trf.xlu0 }
 0x441   :  { %25243 = vst [vmem:[#allocation430_spill] sm:$0xff] %v18259_v46  ;;  %25244 = vst [vmem:[#allocation431_spill] sm:$0xff] %v18261_v19 }
 0x444   :  { %v18263_v12 = vpop.trf.xlu1  ;;  %v18265_v25 = vpop.trf.xlu0 }
 0x445   :  { %25245 = vst [vmem:[#allocation432_spill] sm:$0xff] %v18263_v12  ;;  %25246 = vst [vmem:[#allocation433_spill] sm:$0xff] %v18265_v25 }
 0x448   :  { %v18267_v9 = vpop.trf.xlu1  ;;  %v18269_v56 = vpop.trf.xlu0 }
 0x449   :  { %25247 = vst [vmem:[#allocation434_spill] sm:$0xff] %v18267_v9  ;;  %25248 = vst [vmem:[#allocation435_spill] sm:$0xff] %v18269_v56 }
 0x44c   :  { %v18271_v39 = vpop.trf.xlu1  ;;  %v18273_v31 = vpop.trf.xlu0 }
 0x44d   :  { %25249 = vst [vmem:[#allocation436_spill] sm:$0xff] %v18271_v39  ;;  %25250 = vst [vmem:[#allocation437_spill] sm:$0xff] %v18273_v31 }
 0x450   :  { %v18275_v21 = vpop.trf.xlu1  ;;  %v18277_v61 = vpop.trf.xlu0 }
 0x451   :  { %25251 = vst [vmem:[#allocation438_spill] sm:$0xff] %v18275_v21  ;;  %25252 = vst [vmem:[#allocation439_spill] sm:$0xff] %v18277_v61 }
 0x454   :  { %v18279_v16 = vpop.trf.xlu0  ;;  %v18281_v46 = vpop.trf.xlu1 }
 0x455   :  { %25253 = vst [vmem:[#allocation440_spill] sm:$0xff] %v18279_v16  ;;  %25254 = vst [vmem:[#allocation441_spill] sm:$0xff] %v18281_v46 }
 0x458   :  { %v18283_v19 = vpop.trf.xlu0  ;;  %v18285_v12 = vpop.trf.xlu1 }
 0x459   :  { %25255 = vst [vmem:[#allocation442_spill] sm:$0xff] %v18283_v19  ;;  %25256 = vst [vmem:[#allocation443_spill] sm:$0xff] %v18285_v12  ;;  %v25261_v19 = vld [vmem:[#allocation8_spill] sm:$0xff]  ;;  %v25263_v12 = vld [vmem:[#allocation131_spill] sm:$0xff] }
 0x45a   :  { %v25264_v5 = vcombine.low %v25262_v42, %v25263_v12 }
 0x45c   :  { %v1319_v25 = vpop.trf.xlu0  ;;  %v18289_v56 = vpop.trf.xlu1  ;;  %v18307_v40 = vrot.slane %v25264_v5, %v25261_v19 }
 0x45d   :  { %25257 = vst [vmem:[#allocation444_spill] sm:$0xff] %v18289_v56 }
 0x45e   :  { %25265 = vst [vmem:[#allocation8_spill] sm:$0xff] %v18307_v40 }
 0x460   :  { %v18287_v9 = vpop.trf.xlu0  ;;  %v18293_v62 = vpop.trf.xlu1 }
 0x461   :  { %25258 = vst [vmem:[#allocation445_spill] sm:$0xff] %v18293_v62  ;;  %v25268_v62 = vld [vmem:[#allocation58_spill] sm:$0xff] }
 0x462   :  { %v25270_v47 = vcombine.low %v25268_v62, %v25269_v18 }
 0x464   :  { %v18291_v57 = vpop.trf.xlu0  ;;  %v18299_v16 = vpop.trf.xlu1  ;;  %v18317_v14 = vrot.slane %v25270_v47, %v25261_v19 }
 0x465   :  { %25259 = vst [vmem:[#allocation446_spill] sm:$0xff] %v18299_v16 }
 0x466   :  { %25271 = vst [vmem:[#allocation58_spill] sm:$0xff] %v18317_v14  ;;  %v1560_v16 = vcombine.high %v18317_v14, %v18307_v40 }
 0x468   :  { %v18295_v21 = vpop.trf.xlu0  ;;  %v18309_v20 = vpop.trf.xlu1 }
 0x469   :  { %25266 = vst [vmem:[#allocation19_spill] sm:$0xff] %v18309_v20 }
 0x46c   :  { %v18297_v61 = vpop.trf.xlu0  ;;  %v18323_v39 = vpop.trf.xlu1 }
 0x46d   :  { %25273 = vst [vmem:[#allocation448_spill] sm:$0xff] %v18323_v39 }
 0x470   :  { %v18301_v46 = vpop.trf.xlu0  ;;  %v18328_v42 = vpop.trf.xlu1 }
 0x471   :  { %25260 = vst [vmem:[#allocation447_spill] sm:$0xff] %v18301_v46  ;;  %25275 = vst [vmem:[#allocation450_spill] sm:$0xff] %v18328_v42 }
 0x474   :  { %v18311_v1 = vpop.trf.xlu0  ;;  %v18334_v18 = vpop.trf.xlu1 }
 0x475   :  { %25267 = vst [vmem:[#allocation131_spill] sm:$0xff] %v18311_v1  ;;  %25278 = vst [vmem:[#allocation453_spill] sm:$0xff] %v18334_v18 }
 0x478   :  { %v18321_v4 = vpop.trf.xlu0  ;;  %v18338_v62 = vpop.trf.xlu1 }
 0x479   :  { %25272 = vst [vmem:[#allocation60_spill] sm:$0xff] %v18321_v4  ;;  %10137 = vrot.lane.b32.xlu0 %v1560_v16, %s12805_s0  ;;  %25280 = vst [vmem:[#allocation455_spill] sm:$0xff] %v18338_v62 }
 0x47c   :  { %v18326_v5 = vpop.trf.xlu0  ;;  %v18344_v4 = vpop.trf.xlu1 }
 0x47d   :  { %25274 = vst [vmem:[#allocation449_spill] sm:$0xff] %v18326_v5  ;;  %25283 = vst [vmem:[#allocation458_spill] sm:$0xff] %v18344_v4 }
 0x480   :  { %v18330_v12 = vpop.trf.xlu0  ;;  %v18348_v1 = vpop.trf.xlu1 }
 0x481   :  { %25276 = vst [vmem:[#allocation451_spill] sm:$0xff] %v18330_v12  ;;  %25285 = vst [vmem:[#allocation460_spill] sm:$0xff] %v18348_v1 }
 0x484   :  { %v18332_v20 = vpop.trf.xlu0  ;;  %v18353_v18 = vpop.trf.xlu1 }
 0x485   :  { %25277 = vst [vmem:[#allocation452_spill] sm:$0xff] %v18332_v20  ;;  %v5815_v20 = vcombine.low %v17884_v50, %v1319_v25  ;;  %25287 = vst [vmem:[#allocation462_spill] sm:$0xff] %v18353_v18 }
 0x487   :  { %v5823_v46 = vrot.slane %v5815_v20, %v12858_v10  ;;  %v25290_v20 = vcombine.high %v17249_v38, %v17282_v17 }
 0x488   :  { %v18336_v47 = vpop.trf.xlu0 }
 0x489   :  { %25279 = vst [vmem:[#allocation454_spill] sm:$0xff] %v18336_v47 }
 0x48c   :  { %v18340_v14 = vpop.trf.xlu0 }
 0x48d   :  { %25281 = vst [vmem:[#allocation456_spill] sm:$0xff] %v18340_v14 }
 0x490   :  { %v18342_v40 = vpop.trf.xlu0 }
 0x491   :  { %25282 = vst [vmem:[#allocation457_spill] sm:$0xff] %v18342_v40  ;;  %v5816_v40 = vcombine.high %v17884_v50, %v1319_v25  ;;  %v25289_v50 = vcombine.low %v17249_v38, %v17282_v17  ;;  %v25292_v25 = vld [vmem:[#allocation156_spill] sm:$0xff] }
 0x493   :  { %v5830_v7 = vrot.slane %v5816_v40, %v12858_v10 }
 0x494   :  { %v18346_v16 = vpop.trf.xlu0 }
 0x495   :  { %25284 = vst [vmem:[#allocation459_spill] sm:$0xff] %v18346_v16 }
 0x498   :  { %v18350_v42 = vpop.trf.xlu0 }
 0x499   :  { %25286 = vst [vmem:[#allocation461_spill] sm:$0xff] %v18350_v42  ;;  %v18361_v42 = vpop.trf.xlu1 }
 0x49a   :  { %25288 = vst [vmem:[#allocation463_spill] sm:$0xff] %v18361_v42 }
 0x49c   :  { %v1383_v12 = vpop.trf.xlu0 }
 0x49d   :  { %v5831_v47 = vcombine.low %v18225_v13, %v1383_v12  ;;  %v5832_v62 = vcombine.high %v18225_v13, %v1383_v12  ;;  %v18372_v13 = vrot.slane %v25289_v50, %v25261_v19  ;;  %v25293_v12 = vcombine.low %v17252_v27, %v25292_v25 }
 0x49f   :  { %v5839_v54 = vrot.slane %v5831_v47, %v12858_v10  ;;  %v5846_v16 = vrot.slane %v5832_v62, %v12858_v10  ;;  %v5871_v47 = vrot.slane %v25293_v12, %v25261_v19 }
 0x4a0   :  { %v1384_v50 = vpop.trf.xlu0 }
 0x4a1   :  { %v5879_v1 = vcombine.low %v5823_v46, %v5839_v54  ;;  %v5880_v29 = vcombine.high %v5823_v46, %v5839_v54  ;;  %v5895_v4 = vcombine.low %v5830_v7, %v5846_v16  ;;  %v5862_v54 = vrot.slane %v25290_v20, %v25261_v19  ;;  %v18378_v46 = vpop.trf.xlu1  ;;  %v25296_v20 = vld [vmem:[#allocation140_spill] sm:$0xff] }
 0x4a2   :  { %25291 = vst [vmem:[#allocation464_spill] sm:$0xff] %v18378_v46  ;;  %v5896_v38 = vcombine.high %v5830_v7, %v5846_v16  ;;  %v25298_v7 = vcombine.high %v17252_v27, %v25292_v25 }
 0x4a3   :  { %v5894_v18 = vrot.slane %v5880_v29, %v25261_v19  ;;  %v18366_v44 = vrot.slane %v5879_v1, %v25261_v19  ;;  %v5903_v1 = vrot.slane %v5895_v4, %v25261_v19  ;;  %v25295_v4 = vld [vmem:[#allocation167_spill] sm:$0xff] }
 0x4a4   :  { %v25297_v42 = vcombine.low %v25295_v4, %v25296_v20  ;;  %v5910_v46 = vrot.slane %v5896_v38, %v25261_v19  ;;  %v5878_v16 = vrot.slane %v25298_v7, %v25261_v19  ;;  %v25300_v27 = vcombine.high %v25295_v4, %v25296_v20  ;;  %v25302_v38 = vld [vmem:[#allocation62_spill] sm:$0xff] }
 0x4a5   :  { %v5914_v40 = vcombine.high %v5862_v54, %v5894_v18  ;;  %v5912_v29 = vcombine.high %v18372_v13, %v18366_v44  ;;  %v5915_v17 = vcombine.low %v5871_v47, %v5903_v1  ;;  %v18389_v62 = vpop.trf.xlu1  ;;  %v5916_v12 = vcombine.high %v5871_v47, %v5903_v1 }
 0x4a6   :  { %25294 = vst [vmem:[#allocation156_spill] sm:$0xff] %v18389_v62  ;;  %v5918_v47 = vcombine.high %v5878_v16, %v5910_v46 }
 0x4a7   :  { %10155 = vrot.lane.b32.xlu0 %v5914_v40, %s12806_s13  ;;  %10139 = vrot.lane.b32.xlu1 %v5912_v29, %s12805_s0  ;;  %v5967_v40 = vcombine.low %v18229_v35, %v1384_v50  ;;  %v5913_v29 = vcombine.low %v5862_v54, %v5894_v18 }
 0x4a9   :  { %v18405_v62 = vpop.trf.xlu1  ;;  %v5975_v1 = vrot.slane %v5967_v40, %v12858_v10 }
 0x4aa   :  { %25299 = vst [vmem:[#allocation167_spill] sm:$0xff] %v18405_v62 }
 0x4ab   :  { %10163 = vrot.lane.b32.xlu0 %v5915_v17, %s12807_s14  ;;  %10145 = vrot.lane.b32.xlu1 %v25297_v42, %s12808_s15  ;;  %v5951_v17 = vcombine.low %v17923_v58, %v18287_v9  ;;  %v5917_v42 = vcombine.low %v5878_v16, %v5910_v46 }
 0x4ad   :  { %v5959_v18 = vrot.slane %v5951_v17, %v12858_v10  ;;  %v18415_v54 = vpop.trf.xlu1 }
 0x4ae   :  { %25301 = vst [vmem:[#allocation140_spill] sm:$0xff] %v18415_v54  ;;  %v5952_v54 = vcombine.high %v17923_v58, %v18287_v9 }
 0x4af   :  { %10171 = vrot.lane.b32.xlu0 %v5916_v12, %s12809_s16  ;;  %10147 = vrot.lane.b32.xlu1 %v5913_v29, %s12808_s15  ;;  %v6015_v25 = vcombine.low %v5959_v18, %v5975_v1  ;;  %v25303_v12 = vld [vmem:[#allocation215_spill] sm:$0xff]  ;;  %v25305_v29 = vcombine.low %v17291_v32, %v17350_v26  ;;  %v6016_v17 = vcombine.high %v5959_v18, %v5975_v1 }
 0x4b0   :  { %v25304_v40 = vcombine.low %v25302_v38, %v25303_v12  ;;  %v25307_v46 = vcombine.high %v25302_v38, %v25303_v12  ;;  %v5966_v58 = vrot.slane %v5952_v54, %v12858_v10  ;;  %v25318_v54 = vld [vmem:[#allocation335_spill] sm:$0xff] }
 0x4b1   :  { %v5991_v7 = vrot.slane %v25305_v29, %v25261_v19  ;;  %v6023_v4 = vrot.slane %v6015_v25, %v25261_v19  ;;  %v18427_v20 = vpop.trf.xlu1  ;;  %v6030_v1 = vrot.slane %v6016_v17, %v25261_v19 }
 0x4b2   :  { %25306 = vst [vmem:[#allocation62_spill] sm:$0xff] %v18427_v20 }
 0x4b3   :  { %10179 = vrot.lane.b32.xlu0 %v5917_v42, %s12810_s17  ;;  %10153 = vrot.lane.b32.xlu1 %v25300_v27, %s12806_s13  ;;  %v6047_v16 = vcombine.low %v5991_v7, %v6023_v4  ;;  %v5968_v42 = vcombine.high %v18229_v35, %v1384_v50  ;;  %v18435_v27 = vpop.trf.xlu0  ;;  %v6048_v29 = vcombine.high %v5991_v7, %v6023_v4 }
 0x4b4   :  { %v25312_v35 = vcombine.high %v17291_v32, %v17350_v26  ;;  %v25315_v26 = vld [vmem:[#allocation172_spill] sm:$0xff] }
 0x4b5   :  { %v18443_v38 = vpop.trf.xlu1  ;;  %v5982_v18 = vrot.slane %v5968_v42, %v12858_v10  ;;  %v25319_v42 = vcombine.low %v17294_v28, %v25318_v54 }
 0x4b6   :  { %25311 = vst [vmem:[#allocation215_spill] sm:$0xff] %v18443_v38  ;;  %v5998_v50 = vrot.slane %v25312_v35, %v25261_v19 }
 0x4b7   :  { %10187 = vrot.lane.b32.xlu0 %v5918_v47, %s12811_s18  ;;  %10161 = vrot.lane.b32.xlu1 %v25304_v40, %s12807_s14  ;;  %v25308_v47 = vld [vmem:[#allocation61_spill] sm:$0xff]  ;;  %v25309_v40 = vld [vmem:[#allocation216_spill] sm:$0xff]  ;;  %v18457_v7 = vpop.trf.xlu0  ;;  %v6031_v4 = vcombine.low %v5966_v58, %v5982_v18 }
 0x4b8   :  { %v25310_v25 = vcombine.low %v25308_v47, %v25309_v40  ;;  %v25313_v12 = vcombine.high %v25308_v47, %v25309_v40  ;;  %v6049_v9 = vcombine.low %v5998_v50, %v6030_v1  ;;  %v6050_v17 = vcombine.high %v5998_v50, %v6030_v1 }
 0x4b9   :  { %v18460_v32 = vpop.trf.xlu1  ;;  %v6007_v47 = vrot.slane %v25319_v42, %v25261_v19  ;;  %v6032_v1 = vcombine.high %v5966_v58, %v5982_v18  ;;  %v25325_v18 = vcombine.high %v17294_v28, %v25318_v54  ;;  %v25328_v54 = vld [vmem:[#allocation63_spill] sm:$0xff] }
 0x4ba   :  { %25314 = vst [vmem:[#allocation61_spill] sm:$0xff] %v18460_v32 }
 0x4bb   :  { %10169 = vrot.lane.b32.xlu1 %v25307_v46, %s12809_s16  ;;  %10195 = vrot.lane.b32.xlu0 %v6047_v16, %s12812_s19  ;;  %v25316_v46 = vld [vmem:[#allocation221_spill] sm:$0xff]  ;;  %v18471_v40 = vpop.trf.xlu0  ;;  %v6014_v58 = vrot.slane %v25325_v18, %v25261_v19 }
 0x4bc   :  { %v25317_v16 = vcombine.low %v25315_v26, %v25316_v46 }
 0x4bd   :  { %v18478_v35 = vpop.trf.xlu1 }
 0x4be   :  { %25321 = vst [vmem:[#allocation216_spill] sm:$0xff] %v18478_v35 }
 0x4bf   :  { %10177 = vrot.lane.b32.xlu1 %v25310_v25, %s12810_s17  ;;  %10203 = vrot.lane.b32.xlu0 %v6048_v29, %s12813_s20  ;;  %v25320_v25 = vcombine.high %v25315_v26, %v25316_v46  ;;  %v6039_v29 = vrot.slane %v6031_v4, %v25261_v19  ;;  %v6103_v26 = vcombine.low %v18233_v22, %v18435_v27 }
 0x4c0   :  { %v6046_v4 = vrot.slane %v6032_v1, %v25261_v19 }
 0x4c1   :  { %v6051_v50 = vcombine.low %v6007_v47, %v6039_v29  ;;  %v6052_v42 = vcombine.high %v6007_v47, %v6039_v29  ;;  %v18494_v46 = vpop.trf.xlu1 }
 0x4c2   :  { %25326 = vst [vmem:[#allocation172_spill] sm:$0xff] %v18494_v46  ;;  %v6053_v29 = vcombine.low %v6014_v58, %v6046_v4  ;;  %v6054_v62 = vcombine.high %v6014_v58, %v6046_v4  ;;  %v6104_v4 = vcombine.high %v18233_v22, %v18435_v27 }
 0x4c3   :  { %10185 = vrot.lane.b32.xlu1 %v25313_v12, %s12811_s18  ;;  %10211 = vrot.lane.b32.xlu0 %v6049_v9, %s12814_s21  ;;  %v25322_v12 = vld [vmem:[#allocation173_spill] sm:$0xff]  ;;  %v25323_v9 = vld [vmem:[#allocation222_spill] sm:$0xff] }
 0x4c4   :  { %v25327_v47 = vcombine.high %v25322_v12, %v25323_v9 }
 0x4c5   :  { %v18512_v18 = vpop.trf.xlu1 }
 0x4c6   :  { %25331 = vst [vmem:[#allocation221_spill] sm:$0xff] %v18512_v18  ;;  %v25335_v18 = vld [vmem:[#allocation64_spill] sm:$0xff] }
 0x4c7   :  { %10193 = vrot.lane.b32.xlu1 %v25317_v16, %s12812_s19  ;;  %10219 = vrot.lane.b32.xlu0 %v6050_v17, %s23817_s22  ;;  %v25324_v16 = vcombine.low %v25322_v12, %v25323_v9  ;;  %v18485_v17 = vpop.trf.xlu0 }
 0x4cb   :  { %10201 = vrot.lane.b32.xlu1 %v25320_v25, %s12813_s20  ;;  %10227 = vrot.lane.b32.xlu0 %v6051_v50, %s12816_s23  ;;  %v6087_v25 = vcombine.low %v17965_v51, %v18291_v57  ;;  %v6111_v50 = vrot.slane %v6103_v26, %v12858_v10  ;;  %v18504_v1 = vpop.trf.xlu0 }
 0x4cd   :  { %v6095_v28 = vrot.slane %v6087_v25, %v12858_v10  ;;  %v25333_v25 = vcombine.low %v17321_v3, %v17362_v43 }
 0x4cf   :  { %10209 = vrot.lane.b32.xlu1 %v25324_v16, %s12814_s21  ;;  %10235 = vrot.lane.b32.xlu0 %v6052_v42, %s12817_s24  ;;  %v25329_v16 = vld [vmem:[#allocation223_spill] sm:$0xff]  ;;  %v6151_v12 = vcombine.low %v6095_v28, %v6111_v50  ;;  %v18519_v26 = vpop.trf.xlu0 }
 0x4d0   :  { %v25330_v42 = vcombine.low %v25328_v54, %v25329_v16  ;;  %v25332_v9 = vcombine.high %v25328_v54, %v25329_v16  ;;  %v25336_v54 = vld [vmem:[#allocation224_spill] sm:$0xff] }
 0x4d1   :  { %v25337_v16 = vcombine.low %v25335_v18, %v25336_v54  ;;  %v25339_v27 = vcombine.high %v25335_v18, %v25336_v54  ;;  %v6359_v18 = vcombine.low %v18046_v0, %v18297_v61  ;;  %v25343_v54 = vld [vmem:[#allocation295_spill] sm:$0xff] }
 0x4d3   :  { %10217 = vrot.lane.b32.xlu1 %v25327_v47, %s23817_s22  ;;  %10243 = vrot.lane.b32.xlu0 %v6053_v29, %s12818_s25  ;;  %v6127_v47 = vrot.slane %v25333_v25, %v25261_v19  ;;  %v6159_v29 = vrot.slane %v6151_v12, %v25261_v19  ;;  %v18537_v25 = vpop.trf.xlu0  ;;  %v25348_v12 = vld [vmem:[#allocation338_spill] sm:$0xff] }
 0x4d4   :  { %25338 = vst [vmem:[#allocation173_spill] sm:$0xff] %v18537_v25 }
 0x4d5   :  { %v6183_v58 = vcombine.low %v6127_v47, %v6159_v29  ;;  %v6184_v22 = vcombine.high %v6127_v47, %v6159_v29 }
 0x4d7   :  { %10225 = vrot.lane.b32.xlu1 %v25330_v42, %s12816_s23  ;;  %10251 = vrot.lane.b32.xlu0 %v6054_v62, %s23813_s26  ;;  %v18526_v42 = vpop.trf.xlu1  ;;  %v6152_v62 = vcombine.high %v6095_v28, %v6111_v50  ;;  %v25341_v28 = vcombine.high %v17321_v3, %v17362_v43  ;;  %v18566_v3 = vpop.trf.xlu0  ;;  %v18570_v43 = vrot.slane %v6359_v18, %v12858_v10 }
 0x4d8   :  { %25334 = vst [vmem:[#allocation335_spill] sm:$0xff] %v18526_v42  ;;  %v6118_v42 = vrot.slane %v6104_v4, %v12858_v10  ;;  %25345 = vst [vmem:[#allocation63_spill] sm:$0xff] %v18566_v3  ;;  %v25365_v3 = vld [vmem:[#allocation229_spill] sm:$0xff] }
 0x4d9   :  { %v6166_v50 = vrot.slane %v6152_v62, %v25261_v19  ;;  %v25342_v62 = vld [vmem:[#allocation202_spill] sm:$0xff] }
 0x4db   :  { %10233 = vrot.lane.b32.xlu1 %v25332_v9, %s12817_s24  ;;  %v6088_v9 = vcombine.high %v17965_v51, %v18291_v57  ;;  %10259 = vrot.lane.b32.xlu0 %v6183_v58, %s12802_s10  ;;  %v6375_v51 = vcombine.low %v18241_v55, %v18471_v40  ;;  %v18549_v57 = vpop.trf.xlu1  ;;  %v6134_v58 = vrot.slane %v25341_v28, %v25261_v19  ;;  %v18586_v18 = vpop.trf.xlu0 }
 0x4dc   :  { %25340 = vst [vmem:[#allocation222_spill] sm:$0xff] %v18549_v57  ;;  %v25347_v28 = vcombine.high %v25342_v62, %v25343_v54  ;;  %25350 = vst [vmem:[#allocation64_spill] sm:$0xff] %v18586_v18 }
 0x4dd   :  { %v6102_v4 = vrot.slane %v6088_v9, %v12858_v10  ;;  %v6185_v29 = vcombine.low %v6134_v58, %v6166_v50 }
 0x4df   :  { %10241 = vrot.lane.b32.xlu1 %v25337_v16, %s12818_s25  ;;  %10267 = vrot.lane.b32.xlu0 %v6184_v22, %s12820_s27  ;;  %v6167_v47 = vcombine.low %v6102_v4, %v6118_v42  ;;  %v25344_v16 = vcombine.low %v25342_v62, %v25343_v54  ;;  %v18572_v9 = vpop.trf.xlu1  ;;  %v6186_v22 = vcombine.high %v6134_v58, %v6166_v50  ;;  %v25352_v54 = vld [vmem:[#allocation228_spill] sm:$0xff] }
 0x4e0   :  { %25346 = vst [vmem:[#allocation223_spill] sm:$0xff] %v18572_v9  ;;  %v6168_v50 = vcombine.high %v6102_v4, %v6118_v42  ;;  %v6239_v58 = vcombine.low %v18237_v45, %v18457_v7  ;;  %v6919_v42 = vcombine.low %v18257_v37, %v18537_v25  ;;  %v25356_v4 = vcombine.low %v17425_v30, %v17515_v36  ;;  %v25515_v25 = vld [vmem:[#allocation60_spill] sm:$0xff] }
 0x4e2   :  { %v6182_v18 = vrot.slane %v6168_v50, %v25261_v19 }
 0x4e3   :  { %10249 = vrot.lane.b32.xlu1 %v25339_v27, %s23813_s26  ;;  %v18564_v27 = vrot.slane %v6375_v51, %v12858_v10  ;;  %10275 = vrot.lane.b32.xlu0 %v6185_v29, %s23811_s28  ;;  %v25349_v29 = vcombine.low %v17324_v63, %v25348_v12  ;;  %v18594_v35 = vpop.trf.xlu1 }
 0x4e4   :  { %25354 = vst [vmem:[#allocation224_spill] sm:$0xff] %v18594_v35 }
 0x4e5   :  { %v6423_v51 = vcombine.low %v18570_v43, %v18564_v27  ;;  %v6143_v57 = vrot.slane %v25349_v29, %v25261_v19  ;;  %v18608_v29 = vrot.slane %v25356_v4, %v25261_v19  ;;  %v25360_v4 = vcombine.high %v17324_v63, %v25348_v12 }
 0x4e7   :  { %10257 = vrot.lane.b32.xlu1 %v25344_v16, %s12802_s10  ;;  %v6175_v16 = vrot.slane %v6167_v47, %v25261_v19  ;;  %10283 = vrot.lane.b32.xlu0 %v6186_v22, %s12822_s29  ;;  %v25351_v47 = vld [vmem:[#allocation67_spill] sm:$0xff]  ;;  %v18597_v32 = vrot.slane %v6423_v51, %v25261_v19  ;;  %v6223_v22 = vcombine.low %v18004_v60, %v18295_v21 }
 0x4e8   :  { %25357 = vst [vmem:[#allocation295_spill] sm:$0xff] %v18608_v29  ;;  %v6247_v51 = vrot.slane %v6239_v58, %v12858_v10  ;;  %v25358_v38 = vcombine.high %v25351_v47, %v25352_v54 }
 0x4e9   :  { %v6187_v62 = vcombine.low %v6143_v57, %v6175_v16  ;;  %25355 = vst [vmem:[#allocation202_spill] sm:$0xff] %v18597_v32  ;;  %v6188_v35 = vcombine.high %v6143_v57, %v6175_v16  ;;  %v6231_v58 = vrot.slane %v6223_v22, %v12858_v10  ;;  %v18628_v57 = vrot.slane %v6919_v42, %v12858_v10 }
 0x4eb   :  { %10265 = vrot.lane.b32.xlu1 %v25347_v28, %s12820_s27  ;;  %v25353_v28 = vcombine.low %v25351_v47, %v25352_v54  ;;  %10291 = vrot.lane.b32.xlu0 %v6187_v62, %s12823_s30  ;;  %v18618_v62 = vpop.trf.xlu0  ;;  %25361 = vst [vmem:[#allocation67_spill] sm:$0xff] %v18628_v57  ;;  %v6287_v50 = vcombine.low %v6231_v58, %v6247_v51  ;;  %v25364_v54 = vld [vmem:[#allocation65_spill] sm:$0xff] }
 0x4ec   :  { %25359 = vst [vmem:[#allocation338_spill] sm:$0xff] %v18618_v62  ;;  %v25366_v63 = vcombine.low %v25364_v54, %v25365_v3  ;;  %v25368_v42 = vcombine.high %v25364_v54, %v25365_v3  ;;  %v25372_v3 = vcombine.low %v17680_v48, %v17753_v41  ;;  %v6240_v54 = vcombine.high %v18237_v45, %v18457_v7  ;;  %v25494_v62 = vld [vmem:[#allocation287_spill] sm:$0xff] }
 0x4ef   :  { %10273 = vrot.lane.b32.xlu1 %v25353_v28, %s23811_s28  ;;  %v6903_v28 = vcombine.low %v18188_v15, %v18326_v5  ;;  %v6150_v15 = vrot.slane %v25360_v4, %v25261_v19  ;;  %10299 = vrot.lane.b32.xlu0 %v6188_v35, %s23807_s2  ;;  %v18643_v22 = vpop.trf.xlu0 }
 0x4f0   :  { %25367 = vst [vmem:[#allocation65_spill] sm:$0xff] %v18643_v22 }
 0x4f1   :  { %v18634_v16 = vrot.slane %v6903_v28, %v12858_v10  ;;  %v6189_v47 = vcombine.low %v6150_v15, %v6182_v18  ;;  %v6190_v35 = vcombine.high %v6150_v15, %v6182_v18  ;;  %v6295_v28 = vrot.slane %v6287_v50, %v25261_v19 }
 0x4f2   :  { %v18666_v18 = vrot.slane %v25372_v3, %v25261_v19  ;;  %v7447_v50 = vcombine.low %v18204_v11, %v18340_v14 }
 0x4f3   :  { %10281 = vrot.lane.b32.xlu1 %v25358_v38, %s12822_s29  ;;  %v18631_v38 = vpop.trf.xlu1  ;;  %25363 = vst [vmem:[#allocation465_spill] sm:$0xff] %v18634_v16  ;;  %v6967_v12 = vcombine.low %v18634_v16, %v18628_v57  ;;  %10307 = vrot.lane.b32.xlu0 %v6189_v47, %s12825_s3  ;;  %v7463_v47 = vcombine.low %v18273_v31, %v18643_v22  ;;  %v25513_v57 = vld [vmem:[#allocation249_spill] sm:$0xff] }
 0x4f4   :  { %25362 = vst [vmem:[#allocation228_spill] sm:$0xff] %v18631_v38  ;;  %25373 = vst [vmem:[#allocation467_spill] sm:$0xff] %v18666_v18  ;;  %v18687_v7 = vrot.slane %v7447_v50, %v12858_v10 }
 0x4f5   :  { %v18660_v15 = vrot.slane %v6967_v12, %v25261_v19  ;;  %v6224_v12 = vcombine.high %v18004_v60, %v18295_v21  ;;  %v18679_v22 = vrot.slane %v7463_v47, %v12858_v10  ;;  %v25382_v47 = vcombine.high %v17393_v53, %v17458_v52 }
 0x4f6   :  { %25379 = vst [vmem:[#allocation468_spill] sm:$0xff] %v18687_v7 }
 0x4f7   :  { %10289 = vrot.lane.b32.xlu1 %v25366_v63, %s12823_s30  ;;  %v18650_v4 = vpop.trf.xlu1  ;;  %v25370_v63 = vcombine.low %v17393_v53, %v17458_v52  ;;  %10315 = vrot.lane.b32.xlu0 %v6190_v35, %s23804_s4  ;;  %25371 = vst [vmem:[#allocation466_spill] sm:$0xff] %v18660_v15  ;;  %v25375_v35 = vld [vmem:[#allocation230_spill] sm:$0xff]  ;;  %v6238_v50 = vrot.slane %v6224_v12, %v12858_v10 }
 0x4f8   :  { %25369 = vst [vmem:[#allocation229_spill] sm:$0xff] %v18650_v4  ;;  %v25374_v4 = vld [vmem:[#allocation68_spill] sm:$0xff]  ;;  %v8007_v52 = vcombine.low %v18223_v2, %v18427_v20  ;;  %v25389_v12 = vcombine.low %v17937_v33, %v17982_v34 }
 0x4f9   :  { %v6263_v38 = vrot.slane %v25370_v63, %v25261_v19  ;;  %v25376_v31 = vcombine.low %v25374_v4, %v25375_v35  ;;  %25377 = vst [vmem:[#allocation68_spill] sm:$0xff] %v18679_v22  ;;  %v25381_v60 = vcombine.high %v25374_v4, %v25375_v35  ;;  %v25383_v4 = vld [vmem:[#allocation179_spill] sm:$0xff] }
 0x4fa   :  { %v25384_v35 = vld [vmem:[#allocation143_spill] sm:$0xff] }
 0x4fb   :  { %10297 = vrot.lane.b32.xlu1 %v25368_v42, %s23807_s2  ;;  %v6288_v42 = vcombine.high %v6231_v58, %v6247_v51  ;;  %v6319_v63 = vcombine.low %v6263_v38, %v6295_v28  ;;  %v18684_v45 = vpop.trf.xlu1  ;;  %v6254_v51 = vrot.slane %v6240_v54, %v12858_v10  ;;  %v6320_v58 = vcombine.high %v6263_v38, %v6295_v28 }
 0x4fc   :  { %25378 = vst [vmem:[#allocation230_spill] sm:$0xff] %v18684_v45  ;;  %v7511_v54 = vcombine.low %v18687_v7, %v18679_v22  ;;  %v25486_v7 = vld [vmem:[#allocation391_spill] sm:$0xff] }
 0x4fd   :  { %10323 = vrot.lane.b32.xlu0 %v6319_v63, %s12827_s5  ;;  %v6302_v21 = vrot.slane %v6288_v42, %v25261_v19  ;;  %v6270_v63 = vrot.slane %v25382_v47, %v25261_v19  ;;  %v6303_v38 = vcombine.low %v6238_v50, %v6254_v51 }
 0x4fe   :  { %v18715_v53 = vrot.slane %v7511_v54, %v25261_v19  ;;  %v7991_v54 = vcombine.low %v17882_v49, %v18289_v56  ;;  %v25397_v49 = vld [vmem:[#allocation146_spill] sm:$0xff] }
 0x4ff   :  { %10305 = vrot.lane.b32.xlu1 %v25376_v31, %s12825_s3  ;;  %v18690_v31 = vpop.trf.xlu0  ;;  %v6321_v28 = vcombine.low %v6270_v63, %v6302_v21  ;;  %v18709_v42 = vpop.trf.xlu1  ;;  %v6322_v47 = vcombine.high %v6270_v63, %v6302_v21  ;;  %v18740_v63 = vrot.slane %v8007_v52, %v12858_v10 }
 0x500   :  { %25380 = vst [vmem:[#allocation469_spill] sm:$0xff] %v18690_v31  ;;  %25386 = vst [vmem:[#allocation179_spill] sm:$0xff] %v18709_v42  ;;  %v25392_v42 = vcombine.low %v17396_v6, %v17461_v8  ;;  %v25446_v31 = vld [vmem:[#allocation436_spill] sm:$0xff] }
 0x501   :  { %10331 = vrot.lane.b32.xlu0 %v6320_v58, %s23796_s6  ;;  %25388 = vst [vmem:[#allocation470_spill] sm:$0xff] %v18715_v53  ;;  %v18723_v58 = vrot.slane %v25389_v12, %v25261_v19  ;;  %25393 = vst [vmem:[#allocation472_spill] sm:$0xff] %v18740_v63  ;;  %v9639_v34 = vcombine.low %v25446_v31, %v18684_v45  ;;  %v25452_v31 = vld [vmem:[#allocation366_spill] sm:$0xff] }
 0x502   :  { %v6279_v2 = vrot.slane %v25392_v42, %v25261_v19  ;;  %v18751_v42 = vrot.slane %v7991_v54, %v12858_v10  ;;  %v25402_v54 = vcombine.high %v17396_v6, %v17461_v8  ;;  %v25407_v6 = vld [vmem:[#allocation259_spill] sm:$0xff]  ;;  %v25408_v8 = vld [vmem:[#allocation260_spill] sm:$0xff] }
 0x503   :  { %10313 = vrot.lane.b32.xlu1 %v25381_v60, %s23804_s4  ;;  %v25385_v60 = vcombine.low %v25383_v4, %v25384_v35  ;;  %v18711_v3 = vpop.trf.xlu0  ;;  %25390 = vst [vmem:[#allocation471_spill] sm:$0xff] %v18723_v58 }
 0x504   :  { %25387 = vst [vmem:[#allocation143_spill] sm:$0xff] %v18711_v3  ;;  %v8055_v52 = vcombine.low %v18751_v42, %v18740_v63 }
 0x505   :  { %10339 = vrot.lane.b32.xlu0 %v6321_v28, %s12829_s7  ;;  %v6311_v28 = vrot.slane %v6303_v38, %v25261_v19  ;;  %v6304_v38 = vcombine.high %v6238_v50, %v6254_v51 }
 0x507   :  { %10321 = vrot.lane.b32.xlu1 %v25385_v60, %s12827_s5  ;;  %v25391_v60 = vcombine.high %v25383_v4, %v25384_v35  ;;  %v18742_v4 = vpop.trf.xlu1  ;;  %v18744_v35 = vpop.trf.xlu0  ;;  %v6323_v12 = vcombine.low %v6279_v2, %v6311_v28  ;;  %v6324_v51 = vcombine.high %v6279_v2, %v6311_v28  ;;  %v6318_v21 = vrot.slane %v6304_v38, %v25261_v19  ;;  %v25404_v28 = vld [vmem:[#allocation181_spill] sm:$0xff]  ;;  %v25405_v38 = vld [vmem:[#allocation235_spill] sm:$0xff] }
 0x508   :  { %25394 = vst [vmem:[#allocation473_spill] sm:$0xff] %v18742_v4  ;;  %25395 = vst [vmem:[#allocation474_spill] sm:$0xff] %v18744_v35  ;;  %v18771_v4 = vrot.slane %v8055_v52, %v25261_v19  ;;  %v8551_v2 = vcombine.low %v18239_v23, %v18494_v46  ;;  %v8535_v52 = vcombine.low %v18044_v59, %v18323_v39 }
 0x509   :  { %10347 = vrot.lane.b32.xlu0 %v6322_v47, %s12830_s8  ;;  %v6376_v46 = vcombine.high %v18241_v55, %v18471_v40  ;;  %v25412_v59 = vcombine.high %v25404_v28, %v25405_v38 }
 0x50a   :  { %25403 = vst [vmem:[#allocation475_spill] sm:$0xff] %v18771_v4  ;;  %v18810_v23 = vrot.slane %v8535_v52, %v12858_v10 }
 0x50b   :  { %10329 = vrot.lane.b32.xlu1 %v25391_v60, %s23796_s6  ;;  %v25396_v60 = vld [vmem:[#allocation180_spill] sm:$0xff]  ;;  %v18756_v47 = vpop.permute.xlu0 %10137  ;;  %v6390_v40 = vrot.slane %v6376_v46, %v12858_v10  ;;  %v25421_v46 = vcombine.high %v17425_v30, %v17515_v36 }
 0x50c   :  { %v25398_v56 = vcombine.low %v25396_v60, %v25397_v49  ;;  %25399 = vst [vmem:[#allocation180_spill] sm:$0xff] %v18751_v42  ;;  %v25400_v50 = vcombine.high %v25396_v60, %v25397_v49  ;;  %v25406_v60 = vcombine.low %v25404_v28, %v25405_v38  ;;  %25413 = vst [vmem:[#allocation476_spill] sm:$0xff] %v18810_v23  ;;  %v25418_v38 = vld [vmem:[#allocation142_spill] sm:$0xff] }
 0x50d   :  { %10355 = vrot.lane.b32.xlu0 %v6323_v12, %s23723_s11  ;;  %v6286_v12 = vrot.slane %v25402_v54, %v25261_v19  ;;  %v25409_v54 = vcombine.low %v25407_v6, %v25408_v8 }
 0x50f   :  { %10337 = vrot.lane.b32.xlu1 %v25398_v56, %s12829_s7  ;;  %v18763_v56 = vpop.trf.xlu1  ;;  %v6325_v49 = vcombine.low %v6286_v12, %v6318_v21  ;;  %v6326_v8 = vcombine.high %v6286_v12, %v6318_v21 }
 0x510   :  { %25401 = vst [vmem:[#allocation146_spill] sm:$0xff] %v18763_v56  ;;  %v18785_v56 = vrot.slane %v25409_v54, %v25261_v19  ;;  %v6424_v54 = vcombine.high %v18570_v43, %v18564_v27  ;;  %v25414_v27 = vld [vmem:[#allocation182_spill] sm:$0xff]  ;;  %v25415_v43 = vld [vmem:[#allocation236_spill] sm:$0xff] }
 0x511   :  { %10363 = vrot.lane.b32.xlu0 %v6324_v51, %s12832_s12  ;;  %v25416_v21 = vcombine.low %v25414_v27, %v25415_v43 }
 0x512   :  { %25410 = vst [vmem:[#allocation181_spill] sm:$0xff] %v18785_v56  ;;  %v6438_v12 = vrot.slane %v6424_v54, %v25261_v19  ;;  %v25422_v54 = vld [vmem:[#allocation74_spill] sm:$0xff] }
 0x513   :  { %10345 = vrot.lane.b32.xlu1 %v25400_v50, %s12830_s8 }
 0x515   :  { %10371 = vrot.lane.b32.xlu0 %v6325_v49, %s12833_s9 }
 0x517   :  { %10353 = vrot.lane.b32.xlu1 %v25406_v60, %s23723_s11  ;;  %v18795_v60 = vrot.slane %v8551_v2, %v12858_v10  ;;  %v6360_v2 = vcombine.high %v18046_v0, %v18297_v61  ;;  %s12834_s11 = smov 124   ;;  %v25417_v0 = vld [vmem:[#allocation52_spill] sm:$0xff] }
 0x519   :  { %v18779_v50 = vpop.permute.xlu0 %10155  ;;  %v18787_v51 = vpop.permute.xlu1 %10139  ;;  %25411 = vst [vmem:[#allocation235_spill] sm:$0xff] %v18795_v60  ;;  %10379 = vrot.lane.b32.xlu0 %v6326_v8, %s12834_s11  ;;  %v8599_v55 = vcombine.low %v18810_v23, %v18795_v60  ;;  %v25419_v8 = vcombine.low %v25417_v0, %v25418_v38  ;;  %v6406_v23 = vrot.slane %v25421_v46, %v25261_v19 }
 0x51a   :  { %v6374_v60 = vrot.slane %v6360_v2, %v12858_v10  ;;  %v25426_v0 = vcombine.high %v25414_v27, %v25415_v43  ;;  %v25428_v2 = vld [vmem:[#allocation342_spill] sm:$0xff] }
 0x51b   :  { %10361 = vrot.lane.b32.xlu1 %v25412_v59, %s12832_s12  ;;  %v6456_v59 = vcombine.high %v18608_v29, %v18597_v32  ;;  %v18833_v52 = vrot.slane %v25419_v8, %v25261_v19  ;;  %v6457_v42 = vcombine.low %v6406_v23, %v6438_v12  ;;  %v18854_v30 = vrot.slane %v8599_v55, %v25261_v19  ;;  %v25431_v8 = vld [vmem:[#allocation428_spill] sm:$0xff]  ;;  %v25432_v43 = vld [vmem:[#allocation458_spill] sm:$0xff] }
 0x51c   :  { %v6439_v4 = vcombine.low %v6374_v60, %v6390_v40  ;;  %v9095_v46 = vcombine.low %v25431_v8, %v18572_v9  ;;  %v25435_v8 = vld [vmem:[#allocation161_spill] sm:$0xff] }
 0x51d   :  { %v18805_v39 = vpop.permute.xlu0 %10163  ;;  %v18807_v49 = vpop.permute.xlu1 %10145  ;;  %25420 = vst [vmem:[#allocation182_spill] sm:$0xff] %v18833_v52  ;;  %10387 = vrot.lane.b32.xlu0 %v6456_v59, %s12805_s0  ;;  %25427 = vst [vmem:[#allocation52_spill] sm:$0xff] %v18854_v30  ;;  %v25429_v59 = vcombine.low %v17419_v24, %v25428_v2 }
 0x51e   :  { %v18884_v20 = vrot.slane %v9095_v46, %v12858_v10  ;;  %v25444_v46 = vld [vmem:[#allocation101_spill] sm:$0xff] }
 0x51f   :  { %10369 = vrot.lane.b32.xlu1 %v25416_v21, %s12833_s9  ;;  %v25423_v21 = vld [vmem:[#allocation76_spill] sm:$0xff] }
 0x520   :  { %v25424_v6 = vcombine.low %v25422_v54, %v25423_v21  ;;  %v25433_v54 = vld [vmem:[#allocation401_spill] sm:$0xff]  ;;  %v6458_v21 = vcombine.high %v6406_v23, %v6438_v12  ;;  %25437 = vst [vmem:[#allocation74_spill] sm:$0xff] %v18884_v20  ;;  %v25439_v12 = vld [vmem:[#allocation423_spill] sm:$0xff] }
 0x521   :  { %v18825_v28 = vpop.permute.xlu0 %10171  ;;  %v18827_v61 = vpop.permute.xlu1 %10147  ;;  %10395 = vrot.lane.b32.xlu0 %v6457_v42, %s12808_s15  ;;  %v9079_v55 = vcombine.low %v25433_v54, %v25432_v43  ;;  %v25434_v42 = vld [vmem:[#allocation274_spill] sm:$0xff]  ;;  %v25440_v54 = vld [vmem:[#allocation184_spill] sm:$0xff] }
 0x522   :  { %v18845_v56 = vrot.slane %v25424_v6, %v25261_v19  ;;  %v18862_v6 = vrot.slane %v25429_v59, %v25261_v19  ;;  %v25436_v9 = vcombine.low %v25434_v42, %v25435_v8  ;;  %v25441_v43 = vld [vmem:[#allocation240_spill] sm:$0xff] }
 0x523   :  { %10377 = vrot.lane.b32.xlu1 %v25426_v0, %s12834_s11  ;;  %v6447_v0 = vrot.slane %v6439_v4, %v25261_v19  ;;  %v18888_v23 = vrot.slane %v9079_v55, %v12858_v10  ;;  %v6440_v4 = vcombine.high %v6374_v60, %v6390_v40  ;;  %v25445_v3 = vcombine.high %v25440_v54, %v25441_v43 }
 0x524   :  { %25425 = vst [vmem:[#allocation236_spill] sm:$0xff] %v18845_v56  ;;  %25430 = vst [vmem:[#allocation142_spill] sm:$0xff] %v18862_v6  ;;  %v2104_v27 = vcombine.high %v18845_v56, %v18833_v52  ;;  %v6415_v63 = vrot.slane %v25436_v9, %v25261_v19  ;;  %v25442_v6 = vcombine.low %v25440_v54, %v25441_v43  ;;  %v25443_v9 = vld [vmem:[#allocation447_spill] sm:$0xff]  ;;  %v25450_v43 = vld [vmem:[#allocation409_spill] sm:$0xff] }
 0x525   :  { %v18851_v38 = vpop.permute.xlu0 %10179  ;;  %v18856_v36 = vpop.permute.xlu1 %10153  ;;  %10403 = vrot.lane.b32.xlu0 %v6458_v21, %s12806_s13  ;;  %25438 = vst [vmem:[#allocation76_spill] sm:$0xff] %v18888_v23  ;;  %v6495_v35 = vcombine.low %v25444_v46, %v25443_v9  ;;  %v9143_v21 = vcombine.low %v18888_v23, %v18884_v20 }
 0x526   :  { %v6459_v59 = vcombine.low %v6415_v63, %v6447_v0  ;;  %v6460_v55 = vcombine.high %v6415_v63, %v6447_v0 }
 0x527   :  { %10385 = vrot.lane.b32.xlu1 %v2104_v27, %s12805_s0  ;;  %v6511_v27 = vcombine.low %v25439_v12, %v18485_v17  ;;  %v18922_v63 = vrot.slane %v9143_v21, %v25261_v19  ;;  %v18939_v21 = vrot.slane %v9639_v34, %v12858_v10 }
 0x529   :  { %v18875_v2 = vpop.permute.xlu1 %10161  ;;  %v18877_v24 = vpop.permute.xlu0 %10187  ;;  %10411 = vrot.lane.b32.xlu0 %v6459_v59, %s12807_s14  ;;  %v6519_v40 = vrot.slane %v6511_v27, %v12858_v10  ;;  %v25447_v59 = vcombine.high %v25434_v42, %v25435_v8  ;;  %v6503_v27 = vrot.slane %v6495_v35, %v12858_v10  ;;  %25448 = vst [vmem:[#allocation274_spill] sm:$0xff] %v18922_v63  ;;  %v25455_v35 = vld [vmem:[#allocation75_spill] sm:$0xff]  ;;  %25458 = vst [vmem:[#allocation423_spill] sm:$0xff] %v18939_v21 }
 0x52b   :  { %10393 = vrot.lane.b32.xlu1 %v25442_v6, %s12808_s15  ;;  %v6454_v6 = vrot.slane %v6440_v4, %v25261_v19  ;;  %v6422_v23 = vrot.slane %v25447_v59, %v25261_v19  ;;  %v25451_v4 = vld [vmem:[#allocation361_spill] sm:$0xff]  ;;  %v6559_v8 = vcombine.low %v6503_v27, %v6519_v40  ;;  %v25456_v59 = vld [vmem:[#allocation147_spill] sm:$0xff] }
 0x52c   :  { %v25453_v45 = vcombine.low %v25451_v4, %v25452_v31 }
 0x52d   :  { %v18896_v30 = vpop.permute.xlu1 %10169  ;;  %v18903_v60 = vpop.permute.xlu0 %10195  ;;  %10419 = vrot.lane.b32.xlu0 %v6460_v55, %s12809_s16  ;;  %v6461_v42 = vcombine.low %v6422_v23, %v6454_v6  ;;  %v25457_v55 = vcombine.low %v25455_v35, %v25456_v59  ;;  %v6567_v34 = vrot.slane %v6559_v8, %v25261_v19  ;;  %v25464_v8 = vld [vmem:[#allocation77_spill] sm:$0xff] }
 0x52e   :  { %v18932_v20 = vrot.slane %v25453_v45, %v25261_v19 }
 0x52f   :  { %10401 = vrot.lane.b32.xlu1 %v25445_v3, %s12806_s13  ;;  %v25449_v3 = vld [vmem:[#allocation464_spill] sm:$0xff] }
 0x530   :  { %v9623_v54 = vcombine.low %v25450_v43, %v25449_v3  ;;  %25454 = vst [vmem:[#allocation161_spill] sm:$0xff] %v18932_v20  ;;  %v6462_v3 = vcombine.high %v6422_v23, %v6454_v6  ;;  %v25461_v43 = vld [vmem:[#allocation345_spill] sm:$0xff]  ;;  %v6512_v23 = vcombine.high %v25439_v12, %v18485_v17  ;;  %v6560_v6 = vcombine.high %v6503_v27, %v6519_v40  ;;  %v25468_v17 = vld [vmem:[#allocation311_spill] sm:$0xff] }
 0x531   :  { %v18913_v33 = vpop.permute.xlu1 %10177  ;;  %v18926_v0 = vpop.permute.xlu0 %10203  ;;  %10427 = vrot.lane.b32.xlu0 %v6461_v42, %s12810_s17  ;;  %v25462_v20 = vld [vmem:[#allocation285_spill] sm:$0xff] }
 0x532   :  { %v18947_v45 = vrot.slane %v9623_v54, %v12858_v10  ;;  %v25463_v54 = vcombine.low %v25461_v43, %v25462_v20  ;;  %v25469_v12 = vld [vmem:[#allocation313_spill] sm:$0xff] }
 0x533   :  { %10409 = vrot.lane.b32.xlu1 %v25457_v55, %s12807_s14  ;;  %v25460_v55 = vcombine.high %v25455_v35, %v25456_v59  ;;  %v25470_v40 = vcombine.low %v25468_v17, %v25469_v12 }
 0x534   :  { %25459 = vst [vmem:[#allocation184_spill] sm:$0xff] %v18947_v45  ;;  %v9687_v4 = vcombine.low %v18947_v45, %v18939_v21  ;;  %v6535_v63 = vrot.slane %v25463_v54, %v25261_v19  ;;  %v6526_v54 = vrot.slane %v6512_v23, %v12858_v10 }
 0x535   :  { %v18941_v58 = vpop.permute.xlu1 %10185  ;;  %v18949_v31 = vpop.permute.xlu0 %10211  ;;  %10435 = vrot.lane.b32.xlu0 %v6462_v3, %s12811_s18  ;;  %v6496_v3 = vcombine.high %v25444_v46, %v25443_v9  ;;  %v18985_v27 = vrot.slane %v25470_v40, %v25261_v19 }
 0x536   :  { %v6591_v35 = vcombine.low %v6535_v63, %v6567_v34  ;;  %v18976_v53 = vrot.slane %v9687_v4, %v25261_v19  ;;  %v6592_v11 = vcombine.high %v6535_v63, %v6567_v34  ;;  %v6574_v4 = vrot.slane %v6560_v6, %v25261_v19  ;;  %v25474_v6 = vld [vmem:[#allocation82_spill] sm:$0xff] }
 0x537   :  { %10417 = vrot.lane.b32.xlu1 %v25460_v55, %s12809_s16  ;;  %v25465_v55 = vld [vmem:[#allocation148_spill] sm:$0xff]  ;;  %25471 = vst [vmem:[#allocation447_spill] sm:$0xff] %v18985_v27  ;;  %v6510_v63 = vrot.slane %v6496_v3, %v12858_v10  ;;  %v25478_v3 = vld [vmem:[#allocation346_spill] sm:$0xff] }
 0x538   :  { %v25466_v45 = vcombine.low %v25464_v8, %v25465_v55  ;;  %25467 = vst [vmem:[#allocation240_spill] sm:$0xff] %v18976_v53 }
 0x539   :  { %v18958_v42 = vpop.permute.xlu1 %10193  ;;  %v18967_v59 = vpop.permute.xlu0 %10219  ;;  %10443 = vrot.lane.b32.xlu0 %v6591_v35, %s12812_s19  ;;  %v25473_v35 = vcombine.high %v25461_v43, %v25462_v20  ;;  %v6575_v34 = vcombine.low %v6510_v63, %v6526_v54  ;;  %v6576_v27 = vcombine.high %v6510_v63, %v6526_v54 }
 0x53b   :  { %10425 = vrot.lane.b32.xlu1 %v25466_v45, %s12810_s17  ;;  %v25472_v45 = vcombine.high %v25464_v8, %v25465_v55  ;;  %v6542_v23 = vrot.slane %v25473_v35, %v25261_v19  ;;  %v25475_v55 = vld [vmem:[#allocation245_spill] sm:$0xff]  ;;  %v25479_v35 = vld [vmem:[#allocation350_spill] sm:$0xff]  ;;  %v6590_v52 = vrot.slane %v6576_v27, %v25261_v19 }
 0x53c   :  { %v25476_v40 = vcombine.low %v25474_v6, %v25475_v55  ;;  %v25477_v20 = vcombine.high %v25474_v6, %v25475_v55  ;;  %v25482_v6 = vld [vmem:[#allocation84_spill] sm:$0xff]  ;;  %v25483_v55 = vld [vmem:[#allocation107_spill] sm:$0xff] }
 0x53d   :  { %v18973_v21 = vpop.permute.xlu1 %10201  ;;  %v18993_v14 = vpop.permute.xlu0 %10227  ;;  %10451 = vrot.lane.b32.xlu0 %v6592_v11, %s12813_s20  ;;  %v6593_v8 = vcombine.low %v6542_v23, %v6574_v4  ;;  %v6594_v12 = vcombine.high %v6542_v23, %v6574_v4  ;;  %v6583_v11 = vrot.slane %v6575_v34, %v25261_v19  ;;  %v25481_v4 = vld [vmem:[#allocation425_spill] sm:$0xff]  ;;  %v25484_v34 = vcombine.low %v25482_v6, %v25483_v55 }
 0x53e   :  { %v6647_v23 = vcombine.low %v25481_v4, %v18504_v1  ;;  %v25487_v56 = vcombine.high %v25482_v6, %v25483_v55  ;;  %v25489_v6 = vld [vmem:[#allocation83_spill] sm:$0xff]  ;;  %v6648_v48 = vcombine.high %v25481_v4, %v18504_v1 }
 0x53f   :  { %10433 = vrot.lane.b32.xlu1 %v25472_v45, %s12811_s18 }
 0x540   :  { %v6655_v54 = vrot.slane %v6647_v23, %v12858_v10 }
 0x541   :  { %v18995_v9 = vpop.permute.xlu1 %10209  ;;  %v19009_v45 = vpop.permute.xlu0 %10235  ;;  %10459 = vrot.lane.b32.xlu0 %v6593_v8, %s12814_s21 }
 0x543   :  { %10441 = vrot.lane.b32.xlu1 %v25476_v40, %s12812_s19  ;;  %v25480_v40 = vcombine.low %v25478_v3, %v25479_v35 }
 0x545   :  { %v19012_v46 = vpop.permute.xlu1 %10217  ;;  %v19019_v43 = vpop.permute.xlu0 %10243  ;;  %v6551_v17 = vrot.slane %v25480_v40, %v25261_v19  ;;  %10467 = vrot.lane.b32.xlu0 %v6594_v12, %s23817_s22 }
 0x547   :  { %10449 = vrot.lane.b32.xlu1 %v25477_v20, %s12813_s20  ;;  %v6595_v53 = vcombine.low %v6551_v17, %v6583_v11  ;;  %v25485_v20 = vld [vmem:[#allocation131_spill] sm:$0xff]  ;;  %v6596_v63 = vcombine.high %v6551_v17, %v6583_v11 }
 0x548   :  { %v6631_v22 = vcombine.low %v25486_v7, %v25485_v20 }
 0x549   :  { %v19026_v8 = vpop.permute.xlu1 %10225  ;;  %10475 = vrot.lane.b32.xlu0 %v6595_v53, %s12816_s23  ;;  %v19037_v40 = vpop.permute.xlu0 %10251 }
 0x54a   :  { %v6639_v53 = vrot.slane %v6631_v22, %v12858_v10 }
 0x54b   :  { %10457 = vrot.lane.b32.xlu1 %v25484_v34, %s12814_s21  ;;  %v25488_v34 = vcombine.high %v25478_v3, %v25479_v35 }
 0x54c   :  { %v6695_v23 = vcombine.low %v6639_v53, %v6655_v54 }
 0x54d   :  { %v19039_v12 = vpop.permute.xlu1 %10233  ;;  %v6558_v32 = vrot.slane %v25488_v34, %v25261_v19  ;;  %10483 = vrot.lane.b32.xlu0 %v6596_v63, %s12817_s24  ;;  %v19055_v17 = vpop.permute.xlu0 %10259  ;;  %v25493_v34 = vld [vmem:[#allocation349_spill] sm:$0xff] }
 0x54e   :  { %v6703_v63 = vrot.slane %v6695_v23, %v25261_v19 }
 0x54f   :  { %10465 = vrot.lane.b32.xlu1 %v25487_v56, %s23817_s22  ;;  %v6597_v11 = vcombine.low %v6558_v32, %v6590_v52  ;;  %v25490_v56 = vld [vmem:[#allocation43_spill] sm:$0xff]  ;;  %v6598_v22 = vcombine.high %v6558_v32, %v6590_v52  ;;  %v6696_v32 = vcombine.high %v6639_v53, %v6655_v54 }
 0x550   :  { %v25491_v55 = vcombine.low %v25489_v6, %v25490_v56  ;;  %v25492_v35 = vcombine.high %v25489_v6, %v25490_v56  ;;  %v25496_v6 = vld [vmem:[#allocation85_spill] sm:$0xff] }
 0x551   :  { %v19053_v29 = vpop.permute.xlu1 %10241  ;;  %10491 = vrot.lane.b32.xlu0 %v6597_v11, %s12818_s25  ;;  %v19064_v3 = vpop.permute.xlu0 %10267  ;;  %v25497_v56 = vld [vmem:[#allocation149_spill] sm:$0xff]  ;;  %v6710_v54 = vrot.slane %v6696_v32, %v25261_v19 }
 0x552   :  { %v25498_v23 = vcombine.low %v25496_v6, %v25497_v56  ;;  %v25499_v4 = vcombine.high %v25496_v6, %v25497_v56  ;;  %v25501_v6 = vld [vmem:[#allocation203_spill] sm:$0xff]  ;;  %v25502_v56 = vld [vmem:[#allocation22_spill] sm:$0xff] }
 0x553   :  { %10473 = vrot.lane.b32.xlu1 %v25491_v55, %s12816_s23  ;;  %v25495_v55 = vcombine.low %v25493_v34, %v25494_v62 }
 0x555   :  { %v19062_v27 = vpop.permute.xlu1 %10249  ;;  %10499 = vrot.lane.b32.xlu0 %v6598_v22, %s23813_s26  ;;  %v6671_v41 = vrot.slane %v25495_v55, %v25261_v19  ;;  %v19080_v52 = vpop.permute.xlu0 %10275  ;;  %v6632_v22 = vcombine.high %v25486_v7, %v25485_v20  ;;  %v6662_v55 = vrot.slane %v6648_v48, %v12858_v10  ;;  %v25500_v7 = vcombine.high %v25493_v34, %v25494_v62 }
 0x557   :  { %10481 = vrot.lane.b32.xlu1 %v25492_v35, %s12817_s24  ;;  %v6727_v18 = vcombine.low %v6671_v41, %v6703_v63  ;;  %v6728_v1 = vcombine.high %v6671_v41, %v6703_v63  ;;  %v6678_v20 = vrot.slane %v25500_v7, %v25261_v19  ;;  %v25507_v7 = vld [vmem:[#allocation288_spill] sm:$0xff] }
 0x559   :  { %v19076_v11 = vpop.permute.xlu1 %10257  ;;  %10507 = vrot.lane.b32.xlu0 %v6727_v18, %s12802_s10  ;;  %v19092_v15 = vpop.permute.xlu0 %10283  ;;  %v6646_v18 = vrot.slane %v6632_v22, %v12858_v10  ;;  %v6729_v63 = vcombine.low %v6678_v20, %v6710_v54  ;;  %v6730_v34 = vcombine.high %v6678_v20, %v6710_v54  ;;  %v25505_v22 = vcombine.high %v25501_v6, %v25502_v56 }
 0x55a   :  { %v25511_v20 = vcombine.low %v18372_v13, %v18366_v44 }
 0x55b   :  { %10489 = vrot.lane.b32.xlu1 %v25498_v23, %s12818_s25  ;;  %v6711_v53 = vcombine.low %v6646_v18, %v6662_v55  ;;  %v25503_v23 = vcombine.low %v25501_v6, %v25502_v56 }
 0x55c   :  { %v12121_v6 = vsel %vm12119_vm0, %v25511_v20, %v18787_v51 }
 0x55d   :  { %v19089_v35 = vpop.permute.xlu1 %10265  ;;  %10515 = vrot.lane.b32.xlu0 %v6728_v1, %s12820_s27  ;;  %v19107_v41 = vpop.permute.xlu0 %10291  ;;  %v6719_v1 = vrot.slane %v6711_v53, %v25261_v19  ;;  %v6712_v53 = vcombine.high %v6646_v18, %v6662_v55 }
 0x55f   :  { %10497 = vrot.lane.b32.xlu1 %v25499_v4, %s23813_s26  ;;  %v25506_v4 = vld [vmem:[#allocation351_spill] sm:$0xff]  ;;  %v6726_v18 = vrot.slane %v6712_v53, %v25261_v19 }
 0x560   :  { %v25508_v5 = vcombine.low %v25506_v4, %v25507_v7  ;;  %v25518_v20 = vcombine.high %v25506_v4, %v25507_v7  ;;  %v25523_v7 = vld [vmem:[#allocation8_spill] sm:$0xff] }
 0x561   :  { %v19105_v48 = vpop.permute.xlu1 %10273  ;;  %10523 = vrot.lane.b32.xlu0 %v6729_v63, %s23811_s28  ;;  %v19116_v62 = vpop.permute.xlu0 %10299 }
 0x562   :  { %v6687_v16 = vrot.slane %v25508_v5, %v25261_v19  ;;  %v12124_v5 = vsel %vm23801_vm1, %v12121_v6, %v18827_v61  ;;  %v6694_v6 = vrot.slane %v25518_v20, %v25261_v19 }
 0x563   :  { %10505 = vrot.lane.b32.xlu1 %v25503_v23, %s12802_s10  ;;  %v25510_v23 = vld [vmem:[#allocation427_spill] sm:$0xff]  ;;  %v12127_v13 = vsel %vm23802_vm2, %v12124_v5, %v18779_v50  ;;  %v25519_v5 = vld [vmem:[#allocation9_spill] sm:$0xff] }
 0x564   :  { %v6783_v54 = vcombine.low %v25510_v23, %v18519_v26  ;;  %v6732_v55 = vcombine.high %v6687_v16, %v6719_v1  ;;  %v6733_v53 = vcombine.low %v6694_v6, %v6726_v18  ;;  %v6734_v20 = vcombine.high %v6694_v6, %v6726_v18 }
 0x565   :  { %v19114_v32 = vpop.permute.xlu1 %10281  ;;  %10531 = vrot.lane.b32.xlu0 %v6730_v34, %s12822_s29  ;;  %v19139_v56 = vpop.permute.xlu0 %10307  ;;  %v6731_v34 = vcombine.low %v6687_v16, %v6719_v1  ;;  %v6784_v18 = vcombine.high %v25510_v23, %v18519_v26 }
 0x566   :  { %25504 = vst [vmem:[#allocation101_spill] sm:$0xff] %v19114_v32  ;;  %v19153_v51 = vrot.slane %v6783_v54, %v12858_v10  ;;  %v12130_v54 = vsel %vm23806_vm3, %v12127_v13, %v18805_v39 }
 0x567   :  { %10513 = vrot.lane.b32.xlu1 %v25505_v22, %s12820_s27  ;;  %v25512_v22 = vld [vmem:[#allocation11_spill] sm:$0xff] }
 0x568   :  { %v25514_v37 = vcombine.low %v25512_v22, %v25513_v57 }
 0x569   :  { %v19128_v63 = vpop.permute.xlu1 %10289  ;;  %10539 = vrot.lane.b32.xlu0 %v6731_v34, %s12823_s30  ;;  %v19155_v61 = vpop.permute.xlu0 %10315  ;;  %v25520_v34 = vld [vmem:[#allocation150_spill] sm:$0xff] }
 0x56a   :  { %25509 = vst [vmem:[#allocation75_spill] sm:$0xff] %v19128_v63  ;;  %v25516_v63 = vld [vmem:[#allocation400_spill] sm:$0xff]  ;;  %v25521_v4 = vcombine.low %v25519_v5, %v25520_v34 }
 0x56b   :  { %10521 = vrot.lane.b32.xlu1 %v25514_v37, %s23811_s28  ;;  %v6767_v32 = vcombine.low %v25516_v63, %v25515_v25  ;;  %v25517_v37 = vcombine.high %v25512_v22, %v25513_v57  ;;  %v25524_v22 = vld [vmem:[#allocation58_spill] sm:$0xff] }
 0x56c   :  { %v1559_v13 = vcombine.low %v25524_v22, %v25523_v7 }
 0x56d   :  { %v19148_v44 = vpop.permute.xlu1 %10297  ;;  %v6775_v50 = vrot.slane %v6767_v32, %v12858_v10  ;;  %10547 = vrot.lane.b32.xlu0 %v6732_v55, %s23807_s2  ;;  %v12133_v32 = vsel %vm23782_vm4, %v12130_v54, %v18825_v28  ;;  %v25525_v28 = vcombine.high %v25519_v5, %v25520_v34 }
 0x56e   :  { %v12136_v55 = vsel %vm23803_vm5, %v12133_v32, %v18851_v38  ;;  %v12120_v22 = vsel %vm12119_vm0, %v1559_v13, %v18756_v47  ;;  %v25529_v32 = vld [vmem:[#allocation87_spill] sm:$0xff] }
 0x56f   :  { %10529 = vrot.lane.b32.xlu1 %v25517_v37, %s12822_s29  ;;  %v6831_v57 = vcombine.low %v6775_v50, %v19153_v51  ;;  %v19173_v1 = vpop.permute.xlu0 %10323  ;;  %v12139_v38 = vsel %vm23784_vm6, %v12136_v55, %v18877_v24  ;;  %v12123_v6 = vsel %vm23801_vm1, %v12120_v22, %v18807_v49  ;;  %v6832_v47 = vcombine.high %v6775_v50, %v19153_v51  ;;  %v25530_v51 = vld [vmem:[#allocation250_spill] sm:$0xff] }
 0x570   :  { %v12126_v24 = vsel %vm23802_vm2, %v12123_v6, %v18856_v36  ;;  %v25531_v50 = vcombine.low %v25529_v32, %v25530_v51  ;;  %v6768_v36 = vcombine.high %v25516_v63, %v25515_v25  ;;  %v25534_v6 = vld [vmem:[#allocation31_spill] sm:$0xff] }
 0x571   :  { %v19170_v16 = vpop.permute.xlu1 %10305  ;;  %10555 = vrot.lane.b32.xlu0 %v6733_v53, %s12825_s3  ;;  %v6839_v54 = vrot.slane %v6831_v57, %v25261_v19  ;;  %v25526_v53 = vld [vmem:[#allocation356_spill] sm:$0xff]  ;;  %v12142_v57 = vsel %vm23783_vm7, %v12139_v38, %v18903_v60  ;;  %v12129_v26 = vsel %vm23806_vm3, %v12126_v24, %v18875_v2 }
 0x572   :  { %v12145_v34 = vsel %vm23785_vm8, %v12142_v57, %v18926_v0  ;;  %v12132_v0 = vsel %vm23782_vm4, %v12129_v26, %v18896_v30  ;;  %vm23793_vm4 = vcmask 556032   ;;  %v25535_v57 = vld [vmem:[#allocation252_spill] sm:$0xff] }
 0x573   :  { %10537 = vrot.lane.b32.xlu1 %v25521_v4, %s12823_s30  ;;  %v19188_v37 = vpop.permute.xlu0 %10331  ;;  %v25527_v4 = vld [vmem:[#allocation360_spill] sm:$0xff]  ;;  %v12148_v49 = vsel %vm23786_vm9, %v12145_v34, %v18949_v31  ;;  %v19234_v31 = vrot.slane %v6784_v18, %v12858_v10 }
 0x574   :  { %v12151_v2 = vsel %vm23787_vm10, %v12148_v49, %v18967_v59 }
 0x575   :  { %v19182_v39 = vpop.permute.xlu1 %10313  ;;  %10563 = vrot.lane.b32.xlu0 %v6734_v20, %s23804_s4  ;;  %v12154_v13 = vsel %vm23788_vm11, %v12151_v2, %v18993_v14  ;;  %v25532_v20 = vcombine.high %v25529_v32, %v25530_v51  ;;  %v25539_v32 = vld [vmem:[#allocation364_spill] sm:$0xff] }
 0x576   :  { %25522 = vst [vmem:[#allocation147_spill] sm:$0xff] %v19182_v39  ;;  %v25528_v39 = vcombine.low %v25526_v53, %v25527_v4  ;;  %v12157_v59 = vsel %vm23789_vm12, %v12154_v13, %v19009_v45  ;;  %v19259_v45 = vrot.slane %v6768_v36, %v12858_v10  ;;  %v25542_v13 = vld [vmem:[#allocation75_spill] sm:$0xff] }
 0x577   :  { %10545 = vrot.lane.b32.xlu1 %v25525_v28, %s23807_s2  ;;  %v19221_v60 = vpop.permute.xlu0 %10339 }
 0x578   :  { %v6807_v7 = vrot.slane %v25528_v39, %v25261_v19  ;;  %v12135_v39 = vsel %vm23803_vm5, %v12132_v0, %v18913_v33  ;;  %v12160_v33 = vsel %vm23790_vm13, %v12157_v59, %v19019_v43  ;;  %v25533_v43 = vcombine.high %v25526_v53, %v25527_v4 }
 0x579   :  { %v19210_v5 = vpop.permute.xlu1 %10321  ;;  %v12138_v30 = vsel %vm23784_vm6, %v12135_v39, %v18941_v58  ;;  %v6846_v58 = vrot.slane %v6832_v47, %v25261_v19  ;;  %vm23795_vm6 = vcmask 621568   ;;  %v25536_v47 = vcombine.low %v25534_v6, %v25535_v57 }
 0x57a   :  { %v6863_v23 = vcombine.low %v6807_v7, %v6839_v54  ;;  %v12141_v63 = vsel %vm23783_vm7, %v12138_v30, %v18958_v42  ;;  %v6864_v55 = vcombine.high %v6807_v7, %v6839_v54  ;;  %v12163_v42 = vsel %vm23791_vm14, %v12160_v33, %v19037_v40  ;;  %v25544_v33 = vld [vmem:[#allocation253_spill] sm:$0xff] }
 0x57b   :  { %10553 = vrot.lane.b32.xlu1 %v25531_v50, %s12825_s3  ;;  %v19251_v14 = vpop.permute.xlu0 %10347  ;;  %v12144_v28 = vsel %vm23785_vm8, %v12141_v63, %v18973_v21  ;;  %vm23794_vm7 = vcmask 588800   ;;  %v6814_v54 = vrot.slane %v25533_v43, %v25261_v19  ;;  %v12166_v22 = vsel %vm23792_vm15, %v12163_v42, %v19055_v17  ;;  %v25543_v63 = vld [vmem:[#allocation89_spill] sm:$0xff] }
 0x57c   :  { %10571 = vrot.lane.b32.xlu0 %v6863_v23, %s12827_s5  ;;  %v12147_v7 = vsel %vm23786_vm9, %v12144_v28, %v18995_v9  ;;  %v6847_v21 = vcombine.low %v19259_v45, %v19234_v31  ;;  %v12169_v53 = vsel %vm23793_vm4, %v12166_v22, %v19064_v3  ;;  %vm23798_vm8 = vcmask 654336  }
 0x57d   :  { %v19241_v25 = vpop.permute.xlu1 %10329  ;;  %v12150_v40 = vsel %vm23787_vm10, %v12147_v7, %v19012_v46  ;;  %v12172_v17 = vsel %vm23794_vm7, %v12169_v53, %v19080_v52  ;;  %vm12179_vm9 = vcmask 687104   ;;  %v6865_v18 = vcombine.low %v6814_v54, %v6846_v58 }
 0x57e   :  { %v12153_v9 = vsel %vm23788_vm11, %v12150_v40, %v19026_v8  ;;  %v12175_v3 = vsel %vm23795_vm6, %v12172_v17, %v19092_v15  ;;  %vm12182_vm10 = vcmask 719872   ;;  %vm12185_vm11 = vcmask 752640  }
 0x57f   :  { %10561 = vrot.lane.b32.xlu1 %v25532_v20, %s23804_s4  ;;  %v10356_v4 = vpop.permute.xlu0 %10355  ;;  %v12156_v46 = vsel %vm23789_vm12, %v12153_v9, %v19039_v12  ;;  %v12178_v52 = vsel %vm23798_vm8, %v12175_v3, %v19107_v41  ;;  %vm12188_vm12 = vcmask 785408   ;;  %v6855_v15 = vrot.slane %v6847_v21, %v25261_v19 }
 0x580   :  { %10579 = vrot.lane.b32.xlu0 %v6864_v55, %s23796_s6  ;;  %v12159_v8 = vsel %vm23790_vm13, %v12156_v46, %v19053_v29  ;;  %v12181_v12 = vsel %vm12179_vm9, %v12178_v52, %v19116_v62  ;;  %vm12191_vm13 = vcmask 818176   ;;  %v6866_v49 = vcombine.high %v6814_v54, %v6846_v58  ;;  %v25553_v52 = vld [vmem:[#allocation173_spill] sm:$0xff] }
 0x581   :  { %v19274_v38 = vpop.permute.xlu1 %10337  ;;  %v12162_v34 = vsel %vm23791_vm14, %v12159_v8, %v19062_v27  ;;  %v12184_v29 = vsel %vm12182_vm10, %v12181_v12, %v19139_v56  ;;  %v25537_v23 = vcombine.high %v25534_v6, %v25535_v57  ;;  %vm12194_vm14 = vcmask 850944   ;;  %v25550_v6 = vld [vmem:[#allocation46_spill] sm:$0xff]  ;;  %v25555_v12 = vld [vmem:[#allocation67_spill] sm:$0xff] }
 0x582   :  { %v12165_v26 = vsel %vm23792_vm15, %v12162_v34, %v19076_v11  ;;  %v12187_v62 = vsel %vm12185_vm11, %v12184_v29, %v19155_v61  ;;  %v25538_v11 = vld [vmem:[#allocation357_spill] sm:$0xff]  ;;  %vm23825_vm15 = vcmask 883712   ;;  %v25551_v57 = vld [vmem:[#allocation254_spill] sm:$0xff] }
 0x583   :  { %10569 = vrot.lane.b32.xlu1 %v25536_v47, %s12827_s5  ;;  %v10364_v41 = vpop.permute.xlu0 %10363  ;;  %v12168_v27 = vsel %vm23793_vm4, %v12165_v26, %v19089_v35  ;;  %v25540_v51 = vcombine.low %v25538_v11, %v25539_v32  ;;  %v12190_v36 = vsel %vm12188_vm12, %v12187_v62, %v19173_v1  ;;  %v6848_v35 = vcombine.high %v19259_v45, %v19234_v31  ;;  %v25541_v61 = vld [vmem:[#allocation101_spill] sm:$0xff]  ;;  %v25547_v45 = vld [vmem:[#allocation147_spill] sm:$0xff] }
 0x584   :  { %10587 = vrot.lane.b32.xlu0 %v6865_v18, %s12829_s7  ;;  %v12171_v50 = vsel %vm23794_vm7, %v12168_v27, %v19105_v48  ;;  %v12193_v39 = vsel %vm12191_vm13, %v12190_v36, %v19188_v37  ;;  %vm23824_vm4 = vcmask 916480   ;;  %vm23823_vm7 = vcmask 949248   ;;  %v25559_v27 = vld [vmem:[#allocation402_spill] sm:$0xff] }
 0x585   :  { %v10346_v24 = vpop.permute.xlu1 %10345  ;;  %v6823_v56 = vrot.slane %v25540_v51, %v25261_v19  ;;  %v12174_v2 = vsel %vm23795_vm6, %v12171_v50, %v25541_v61  ;;  %v12196_v1 = vsel %vm12194_vm14, %v12193_v39, %v19221_v60  ;;  %v25545_v31 = vcombine.low %v25543_v63, %v25544_v33  ;;  %v25561_v50 = vld [vmem:[#allocation467_spill] sm:$0xff] }
 0x586   :  { %v12177_v48 = vsel %vm23798_vm8, %v12174_v2, %v25542_v13  ;;  %v12199_v37 = vsel %vm23825_vm15, %v12196_v1, %v19251_v14  ;;  %vm23800_vm6 = vcmask 982016   ;;  %vm23799_vm8 = vcmask 1014784   ;;  %v25565_v39 = vld [vmem:[#allocation363_spill] sm:$0xff]  ;;  %v25566_v13 = vld [vmem:[#allocation320_spill] sm:$0xff] }
 0x587   :  { %10577 = vrot.lane.b32.xlu1 %v25537_v23, %s23796_s6  ;;  %v10372_v30 = vpop.permute.xlu0 %10371  ;;  %v6867_v59 = vcombine.low %v6823_v56, %v6855_v15  ;;  %v12180_v55 = vsel %vm12179_vm9, %v12177_v48, %v19148_v44  ;;  %v12202_v60 = vsel %vm23824_vm4, %v12199_v37, %v10356_v4  ;;  %s25546_s6 = smov 112   ;;  %v6868_v54 = vcombine.high %v6823_v56, %v6855_v15  ;;  %v25556_v15 = vld [vmem:[#allocation465_spill] sm:$0xff]  ;;  %v25560_v56 = vld [vmem:[#allocation466_spill] sm:$0xff] }
 0x588   :  { %10595 = vrot.lane.b32.xlu0 %v6866_v49, %s12830_s8  ;;  %v12183_v20 = vsel %vm12182_vm10, %v12180_v55, %v19170_v16  ;;  %v12205_v42 = vsel %vm23823_vm7, %v12202_v60, %v10364_v41  ;;  %v25548_v16 = vcombine.high %v25543_v63, %v25544_v33  ;;  %v6862_v7 = vrot.slane %v6848_v35, %v25261_v19  ;;  %v25558_v23 = vld [vmem:[#allocation449_spill] sm:$0xff]  ;;  %v25563_v35 = vld [vmem:[#allocation116_spill] sm:$0xff] }
 0x589   :  { %v10354_v0 = vpop.permute.xlu1 %10353  ;;  %v12186_v28 = vsel %vm12185_vm11, %v12183_v20, %v25547_v45  ;;  %v12208_v14 = vsel %vm23800_vm6, %v12205_v42, %v10372_v30  ;;  %v25552_v47 = vcombine.low %v25550_v6, %v25551_v57  ;;  %v6968_v26 = vcombine.high %v25556_v15, %v25555_v12  ;;  %v25570_v45 = vld [vmem:[#allocation113_spill] sm:$0xff] }
 0x58a   :  { %v12189_v44 = vsel %vm12188_vm12, %v12186_v28, %v19210_v5  ;;  %v25549_v5 = vcombine.high %v25538_v11, %v25539_v32  ;;  %v25557_v49 = vcombine.high %v25550_v6, %v25551_v57  ;;  %v6904_v62 = vcombine.high %v25559_v27, %v25558_v23  ;;  %v25581_v6 = vld [vmem:[#allocation404_spill] sm:$0xff]  ;;  %v25584_v23 = vld [vmem:[#allocation47_spill] sm:$0xff]  ;;  %v25585_v27 = vld [vmem:[#allocation118_spill] sm:$0xff] }
 0x58b   :  { %10585 = vrot.lane.b32.xlu1 %v25545_v31, %s12829_s7  ;;  %v10380_v43 = vpop.permute.xlu0 %10379  ;;  %v12192_v22 = vsel %vm12191_vm13, %v12189_v44, %v19241_v25  ;;  %v7000_v36 = vcombine.high %v25561_v50, %v25560_v56  ;;  %v6982_v2 = vrot.slane %v6968_v26, %v25261_v19  ;;  %v25567_v48 = vcombine.high %v25565_v39, %v25566_v13  ;;  %v25572_v44 = vld [vmem:[#allocation365_spill] sm:$0xff] }
 0x58c   :  { %10603 = vrot.lane.b32.xlu0 %v6867_v59, %s25546_s6  ;;  %v12211_v21 = vsel %vm23799_vm8, %v12208_v14, %v10380_v43  ;;  %v6830_v40 = vrot.slane %v25549_v5, %v25261_v19  ;;  %v12195_v53 = vsel %vm12194_vm14, %v12192_v22, %v19274_v38  ;;  %v6918_v30 = vrot.slane %v6904_v62, %v12858_v10  ;;  %v25573_v14 = vld [vmem:[#allocation297_spill] sm:$0xff]  ;;  %v25575_v22 = vld [vmem:[#allocation63_spill] sm:$0xff] }
 0x58d   :  { %v10362_v58 = vpop.permute.xlu1 %10361  ;;  %12654 = vst [vmem:[#allocation5 + $0x40] sm:$0xff] %v12211_v21  ;;  %v12198_v17 = vsel %vm23825_vm15, %v12195_v53, %v10346_v24  ;;  %v25554_v24 = vld [vmem:[#allocation429_spill] sm:$0xff]  ;;  %v6950_v1 = vrot.slane %v25567_v48, %v25261_v19  ;;  %v25574_v43 = vcombine.low %v25572_v44, %v25573_v14  ;;  %v25576_v21 = vld [vmem:[#allocation431_spill] sm:$0xff]  ;;  %v25586_v62 = vcombine.low %v25584_v23, %v25585_v27 }
 0x58e   :  { %v12201_v4 = vsel %vm23824_vm4, %v12198_v17, %v10354_v0  ;;  %v6869_v25 = vcombine.low %v6830_v40, %v6862_v7  ;;  %v6920_v34 = vcombine.high %v25554_v24, %v25553_v52  ;;  %v6870_v41 = vcombine.high %v6830_v40, %v6862_v7  ;;  %v25562_v0 = vld [vmem:[#allocation90_spill] sm:$0xff]  ;;  %v25589_v39 = vld [vmem:[#allocation321_spill] sm:$0xff] }
 0x58f   :  { %10593 = vrot.lane.b32.xlu1 %v25548_v16, %s12830_s8  ;;  %v19370_v18 = vpop.permute.xlu0 %10387  ;;  %v12204_v46 = vsel %vm23823_vm7, %v12201_v4, %v10362_v58  ;;  %v25564_v61 = vcombine.low %v25562_v0, %v25563_v35  ;;  %v7001_v31 = vcombine.low %v6950_v1, %v6982_v2  ;;  %v25568_v55 = vcombine.high %v25562_v0, %v25563_v35  ;;  %v25569_v58 = vld [vmem:[#allocation93_spill] sm:$0xff]  ;;  %v25578_v17 = vld [vmem:[#allocation154_spill] sm:$0xff] }
 0x590   :  { %10611 = vrot.lane.b32.xlu0 %v6868_v54, %s12832_s12  ;;  %v6934_v32 = vrot.slane %v6920_v34, %v12858_v10  ;;  %v7002_v60 = vcombine.high %v6950_v1, %v6982_v2  ;;  %v25571_v28 = vcombine.high %v25569_v58, %v25570_v45  ;;  %v6959_v54 = vrot.slane %v25574_v43, %v25261_v19  ;;  %v25588_v2 = vld [vmem:[#allocation371_spill] sm:$0xff]  ;;  %v25639_v58 = vld [vmem:[#allocation408_spill] sm:$0xff] }
 0x591   :  { %v10370_v9 = vpop.permute.xlu1 %10369  ;;  %v7055_v5 = vcombine.low %v25576_v21, %v25575_v22  ;;  %v25583_v24 = vcombine.high %v25572_v44, %v25573_v14  ;;  %v25587_v35 = vcombine.high %v25584_v23, %v25585_v27  ;;  %v25590_v13 = vcombine.low %v25588_v2, %v25589_v39 }
 0x592   :  { %v12207_v38 = vsel %vm23800_vm6, %v12204_v46, %v10370_v9  ;;  %v6983_v63 = vcombine.low %v6918_v30, %v6934_v32  ;;  %v6984_v7 = vcombine.high %v6918_v30, %v6934_v32  ;;  %v25577_v9 = vld [vmem:[#allocation12_spill] sm:$0xff]  ;;  %v7056_v30 = vcombine.high %v25576_v21, %v25575_v22 }
 0x593   :  { %10601 = vrot.lane.b32.xlu1 %v25552_v47, %s25546_s6  ;;  %v19384_v29 = vpop.permute.xlu0 %10395  ;;  %v25579_v4 = vcombine.low %v25577_v9, %v25578_v17  ;;  %v7063_v46 = vrot.slane %v7055_v5, %v12858_v10  ;;  %v6966_v34 = vrot.slane %v25583_v24, %v25261_v19  ;;  %v7079_v48 = vrot.slane %v25590_v13, %v25261_v19 }
 0x594   :  { %10619 = vrot.lane.b32.xlu0 %v6869_v25, %s12833_s9  ;;  %v6991_v42 = vrot.slane %v6983_v63, %v25261_v19  ;;  %v25580_v25 = vld [vmem:[#allocation451_spill] sm:$0xff]  ;;  %v6998_v52 = vrot.slane %v6984_v7, %v25261_v19  ;;  %v7070_v43 = vrot.slane %v7056_v30, %v12858_v10  ;;  %v25595_v5 = vcombine.high %v25588_v2, %v25589_v39  ;;  %v25606_v30 = vld [vmem:[#allocation264_spill] sm:$0xff] }
 0x595   :  { %v10378_v3 = vpop.permute.xlu1 %10377  ;;  %v7039_v57 = vcombine.low %v25581_v6, %v25580_v25  ;;  %v7040_v44 = vcombine.high %v25581_v6, %v25580_v25  ;;  %vm25655_vm6 = vcmask 228352  }
 0x596   :  { %v12210_v8 = vsel %vm23799_vm8, %v12207_v38, %v10378_v3  ;;  %v7003_v53 = vcombine.low %v6959_v54, %v6991_v42  ;;  %v7004_v3 = vcombine.high %v6959_v54, %v6991_v42  ;;  %v7006_v0 = vcombine.high %v6966_v34, %v6998_v52 }
 0x597   :  { %12646 = vst [vmem:[#allocation5] sm:$0xff] %v12210_v8  ;;  %10609 = vrot.lane.b32.xlu1 %v25557_v49, %s12832_s12  ;;  %v19396_v51 = vpop.permute.xlu0 %10403  ;;  %v25582_v8 = vcombine.high %v25577_v9, %v25578_v17  ;;  %v7047_v12 = vrot.slane %v7039_v57, %v12858_v10  ;;  %v7005_v49 = vcombine.low %v6966_v34, %v6998_v52  ;;  %v25596_v57 = vld [vmem:[#allocation185_spill] sm:$0xff]  ;;  %vm25653_vm8 = vcmask 162816  }
 0x598   :  { %10627 = vrot.lane.b32.xlu0 %v6870_v41, %s12834_s11  ;;  %v7054_v9 = vrot.slane %v7040_v44, %v12858_v10 }
 0x599   :  { %v19393_v11 = vpop.permute.xlu1 %10385  ;;  %v7103_v26 = vcombine.low %v7047_v12, %v7063_v46  ;;  %v7104_v63 = vcombine.high %v7047_v12, %v7063_v46  ;;  %v25597_v46 = vld [vmem:[#allocation155_spill] sm:$0xff] }
 0x59a   :  { %v25599_v34 = vcombine.high %v25596_v57, %v25597_v46 }
 0x59b   :  { %10617 = vrot.lane.b32.xlu1 %v25564_v61, %s12833_s9  ;;  %v19413_v33 = vpop.permute.xlu0 %10411  ;;  %v7111_v61 = vrot.slane %v7103_v26, %v25261_v19  ;;  %v7118_v21 = vrot.slane %v7104_v63, %v25261_v19  ;;  %v25600_v26 = vld [vmem:[#allocation372_spill] sm:$0xff] }
 0x59c   :  { %10635 = vrot.lane.b32.xlu0 %v7000_v36, %s12805_s0 }
 0x59d   :  { %v19411_v59 = vpop.permute.xlu1 %10393  ;;  %v7136_v7 = vcombine.high %v7079_v48, %v7111_v61 }
 0x59f   :  { %10625 = vrot.lane.b32.xlu1 %v25568_v55, %s12834_s11  ;;  %v19422_v20 = vpop.permute.xlu0 %10419  ;;  %v7135_v55 = vcombine.low %v7079_v48, %v7111_v61  ;;  %v25604_v61 = vld [vmem:[#allocation433_spill] sm:$0xff]  ;;  %v25605_v48 = vld [vmem:[#allocation186_spill] sm:$0xff] }
 0x5a0   :  { %10643 = vrot.lane.b32.xlu0 %v7001_v31, %s12808_s15  ;;  %v25607_v63 = vcombine.low %v25605_v48, %v25606_v30 }
 0x5a1   :  { %v19420_v37 = vpop.permute.xlu1 %10401 }
 0x5a3   :  { %10633 = vrot.lane.b32.xlu1 %v25571_v28, %s12805_s0  ;;  %v19438_v40 = vpop.permute.xlu0 %10427  ;;  %v25592_v28 = vld [vmem:[#allocation120_spill] sm:$0xff] }
 0x5a4   :  { %10651 = vrot.lane.b32.xlu0 %v7002_v60, %s12806_s13  ;;  %v25591_v60 = vld [vmem:[#allocation15_spill] sm:$0xff] }
 0x5a5   :  { %v19434_v16 = vpop.permute.xlu1 %10409  ;;  %v25593_v42 = vcombine.low %v25591_v60, %v25592_v28  ;;  %v25594_v22 = vcombine.high %v25591_v60, %v25592_v28  ;;  %v25609_v60 = vld [vmem:[#allocation406_spill] sm:$0xff] }
 0x5a7   :  { %10641 = vrot.lane.b32.xlu1 %v25579_v4, %s12808_s15  ;;  %v19450_v38 = vpop.permute.xlu0 %10435  ;;  %v7119_v4 = vcombine.low %v7054_v9, %v7070_v43 }
 0x5a8   :  { %10659 = vrot.lane.b32.xlu0 %v7003_v53, %s12807_s14  ;;  %v7086_v53 = vrot.slane %v25595_v5, %v25261_v19 }
 0x5a9   :  { %v19447_v47 = vpop.permute.xlu1 %10417  ;;  %v7127_v12 = vrot.slane %v7119_v4, %v25261_v19 }
 0x5aa   :  { %v7137_v6 = vcombine.low %v7086_v53, %v7118_v21  ;;  %v7138_v24 = vcombine.high %v7086_v53, %v7118_v21 }
 0x5ab   :  { %10649 = vrot.lane.b32.xlu1 %v25582_v8, %s12806_s13  ;;  %v19465_v41 = vpop.permute.xlu0 %10443 }
 0x5ac   :  { %10667 = vrot.lane.b32.xlu0 %v7004_v3, %s12809_s16  ;;  %v25598_v3 = vcombine.low %v25596_v57, %v25597_v46 }
 0x5ad   :  { %v19463_v15 = vpop.permute.xlu1 %10425 }
 0x5af   :  { %10657 = vrot.lane.b32.xlu1 %v25586_v62, %s12807_s14  ;;  %v19474_v36 = vpop.permute.xlu0 %10451 }
 0x5b0   :  { %10675 = vrot.lane.b32.xlu0 %v7005_v49, %s12810_s17  ;;  %v25601_v49 = vld [vmem:[#allocation299_spill] sm:$0xff] }
 0x5b1   :  { %v19472_v32 = vpop.permute.xlu1 %10433  ;;  %v25602_v23 = vcombine.low %v25600_v26, %v25601_v49  ;;  %v25611_v5 = vcombine.high %v25600_v26, %v25601_v49 }
 0x5b3   :  { %10665 = vrot.lane.b32.xlu1 %v25587_v35, %s12809_s16  ;;  %v19490_v31 = vpop.permute.xlu0 %10459  ;;  %v7095_v27 = vrot.slane %v25602_v23, %v25261_v19  ;;  %v25603_v35 = vld [vmem:[#allocation64_spill] sm:$0xff]  ;;  %v7102_v53 = vrot.slane %v25611_v5, %v25261_v19  ;;  %v25620_v5 = vld [vmem:[#allocation123_spill] sm:$0xff] }
 0x5b4   :  { %10683 = vrot.lane.b32.xlu0 %v7006_v0, %s12811_s18  ;;  %v7120_v0 = vcombine.high %v7054_v9, %v7070_v43  ;;  %v7191_v2 = vcombine.low %v25604_v61, %v25603_v35 }
 0x5b5   :  { %v19486_v1 = vpop.permute.xlu1 %10441  ;;  %v7139_v13 = vcombine.low %v7095_v27, %v7127_v12 }
 0x5b6   :  { %v7199_v44 = vrot.slane %v7191_v2, %v12858_v10  ;;  %v7134_v21 = vrot.slane %v7120_v0, %v25261_v19  ;;  %v25616_v0 = vld [vmem:[#allocation375_spill] sm:$0xff] }
 0x5b7   :  { %10673 = vrot.lane.b32.xlu1 %v25593_v42, %s12810_s17  ;;  %v19502_v54 = vpop.permute.xlu0 %10467  ;;  %v25617_v2 = vld [vmem:[#allocation211_spill] sm:$0xff] }
 0x5b8   :  { %10691 = vrot.lane.b32.xlu0 %v7135_v55, %s12812_s19  ;;  %v25608_v55 = vld [vmem:[#allocation452_spill] sm:$0xff]  ;;  %v7141_v46 = vcombine.low %v7102_v53, %v7134_v21  ;;  %v7142_v49 = vcombine.high %v7102_v53, %v7134_v21  ;;  %v25619_v21 = vld [vmem:[#allocation14_spill] sm:$0xff] }
 0x5b9   :  { %v19499_v14 = vpop.permute.xlu1 %10449  ;;  %v7175_v28 = vcombine.low %v25609_v60, %v25608_v55  ;;  %v25621_v53 = vcombine.low %v25619_v21, %v25620_v5 }
 0x5bb   :  { %10681 = vrot.lane.b32.xlu1 %v25594_v22, %s12811_s18  ;;  %v19517_v25 = vpop.permute.xlu0 %10475  ;;  %v25610_v22 = vcombine.high %v25605_v48, %v25606_v30  ;;  %v7183_v9 = vrot.slane %v7175_v28, %v12858_v10 }
 0x5bc   :  { %10699 = vrot.lane.b32.xlu0 %v7136_v7, %s12813_s20  ;;  %v7140_v7 = vcombine.high %v7095_v27, %v7127_v12 }
 0x5bd   :  { %v19515_v17 = vpop.permute.xlu1 %10457  ;;  %v7240_v28 = vcombine.high %v7183_v9, %v7199_v44 }
 0x5bf   :  { %10689 = vrot.lane.b32.xlu1 %v25598_v3, %s12812_s19  ;;  %v19526_v52 = vpop.permute.xlu0 %10483  ;;  %v25612_v3 = vld [vmem:[#allocation17_spill] sm:$0xff] }
 0x5c0   :  { %10707 = vrot.lane.b32.xlu0 %v7137_v6, %s12814_s21  ;;  %v7239_v6 = vcombine.low %v7183_v9, %v7199_v44  ;;  %v7254_v44 = vrot.slane %v7240_v28, %v25261_v19 }
 0x5c1   :  { %v19524_v8 = vpop.permute.xlu1 %10465 }
 0x5c2   :  { %v7247_v27 = vrot.slane %v7239_v6, %v25261_v19  ;;  %v7176_v6 = vcombine.high %v25609_v60, %v25608_v55  ;;  %v25623_v55 = vcombine.high %v25616_v0, %v25617_v2 }
 0x5c3   :  { %10697 = vrot.lane.b32.xlu1 %v25599_v34, %s12813_s20  ;;  %v19542_v39 = vpop.permute.xlu0 %10491 }
 0x5c4   :  { %10715 = vrot.lane.b32.xlu0 %v7138_v24, %s23817_s22  ;;  %v25613_v24 = vld [vmem:[#allocation265_spill] sm:$0xff]  ;;  %v7222_v60 = vrot.slane %v25623_v55, %v25261_v19  ;;  %v7190_v9 = vrot.slane %v7176_v6, %v12858_v10 }
 0x5c5   :  { %v19538_v62 = vpop.permute.xlu1 %10473  ;;  %v25614_v34 = vcombine.low %v25612_v3, %v25613_v24  ;;  %v25615_v23 = vcombine.high %v25612_v3, %v25613_v24 }
 0x5c7   :  { %10705 = vrot.lane.b32.xlu1 %v25607_v63, %s12814_s21  ;;  %v19554_v43 = vpop.permute.xlu0 %10499  ;;  %v7192_v63 = vcombine.high %v25604_v61, %v25603_v35  ;;  %v25622_v61 = vcombine.high %v25619_v21, %v25620_v5  ;;  %v25629_v5 = vld [vmem:[#allocation376_spill] sm:$0xff] }
 0x5c8   :  { %10723 = vrot.lane.b32.xlu0 %v7139_v13, %s12816_s23  ;;  %v25618_v13 = vcombine.low %v25616_v0, %v25617_v2  ;;  %v7274_v2 = vcombine.high %v7222_v60, %v7254_v44 }
 0x5c9   :  { %v19551_v42 = vpop.permute.xlu1 %10481  ;;  %v7206_v3 = vrot.slane %v7192_v63, %v12858_v10 }
 0x5ca   :  { %v7215_v48 = vrot.slane %v25618_v13, %v25261_v19  ;;  %v25624_v13 = vld [vmem:[#allocation204_spill] sm:$0xff] }
 0x5cb   :  { %10713 = vrot.lane.b32.xlu1 %v25610_v22, %s23817_s22  ;;  %v19569_v57 = vpop.permute.xlu0 %10507  ;;  %v7256_v55 = vcombine.high %v7190_v9, %v7206_v3 }
 0x5cc   :  { %10731 = vrot.lane.b32.xlu0 %v7140_v7, %s12817_s24  ;;  %v7271_v22 = vcombine.low %v7215_v48, %v7247_v27  ;;  %v7272_v35 = vcombine.high %v7215_v48, %v7247_v27  ;;  %v7273_v27 = vcombine.low %v7222_v60, %v7254_v44  ;;  %v25625_v48 = vld [vmem:[#allocation40_spill] sm:$0xff] }
 0x5cd   :  { %v19567_v4 = vpop.permute.xlu1 %10489  ;;  %v25626_v63 = vcombine.low %v25624_v13, %v25625_v48 }
 0x5cf   :  { %10721 = vrot.lane.b32.xlu1 %v25614_v34, %s12816_s23  ;;  %v19578_v26 = vpop.permute.xlu0 %10515 }
 0x5d0   :  { %10739 = vrot.lane.b32.xlu0 %v7141_v46, %s12818_s25 }
 0x5d1   :  { %v19576_v12 = vpop.permute.xlu1 %10497 }
 0x5d3   :  { %10729 = vrot.lane.b32.xlu1 %v25615_v23, %s12817_s24  ;;  %v19594_v7 = vpop.permute.xlu0 %10523 }
 0x5d4   :  { %10747 = vrot.lane.b32.xlu0 %v7142_v49, %s23813_s26  ;;  %v7255_v49 = vcombine.low %v7190_v9, %v7206_v3 }
 0x5d5   :  { %v19590_v30 = vpop.permute.xlu1 %10505 }
 0x5d6   :  { %v7263_v21 = vrot.slane %v7255_v49, %v25261_v19 }
 0x5d7   :  { %10737 = vrot.lane.b32.xlu1 %v25621_v53, %s12818_s25  ;;  %v19606_v24 = vpop.permute.xlu0 %10531  ;;  %v25630_v53 = vld [vmem:[#allocation308_spill] sm:$0xff] }
 0x5d8   :  { %10755 = vrot.lane.b32.xlu0 %v7271_v22, %s12802_s10  ;;  %v25628_v22 = vcombine.high %v25624_v13, %v25625_v48  ;;  %v25631_v6 = vcombine.low %v25629_v5, %v25630_v53  ;;  %v25635_v13 = vld [vmem:[#allocation16_spill] sm:$0xff]  ;;  %v25636_v48 = vld [vmem:[#allocation270_spill] sm:$0xff] }
 0x5d9   :  { %v19603_v46 = vpop.permute.xlu1 %10513  ;;  %v25637_v49 = vcombine.low %v25635_v13, %v25636_v48  ;;  %v25641_v50 = vcombine.high %v25635_v13, %v25636_v48 }
 0x5db   :  { %10745 = vrot.lane.b32.xlu1 %v25622_v61, %s23813_s26  ;;  %v19621_v23 = vpop.permute.xlu0 %10539 }
 0x5dc   :  { %10763 = vrot.lane.b32.xlu0 %v7272_v35, %s12820_s27  ;;  %v7231_v35 = vrot.slane %v25631_v6, %v25261_v19 }
 0x5dd   :  { %v19619_v34 = vpop.permute.xlu1 %10521 }
 0x5de   :  { %v7275_v45 = vcombine.low %v7231_v35, %v7263_v21  ;;  %v7276_v6 = vcombine.high %v7231_v35, %v7263_v21  ;;  %v25644_v21 = vld [vmem:[#allocation295_spill] sm:$0xff]  ;;  %v25645_v35 = vld [vmem:[#allocation202_spill] sm:$0xff] }
 0x5df   :  { %10753 = vrot.lane.b32.xlu1 %v25626_v63, %s12802_s10  ;;  %v19630_v0 = vpop.permute.xlu0 %10547  ;;  %v25634_v63 = vld [vmem:[#allocation435_spill] sm:$0xff] }
 0x5e0   :  { %10771 = vrot.lane.b32.xlu0 %v7273_v27, %s23811_s28  ;;  %v25633_v27 = vld [vmem:[#allocation338_spill] sm:$0xff] }
 0x5e1   :  { %v19628_v28 = vpop.permute.xlu1 %10529  ;;  %v7327_v44 = vcombine.low %v25634_v63, %v25633_v27 }
 0x5e2   :  { %25627 = vst [vmem:[#allocation345_spill] sm:$0xff] %v19628_v28 }
 0x5e3   :  { %10761 = vrot.lane.b32.xlu1 %v25628_v22, %s12820_s27  ;;  %v19646_v60 = vpop.permute.xlu0 %10555  ;;  %v25638_v22 = vld [vmem:[#allocation454_spill] sm:$0xff]  ;;  %v7335_v3 = vrot.slane %v7327_v44, %v12858_v10 }
 0x5e4   :  { %10779 = vrot.lane.b32.xlu0 %v7274_v2, %s12822_s29  ;;  %v7311_v56 = vcombine.low %v25639_v58, %v25638_v22 }
 0x5e5   :  { %v19642_v61 = vpop.permute.xlu1 %10537 }
 0x5e6   :  { %25632 = vst [vmem:[#allocation285_spill] sm:$0xff] %v19642_v61  ;;  %v7270_v61 = vrot.slane %v7256_v55, %v25261_v19 }
 0x5e7   :  { %10769 = vrot.lane.b32.xlu1 %v25637_v49, %s23811_s28  ;;  %v19658_v9 = vpop.permute.xlu0 %10563  ;;  %v25642_v49 = vcombine.high %v25629_v5, %v25630_v53  ;;  %v25648_v53 = vld [vmem:[#allocation38_spill] sm:$0xff] }
 0x5e8   :  { %10787 = vrot.lane.b32.xlu0 %v7275_v45, %s12823_s30  ;;  %v7319_v45 = vrot.slane %v7311_v56, %v12858_v10  ;;  %v25649_v56 = vld [vmem:[#allocation271_spill] sm:$0xff] }
 0x5e9   :  { %v19655_v2 = vpop.permute.xlu1 %10545  ;;  %v7238_v28 = vrot.slane %v25642_v49, %v25261_v19  ;;  %v25650_v49 = vcombine.low %v25648_v53, %v25649_v56 }
 0x5ea   :  { %25640 = vst [vmem:[#allocation77_spill] sm:$0xff] %v19655_v2  ;;  %v25646_v2 = vcombine.low %v25644_v21, %v25645_v35 }
 0x5eb   :  { %10777 = vrot.lane.b32.xlu1 %v25641_v50, %s12822_s29  ;;  %v7375_v50 = vcombine.low %v7319_v45, %v7335_v3  ;;  %v7277_v5 = vcombine.low %v7238_v28, %v7270_v61 }
 0x5ec   :  { %10795 = vrot.lane.b32.xlu0 %v7276_v6, %s23807_s2  ;;  %v12213_v13 = vsel %vm12119_vm0, %v25646_v2, %v19370_v18  ;;  %v25651_v2 = vld [vmem:[#allocation182_spill] sm:$0xff] }
 0x5ed   :  { %v19671_v44 = vpop.permute.xlu1 %10553  ;;  %v12215_v55 = vsel %vm23801_vm1, %v12213_v13, %v19384_v29  ;;  %v25652_v29 = vld [vmem:[#allocation236_spill] sm:$0xff] }
 0x5ee   :  { %25643 = vst [vmem:[#allocation148_spill] sm:$0xff] %v19671_v44  ;;  %v19680_v48 = vpop.permute.xlu0 %10571  ;;  %v12217_v6 = vsel %vm23802_vm2, %v12215_v55, %v19396_v51  ;;  %v2103_v35 = vcombine.low %v25652_v29, %v25651_v2  ;;  %v25654_v51 = vcombine.high %v25648_v53, %v25649_v56  ;;  %v7376_v53 = vcombine.high %v7319_v45, %v7335_v3  ;;  %v25662_v2 = vld [vmem:[#allocation100_spill] sm:$0xff] }
 0x5ef   :  { %25647 = vst [vmem:[#allocation82_spill] sm:$0xff] %v19680_v48  ;;  %10785 = vrot.lane.b32.xlu1 %v25650_v49, %s12823_s30  ;;  %v12219_v21 = vsel %vm23806_vm3, %v12217_v6, %v19413_v33  ;;  %v7278_v48 = vcombine.high %v7238_v28, %v7270_v61  ;;  %v7383_v33 = vrot.slane %v7375_v50, %v25261_v19  ;;  %v25657_v6 = vld [vmem:[#allocation325_spill] sm:$0xff]  ;;  %v25663_v29 = vld [vmem:[#allocation272_spill] sm:$0xff] }
 0x5f0   :  { %10803 = vrot.lane.b32.xlu0 %v7277_v5, %s12825_s3  ;;  %v12221_v13 = vsel %vm25653_vm8, %v12219_v21, %v19422_v20  ;;  %v12212_v55 = vsel %vm12119_vm0, %v2103_v35, %v19393_v11  ;;  %v25656_v20 = vld [vmem:[#allocation301_spill] sm:$0xff]  ;;  %vm25659_vm8 = vcmask 261120   ;;  %v7328_v11 = vcombine.high %v25634_v63, %v25633_v27 }
 0x5f1   :  { %v19691_v18 = vpop.permute.xlu1 %10561  ;;  %v12223_v44 = vsel %vm23803_vm5, %v12221_v13, %v19438_v40  ;;  %v25658_v40 = vcombine.low %v25656_v20, %v25657_v6  ;;  %v12214_v28 = vsel %vm23801_vm1, %v12212_v55, %v19411_v59  ;;  %vm25661_vm1 = vcmask 326656  }
 0x5f2   :  { %v19699_v49 = vpop.permute.xlu0 %10579  ;;  %v12225_v5 = vsel %vm25655_vm6, %v12223_v44, %v19450_v38  ;;  %v12216_v38 = vsel %vm23802_vm2, %v12214_v28, %v19420_v37  ;;  %vm25660_vm6 = vcmask 293888   ;;  %v25664_v35 = vcombine.low %v25662_v2, %v25663_v29  ;;  %v25684_v28 = vld [vmem:[#allocation209_spill] sm:$0xff] }
 0x5f3   :  { %10793 = vrot.lane.b32.xlu1 %v25654_v51, %s23807_s2  ;;  %v7351_v21 = vrot.slane %v25658_v40, %v25261_v19  ;;  %v12227_v61 = vsel %vm25659_vm8, %v12225_v5, %v19465_v41  ;;  %v12218_v59 = vsel %vm23806_vm3, %v12216_v38, %v19434_v16  ;;  %vm25665_vm8 = vcmask 162816  }
 0x5f4   :  { %10811 = vrot.lane.b32.xlu0 %v7278_v48, %s23804_s4  ;;  %v12229_v44 = vsel %vm25660_vm6, %v12227_v61, %v19474_v36  ;;  %v12220_v37 = vsel %vm25665_vm8, %v12218_v59, %v19447_v47  ;;  %vm25666_vm2 = vcmask 359424   ;;  %v7312_v27 = vcombine.high %v25639_v58, %v25638_v22 }
 0x5f5   :  { %v19719_v50 = vpop.permute.xlu1 %10569  ;;  %v12231_v41 = vsel %vm25661_vm1, %v12229_v44, %v19490_v31  ;;  %v7407_v48 = vcombine.low %v7351_v21, %v7383_v33  ;;  %v12222_v16 = vsel %vm23803_vm5, %v12220_v37, %v19463_v15  ;;  %vm25667_vm1 = vcmask 392192  }
 0x5f6   :  { %v10588_v56 = vpop.permute.xlu0 %10587  ;;  %v12233_v36 = vsel %vm25666_vm2, %v12231_v41, %v19502_v54  ;;  %v19749_v3 = vrot.slane %v7328_v11, %v12858_v10  ;;  %vm25668_vm6 = vcmask 228352   ;;  %vm25669_vm2 = vcmask 424960   ;;  %v25695_v41 = vld [vmem:[#allocation145_spill] sm:$0xff] }
 0x5f7   :  { %10801 = vrot.lane.b32.xlu1 %v25664_v35, %s12825_s3  ;;  %v12235_v31 = vsel %vm25667_vm1, %v12233_v36, %v19517_v25  ;;  %v12224_v47 = vsel %vm25668_vm6, %v12222_v16, %v19472_v32  ;;  %vm25670_vm8 = vcmask 261120   ;;  %vm25671_vm5 = vcmask 457728   ;;  %v25699_v36 = vld [vmem:[#allocation345_spill] sm:$0xff] }
 0x5f8   :  { %10819 = vrot.lane.b32.xlu0 %v7407_v48, %s12827_s5  ;;  %v12237_v54 = vsel %vm25669_vm2, %v12235_v31, %v19526_v52  ;;  %v12226_v58 = vsel %vm25670_vm8, %v12224_v47, %v19486_v1  ;;  %v7408_v22 = vcombine.high %v7351_v21, %v7383_v33  ;;  %v25672_v45 = vcombine.high %v25662_v2, %v25663_v29  ;;  %v25698_v29 = vld [vmem:[#allocation82_spill] sm:$0xff]  ;;  %v25701_v16 = vld [vmem:[#allocation285_spill] sm:$0xff] }
 0x5f9   :  { %v19746_v63 = vpop.permute.xlu1 %10577  ;;  %v12239_v15 = vsel %vm25671_vm5, %v12237_v54, %v19542_v39  ;;  %v7390_v13 = vrot.slane %v7376_v53, %v25261_v19  ;;  %vm25673_vm1 = vcmask 293888   ;;  %vm25674_vm6 = vcmask 490496  }
 0x5fa   :  { %v10596_v25 = vpop.permute.xlu0 %10595  ;;  %v12228_v32 = vsel %vm25673_vm1, %v12226_v58, %v19499_v14  ;;  %v12241_v52 = vsel %vm25674_vm6, %v12239_v15, %v19554_v43  ;;  %v25675_v1 = vcombine.high %v25656_v20, %v25657_v6  ;;  %v7326_v51 = vrot.slane %v7312_v27, %v12858_v10  ;;  %v25702_v58 = vld [vmem:[#allocation187_spill] sm:$0xff]  ;;  %v25703_v15 = vld [vmem:[#allocation276_spill] sm:$0xff] }
 0x5fb   :  { %10809 = vrot.lane.b32.xlu1 %v25672_v45, %s23804_s4  ;;  %vm25676_vm5 = vcmask 326656   ;;  %vm25677_vm2 = vcmask 523264   ;;  %s25678_s4 = smov 100   ;;  %vm25679_vm8 = vcmask 359424   ;;  %vm25680_vm1 = vcmask 556032   ;;  %v25705_v45 = vld [vmem:[#allocation77_spill] sm:$0xff] }
 0x5fc   :  { %v7358_v39 = vrot.slane %v25675_v1, %v25261_v19  ;;  %v12230_v33 = vsel %vm25676_vm5, %v12228_v32, %v19515_v17  ;;  %v12243_v55 = vsel %vm25677_vm2, %v12241_v52, %v19569_v57  ;;  %10827 = vrot.lane.b32.xlu0 %v7408_v22, %s25678_s4  ;;  %v7391_v20 = vcombine.low %v7326_v51, %v19749_v3  ;;  %v25683_v57 = vld [vmem:[#allocation97_spill] sm:$0xff] }
 0x5fd   :  { %v10586_v5 = vpop.permute.xlu1 %10585  ;;  %v12232_v14 = vsel %vm25679_vm8, %v12230_v33, %v19524_v8  ;;  %v12245_v43 = vsel %vm25680_vm1, %v12243_v55, %v19578_v26  ;;  %vm25681_vm6 = vcmask 392192   ;;  %vm25682_vm3 = vcmask 588800  }
 0x5fe   :  { %v12234_v6 = vsel %vm25681_vm6, %v12232_v14, %v19538_v62  ;;  %v12247_v17 = vsel %vm25682_vm3, %v12245_v43, %v19594_v7  ;;  %v10604_v40 = vpop.permute.xlu0 %10603  ;;  %v7409_v21 = vcombine.low %v7358_v39, %v7390_v13  ;;  %v25685_v61 = vcombine.low %v25683_v57, %v25684_v28 }
 0x5ff   :  { %vm25686_vm5 = vcmask 424960   ;;  %vm25687_vm2 = vcmask 621568   ;;  %vm25688_vm8 = vcmask 457728   ;;  %vm25689_vm1 = vcmask 654336  }
 0x600   :  { %10817 = vrot.lane.b32.xlu1 %v25685_v61, %s12827_s5  ;;  %v12236_v8 = vsel %vm25686_vm5, %v12234_v6, %v19551_v42  ;;  %v12249_v26 = vsel %vm25687_vm2, %v12247_v17, %v19606_v24  ;;  %10835 = vrot.lane.b32.xlu0 %v7409_v21, %s12829_s7  ;;  %vm25690_vm3 = vcmask 490496   ;;  %vm25691_vm6 = vcmask 523264   ;;  %v25711_v61 = vld [vmem:[#allocation188_spill] sm:$0xff] }
 0x601   :  { %v12238_v11 = vsel %vm25688_vm8, %v12236_v8, %v19567_v4  ;;  %v12251_v62 = vsel %vm25689_vm1, %v12249_v26, %v19621_v23  ;;  %v10594_v7 = vpop.permute.xlu1 %10593  ;;  %v7410_v4 = vcombine.high %v7358_v39, %v7390_v13  ;;  %v25692_v23 = vcombine.high %v25683_v57, %v25684_v28  ;;  %v25712_v8 = vld [vmem:[#allocation277_spill] sm:$0xff] }
 0x602   :  { %v12240_v38 = vsel %vm25690_vm3, %v12238_v11, %v19576_v12  ;;  %v12253_v44 = vsel %vm12179_vm9, %v12251_v62, %v19630_v0  ;;  %v10612_v53 = vpop.permute.xlu0 %10611  ;;  %v7399_v59 = vrot.slane %v7391_v20, %v25261_v19  ;;  %vm25693_vm5 = vcmask 556032  }
 0x603   :  { %v12242_v42 = vsel %vm25691_vm6, %v12240_v38, %v19590_v30  ;;  %v12255_v24 = vsel %vm12182_vm10, %v12253_v44, %v19646_v60  ;;  %v25694_v30 = vld [vmem:[#allocation302_spill] sm:$0xff]  ;;  %vm25697_vm2 = vcmask 588800   ;;  %vm25700_vm8 = vcmask 621568   ;;  %v25717_v44 = vld [vmem:[#allocation437_spill] sm:$0xff] }
 0x604   :  { %10825 = vrot.lane.b32.xlu1 %v25692_v23, %s25678_s4  ;;  %v12244_v12 = vsel %vm25693_vm5, %v12242_v42, %v19603_v46  ;;  %v12257_v0 = vsel %vm12185_vm11, %v12255_v24, %v19658_v9  ;;  %v25696_v48 = vcombine.low %v25694_v30, %v25695_v41  ;;  %10843 = vrot.lane.b32.xlu0 %v7410_v4, %s12830_s8  ;;  %vm25707_vm3 = vcmask 982016   ;;  %v25718_v24 = vld [vmem:[#allocation68_spill] sm:$0xff] }
 0x605   :  { %v12246_v2 = vsel %vm25697_vm2, %v12244_v12, %v19619_v34  ;;  %v12259_v35 = vsel %vm12188_vm12, %v12257_v0, %v25698_v29  ;;  %v10602_v37 = vpop.permute.xlu1 %10601  ;;  %v7392_v27 = vcombine.high %v7326_v51, %v19749_v3  ;;  %v25704_v22 = vcombine.low %v25702_v58, %v25703_v15  ;;  %vm25714_vm5 = vmmov %vm25707_vm3  ;;  %v25721_v0 = vld [vmem:[#allocation456_spill] sm:$0xff]  ;;  %v25723_v29 = vld [vmem:[#allocation470_spill] sm:$0xff] }
 0x606   :  { %v7367_v60 = vrot.slane %v25696_v48, %v25261_v19  ;;  %v12248_v46 = vsel %vm25700_vm8, %v12246_v2, %v25699_v36  ;;  %v12261_v9 = vsel %vm12191_vm13, %v12259_v35, %v19699_v49  ;;  %v10620_v34 = vpop.permute.xlu0 %10619  ;;  %v25706_v49 = vld [vmem:[#allocation148_spill] sm:$0xff]  ;;  %v25708_v14 = vcombine.high %v25702_v58, %v25703_v15  ;;  %v25724_v35 = vld [vmem:[#allocation471_spill] sm:$0xff]  ;;  %v25725_v36 = vld [vmem:[#allocation189_spill] sm:$0xff] }
 0x607   :  { %v12250_v31 = vsel %vm25689_vm1, %v12248_v46, %v25701_v16  ;;  %v12263_v47 = vsel %vm12194_vm14, %v12261_v9, %v10588_v56  ;;  %v7406_v43 = vrot.slane %v7392_v27, %v25261_v19  ;;  %vm25709_vm6 = vcmask 1014784   ;;  %v25726_v46 = vld [vmem:[#allocation278_spill] sm:$0xff]  ;;  %v25728_v16 = vld [vmem:[#allocation380_spill] sm:$0xff] }
 0x608   :  { %v7411_v54 = vcombine.low %v7367_v60, %v7399_v59  ;;  %10833 = vrot.lane.b32.xlu1 %v25704_v22, %s12829_s7  ;;  %v12252_v13 = vsel %vm12179_vm9, %v12250_v31, %v25705_v45  ;;  %v12265_v32 = vsel %vm23825_vm15, %v12263_v47, %v10596_v25  ;;  %v7412_v25 = vcombine.high %v7367_v60, %v7399_v59  ;;  %vm25715_vm2 = vmmov %vm25709_vm6  ;;  %v25729_v31 = vld [vmem:[#allocation303_spill] sm:$0xff] }
 0x609   :  { %v12254_v3 = vsel %vm12182_vm10, %v12252_v13, %v25706_v49  ;;  %v12267_v52 = vsel %vm23824_vm4, %v12265_v32, %v10604_v40  ;;  %v10610_v56 = vpop.permute.xlu1 %10609  ;;  %v25713_v26 = vcombine.low %v25711_v61, %v25712_v8  ;;  %v25720_v12 = vcombine.high %v25711_v61, %v25712_v8  ;;  %v25744_v61 = vld [vmem:[#allocation412_spill] sm:$0xff] }
 0x60a   :  { %10851 = vrot.lane.b32.xlu0 %v7411_v54, %s25546_s6  ;;  %v12256_v1 = vsel %vm12185_vm11, %v12254_v3, %v19691_v18  ;;  %v12269_v39 = vsel %vm23823_vm7, %v12267_v52, %v10612_v53  ;;  %v10628_v55 = vpop.permute.xlu0 %10627  ;;  %v25719_v53 = vld [vmem:[#allocation468_spill] sm:$0xff]  ;;  %v25727_v9 = vcombine.low %v25725_v36, %v25726_v46  ;;  %v25730_v47 = vcombine.high %v25728_v16, %v25729_v31  ;;  %v25752_v16 = vld [vmem:[#allocation305_spill] sm:$0xff] }
 0x60b   :  { %v12258_v51 = vsel %vm12188_vm12, %v12256_v1, %v19719_v50  ;;  %v12271_v33 = vsel %vm25707_vm3, %v12269_v39, %v10620_v34  ;;  %v25710_v50 = vcombine.high %v25694_v30, %v25695_v41  ;;  %v7512_v4 = vcombine.high %v25719_v53, %v25718_v24  ;;  %v25722_v30 = vld [vmem:[#allocation410_spill] sm:$0xff]  ;;  %v25732_v52 = vld [vmem:[#allocation20_spill] sm:$0xff] }
 0x60c   :  { %10841 = vrot.lane.b32.xlu1 %v25708_v14, %s12830_s8  ;;  %v12260_v20 = vsel %vm12191_vm13, %v12258_v51, %v19746_v63  ;;  %v12273_v18 = vsel %vm25709_vm6, %v12271_v33, %v10628_v55  ;;  %v7448_v41 = vcombine.high %v25722_v30, %v25721_v0  ;;  %v7494_v34 = vrot.slane %v25730_v47, %v25261_v19  ;;  %v25735_v51 = vld [vmem:[#allocation314_spill] sm:$0xff]  ;;  %v25736_v33 = vld [vmem:[#allocation381_spill] sm:$0xff]  ;;  %v25747_v0 = vld [vmem:[#allocation23_spill] sm:$0xff] }
 0x60d   :  { %v7374_v6 = vrot.slane %v25710_v50, %v25261_v19  ;;  %v12262_v17 = vsel %vm12194_vm14, %v12260_v20, %v10586_v5  ;;  %12655 = vst [vmem:[#allocation5 + $0x48] sm:$0xff] %v12273_v18  ;;  %v10618_v40 = vpop.permute.xlu1 %10617  ;;  %v7526_v27 = vrot.slane %v7512_v4, %v25261_v19  ;;  %v25731_v13 = vcombine.high %v25725_v36, %v25726_v46  ;;  %v25738_v20 = vld [vmem:[#allocation469_spill] sm:$0xff]  ;;  %v25739_v18 = vld [vmem:[#allocation439_spill] sm:$0xff] }
 0x60e   :  { %10859 = vrot.lane.b32.xlu0 %v7412_v25, %s12832_s12  ;;  %v12264_v21 = vsel %vm23825_vm15, %v12262_v17, %v10594_v7  ;;  %v19867_v28 = vpop.permute.xlu0 %10635  ;;  %v25716_v7 = vld [vmem:[#allocation65_spill] sm:$0xff]  ;;  %v7462_v54 = vrot.slane %v7448_v41, %v12858_v10  ;;  %v25737_v55 = vcombine.low %v25735_v51, %v25736_v33  ;;  %v7599_v50 = vcombine.low %v25739_v18, %v25738_v20  ;;  %v25748_v30 = vld [vmem:[#allocation283_spill] sm:$0xff] }
 0x60f   :  { %v12266_v57 = vsel %vm23824_vm4, %v12264_v21, %v10602_v37  ;;  %v7413_v63 = vcombine.low %v7374_v6, %v7406_v43  ;;  %v7464_v42 = vcombine.high %v25717_v44, %v25716_v7  ;;  %v7414_v59 = vcombine.high %v7374_v6, %v7406_v43  ;;  %v25741_v21 = vld [vmem:[#allocation281_spill] sm:$0xff] }
 0x610   :  { %10849 = vrot.lane.b32.xlu1 %v25713_v26, %s25546_s6  ;;  %v12268_v11 = vsel %vm23823_vm7, %v12266_v57, %v10610_v56  ;;  %v7544_v37 = vcombine.high %v25724_v35, %v25723_v29  ;;  %v7545_v45 = vcombine.low %v7494_v34, %v7526_v27  ;;  %v7546_v3 = vcombine.high %v7494_v34, %v7526_v27  ;;  %v25733_v56 = vld [vmem:[#allocation210_spill] sm:$0xff]  ;;  %v25751_v27 = vld [vmem:[#allocation385_spill] sm:$0xff] }
 0x611   :  { %v12270_v5 = vsel %vm25714_vm5, %v12268_v11, %v10618_v40  ;;  %v10626_v62 = vpop.permute.xlu1 %10625  ;;  %v7478_v60 = vrot.slane %v7464_v42, %v12858_v10  ;;  %v25734_v1 = vcombine.high %v25732_v52, %v25733_v56  ;;  %v7503_v25 = vrot.slane %v25737_v55, %v25261_v19  ;;  %v25740_v40 = vld [vmem:[#allocation193_spill] sm:$0xff] }
 0x612   :  { %10867 = vrot.lane.b32.xlu0 %v7413_v63, %s12833_s9  ;;  %v12272_v38 = vsel %vm25715_vm2, %v12270_v5, %v10626_v62  ;;  %v19881_v23 = vpop.permute.xlu0 %10643  ;;  %v25742_v57 = vcombine.low %v25740_v40, %v25741_v21  ;;  %v25743_v63 = vld [vmem:[#allocation457_spill] sm:$0xff]  ;;  %v7607_v11 = vrot.slane %v7599_v50, %v12858_v10  ;;  %v25746_v44 = vcombine.high %v25735_v51, %v25736_v33 }
 0x613   :  { %12647 = vst [vmem:[#allocation5 + $0x8] sm:$0xff] %v12272_v38  ;;  %v7527_v15 = vcombine.low %v7462_v54, %v7478_v60  ;;  %v7528_v43 = vcombine.high %v7462_v54, %v7478_v60  ;;  %v7583_v8 = vcombine.low %v25744_v61, %v25743_v63  ;;  %v25745_v38 = vcombine.high %v25740_v40, %v25741_v21 }
 0x614   :  { %10857 = vrot.lane.b32.xlu1 %v25720_v12, %s12832_s12  ;;  %v7510_v42 = vrot.slane %v25746_v44, %v25261_v19  ;;  %v25749_v41 = vcombine.low %v25747_v0, %v25748_v30  ;;  %v25750_v46 = vcombine.high %v25747_v0, %v25748_v30  ;;  %v25753_v31 = vcombine.low %v25751_v27, %v25752_v16 }
 0x615   :  { %v19890_v48 = vpop.permute.xlu1 %10633  ;;  %v7535_v39 = vrot.slane %v7527_v15, %v25261_v19  ;;  %v7542_v7 = vrot.slane %v7528_v43, %v25261_v19  ;;  %v7591_v24 = vrot.slane %v7583_v8, %v12858_v10  ;;  %v7600_v54 = vcombine.high %v25739_v18, %v25738_v20  ;;  %v25759_v8 = vld [vmem:[#allocation103_spill] sm:$0xff] }
 0x616   :  { %10875 = vrot.lane.b32.xlu0 %v7414_v59, %s12834_s11  ;;  %v19893_v2 = vpop.permute.xlu0 %10651  ;;  %v7623_v47 = vrot.slane %v25753_v31, %v25261_v19  ;;  %v7584_v51 = vcombine.high %v25744_v61, %v25743_v63  ;;  %v25758_v50 = vcombine.high %v25751_v27, %v25752_v16  ;;  %vm25810_vm8 = vcmask 64512  }
 0x617   :  { %v7547_v17 = vcombine.low %v7503_v25, %v7535_v39  ;;  %v7548_v62 = vcombine.high %v7503_v25, %v7535_v39  ;;  %v7647_v4 = vcombine.low %v7591_v24, %v7607_v11  ;;  %v7549_v12 = vcombine.low %v7510_v42, %v7542_v7 }
 0x618   :  { %10865 = vrot.lane.b32.xlu1 %v25727_v9, %s12833_s9  ;;  %v7550_v36 = vcombine.high %v7510_v42, %v7542_v7  ;;  %v7648_v15 = vcombine.high %v7591_v24, %v7607_v11  ;;  %v7614_v55 = vrot.slane %v7600_v54, %v12858_v10  ;;  %v7598_v40 = vrot.slane %v7584_v51, %v12858_v10  ;;  %v25760_v11 = vld [vmem:[#allocation289_spill] sm:$0xff]  ;;  %v25769_v54 = vld [vmem:[#allocation290_spill] sm:$0xff] }
 0x619   :  { %v19908_v58 = vpop.permute.xlu1 %10641  ;;  %v7655_v9 = vrot.slane %v7647_v4, %v25261_v19  ;;  %v25762_v42 = vcombine.high %v25759_v8, %v25760_v11  ;;  %v25763_v4 = vld [vmem:[#allocation386_spill] sm:$0xff]  ;;  %vm25814_vm1 = vcmask 97280   ;;  %vm25815_vm3 = vcmask 130048  }
 0x61a   :  { %10883 = vrot.lane.b32.xlu0 %v7544_v37, %s12805_s0  ;;  %v19910_v22 = vpop.permute.xlu0 %10659  ;;  %v7662_v18 = vrot.slane %v7648_v15, %v25261_v19  ;;  %vm25816_vm6 = vcmask 162816   ;;  %vm25817_vm5 = vcmask 195584   ;;  %vm25822_vm2 = vcmask 228352  }
 0x61b   :  { %v7680_v43 = vcombine.high %v7623_v47, %v7655_v9 }
 0x61c   :  { %10873 = vrot.lane.b32.xlu1 %v25731_v13, %s12834_s11  ;;  %v7679_v13 = vcombine.low %v7623_v47, %v7655_v9  ;;  %v25767_v9 = vld [vmem:[#allocation440_spill] sm:$0xff]  ;;  %v25768_v47 = vld [vmem:[#allocation197_spill] sm:$0xff] }
 0x61d   :  { %v19917_v32 = vpop.permute.xlu1 %10649  ;;  %v25770_v15 = vcombine.low %v25768_v47, %v25769_v54 }
 0x61e   :  { %10891 = vrot.lane.b32.xlu0 %v7545_v45, %s12808_s15  ;;  %v19919_v49 = vpop.permute.xlu0 %10667 }
 0x620   :  { %10881 = vrot.lane.b32.xlu1 %v25734_v1, %s12805_s0  ;;  %v25755_v1 = vld [vmem:[#allocation135_spill] sm:$0xff] }
 0x621   :  { %v19931_v14 = vpop.permute.xlu1 %10657 }
 0x622   :  { %10899 = vrot.lane.b32.xlu0 %v7546_v3, %s12806_s13  ;;  %v19935_v6 = vpop.permute.xlu0 %10675  ;;  %v25754_v3 = vld [vmem:[#allocation54_spill] sm:$0xff] }
 0x623   :  { %v25756_v39 = vcombine.low %v25754_v3, %v25755_v1  ;;  %v25757_v20 = vcombine.high %v25754_v3, %v25755_v1  ;;  %v25772_v3 = vld [vmem:[#allocation414_spill] sm:$0xff] }
 0x624   :  { %10889 = vrot.lane.b32.xlu1 %v25742_v57, %s12808_s15  ;;  %v7663_v57 = vcombine.low %v7598_v40, %v7614_v55 }
 0x625   :  { %v19944_v26 = vpop.permute.xlu1 %10665 }
 0x626   :  { %10907 = vrot.lane.b32.xlu0 %v7547_v17, %s12807_s14  ;;  %v19947_v5 = vpop.permute.xlu0 %10683  ;;  %v7630_v17 = vrot.slane %v25758_v50, %v25261_v19  ;;  %v7671_v24 = vrot.slane %v7663_v57, %v25261_v19 }
 0x628   :  { %10897 = vrot.lane.b32.xlu1 %v25745_v38, %s12806_s13  ;;  %v7681_v61 = vcombine.low %v7630_v17, %v7662_v18  ;;  %v7682_v44 = vcombine.high %v7630_v17, %v7662_v18 }
 0x629   :  { %v19960_v53 = vpop.permute.xlu1 %10673 }
 0x62a   :  { %10915 = vrot.lane.b32.xlu0 %v7548_v62, %s12809_s16  ;;  %v19962_v59 = vpop.permute.xlu0 %10691  ;;  %v25761_v62 = vcombine.low %v25759_v8, %v25760_v11 }
 0x62c   :  { %10905 = vrot.lane.b32.xlu1 %v25749_v41, %s12807_s14 }
 0x62d   :  { %v19969_v60 = vpop.permute.xlu1 %10681 }
 0x62e   :  { %10923 = vrot.lane.b32.xlu0 %v7549_v12, %s12810_s17  ;;  %v19971_v37 = vpop.permute.xlu0 %10699  ;;  %v25764_v12 = vld [vmem:[#allocation315_spill] sm:$0xff] }
 0x62f   :  { %v25765_v0 = vcombine.low %v25763_v4, %v25764_v12  ;;  %v25774_v50 = vcombine.high %v25763_v4, %v25764_v12 }
 0x630   :  { %10913 = vrot.lane.b32.xlu1 %v25750_v46, %s12809_s16  ;;  %v25766_v46 = vld [vmem:[#allocation143_spill] sm:$0xff] }
 0x631   :  { %v19983_v34 = vpop.permute.xlu1 %10689  ;;  %v7639_v30 = vrot.slane %v25765_v0, %v25261_v19  ;;  %v7735_v27 = vcombine.low %v25767_v9, %v25766_v46  ;;  %v7646_v17 = vrot.slane %v25774_v50, %v25261_v19  ;;  %v25783_v50 = vld [vmem:[#allocation292_spill] sm:$0xff] }
 0x632   :  { %10931 = vrot.lane.b32.xlu0 %v7550_v36, %s12811_s18  ;;  %v19987_v45 = vpop.permute.xlu0 %10707  ;;  %v7664_v36 = vcombine.high %v7598_v40, %v7614_v55 }
 0x633   :  { %v7683_v31 = vcombine.low %v7639_v30, %v7671_v24  ;;  %v7743_v51 = vrot.slane %v7735_v27, %v12858_v10  ;;  %v25780_v27 = vld [vmem:[#allocation257_spill] sm:$0xff] }
 0x634   :  { %10921 = vrot.lane.b32.xlu1 %v25756_v39, %s12810_s17  ;;  %v7678_v18 = vrot.slane %v7664_v36, %v25261_v19  ;;  %v25779_v36 = vld [vmem:[#allocation317_spill] sm:$0xff] }
 0x635   :  { %v19996_v33 = vpop.permute.xlu1 %10697 }
 0x636   :  { %10939 = vrot.lane.b32.xlu0 %v7679_v13, %s12812_s19  ;;  %v19999_v25 = vpop.permute.xlu0 %10715  ;;  %v25771_v13 = vld [vmem:[#allocation459_spill] sm:$0xff]  ;;  %v7685_v11 = vcombine.low %v7646_v17, %v7678_v18  ;;  %v7686_v12 = vcombine.high %v7646_v17, %v7678_v18  ;;  %v25782_v18 = vld [vmem:[#allocation104_spill] sm:$0xff] }
 0x637   :  { %v7719_v1 = vcombine.low %v25772_v3, %v25771_v13  ;;  %v25784_v17 = vcombine.low %v25782_v18, %v25783_v50 }
 0x638   :  { %10929 = vrot.lane.b32.xlu1 %v25757_v20, %s12811_s18  ;;  %v25773_v20 = vcombine.high %v25768_v47, %v25769_v54 }
 0x639   :  { %v20012_v21 = vpop.permute.xlu1 %10705  ;;  %v7727_v40 = vrot.slane %v7719_v1, %v12858_v10 }
 0x63a   :  { %10947 = vrot.lane.b32.xlu0 %v7680_v43, %s12813_s20  ;;  %v20014_v63 = vpop.permute.xlu0 %10723  ;;  %v7684_v43 = vcombine.high %v7639_v30, %v7671_v24 }
 0x63b   :  { %v7784_v1 = vcombine.high %v7727_v40, %v7743_v51 }
 0x63c   :  { %10937 = vrot.lane.b32.xlu1 %v25761_v62, %s12812_s19  ;;  %v25775_v62 = vld [vmem:[#allocation102_spill] sm:$0xff] }
 0x63d   :  { %v20021_v38 = vpop.permute.xlu1 %10713 }
 0x63e   :  { %10955 = vrot.lane.b32.xlu0 %v7681_v61, %s12814_s21  ;;  %v20023_v7 = vpop.permute.xlu0 %10731  ;;  %v7783_v61 = vcombine.low %v7727_v40, %v7743_v51  ;;  %v7798_v51 = vrot.slane %v7784_v1, %v25261_v19 }
 0x640   :  { %10945 = vrot.lane.b32.xlu1 %v25762_v42, %s12813_s20  ;;  %v7791_v30 = vrot.slane %v7783_v61, %v25261_v19  ;;  %v7720_v61 = vcombine.high %v25772_v3, %v25771_v13  ;;  %v25786_v13 = vcombine.high %v25779_v36, %v25780_v27 }
 0x641   :  { %v20035_v41 = vpop.permute.xlu1 %10721 }
 0x642   :  { %10963 = vrot.lane.b32.xlu0 %v7682_v44, %s23817_s22  ;;  %v20039_v16 = vpop.permute.xlu0 %10739  ;;  %v25776_v44 = vld [vmem:[#allocation291_spill] sm:$0xff]  ;;  %v7734_v40 = vrot.slane %v7720_v61, %v12858_v10  ;;  %v7766_v3 = vrot.slane %v25786_v13, %v25261_v19 }
 0x643   :  { %v25777_v42 = vcombine.low %v25775_v62, %v25776_v44  ;;  %v25778_v0 = vcombine.high %v25775_v62, %v25776_v44 }
 0x644   :  { %10953 = vrot.lane.b32.xlu1 %v25770_v15, %s12814_s21  ;;  %v7736_v15 = vcombine.high %v25767_v9, %v25766_v46  ;;  %v25785_v9 = vcombine.high %v25782_v18, %v25783_v50  ;;  %v7818_v18 = vcombine.high %v7766_v3, %v7798_v51  ;;  %v25793_v50 = vld [vmem:[#allocation390_spill] sm:$0xff] }
 0x645   :  { %v20048_v39 = vpop.permute.xlu1 %10729 }
 0x646   :  { %10971 = vrot.lane.b32.xlu0 %v7683_v31, %s12816_s23  ;;  %v20051_v55 = vpop.permute.xlu0 %10747  ;;  %v25781_v31 = vcombine.low %v25779_v36, %v25780_v27  ;;  %v7750_v62 = vrot.slane %v7736_v15, %v12858_v10 }
 0x648   :  { %10961 = vrot.lane.b32.xlu1 %v25773_v20, %s23817_s22  ;;  %v7759_v47 = vrot.slane %v25781_v31, %v25261_v19  ;;  %v25788_v31 = vld [vmem:[#allocation98_spill] sm:$0xff]  ;;  %v7800_v13 = vcombine.high %v7734_v40, %v7750_v62 }
 0x649   :  { %v20064_v57 = vpop.permute.xlu1 %10737 }
 0x64a   :  { %10979 = vrot.lane.b32.xlu0 %v7684_v43, %s12817_s24  ;;  %v20066_v8 = vpop.permute.xlu0 %10755  ;;  %v7815_v20 = vcombine.low %v7759_v47, %v7791_v30  ;;  %v7816_v46 = vcombine.high %v7759_v47, %v7791_v30  ;;  %v7817_v30 = vcombine.low %v7766_v3, %v7798_v51  ;;  %v25789_v47 = vld [vmem:[#allocation258_spill] sm:$0xff] }
 0x64b   :  { %v25790_v15 = vcombine.low %v25788_v31, %v25789_v47  ;;  %v25792_v36 = vcombine.high %v25788_v31, %v25789_v47  ;;  %v25799_v31 = vld [vmem:[#allocation24_spill] sm:$0xff] }
 0x64c   :  { %10969 = vrot.lane.b32.xlu1 %v25777_v42, %s12816_s23  ;;  %v25800_v47 = vld [vmem:[#allocation284_spill] sm:$0xff] }
 0x64d   :  { %v20073_v24 = vpop.permute.xlu1 %10745  ;;  %v25805_v35 = vcombine.high %v25799_v31, %v25800_v47 }
 0x64e   :  { %10987 = vrot.lane.b32.xlu0 %v7685_v11, %s12818_s25  ;;  %v20075_v4 = vpop.permute.xlu0 %10763 }
 0x650   :  { %10977 = vrot.lane.b32.xlu1 %v25778_v0, %s12817_s24 }
 0x651   :  { %v20087_v54 = vpop.permute.xlu1 %10753 }
 0x652   :  { %10995 = vrot.lane.b32.xlu0 %v7686_v12, %s23813_s26  ;;  %v20091_v43 = vpop.permute.xlu0 %10771  ;;  %v7799_v12 = vcombine.low %v7734_v40, %v7750_v62 }
 0x654   :  { %10985 = vrot.lane.b32.xlu1 %v25784_v17, %s12818_s25  ;;  %v7807_v27 = vrot.slane %v7799_v12, %v25261_v19  ;;  %v25794_v17 = vld [vmem:[#allocation119_spill] sm:$0xff]  ;;  %v25801_v12 = vcombine.low %v25799_v31, %v25800_v47  ;;  %v25811_v47 = vld [vmem:[#allocation56_spill] sm:$0xff] }
 0x655   :  { %v20100_v11 = vpop.permute.xlu1 %10761  ;;  %v25795_v61 = vcombine.low %v25793_v50, %v25794_v17 }
 0x656   :  { %11003 = vrot.lane.b32.xlu0 %v7815_v20, %s12802_s10  ;;  %v20103_v44 = vpop.permute.xlu0 %10779 }
 0x658   :  { %10993 = vrot.lane.b32.xlu1 %v25785_v9, %s23813_s26 }
 0x659   :  { %v20116_v42 = vpop.permute.xlu1 %10769 }
 0x65a   :  { %11011 = vrot.lane.b32.xlu0 %v7816_v46, %s12820_s27  ;;  %25787 = vst [vmem:[#allocation245_spill] sm:$0xff] %v20116_v42  ;;  %v20118_v0 = vpop.permute.xlu0 %10787  ;;  %v7775_v46 = vrot.slane %v25795_v61, %v25261_v19  ;;  %v25812_v42 = vld [vmem:[#allocation134_spill] sm:$0xff] }
 0x65c   :  { %11001 = vrot.lane.b32.xlu1 %v25790_v15, %s12802_s10  ;;  %v25798_v15 = vld [vmem:[#allocation442_spill] sm:$0xff]  ;;  %v7819_v56 = vcombine.low %v7775_v46, %v7807_v27  ;;  %v7820_v29 = vcombine.high %v7775_v46, %v7807_v27  ;;  %v25807_v27 = vld [vmem:[#allocation467_spill] sm:$0xff] }
 0x65d   :  { %v20125_v1 = vpop.permute.xlu1 %10777  ;;  %v25808_v46 = vld [vmem:[#allocation466_spill] sm:$0xff] }
 0x65e   :  { %11019 = vrot.lane.b32.xlu0 %v7817_v30, %s23811_s28  ;;  %25791 = vst [vmem:[#allocation346_spill] sm:$0xff] %v20125_v1  ;;  %v20127_v20 = vpop.permute.xlu0 %10795  ;;  %v25797_v30 = vld [vmem:[#allocation474_spill] sm:$0xff]  ;;  %v25809_v1 = vcombine.low %v25807_v27, %v25808_v46 }
 0x65f   :  { %v7871_v51 = vcombine.low %v25798_v15, %v25797_v30 }
 0x660   :  { %11009 = vrot.lane.b32.xlu1 %v25792_v36, %s12820_s27  ;;  %v25803_v36 = vld [vmem:[#allocation416_spill] sm:$0xff]  ;;  %v12275_v31 = vsel %vm12119_vm0, %v25809_v1, %v19867_v28 }
 0x661   :  { %v20139_v9 = vpop.permute.xlu1 %10785  ;;  %v7879_v62 = vrot.slane %v7871_v51, %v12858_v10 }
 0x662   :  { %11027 = vrot.lane.b32.xlu0 %v7818_v18, %s12822_s29  ;;  %25796 = vst [vmem:[#allocation350_spill] sm:$0xff] %v20139_v9  ;;  %v20143_v3 = vpop.permute.xlu0 %10803  ;;  %v25802_v18 = vld [vmem:[#allocation461_spill] sm:$0xff]  ;;  %v7814_v9 = vrot.slane %v7800_v13, %v25261_v19  ;;  %v12277_v13 = vsel %vm25810_vm8, %v12275_v31, %v19881_v23 }
 0x663   :  { %v7855_v52 = vcombine.low %v25803_v36, %v25802_v18  ;;  %v25819_v31 = vld [vmem:[#allocation93_spill] sm:$0xff] }
 0x664   :  { %11017 = vrot.lane.b32.xlu1 %v25801_v12, %s23811_s28 }
 0x665   :  { %v20152_v61 = vpop.permute.xlu1 %10793  ;;  %v7863_v12 = vrot.slane %v7855_v52, %v12858_v10 }
 0x666   :  { %11035 = vrot.lane.b32.xlu0 %v7819_v56, %s12823_s30  ;;  %25804 = vst [vmem:[#allocation425_spill] sm:$0xff] %v20152_v61  ;;  %v20155_v40 = vpop.permute.xlu0 %10811  ;;  %v25806_v56 = vcombine.high %v25793_v50, %v25794_v17  ;;  %v25813_v50 = vcombine.low %v25811_v47, %v25812_v42  ;;  %v12279_v17 = vsel %vm25814_vm1, %v12277_v13, %v19893_v2  ;;  %v25820_v13 = vld [vmem:[#allocation113_spill] sm:$0xff]  ;;  %vm25826_vm1 = vcmask 261120  }
 0x667   :  { %v25818_v2 = vcombine.high %v25811_v47, %v25812_v42 }
 0x668   :  { %11025 = vrot.lane.b32.xlu1 %v25805_v35, %s12822_s29  ;;  %v7782_v61 = vrot.slane %v25806_v56, %v25261_v19  ;;  %v7919_v35 = vcombine.low %v7863_v12, %v7879_v62  ;;  %v12281_v56 = vsel %vm25815_vm3, %v12279_v17, %v19910_v22  ;;  %v25824_v17 = vld [vmem:[#allocation395_spill] sm:$0xff]  ;;  %vm25828_vm3 = vcmask 97280  }
 0x669   :  { %v20168_v51 = vpop.permute.xlu1 %10801  ;;  %v12283_v23 = vsel %vm25816_vm6, %v12281_v56, %v19919_v49  ;;  %vm25829_vm6 = vcmask 293888  }
 0x66a   :  { %11043 = vrot.lane.b32.xlu0 %v7820_v29, %s23807_s2  ;;  %v20177_v52 = vpop.permute.xlu0 %10819  ;;  %v7821_v29 = vcombine.low %v7782_v61, %v7814_v9  ;;  %v12285_v1 = vsel %vm25817_vm5, %v12283_v23, %v19935_v6  ;;  %v7822_v46 = vcombine.high %v7782_v61, %v7814_v9  ;;  %v7927_v22 = vrot.slane %v7919_v35, %v25261_v19  ;;  %v25823_v6 = vld [vmem:[#allocation397_spill] sm:$0xff] }
 0x66b   :  { %v12287_v49 = vsel %vm25822_vm2, %v12285_v1, %v19947_v5  ;;  %v25825_v9 = vcombine.low %v25823_v6, %v25824_v17  ;;  %v7920_v23 = vcombine.high %v7863_v12, %v7879_v62  ;;  %vm25830_vm5 = vcmask 130048  }
 0x66c   :  { %11033 = vrot.lane.b32.xlu1 %v25813_v50, %s12823_s30  ;;  %v12289_v35 = vsel %vm25826_vm1, %v12287_v49, %v19962_v59  ;;  %vm25831_vm2 = vcmask 326656   ;;  %vm25836_vm1 = vcmask 359424  }
 0x66d   :  { %v20188_v28 = vpop.permute.xlu1 %10809  ;;  %v7895_v61 = vrot.slane %v25825_v9, %v25261_v19  ;;  %v12291_v56 = vsel %vm25829_vm6, %v12289_v35, %v19971_v37  ;;  %vm25838_vm6 = vcmask 392192   ;;  %v25854_v35 = vld [vmem:[#allocation293_spill] sm:$0xff] }
 0x66e   :  { %11051 = vrot.lane.b32.xlu0 %v7821_v29, %s12825_s3  ;;  %v20194_v27 = vpop.permute.xlu0 %10827  ;;  %v25821_v29 = vcombine.low %v25819_v31, %v25820_v13  ;;  %v12293_v59 = vsel %vm25831_vm2, %v12291_v56, %v19987_v45  ;;  %v25833_v31 = vld [vmem:[#allocation162_spill] sm:$0xff]  ;;  %vm25840_vm2 = vcmask 424960  }
 0x66f   :  { %v12295_v37 = vsel %vm25836_vm1, %v12293_v59, %v19999_v25  ;;  %vm25842_vm1 = vcmask 457728  }
 0x670   :  { %11041 = vrot.lane.b32.xlu1 %v25818_v2, %s23807_s2  ;;  %v12274_v50 = vsel %vm12119_vm0, %v25821_v29, %v19890_v48  ;;  %s25827_s2 = smov 92   ;;  %v7872_v48 = vcombine.high %v25798_v15, %v25797_v30  ;;  %v25832_v2 = vld [vmem:[#allocation99_spill] sm:$0xff]  ;;  %v7856_v30 = vcombine.high %v25803_v36, %v25802_v18  ;;  %v12297_v45 = vsel %vm25838_vm6, %v12295_v37, %v20014_v63 }
 0x671   :  { %v12276_v42 = vsel %vm25810_vm8, %v12274_v50, %v19908_v58  ;;  %v25834_v13 = vcombine.low %v25832_v2, %v25833_v31  ;;  %vm25835_vm8 = vcmask 162816   ;;  %v12299_v25 = vsel %vm25840_vm2, %v12297_v45, %v20023_v7  ;;  %v25871_v45 = vld [vmem:[#allocation350_spill] sm:$0xff] }
 0x672   :  { %11059 = vrot.lane.b32.xlu0 %v7822_v46, %s25827_s2  ;;  %v20217_v47 = vpop.permute.xlu1 %10817  ;;  %v12278_v5 = vsel %vm25828_vm3, %v12276_v42, %v19917_v32  ;;  %v10836_v1 = vpop.permute.xlu0 %10835  ;;  %v7951_v46 = vcombine.low %v7895_v61, %v7927_v22  ;;  %vm25837_vm3 = vcmask 195584   ;;  %v20247_v62 = vrot.slane %v7872_v48, %v12858_v10 }
 0x673   :  { %v12280_v58 = vsel %vm25830_vm5, %v12278_v5, %v19931_v14  ;;  %vm25839_vm5 = vcmask 228352   ;;  %v7952_v36 = vcombine.high %v7895_v61, %v7927_v22  ;;  %v25843_v12 = vcombine.high %v25832_v2, %v25833_v31  ;;  %v25867_v31 = vld [vmem:[#allocation245_spill] sm:$0xff] }
 0x674   :  { %11049 = vrot.lane.b32.xlu1 %v25834_v13, %s12825_s3  ;;  %v12282_v32 = vsel %vm25835_vm8, %v12280_v58, %v19944_v26  ;;  %vm25841_vm8 = vcmask 261120   ;;  %v7934_v29 = vrot.slane %v7920_v23, %v25261_v19  ;;  %vm25845_vm6 = vcmask 490496  }
 0x675   :  { %v12284_v14 = vsel %vm25837_vm3, %v12282_v32, %v19960_v53  ;;  %v12301_v53 = vsel %vm25842_vm1, %v12299_v25, %v20039_v16  ;;  %vm25844_vm3 = vcmask 293888   ;;  %v7870_v22 = vrot.slane %v7856_v30, %v12858_v10  ;;  %v25869_v30 = vld [vmem:[#allocation346_spill] sm:$0xff] }
 0x676   :  { %11067 = vrot.lane.b32.xlu0 %v7951_v46, %s12827_s5  ;;  %v20244_v15 = vpop.permute.xlu1 %10825  ;;  %v12286_v26 = vsel %vm25839_vm5, %v12284_v14, %v19969_v60  ;;  %v10844_v63 = vpop.permute.xlu0 %10843  ;;  %v12303_v7 = vsel %vm25845_vm6, %v12301_v53, %v20051_v55  ;;  %vm25847_vm5 = vcmask 326656   ;;  %vm25848_vm2 = vcmask 523264   ;;  %v25865_v46 = vld [vmem:[#allocation396_spill] sm:$0xff] }
 0x677   :  { %v12288_v18 = vsel %vm25841_vm8, %v12286_v26, %v19983_v34  ;;  %v25846_v34 = vcombine.high %v25823_v6, %v25824_v17  ;;  %v12305_v49 = vsel %vm25848_vm2, %v12303_v7, %v20066_v8  ;;  %vm25849_vm8 = vcmask 359424   ;;  %v25853_v8 = vld [vmem:[#allocation26_spill] sm:$0xff] }
 0x678   :  { %11057 = vrot.lane.b32.xlu1 %v25843_v12, %s25827_s2  ;;  %v12290_v60 = vsel %vm25844_vm3, %v12288_v18, %v19996_v33  ;;  %vm25850_vm1 = vcmask 556032   ;;  %v7935_v6 = vcombine.low %v7870_v22, %v20247_v62  ;;  %vm25851_vm3 = vcmask 392192  }
 0x679   :  { %v7902_v16 = vrot.slane %v25846_v34, %v25261_v19  ;;  %v12292_v50 = vsel %vm25847_vm5, %v12290_v60, %v20012_v21  ;;  %v12307_v55 = vsel %vm25850_vm1, %v12305_v49, %v20075_v4  ;;  %vm25852_vm6 = vcmask 588800  }
 0x67a   :  { %11075 = vrot.lane.b32.xlu0 %v7952_v36, %s25678_s4  ;;  %v10834_v9 = vpop.permute.xlu1 %10833  ;;  %v12294_v33 = vsel %vm25849_vm8, %v12292_v50, %v20021_v38  ;;  %v12309_v21 = vsel %vm25852_vm6, %v12307_v55, %v20091_v43  ;;  %v25855_v48 = vcombine.low %v25853_v8, %v25854_v35  ;;  %vm25856_vm5 = vcmask 424960   ;;  %v25873_v36 = vld [vmem:[#allocation294_spill] sm:$0xff] }
 0x67b   :  { %v12296_v17 = vsel %vm25851_vm3, %v12294_v33, %v20035_v41  ;;  %v7953_v42 = vcombine.low %v7902_v16, %v7934_v29  ;;  %vm25857_vm2 = vcmask 621568   ;;  %vm25858_vm8 = vcmask 457728  }
 0x67c   :  { %v10852_v61 = vpop.permute.xlu0 %10851  ;;  %11065 = vrot.lane.b32.xlu1 %v25855_v48, %s12827_s5  ;;  %v12298_v38 = vsel %vm25856_vm5, %v12296_v17, %v20048_v39  ;;  %v12311_v4 = vsel %vm25857_vm2, %v12309_v21, %v20103_v44  ;;  %vm25859_vm1 = vcmask 654336   ;;  %vm25860_vm3 = vcmask 490496   ;;  %v25881_v48 = vld [vmem:[#allocation296_spill] sm:$0xff] }
 0x67d   :  { %v12300_v5 = vsel %vm25858_vm8, %v12298_v38, %v20064_v57  ;;  %v12313_v41 = vsel %vm25859_vm1, %v12311_v4, %v20118_v0  ;;  %vm25861_vm6 = vcmask 523264   ;;  %v7954_v57 = vcombine.high %v7902_v16, %v7934_v29  ;;  %v25875_v29 = vld [vmem:[#allocation425_spill] sm:$0xff] }
 0x67e   :  { %11083 = vrot.lane.b32.xlu0 %v7953_v42, %s12829_s7  ;;  %v10842_v43 = vpop.permute.xlu1 %10841  ;;  %v12302_v56 = vsel %vm25860_vm3, %v12300_v5, %v20073_v24  ;;  %v12315_v23 = vsel %vm12179_vm9, %v12313_v41, %v20127_v20  ;;  %v25862_v0 = vcombine.high %v25853_v8, %v25854_v35  ;;  %v7943_v59 = vrot.slane %v7935_v6, %v25261_v19  ;;  %v25880_v35 = vld [vmem:[#allocation112_spill] sm:$0xff] }
 0x67f   :  { %v12304_v39 = vsel %vm25861_vm6, %v12302_v56, %v20087_v54  ;;  %v12317_v44 = vsel %vm12182_vm10, %v12315_v23, %v20143_v3  ;;  %vm25863_vm5 = vcmask 556032   ;;  %v25864_v54 = vld [vmem:[#allocation398_spill] sm:$0xff]  ;;  %vm25868_vm2 = vcmask 588800   ;;  %v25886_v56 = vld [vmem:[#allocation417_spill] sm:$0xff] }
 0x680   :  { %v10860_v58 = vpop.permute.xlu0 %10859  ;;  %11073 = vrot.lane.b32.xlu1 %v25862_v0, %s25678_s4  ;;  %v12306_v24 = vsel %vm25863_vm5, %v12304_v39, %v20100_v11  ;;  %v12319_v20 = vsel %vm12185_vm11, %v12317_v44, %v20155_v40  ;;  %v25866_v2 = vcombine.low %v25864_v54, %v25865_v46  ;;  %vm25870_vm8 = vcmask 621568   ;;  %v25887_v39 = vld [vmem:[#allocation472_spill] sm:$0xff] }
 0x681   :  { %v12308_v13 = vsel %vm25868_vm2, %v12306_v24, %v25867_v31  ;;  %v12321_v32 = vsel %vm12188_vm12, %v12319_v20, %v20177_v52  ;;  %v7936_v14 = vcombine.high %v7870_v22, %v20247_v62  ;;  %v25872_v52 = vld [vmem:[#allocation44_spill] sm:$0xff]  ;;  %vm25876_vm3 = vcmask 982016   ;;  %v25891_v20 = vld [vmem:[#allocation377_spill] sm:$0xff]  ;;  %v25892_v31 = vld [vmem:[#allocation475_spill] sm:$0xff] }
 0x682   :  { %v7911_v3 = vrot.slane %v25866_v2, %v25261_v19  ;;  %11091 = vrot.lane.b32.xlu0 %v7954_v57, %s12830_s8  ;;  %v10850_v37 = vpop.permute.xlu1 %10849  ;;  %v12310_v11 = vsel %vm25870_vm8, %v12308_v13, %v25869_v30  ;;  %v12323_v40 = vsel %vm12191_vm13, %v12321_v32, %v20194_v27  ;;  %v25874_v12 = vcombine.low %v25872_v52, %v25873_v36  ;;  %vm25883_vm5 = vmmov %vm25876_vm3  ;;  %v25888_v44 = vld [vmem:[#allocation180_spill] sm:$0xff]  ;;  %v25893_v13 = vld [vmem:[#allocation181_spill] sm:$0xff] }
 0x683   :  { %v12312_v26 = vsel %vm25859_vm1, %v12310_v11, %v25871_v45  ;;  %v12325_v25 = vsel %vm12194_vm14, %v12323_v40, %v10836_v1  ;;  %v7950_v33 = vrot.slane %v7936_v14, %v25261_v19  ;;  %vm25878_vm6 = vcmask 1014784   ;;  %v25890_v24 = vld [vmem:[#allocation444_spill] sm:$0xff]  ;;  %v25895_v30 = vld [vmem:[#allocation298_spill] sm:$0xff] }
 0x684   :  { %v10868_v18 = vpop.permute.xlu0 %10867  ;;  %v7955_v53 = vcombine.low %v7911_v3, %v7943_v59  ;;  %11081 = vrot.lane.b32.xlu1 %v25874_v12, %s12829_s7  ;;  %v12314_v60 = vsel %vm12179_vm9, %v12312_v26, %v25875_v29  ;;  %v12327_v7 = vsel %vm23825_vm15, %v12325_v25, %v10844_v63  ;;  %v7956_v63 = vcombine.high %v7911_v3, %v7943_v59  ;;  %vm25884_vm2 = vmmov %vm25878_vm6  ;;  %v25897_v14 = vld [vmem:[#allocation206_spill] sm:$0xff]  ;;  %v25898_v45 = vld [vmem:[#allocation124_spill] sm:$0xff] }
 0x685   :  { %v12316_v27 = vsel %vm12182_vm10, %v12314_v60, %v20168_v51  ;;  %v12329_v62 = vsel %vm23824_vm4, %v12327_v7, %v10852_v61  ;;  %v25877_v51 = vcombine.high %v25872_v52, %v25873_v36  ;;  %v25882_v38 = vcombine.low %v25880_v35, %v25881_v48  ;;  %v25904_v60 = vld [vmem:[#allocation57_spill] sm:$0xff]  ;;  %v25905_v7 = vld [vmem:[#allocation59_spill] sm:$0xff] }
 0x686   :  { %11099 = vrot.lane.b32.xlu0 %v7955_v53, %s25546_s6  ;;  %v10858_v1 = vpop.permute.xlu1 %10857  ;;  %v12318_v34 = vsel %vm12185_vm11, %v12316_v27, %v20188_v28  ;;  %v12331_v16 = vsel %vm23823_vm7, %v12329_v62, %v10860_v58  ;;  %v8056_v58 = vcombine.high %v25888_v44, %v25887_v39  ;;  %v25889_v59 = vcombine.high %v25880_v35, %v25881_v48  ;;  %v25902_v53 = vld [vmem:[#allocation260_spill] sm:$0xff] }
 0x687   :  { %v12320_v22 = vsel %vm12188_vm12, %v12318_v34, %v20217_v47  ;;  %v12333_v50 = vsel %vm25876_vm3, %v12331_v16, %v10868_v18  ;;  %v25879_v47 = vcombine.high %v25864_v54, %v25865_v46  ;;  %v7992_v54 = vcombine.high %v25891_v20, %v25890_v24  ;;  %v25901_v18 = vld [vmem:[#allocation259_spill] sm:$0xff] }
 0x688   :  { %v10876_v49 = vpop.permute.xlu0 %10875  ;;  %11089 = vrot.lane.b32.xlu1 %v25877_v51, %s12830_s8  ;;  %v12322_v55 = vsel %vm12191_vm13, %v12320_v22, %v20244_v15  ;;  %v8088_v32 = vcombine.high %v25893_v13, %v25892_v31  ;;  %v8070_v40 = vrot.slane %v8056_v58, %v25261_v19  ;;  %v25899_v26 = vcombine.low %v25897_v14, %v25898_v45 }
 0x689   :  { %v12335_v28 = vsel %vm25878_vm6, %v12333_v50, %v10876_v49  ;;  %v7918_v6 = vrot.slane %v25879_v47, %v25261_v19  ;;  %v12324_v17 = vsel %vm12194_vm14, %v12322_v55, %v10834_v9  ;;  %v25903_v52 = vcombine.high %v25901_v18, %v25902_v53  ;;  %v25909_v55 = vld [vmem:[#allocation329_spill] sm:$0xff] }
 0x68a   :  { %12656 = vst [vmem:[#allocation5 + $0x50] sm:$0xff] %v12335_v28  ;;  %11107 = vrot.lane.b32.xlu0 %v7956_v63, %s12832_s12  ;;  %v10866_v21 = vpop.permute.xlu1 %10865  ;;  %v12326_v61 = vsel %vm23825_vm15, %v12324_v17, %v10842_v43  ;;  %v25885_v43 = vld [vmem:[#allocation62_spill] sm:$0xff]  ;;  %v20404_v25 = vrot.slane %v25899_v26, %v25261_v19  ;;  %v8006_v12 = vrot.slane %v7992_v54, %v12858_v10  ;;  %vm25984_vm8 = vcmask 64512  }
 0x68b   :  { %v12328_v42 = vsel %vm23824_vm4, %v12326_v61, %v10850_v37  ;;  %v7957_v15 = vcombine.low %v7918_v6, %v7950_v33  ;;  %v8008_v23 = vcombine.high %v25886_v56, %v25885_v43  ;;  %v7958_v0 = vcombine.high %v7918_v6, %v7950_v33  ;;  %v25894_v37 = vld [vmem:[#allocation55_spill] sm:$0xff]  ;;  %v25910_v28 = vld [vmem:[#allocation122_spill] sm:$0xff] }
 0x68c   :  { %v20365_v8 = vpop.permute.xlu0 %10883  ;;  %11097 = vrot.lane.b32.xlu1 %v25882_v38, %s25546_s6  ;;  %v12330_v4 = vsel %vm23823_vm7, %v12328_v42, %v10858_v1  ;;  %v25896_v11 = vcombine.low %v25894_v37, %v25895_v30  ;;  %25900 = vst [vmem:[#allocation84_spill] sm:$0xff] %v20404_v25  ;;  %v8038_v36 = vrot.slane %v25903_v52, %v25261_v19  ;;  %v25912_v61 = vld [vmem:[#allocation215_spill] sm:$0xff]  ;;  %v25913_v42 = vld [vmem:[#allocation418_spill] sm:$0xff]  ;;  %v25914_v38 = vld [vmem:[#allocation164_spill] sm:$0xff]  ;;  %vm25988_vm1 = vcmask 97280  }
 0x68d   :  { %v12332_v9 = vsel %vm25883_vm5, %v12330_v4, %v10866_v21  ;;  %v8022_v2 = vrot.slane %v8008_v23, %v12858_v10  ;;  %v25906_v27 = vcombine.low %v25904_v60, %v25905_v7  ;;  %v25908_v22 = vcombine.high %v25894_v37, %v25895_v30  ;;  %v25915_v4 = vld [vmem:[#allocation138_spill] sm:$0xff]  ;;  %v25921_v30 = vld [vmem:[#allocation165_spill] sm:$0xff] }
 0x68e   :  { %11115 = vrot.lane.b32.xlu0 %v7957_v15, %s12833_s9  ;;  %v10874_v5 = vpop.permute.xlu1 %10873  ;;  %v8089_v16 = vcombine.low %v8038_v36, %v8070_v40  ;;  %v8090_v51 = vcombine.high %v8038_v36, %v8070_v40  ;;  %v25911_v47 = vcombine.low %v25909_v55, %v25910_v28  ;;  %v8143_v15 = vcombine.low %v25913_v42, %v25912_v61  ;;  %v25925_v52 = vld [vmem:[#allocation330_spill] sm:$0xff]  ;;  %v25926_v36 = vld [vmem:[#allocation269_spill] sm:$0xff] }
 0x68f   :  { %v12334_v41 = vsel %vm25884_vm2, %v12332_v9, %v10874_v5  ;;  %v20418_v62 = vrot.slane %v25906_v27, %v25261_v19  ;;  %v8071_v1 = vcombine.low %v8006_v12, %v8022_v2  ;;  %v8072_v21 = vcombine.high %v8006_v12, %v8022_v2  ;;  %v25917_v5 = vld [vmem:[#allocation445_spill] sm:$0xff] }
 0x690   :  { %v20379_v57 = vpop.permute.xlu0 %10891  ;;  %12648 = vst [vmem:[#allocation5 + $0x10] sm:$0xff] %v12334_v41  ;;  %11105 = vrot.lane.b32.xlu1 %v25889_v59, %s12832_s12  ;;  %v8047_v6 = vrot.slane %v25911_v47, %v25261_v19  ;;  %v25916_v9 = vcombine.low %v25914_v38, %v25915_v4  ;;  %v25918_v41 = vld [vmem:[#allocation324_spill] sm:$0xff]  ;;  %v8151_v23 = vrot.slane %v8143_v15, %v12858_v10  ;;  %vm25989_vm3 = vcmask 130048  }
 0x691   :  { %25907 = vst [vmem:[#allocation107_spill] sm:$0xff] %v20418_v62  ;;  %v3736_v49 = vcombine.high %v20418_v62, %v20404_v25  ;;  %v8079_v33 = vrot.slane %v8071_v1, %v25261_v19  ;;  %v8127_v43 = vcombine.low %v25918_v41, %v25917_v5  ;;  %v25919_v58 = vcombine.high %v25914_v38, %v25915_v4  ;;  %v25976_v25 = vld [vmem:[#allocation382_spill] sm:$0xff] }
 0x692   :  { %11123 = vrot.lane.b32.xlu0 %v7958_v0, %s12834_s11  ;;  %v20388_v46 = vpop.permute.xlu1 %10881  ;;  %v8086_v0 = vrot.slane %v8072_v21, %v25261_v19  ;;  %v25920_v59 = vcombine.high %v25909_v55, %v25910_v28  ;;  %v25927_v12 = vcombine.low %v25925_v52, %v25926_v36  ;;  %v8144_v27 = vcombine.high %v25913_v42, %v25912_v61 }
 0x693   :  { %v8091_v48 = vcombine.low %v8047_v6, %v8079_v33  ;;  %v8092_v44 = vcombine.high %v8047_v6, %v8079_v33  ;;  %v8135_v20 = vrot.slane %v8127_v43, %v12858_v10  ;;  %v8128_v55 = vcombine.high %v25918_v41, %v25917_v5  ;;  %v25933_v43 = vld [vmem:[#allocation168_spill] sm:$0xff] }
 0x694   :  { %v20391_v3 = vpop.permute.xlu0 %10899  ;;  %11113 = vrot.lane.b32.xlu1 %v25896_v11, %s12833_s9  ;;  %v8054_v24 = vrot.slane %v25920_v59, %v25261_v19  ;;  %v25922_v11 = vld [vmem:[#allocation213_spill] sm:$0xff]  ;;  %v8167_v60 = vrot.slane %v25927_v12, %v25261_v19  ;;  %v8158_v47 = vrot.slane %v8144_v27, %v12858_v10  ;;  %v25932_v15 = vcombine.high %v25925_v52, %v25926_v36  ;;  %v25943_v27 = vld [vmem:[#allocation218_spill] sm:$0xff] }
 0x695   :  { %v8191_v2 = vcombine.low %v8135_v20, %v8151_v23  ;;  %v25923_v40 = vcombine.low %v25921_v30, %v25922_v11  ;;  %v25924_v18 = vcombine.high %v25921_v30, %v25922_v11  ;;  %v8192_v1 = vcombine.high %v8135_v20, %v8151_v23  ;;  %v25934_v23 = vld [vmem:[#allocation217_spill] sm:$0xff] }
 0x696   :  { %11131 = vrot.lane.b32.xlu0 %v8088_v32, %s12805_s0  ;;  %v20412_v29 = vpop.permute.xlu1 %10889  ;;  %v8093_v37 = vcombine.low %v8054_v24, %v8086_v0  ;;  %v8094_v26 = vcombine.high %v8054_v24, %v8086_v0  ;;  %v8142_v38 = vrot.slane %v8128_v55, %v12858_v10  ;;  %v25936_v24 = vcombine.high %v25933_v43, %v25934_v23 }
 0x697   :  { %v8199_v53 = vrot.slane %v8191_v2, %v25261_v19  ;;  %v8206_v42 = vrot.slane %v8192_v1, %v25261_v19  ;;  %v25937_v2 = vld [vmem:[#allocation331_spill] sm:$0xff]  ;;  %vm25990_vm6 = vcmask 162816   ;;  %vm25991_vm5 = vcmask 195584  }
 0x698   :  { %v20420_v34 = vpop.permute.xlu0 %10907  ;;  %11121 = vrot.lane.b32.xlu1 %v25908_v22, %s12834_s11  ;;  %vm25996_vm2 = vcmask 228352  }
 0x699   :  { %v8223_v22 = vcombine.low %v8167_v60, %v8199_v53  ;;  %v8224_v21 = vcombine.high %v8167_v60, %v8199_v53  ;;  %v25941_v53 = vld [vmem:[#allocation419_spill] sm:$0xff]  ;;  %v25942_v60 = vld [vmem:[#allocation169_spill] sm:$0xff] }
 0x69a   :  { %11139 = vrot.lane.b32.xlu0 %v8089_v16, %s12808_s15  ;;  %v20427_v50 = vpop.permute.xlu1 %10897  ;;  %v25944_v1 = vcombine.low %v25942_v60, %v25943_v27 }
 0x69c   :  { %v20431_v63 = vpop.permute.xlu0 %10915  ;;  %11129 = vrot.lane.b32.xlu1 %v3736_v49, %s12805_s0  ;;  %v25928_v49 = vld [vmem:[#allocation166_spill] sm:$0xff] }
 0x69e   :  { %11147 = vrot.lane.b32.xlu0 %v8090_v51, %s12806_s13  ;;  %v20440_v17 = vpop.permute.xlu1 %10905  ;;  %v25929_v51 = vld [vmem:[#allocation214_spill] sm:$0xff] }
 0x69f   :  { %v25930_v33 = vcombine.low %v25928_v49, %v25929_v51  ;;  %v25931_v61 = vcombine.high %v25928_v49, %v25929_v51  ;;  %v25946_v49 = vld [vmem:[#allocation312_spill] sm:$0xff] }
 0x6a0   :  { %v20444_v35 = vpop.permute.xlu0 %10923  ;;  %11137 = vrot.lane.b32.xlu1 %v25916_v9, %s12808_s15  ;;  %v8207_v9 = vcombine.low %v8142_v38, %v8158_v47 }
 0x6a2   :  { %11155 = vrot.lane.b32.xlu0 %v8091_v48, %s12807_s14  ;;  %v20453_v56 = vpop.permute.xlu1 %10913  ;;  %v8174_v48 = vrot.slane %v25932_v15, %v25261_v19  ;;  %v8215_v20 = vrot.slane %v8207_v9, %v25261_v19 }
 0x6a4   :  { %v20456_v39 = vpop.permute.xlu0 %10931  ;;  %11145 = vrot.lane.b32.xlu1 %v25919_v58, %s12806_s13  ;;  %v8225_v41 = vcombine.low %v8174_v48, %v8206_v42  ;;  %v8226_v59 = vcombine.high %v8174_v48, %v8206_v42 }
 0x6a6   :  { %11163 = vrot.lane.b32.xlu0 %v8092_v44, %s12809_s16  ;;  %v20469_v54 = vpop.permute.xlu1 %10921  ;;  %v25935_v44 = vcombine.low %v25933_v43, %v25934_v23 }
 0x6a8   :  { %v20471_v32 = vpop.permute.xlu0 %10939  ;;  %11153 = vrot.lane.b32.xlu1 %v25923_v40, %s12807_s14 }
 0x6aa   :  { %11171 = vrot.lane.b32.xlu0 %v8093_v37, %s12810_s17  ;;  %v20478_v14 = vpop.permute.xlu1 %10929  ;;  %v25938_v37 = vld [vmem:[#allocation334_spill] sm:$0xff] }
 0x6ab   :  { %v25939_v30 = vcombine.low %v25937_v2, %v25938_v37  ;;  %v25948_v15 = vcombine.high %v25937_v2, %v25938_v37 }
 0x6ac   :  { %v20480_v45 = vpop.permute.xlu0 %10947  ;;  %11161 = vrot.lane.b32.xlu1 %v25924_v18, %s12809_s16  ;;  %v25940_v18 = vld [vmem:[#allocation61_spill] sm:$0xff] }
 0x6ad   :  { %v8183_v11 = vrot.slane %v25939_v30, %v25261_v19  ;;  %v8279_v52 = vcombine.low %v25941_v53, %v25940_v18  ;;  %v8190_v48 = vrot.slane %v25948_v15, %v25261_v19  ;;  %v25957_v15 = vld [vmem:[#allocation141_spill] sm:$0xff] }
 0x6ae   :  { %11179 = vrot.lane.b32.xlu0 %v8094_v26, %s12811_s18  ;;  %v20492_v7 = vpop.permute.xlu1 %10937  ;;  %v8208_v26 = vcombine.high %v8142_v38, %v8158_v47 }
 0x6af   :  { %v8227_v12 = vcombine.low %v8183_v11, %v8215_v20  ;;  %v8287_v55 = vrot.slane %v8279_v52, %v12858_v10  ;;  %v25954_v52 = vld [vmem:[#allocation336_spill] sm:$0xff] }
 0x6b0   :  { %v20496_v16 = vpop.permute.xlu0 %10955  ;;  %11169 = vrot.lane.b32.xlu1 %v25930_v33, %s12810_s17  ;;  %v8222_v42 = vrot.slane %v8208_v26, %v25261_v19  ;;  %v25953_v26 = vld [vmem:[#allocation268_spill] sm:$0xff] }
 0x6b2   :  { %11187 = vrot.lane.b32.xlu0 %v8223_v22, %s12812_s19  ;;  %v20505_v28 = vpop.permute.xlu1 %10945  ;;  %v25945_v22 = vld [vmem:[#allocation446_spill] sm:$0xff]  ;;  %v8229_v23 = vcombine.low %v8190_v48, %v8222_v42  ;;  %v8230_v37 = vcombine.high %v8190_v48, %v8222_v42  ;;  %v25956_v42 = vld [vmem:[#allocation171_spill] sm:$0xff] }
 0x6b3   :  { %v8263_v51 = vcombine.low %v25946_v49, %v25945_v22  ;;  %v25958_v48 = vcombine.low %v25956_v42, %v25957_v15 }
 0x6b4   :  { %v20508_v6 = vpop.permute.xlu0 %10963  ;;  %11177 = vrot.lane.b32.xlu1 %v25931_v61, %s12811_s18  ;;  %v25947_v61 = vcombine.high %v25942_v60, %v25943_v27 }
 0x6b5   :  { %v8271_v38 = vrot.slane %v8263_v51, %v12858_v10 }
 0x6b6   :  { %11195 = vrot.lane.b32.xlu0 %v8224_v21, %s12813_s20  ;;  %v20521_v4 = vpop.permute.xlu1 %10953  ;;  %v8228_v21 = vcombine.high %v8183_v11, %v8215_v20 }
 0x6b7   :  { %v8328_v51 = vcombine.high %v8271_v38, %v8287_v55 }
 0x6b8   :  { %v20523_v5 = vpop.permute.xlu0 %10971  ;;  %11185 = vrot.lane.b32.xlu1 %v25935_v44, %s12812_s19  ;;  %v25949_v44 = vld [vmem:[#allocation170_spill] sm:$0xff] }
 0x6ba   :  { %11203 = vrot.lane.b32.xlu0 %v8225_v41, %s12814_s21  ;;  %v20530_v58 = vpop.permute.xlu1 %10961  ;;  %v8327_v41 = vcombine.low %v8271_v38, %v8287_v55  ;;  %v8342_v55 = vrot.slane %v8328_v51, %v25261_v19 }
 0x6bc   :  { %v20532_v0 = vpop.permute.xlu0 %10979  ;;  %11193 = vrot.lane.b32.xlu1 %v25936_v24, %s12813_s20  ;;  %v8335_v11 = vrot.slane %v8327_v41, %v25261_v19  ;;  %v8264_v41 = vcombine.high %v25946_v49, %v25945_v22  ;;  %v25960_v22 = vcombine.high %v25953_v26, %v25954_v52 }
 0x6be   :  { %11211 = vrot.lane.b32.xlu0 %v8226_v59, %s23817_s22  ;;  %v20544_v40 = vpop.permute.xlu1 %10969  ;;  %v25950_v59 = vld [vmem:[#allocation219_spill] sm:$0xff]  ;;  %v8310_v49 = vrot.slane %v25960_v22, %v25261_v19  ;;  %v8278_v38 = vrot.slane %v8264_v41, %v12858_v10 }
 0x6bf   :  { %v25951_v24 = vcombine.low %v25949_v44, %v25950_v59  ;;  %v25952_v30 = vcombine.high %v25949_v44, %v25950_v59 }
 0x6c0   :  { %v20548_v36 = vpop.permute.xlu0 %10987  ;;  %11201 = vrot.lane.b32.xlu1 %v25944_v1, %s12814_s21  ;;  %v8280_v1 = vcombine.high %v25941_v53, %v25940_v18  ;;  %v25959_v53 = vcombine.high %v25956_v42, %v25957_v15  ;;  %v25966_v15 = vld [vmem:[#allocation332_spill] sm:$0xff] }
 0x6c2   :  { %11219 = vrot.lane.b32.xlu0 %v8227_v12, %s12816_s23  ;;  %v20557_v33 = vpop.permute.xlu1 %10977  ;;  %v25955_v12 = vcombine.low %v25953_v26, %v25954_v52  ;;  %v8294_v44 = vrot.slane %v8280_v1, %v12858_v10  ;;  %v8362_v52 = vcombine.high %v8310_v49, %v8342_v55 }
 0x6c4   :  { %v20560_v47 = vpop.permute.xlu0 %10995  ;;  %11209 = vrot.lane.b32.xlu1 %v25947_v61, %s23817_s22  ;;  %v8303_v60 = vrot.slane %v25955_v12, %v25261_v19  ;;  %v25961_v12 = vld [vmem:[#allocation110_spill] sm:$0xff]  ;;  %v8344_v22 = vcombine.high %v8278_v38, %v8294_v44 }
 0x6c6   :  { %11227 = vrot.lane.b32.xlu0 %v8228_v21, %s12817_s24  ;;  %v20573_v9 = vpop.permute.xlu1 %10985  ;;  %v8359_v61 = vcombine.low %v8303_v60, %v8335_v11  ;;  %v8360_v18 = vcombine.high %v8303_v60, %v8335_v11  ;;  %v8361_v11 = vcombine.low %v8310_v49, %v8342_v55  ;;  %v25962_v60 = vld [vmem:[#allocation53_spill] sm:$0xff] }
 0x6c7   :  { %v25963_v1 = vcombine.low %v25961_v12, %v25962_v60 }
 0x6c8   :  { %v20575_v43 = vpop.permute.xlu0 %11003  ;;  %11217 = vrot.lane.b32.xlu1 %v25951_v24, %s12816_s23 }
 0x6ca   :  { %11235 = vrot.lane.b32.xlu0 %v8229_v23, %s12818_s25  ;;  %v20582_v20 = vpop.permute.xlu1 %10993 }
 0x6cc   :  { %v20584_v2 = vpop.permute.xlu0 %11011  ;;  %11225 = vrot.lane.b32.xlu1 %v25952_v30, %s12817_s24 }
 0x6ce   :  { %11243 = vrot.lane.b32.xlu0 %v8230_v37, %s23813_s26  ;;  %v20596_v27 = vpop.permute.xlu1 %11001  ;;  %v8343_v37 = vcombine.low %v8278_v38, %v8294_v44 }
 0x6d0   :  { %v20600_v21 = vpop.permute.xlu0 %11019  ;;  %11233 = vrot.lane.b32.xlu1 %v25958_v48, %s12818_s25  ;;  %v8351_v42 = vrot.slane %v8343_v37, %v25261_v19  ;;  %v25967_v48 = vld [vmem:[#allocation337_spill] sm:$0xff] }
 0x6d1   :  { %v25968_v41 = vcombine.low %v25966_v15, %v25967_v48 }
 0x6d2   :  { %11251 = vrot.lane.b32.xlu0 %v8359_v61, %s12802_s10  ;;  %v20609_v23 = vpop.permute.xlu1 %11009  ;;  %v25965_v61 = vcombine.high %v25961_v12, %v25962_v60  ;;  %v25972_v12 = vld [vmem:[#allocation174_spill] sm:$0xff]  ;;  %v25973_v60 = vld [vmem:[#allocation225_spill] sm:$0xff] }
 0x6d3   :  { %v25974_v37 = vcombine.low %v25972_v12, %v25973_v60  ;;  %v25978_v13 = vcombine.high %v25972_v12, %v25973_v60 }
 0x6d4   :  { %v20612_v59 = vpop.permute.xlu0 %11027  ;;  %11241 = vrot.lane.b32.xlu1 %v25959_v53, %s23813_s26 }
 0x6d6   :  { %11259 = vrot.lane.b32.xlu0 %v8360_v18, %s12820_s27  ;;  %v20625_v24 = vpop.permute.xlu1 %11017  ;;  %v8319_v18 = vrot.slane %v25968_v41, %v25261_v19 }
 0x6d8   :  { %v20627_v30 = vpop.permute.xlu0 %11035  ;;  %11249 = vrot.lane.b32.xlu1 %v25963_v1, %s12802_s10  ;;  %v25971_v1 = vld [vmem:[#allocation420_spill] sm:$0xff]  ;;  %v8363_v62 = vcombine.low %v8319_v18, %v8351_v42  ;;  %v8364_v41 = vcombine.high %v8319_v18, %v8351_v42  ;;  %v25981_v42 = vld [vmem:[#allocation471_spill] sm:$0xff]  ;;  %v25982_v18 = vld [vmem:[#allocation470_spill] sm:$0xff] }
 0x6da   :  { %11267 = vrot.lane.b32.xlu0 %v8361_v11, %s23811_s28  ;;  %v20634_v51 = vpop.permute.xlu1 %11025  ;;  %v25970_v11 = vld [vmem:[#allocation216_spill] sm:$0xff] }
 0x6db   :  { %25964 = vst [vmem:[#allocation131_spill] sm:$0xff] %v20634_v51  ;;  %v8415_v55 = vcombine.low %v25971_v1, %v25970_v11 }
 0x6dc   :  { %v20636_v26 = vpop.permute.xlu0 %11043  ;;  %11257 = vrot.lane.b32.xlu1 %v25965_v61, %s12820_s27  ;;  %v25975_v61 = vld [vmem:[#allocation19_spill] sm:$0xff] }
 0x6dd   :  { %v8399_v31 = vcombine.low %v25976_v25, %v25975_v61  ;;  %v8423_v44 = vrot.slane %v8415_v55, %v12858_v10 }
 0x6de   :  { %11275 = vrot.lane.b32.xlu0 %v8362_v52, %s12822_s29  ;;  %v20648_v53 = vpop.permute.xlu1 %11033 }
 0x6df   :  { %25969 = vst [vmem:[#allocation391_spill] sm:$0xff] %v20648_v53  ;;  %v8358_v53 = vrot.slane %v8344_v22, %v25261_v19 }
 0x6e0   :  { %v20652_v49 = vpop.permute.xlu0 %11051  ;;  %11265 = vrot.lane.b32.xlu1 %v25974_v37, %s23811_s28  ;;  %v25979_v37 = vcombine.high %v25966_v15, %v25967_v48  ;;  %s25980_s28 = smov 84   ;;  %v25985_v48 = vld [vmem:[#allocation175_spill] sm:$0xff] }
 0x6e2   :  { %11283 = vrot.lane.b32.xlu0 %v8363_v62, %s12823_s30  ;;  %v20661_v52 = vpop.permute.xlu1 %11041  ;;  %v8326_v51 = vrot.slane %v25979_v37, %v25261_v19  ;;  %v8407_v62 = vrot.slane %v8399_v31, %v12858_v10  ;;  %v25986_v31 = vld [vmem:[#allocation226_spill] sm:$0xff] }
 0x6e3   :  { %25977 = vst [vmem:[#allocation83_spill] sm:$0xff] %v20661_v52  ;;  %v25983_v52 = vcombine.low %v25981_v42, %v25982_v18  ;;  %v25987_v37 = vcombine.low %v25985_v48, %v25986_v31 }
 0x6e4   :  { %v20664_v38 = vpop.permute.xlu0 %11059  ;;  %11273 = vrot.lane.b32.xlu1 %v25978_v13, %s12822_s29  ;;  %v8463_v13 = vcombine.low %v8407_v62, %v8423_v44  ;;  %v8365_v15 = vcombine.low %v8326_v51, %v8358_v53 }
 0x6e5   :  { %v12337_v12 = vsel %vm12119_vm0, %v25983_v52, %v20365_v8 }
 0x6e6   :  { %11291 = vrot.lane.b32.xlu0 %v8364_v41, %s25980_s28  ;;  %v20677_v55 = vpop.permute.xlu1 %11049  ;;  %v12339_v22 = vsel %vm25984_vm8, %v12337_v12, %v20379_v57  ;;  %v8366_v12 = vcombine.high %v8326_v51, %v8358_v53 }
 0x6e7   :  { %v12341_v41 = vsel %vm25988_vm1, %v12339_v22, %v20391_v3  ;;  %v25992_v3 = vcombine.high %v25985_v48, %v25986_v31  ;;  %v25993_v22 = vld [vmem:[#allocation20_spill] sm:$0xff]  ;;  %vm26000_vm1 = vcmask 261120  }
 0x6e8   :  { %v20686_v60 = vpop.permute.xlu0 %11067  ;;  %11281 = vrot.lane.b32.xlu1 %v25987_v37, %s12823_s30  ;;  %v12343_v42 = vsel %vm25989_vm3, %v12341_v41, %v20420_v34  ;;  %v8471_v34 = vrot.slane %v8463_v13, %v25261_v19  ;;  %vm26001_vm3 = vcmask 97280  }
 0x6e9   :  { %v12345_v57 = vsel %vm25990_vm6, %v12343_v42, %v20431_v63  ;;  %v25998_v42 = vld [vmem:[#allocation275_spill] sm:$0xff]  ;;  %vm26002_vm6 = vcmask 293888  }
 0x6ea   :  { %11299 = vrot.lane.b32.xlu0 %v8365_v15, %s12825_s3  ;;  %v20697_v8 = vpop.permute.xlu1 %11057  ;;  %v12347_v52 = vsel %vm25991_vm5, %v12345_v57, %v20444_v35  ;;  %v25994_v15 = vld [vmem:[#allocation210_spill] sm:$0xff]  ;;  %v25997_v35 = vld [vmem:[#allocation333_spill] sm:$0xff]  ;;  %vm26003_vm5 = vcmask 130048  }
 0x6eb   :  { %v25995_v37 = vcombine.low %v25993_v22, %v25994_v15  ;;  %v12349_v63 = vsel %vm25996_vm2, %v12347_v52, %v20456_v39  ;;  %v25999_v51 = vcombine.low %v25997_v35, %v25998_v42  ;;  %v8464_v52 = vcombine.high %v8407_v62, %v8423_v44  ;;  %v26005_v22 = vld [vmem:[#allocation176_spill] sm:$0xff]  ;;  %v26006_v15 = vld [vmem:[#allocation227_spill] sm:$0xff] }
 0x6ec   :  { %v20703_v18 = vpop.permute.xlu0 %11075  ;;  %11289 = vrot.lane.b32.xlu1 %v25992_v3, %s25980_s28  ;;  %v12351_v13 = vsel %vm26000_vm1, %v12349_v63, %v20471_v32  ;;  %vm26004_vm2 = vcmask 326656   ;;  %vm26009_vm1 = vcmask 359424   ;;  %v26016_v62 = vcombine.high %v26005_v22, %v26006_v15 }
 0x6ed   :  { %v12336_v41 = vsel %vm12119_vm0, %v25995_v37, %v20388_v46  ;;  %v8439_v53 = vrot.slane %v25999_v51, %v25261_v19  ;;  %v8416_v46 = vcombine.high %v25971_v1, %v25970_v11  ;;  %v12353_v57 = vsel %vm26002_vm6, %v12351_v13, %v20480_v45 }
 0x6ee   :  { %v12338_v48 = vsel %vm25984_vm8, %v12336_v41, %v20412_v29  ;;  %11307 = vrot.lane.b32.xlu0 %v8366_v12, %s25827_s2  ;;  %v20726_v31 = vpop.permute.xlu1 %11065  ;;  %v12355_v32 = vsel %vm26004_vm2, %v12353_v57, %v20496_v16  ;;  %v26007_v37 = vcombine.low %v26005_v22, %v26006_v15  ;;  %vm26008_vm8 = vcmask 162816   ;;  %v26038_v22 = vld [vmem:[#allocation341_spill] sm:$0xff] }
 0x6ef   :  { %v12340_v39 = vsel %vm26001_vm3, %v12338_v48, %v20427_v50  ;;  %v8495_v12 = vcombine.low %v8439_v53, %v8471_v34  ;;  %v12357_v45 = vsel %vm26009_vm1, %v12355_v32, %v20508_v6  ;;  %v8400_v11 = vcombine.high %v25976_v25, %v25975_v61 }
 0x6f0   :  { %v12342_v29 = vsel %vm26003_vm5, %v12340_v39, %v20440_v17  ;;  %v11084_v3 = vpop.permute.xlu0 %11083  ;;  %11297 = vrot.lane.b32.xlu1 %v26007_v37, %s12825_s3  ;;  %vm26010_vm3 = vcmask 195584   ;;  %vm26011_vm6 = vcmask 392192   ;;  %v20756_v44 = vrot.slane %v8416_v46, %v12858_v10  ;;  %v26027_v46 = vld [vmem:[#allocation231_spill] sm:$0xff] }
 0x6f1   :  { %v12344_v50 = vsel %vm26008_vm8, %v12342_v29, %v20453_v56  ;;  %v12359_v16 = vsel %vm26011_vm6, %v12357_v45, %v20523_v5  ;;  %vm26012_vm5 = vcmask 228352   ;;  %vm26013_vm2 = vcmask 424960  }
 0x6f2   :  { %v12346_v17 = vsel %vm26010_vm3, %v12344_v50, %v20469_v54  ;;  %11315 = vrot.lane.b32.xlu0 %v8495_v12, %s12827_s5  ;;  %v20753_v1 = vpop.permute.xlu1 %11073  ;;  %v12361_v6 = vsel %vm26013_vm2, %v12359_v16, %v20532_v0  ;;  %vm26014_vm8 = vcmask 261120   ;;  %vm26015_vm1 = vcmask 457728   ;;  %v26043_v16 = vld [vmem:[#allocation391_spill] sm:$0xff] }
 0x6f3   :  { %v12348_v56 = vsel %vm26012_vm5, %v12346_v17, %v20478_v14  ;;  %v12363_v54 = vsel %vm26015_vm1, %v12361_v6, %v20548_v36  ;;  %v8496_v61 = vcombine.high %v8439_v53, %v8471_v34  ;;  %v8478_v41 = vrot.slane %v8464_v52, %v25261_v19 }
 0x6f4   :  { %v12350_v25 = vsel %vm26014_vm8, %v12348_v56, %v20492_v7  ;;  %v11092_v5 = vpop.permute.xlu0 %11091  ;;  %11305 = vrot.lane.b32.xlu1 %v26016_v62, %s25827_s2  ;;  %vm26017_vm3 = vcmask 293888   ;;  %vm26018_vm6 = vcmask 490496   ;;  %v26019_v7 = vcombine.high %v25997_v35, %v25998_v42  ;;  %v26047_v62 = vld [vmem:[#allocation83_spill] sm:$0xff] }
 0x6f5   :  { %v12352_v14 = vsel %vm26017_vm3, %v12350_v25, %v20505_v28  ;;  %v12365_v0 = vsel %vm26018_vm6, %v12363_v54, %v20560_v47  ;;  %v8414_v34 = vrot.slane %v8400_v11, %v12858_v10  ;;  %vm26020_vm5 = vcmask 326656   ;;  %v26041_v11 = vld [vmem:[#allocation131_spill] sm:$0xff]  ;;  %v26045_v54 = vld [vmem:[#allocation232_spill] sm:$0xff] }
 0x6f6   :  { %v8446_v36 = vrot.slane %v26019_v7, %v25261_v19  ;;  %v12354_v63 = vsel %vm26020_vm5, %v12352_v14, %v20521_v4  ;;  %vm26021_vm2 = vcmask 523264   ;;  %11323 = vrot.lane.b32.xlu0 %v8496_v61, %s25678_s4  ;;  %v11082_v53 = vpop.permute.xlu1 %11081  ;;  %vm26022_vm8 = vcmask 359424  }
 0x6f7   :  { %v12367_v51 = vsel %vm26021_vm2, %v12365_v0, %v20575_v43  ;;  %v12356_v28 = vsel %vm26022_vm8, %v12354_v63, %v20530_v58  ;;  %vm26023_vm1 = vcmask 556032   ;;  %v8479_v35 = vcombine.low %v8414_v34, %v20756_v44  ;;  %v26026_v43 = vld [vmem:[#allocation66_spill] sm:$0xff] }
 0x6f8   :  { %v12369_v47 = vsel %vm26023_vm1, %v12367_v51, %v20584_v2  ;;  %vm26024_vm3 = vcmask 392192   ;;  %vm26025_vm6 = vcmask 588800   ;;  %v11100_v48 = vpop.permute.xlu0 %11099  ;;  %v8497_v13 = vcombine.low %v8446_v36, %v8478_v41 }
 0x6f9   :  { %v12358_v42 = vsel %vm26024_vm3, %v12356_v28, %v20544_v40  ;;  %v12371_v4 = vsel %vm26025_vm6, %v12369_v47, %v20600_v21  ;;  %v26028_v39 = vcombine.low %v26026_v43, %v26027_v46  ;;  %vm26029_vm5 = vcmask 424960  }
 0x6fa   :  { %v12360_v58 = vsel %vm26029_vm5, %v12358_v42, %v20557_v33  ;;  %vm26030_vm2 = vcmask 621568   ;;  %vm26031_vm8 = vcmask 457728   ;;  %vm26032_vm1 = vcmask 654336   ;;  %11331 = vrot.lane.b32.xlu0 %v8497_v13, %s12829_s7  ;;  %v11090_v21 = vpop.permute.xlu1 %11089 }
 0x6fb   :  { %11313 = vrot.lane.b32.xlu1 %v26028_v39, %s12827_s5  ;;  %v12373_v2 = vsel %vm26030_vm2, %v12371_v4, %v20612_v59  ;;  %v12362_v57 = vsel %vm26031_vm8, %v12360_v58, %v20573_v9  ;;  %vm26033_vm3 = vcmask 490496   ;;  %vm26034_vm6 = vcmask 523264  }
 0x6fc   :  { %v12375_v40 = vsel %vm26032_vm1, %v12373_v2, %v20627_v30  ;;  %v12364_v52 = vsel %vm26033_vm3, %v12362_v57, %v20582_v20  ;;  %v11108_v32 = vpop.permute.xlu0 %11107  ;;  %v8498_v9 = vcombine.high %v8446_v36, %v8478_v41  ;;  %v26035_v30 = vcombine.high %v26026_v43, %v26027_v46  ;;  %v26052_v43 = vld [vmem:[#allocation70_spill] sm:$0xff]  ;;  %v26053_v46 = vld [vmem:[#allocation233_spill] sm:$0xff] }
 0x6fd   :  { %v12377_v29 = vsel %vm12179_vm9, %v12375_v40, %v20636_v26  ;;  %v12366_v33 = vsel %vm26034_vm6, %v12364_v52, %v20596_v27  ;;  %v8487_v12 = vrot.slane %v8479_v35, %v25261_v19  ;;  %vm26036_vm5 = vcmask 556032   ;;  %v26037_v27 = vld [vmem:[#allocation339_spill] sm:$0xff]  ;;  %v26057_v40 = vld [vmem:[#allocation172_spill] sm:$0xff] }
 0x6fe   :  { %v12379_v59 = vsel %vm12182_vm10, %v12377_v29, %v20652_v49  ;;  %v12368_v20 = vsel %vm26036_vm5, %v12366_v33, %v20609_v23  ;;  %v26039_v15 = vcombine.low %v26037_v27, %v26038_v22  ;;  %vm26040_vm2 = vcmask 588800   ;;  %11339 = vrot.lane.b32.xlu0 %v8498_v9, %s12830_s8  ;;  %v11098_v45 = vpop.permute.xlu1 %11097  ;;  %v26059_v29 = vld [vmem:[#allocation235_spill] sm:$0xff]  ;;  %v26060_v33 = vld [vmem:[#allocation476_spill] sm:$0xff] }
 0x6ff   :  { %11321 = vrot.lane.b32.xlu1 %v26035_v30, %s25678_s4  ;;  %v12381_v26 = vsel %vm12185_vm11, %v12379_v59, %v20664_v38  ;;  %v12370_v37 = vsel %vm26040_vm2, %v12368_v20, %v20625_v24  ;;  %vm26042_vm8 = vcmask 621568   ;;  %v8480_v17 = vcombine.high %v8414_v34, %v20756_v44  ;;  %v26063_v20 = vld [vmem:[#allocation328_spill] sm:$0xff] }
 0x700   :  { %v8455_v49 = vrot.slane %v26039_v15, %v25261_v19  ;;  %v12383_v50 = vsel %vm12188_vm12, %v12381_v26, %v20686_v60  ;;  %v12372_v23 = vsel %vm26042_vm8, %v12370_v37, %v26041_v11  ;;  %v11116_v24 = vpop.permute.xlu0 %11115  ;;  %v26044_v60 = vld [vmem:[#allocation177_spill] sm:$0xff]  ;;  %vm26048_vm3 = vcmask 982016   ;;  %v26065_v37 = vld [vmem:[#allocation142_spill] sm:$0xff] }
 0x701   :  { %v12385_v38 = vsel %vm12191_vm13, %v12383_v50, %v20703_v18  ;;  %v12374_v56 = vsel %vm26032_vm1, %v12372_v23, %v26043_v16  ;;  %v26046_v61 = vcombine.low %v26044_v60, %v26045_v54  ;;  %v8494_v51 = vrot.slane %v8480_v17, %v25261_v19  ;;  %vm26055_vm5 = vmmov %vm26048_vm3  ;;  %v26067_v11 = vld [vmem:[#allocation234_spill] sm:$0xff]  ;;  %v26070_v16 = vld [vmem:[#allocation220_spill] sm:$0xff] }
 0x702   :  { %v12387_v6 = vsel %vm12194_vm14, %v12385_v38, %v11084_v3  ;;  %v8499_v25 = vcombine.low %v8455_v49, %v8487_v12  ;;  %v12376_v41 = vsel %vm12179_vm9, %v12374_v56, %v26047_v62  ;;  %v11106_v3 = vpop.permute.xlu1 %11105  ;;  %vm26050_vm6 = vcmask 1014784   ;;  %v26069_v17 = vld [vmem:[#allocation18_spill] sm:$0xff] }
 0x703   :  { %11329 = vrot.lane.b32.xlu1 %v26046_v61, %s12829_s7  ;;  %v12389_v14 = vsel %vm23825_vm15, %v12387_v6, %v11092_v5  ;;  %v12378_v18 = vsel %vm12182_vm10, %v12376_v41, %v20677_v55  ;;  %v8500_v5 = vcombine.high %v8455_v49, %v8487_v12  ;;  %v26049_v55 = vcombine.high %v26044_v60, %v26045_v54  ;;  %vm26056_vm2 = vmmov %vm26050_vm6  ;;  %v26062_v12 = vld [vmem:[#allocation448_spill] sm:$0xff]  ;;  %v26076_v41 = vld [vmem:[#allocation69_spill] sm:$0xff] }
 0x704   :  { %v12391_v44 = vsel %vm23824_vm4, %v12389_v14, %v11100_v48  ;;  %11347 = vrot.lane.b32.xlu0 %v8499_v25, %s25546_s6  ;;  %v12380_v0 = vsel %vm12185_vm11, %v12378_v18, %v20697_v8  ;;  %v11124_v63 = vpop.permute.xlu0 %11123  ;;  %v26054_v39 = vcombine.low %v26052_v43, %v26053_v46  ;;  %v8600_v59 = vcombine.high %v26060_v33, %v26059_v29  ;;  %v26064_v49 = vld [vmem:[#allocation52_spill] sm:$0xff]  ;;  %v26074_v25 = vld [vmem:[#allocation342_spill] sm:$0xff]  ;;  %v26077_v14 = vld [vmem:[#allocation71_spill] sm:$0xff] }
 0x705   :  { %v12393_v7 = vsel %vm23823_vm7, %v12391_v44, %v11108_v32  ;;  %v12382_v36 = vsel %vm12188_vm12, %v12380_v0, %v20726_v31  ;;  %v26051_v31 = vcombine.high %v26037_v27, %v26038_v22  ;;  %v26061_v30 = vcombine.high %v26052_v43, %v26053_v46 }
 0x706   :  { %v12395_v34 = vsel %vm26048_vm3, %v12393_v7, %v11116_v24  ;;  %v12384_v28 = vsel %vm12191_vm13, %v12382_v36, %v20753_v1  ;;  %v11114_v42 = vpop.permute.xlu1 %11113  ;;  %v8536_v26 = vcombine.high %v26063_v20, %v26062_v12  ;;  %v8632_v50 = vcombine.high %v26065_v37, %v26064_v49  ;;  %v26073_v24 = vld [vmem:[#allocation158_spill] sm:$0xff] }
 0x707   :  { %11337 = vrot.lane.b32.xlu1 %v26049_v55, %s12830_s8  ;;  %v12397_v8 = vsel %vm26050_vm6, %v12395_v34, %v11124_v63  ;;  %v8462_v47 = vrot.slane %v26051_v31, %v25261_v19  ;;  %v12386_v35 = vsel %vm12194_vm14, %v12384_v28, %v11082_v53  ;;  %v8614_v38 = vrot.slane %v8600_v59, %v25261_v19  ;;  %v26081_v28 = vld [vmem:[#allocation159_spill] sm:$0xff] }
 0x708   :  { %12657 = vst [vmem:[#allocation5 + $0x58] sm:$0xff] %v12397_v8  ;;  %11355 = vrot.lane.b32.xlu0 %v8500_v5, %s12832_s12  ;;  %v12388_v4 = vsel %vm23825_vm15, %v12386_v35, %v11090_v21  ;;  %v20874_v13 = vpop.permute.xlu0 %11131  ;;  %v26058_v21 = vld [vmem:[#allocation421_spill] sm:$0xff]  ;;  %v26071_v56 = vcombine.low %v26069_v17, %v26070_v16  ;;  %v26075_v60 = vcombine.high %v26073_v24, %v26074_v25  ;;  %v26082_v8 = vld [vmem:[#allocation343_spill] sm:$0xff]  ;;  %vm26157_vm8 = vcmask 64512  }
 0x709   :  { %v12390_v48 = vsel %vm23824_vm4, %v12388_v4, %v11098_v45  ;;  %v8501_v1 = vcombine.low %v8462_v47, %v8494_v51  ;;  %v8552_v52 = vcombine.high %v26058_v21, %v26057_v40  ;;  %v8502_v9 = vcombine.high %v8462_v47, %v8494_v51  ;;  %v26066_v45 = vld [vmem:[#allocation178_spill] sm:$0xff]  ;;  %v26084_v4 = vld [vmem:[#allocation221_spill] sm:$0xff] }
 0x70a   :  { %v12392_v58 = vsel %vm23823_vm7, %v12390_v48, %v11106_v3  ;;  %v11122_v2 = vpop.permute.xlu1 %11121  ;;  %v26068_v23 = vcombine.low %v26066_v45, %v26067_v11  ;;  %v20913_v6 = vrot.slane %v26071_v56, %v25261_v19  ;;  %v8582_v54 = vrot.slane %v26075_v60, %v25261_v19  ;;  %v26085_v48 = vld [vmem:[#allocation422_spill] sm:$0xff]  ;;  %v26097_v60 = vld [vmem:[#allocation340_spill] sm:$0xff] }
 0x70b   :  { %11345 = vrot.lane.b32.xlu1 %v26054_v39, %s25546_s6  ;;  %v12394_v53 = vsel %vm26055_vm5, %v12392_v58, %v11114_v42  ;;  %v8566_v22 = vrot.slane %v8552_v52, %v12858_v10  ;;  %v8550_v61 = vrot.slane %v8536_v26, %v12858_v10  ;;  %v26078_v18 = vcombine.low %v26076_v41, %v26077_v14  ;;  %v26086_v39 = vld [vmem:[#allocation183_spill] sm:$0xff]  ;;  %v26087_v58 = vld [vmem:[#allocation237_spill] sm:$0xff] }
 0x70c   :  { %11363 = vrot.lane.b32.xlu0 %v8501_v1, %s12833_s9  ;;  %v12396_v57 = vsel %vm26056_vm2, %v12394_v53, %v11122_v2  ;;  %v20888_v32 = vpop.permute.xlu0 %11139  ;;  %26072 = vst [vmem:[#allocation43_spill] sm:$0xff] %v20913_v6  ;;  %v8633_v7 = vcombine.low %v8582_v54, %v8614_v38  ;;  %v26080_v36 = vcombine.high %v26066_v45, %v26067_v11  ;;  %v26089_v2 = vld [vmem:[#allocation450_spill] sm:$0xff]  ;;  %v26093_v11 = vld [vmem:[#allocation73_spill] sm:$0xff]  ;;  %vm26162_vm1 = vcmask 97280  }
 0x70d   :  { %12649 = vst [vmem:[#allocation5 + $0x18] sm:$0xff] %v12396_v57  ;;  %v20927_v44 = vrot.slane %v26078_v18, %v25261_v19  ;;  %v8615_v3 = vcombine.low %v8550_v61, %v8566_v22  ;;  %v8634_v55 = vcombine.high %v8582_v54, %v8614_v38  ;;  %v26083_v31 = vcombine.low %v26081_v28, %v26082_v8  ;;  %v26090_v57 = vld [vmem:[#allocation256_spill] sm:$0xff]  ;;  %v26098_v54 = vld [vmem:[#allocation282_spill] sm:$0xff] }
 0x70e   :  { %v20897_v27 = vpop.permute.xlu1 %11129  ;;  %v8616_v42 = vcombine.high %v8550_v61, %v8566_v22  ;;  %v8687_v1 = vcombine.low %v26085_v48, %v26084_v4  ;;  %v26088_v53 = vcombine.low %v26086_v39, %v26087_v58  ;;  %v8671_v40 = vcombine.low %v26090_v57, %v26089_v2 }
 0x70f   :  { %11353 = vrot.lane.b32.xlu1 %v26061_v30, %s12832_s12  ;;  %26079 = vst [vmem:[#allocation349_spill] sm:$0xff] %v20927_v44  ;;  %v4280_v63 = vcombine.high %v20927_v44, %v20913_v6  ;;  %v8623_v51 = vrot.slane %v8615_v3, %v25261_v19  ;;  %v8591_v47 = vrot.slane %v26083_v31, %v25261_v19  ;;  %v26149_v6 = vld [vmem:[#allocation399_spill] sm:$0xff]  ;;  %vm26163_vm3 = vcmask 130048  }
 0x710   :  { %11371 = vrot.lane.b32.xlu0 %v8502_v9, %s12834_s11  ;;  %v20900_v15 = vpop.permute.xlu0 %11147  ;;  %v8695_v52 = vrot.slane %v8687_v1, %v12858_v10  ;;  %v26091_v59 = vcombine.high %v26086_v39, %v26087_v58  ;;  %v8630_v9 = vrot.slane %v8616_v42, %v25261_v19  ;;  %v26092_v30 = vcombine.high %v26081_v28, %v26082_v8 }
 0x711   :  { %v8635_v46 = vcombine.low %v8591_v47, %v8623_v51  ;;  %v8636_v33 = vcombine.high %v8591_v47, %v8623_v51  ;;  %v8679_v20 = vrot.slane %v8671_v40, %v12858_v10  ;;  %v26099_v61 = vcombine.low %v26097_v60, %v26098_v54  ;;  %v26105_v40 = vld [vmem:[#allocation78_spill] sm:$0xff] }
 0x712   :  { %v20921_v62 = vpop.permute.xlu1 %11137  ;;  %v8598_v12 = vrot.slane %v26092_v30, %v25261_v19  ;;  %v8688_v18 = vcombine.high %v26085_v48, %v26084_v4  ;;  %v8672_v28 = vcombine.high %v26090_v57, %v26089_v2  ;;  %v26104_v1 = vcombine.high %v26097_v60, %v26098_v54 }
 0x713   :  { %11361 = vrot.lane.b32.xlu1 %v26068_v23, %s12833_s9  ;;  %v8735_v22 = vcombine.low %v8679_v20, %v8695_v52  ;;  %v26094_v23 = vld [vmem:[#allocation238_spill] sm:$0xff]  ;;  %v8711_v41 = vrot.slane %v26099_v61, %v25261_v19  ;;  %v8736_v3 = vcombine.high %v8679_v20, %v8695_v52  ;;  %v26106_v52 = vld [vmem:[#allocation241_spill] sm:$0xff]  ;;  %vm26166_vm6 = vcmask 162816  }
 0x714   :  { %11379 = vrot.lane.b32.xlu0 %v8632_v50, %s12805_s0  ;;  %v20929_v0 = vpop.permute.xlu0 %11155  ;;  %v8637_v45 = vcombine.low %v8598_v12, %v8630_v9  ;;  %v26095_v38 = vcombine.low %v26093_v11, %v26094_v23  ;;  %v8638_v56 = vcombine.high %v8598_v12, %v8630_v9  ;;  %v26096_v24 = vcombine.high %v26093_v11, %v26094_v23 }
 0x715   :  { %v8743_v25 = vrot.slane %v8735_v22, %v25261_v19  ;;  %v8702_v31 = vrot.slane %v8688_v18, %v12858_v10  ;;  %v8750_v48 = vrot.slane %v8736_v3, %v25261_v19  ;;  %v8686_v39 = vrot.slane %v8672_v28, %v12858_v10  ;;  %v26109_v22 = vld [vmem:[#allocation344_spill] sm:$0xff]  ;;  %v26115_v18 = vld [vmem:[#allocation106_spill] sm:$0xff] }
 0x716   :  { %v20936_v34 = vpop.permute.xlu1 %11145  ;;  %v26108_v12 = vcombine.high %v26105_v40, %v26106_v52  ;;  %vm26167_vm5 = vcmask 195584   ;;  %vm26169_vm2 = vcmask 228352  }
 0x717   :  { %11369 = vrot.lane.b32.xlu1 %v26080_v36, %s12834_s11  ;;  %v8767_v36 = vcombine.low %v8711_v41, %v8743_v25  ;;  %v8768_v42 = vcombine.high %v8711_v41, %v8743_v25  ;;  %v26113_v25 = vld [vmem:[#allocation424_spill] sm:$0xff] }
 0x718   :  { %11387 = vrot.lane.b32.xlu0 %v8633_v7, %s12808_s15  ;;  %v20940_v5 = vpop.permute.xlu0 %11163  ;;  %v26114_v41 = vld [vmem:[#allocation80_spill] sm:$0xff] }
 0x719   :  { %v26116_v3 = vcombine.low %v26114_v41, %v26115_v18 }
 0x71a   :  { %v20949_v35 = vpop.permute.xlu1 %11153 }
 0x71b   :  { %11377 = vrot.lane.b32.xlu1 %v4280_v63, %s12805_s0  ;;  %v26100_v63 = vld [vmem:[#allocation72_spill] sm:$0xff] }
 0x71c   :  { %11395 = vrot.lane.b32.xlu0 %v8634_v55, %s12806_s13  ;;  %v20953_v43 = vpop.permute.xlu0 %11171  ;;  %v26101_v55 = vld [vmem:[#allocation239_spill] sm:$0xff] }
 0x71d   :  { %v26102_v51 = vcombine.low %v26100_v63, %v26101_v55  ;;  %v26103_v4 = vcombine.high %v26100_v63, %v26101_v55  ;;  %v26118_v63 = vld [vmem:[#allocation318_spill] sm:$0xff] }
 0x71e   :  { %v20962_v21 = vpop.permute.xlu1 %11161 }
 0x71f   :  { %11385 = vrot.lane.b32.xlu1 %v26088_v53, %s12808_s15  ;;  %v8751_v53 = vcombine.low %v8686_v39, %v8702_v31 }
 0x720   :  { %11403 = vrot.lane.b32.xlu0 %v8635_v46, %s12807_s14  ;;  %v20965_v29 = vpop.permute.xlu0 %11179  ;;  %v8718_v46 = vrot.slane %v26104_v1, %v25261_v19 }
 0x721   :  { %v8759_v20 = vrot.slane %v8751_v53, %v25261_v19 }
 0x722   :  { %v20978_v26 = vpop.permute.xlu1 %11169  ;;  %v8769_v57 = vcombine.low %v8718_v46, %v8750_v48  ;;  %v8770_v30 = vcombine.high %v8718_v46, %v8750_v48 }
 0x723   :  { %11393 = vrot.lane.b32.xlu1 %v26091_v59, %s12806_s13 }
 0x724   :  { %11411 = vrot.lane.b32.xlu0 %v8636_v33, %s12809_s16  ;;  %v20980_v50 = vpop.permute.xlu0 %11187  ;;  %v26107_v33 = vcombine.low %v26105_v40, %v26106_v52 }
 0x726   :  { %v20987_v17 = vpop.permute.xlu1 %11177 }
 0x727   :  { %11401 = vrot.lane.b32.xlu1 %v26095_v38, %s12807_s14 }
 0x728   :  { %11419 = vrot.lane.b32.xlu0 %v8637_v45, %s12810_s17  ;;  %v20989_v16 = vpop.permute.xlu0 %11195  ;;  %v26110_v45 = vld [vmem:[#allocation133_spill] sm:$0xff] }
 0x729   :  { %v26111_v11 = vcombine.low %v26109_v22, %v26110_v45  ;;  %v26120_v1 = vcombine.high %v26109_v22, %v26110_v45 }
 0x72a   :  { %v21001_v14 = vpop.permute.xlu1 %11185 }
 0x72b   :  { %11409 = vrot.lane.b32.xlu1 %v26096_v24, %s12809_s16  ;;  %v8727_v23 = vrot.slane %v26111_v11, %v25261_v19  ;;  %v26112_v24 = vld [vmem:[#allocation335_spill] sm:$0xff]  ;;  %v8734_v46 = vrot.slane %v26120_v1, %v25261_v19  ;;  %v26129_v1 = vld [vmem:[#allocation244_spill] sm:$0xff] }
 0x72c   :  { %11427 = vrot.lane.b32.xlu0 %v8638_v56, %s12811_s18  ;;  %v21005_v7 = vpop.permute.xlu0 %11203  ;;  %v8752_v56 = vcombine.high %v8686_v39, %v8702_v31  ;;  %v8823_v60 = vcombine.low %v26113_v25, %v26112_v24 }
 0x72d   :  { %v8771_v61 = vcombine.low %v8727_v23, %v8759_v20 }
 0x72e   :  { %v21014_v8 = vpop.permute.xlu1 %11193  ;;  %v8831_v28 = vrot.slane %v8823_v60, %v12858_v10  ;;  %v8766_v48 = vrot.slane %v8752_v56, %v25261_v19  ;;  %v26125_v56 = vld [vmem:[#allocation347_spill] sm:$0xff]  ;;  %v26126_v60 = vld [vmem:[#allocation354_spill] sm:$0xff] }
 0x72f   :  { %11417 = vrot.lane.b32.xlu1 %v26102_v51, %s12810_s17 }
 0x730   :  { %11435 = vrot.lane.b32.xlu0 %v8767_v36, %s12812_s19  ;;  %v21017_v47 = vpop.permute.xlu0 %11211  ;;  %v26117_v36 = vld [vmem:[#allocation453_spill] sm:$0xff]  ;;  %v8773_v52 = vcombine.low %v8734_v46, %v8766_v48  ;;  %v8774_v45 = vcombine.high %v8734_v46, %v8766_v48 }
 0x731   :  { %v8807_v55 = vcombine.low %v26118_v63, %v26117_v36  ;;  %v26128_v48 = vld [vmem:[#allocation81_spill] sm:$0xff] }
 0x732   :  { %v21030_v58 = vpop.permute.xlu1 %11201  ;;  %v26130_v46 = vcombine.low %v26128_v48, %v26129_v1 }
 0x733   :  { %11425 = vrot.lane.b32.xlu1 %v26103_v4, %s12811_s18  ;;  %v26119_v4 = vcombine.high %v26114_v41, %v26115_v18  ;;  %v8815_v39 = vrot.slane %v8807_v55, %v12858_v10 }
 0x734   :  { %11443 = vrot.lane.b32.xlu0 %v8768_v42, %s12813_s20  ;;  %v21032_v2 = vpop.permute.xlu0 %11219  ;;  %v8772_v42 = vcombine.high %v8727_v23, %v8759_v20 }
 0x735   :  { %v8872_v55 = vcombine.high %v8815_v39, %v8831_v28 }
 0x736   :  { %v21039_v59 = vpop.permute.xlu1 %11209 }
 0x737   :  { %11433 = vrot.lane.b32.xlu1 %v26107_v33, %s12812_s19  ;;  %v26121_v33 = vld [vmem:[#allocation79_spill] sm:$0xff] }
 0x738   :  { %11451 = vrot.lane.b32.xlu0 %v8769_v57, %s12814_s21  ;;  %v21041_v9 = vpop.permute.xlu0 %11227  ;;  %v8871_v57 = vcombine.low %v8815_v39, %v8831_v28  ;;  %v8886_v28 = vrot.slane %v8872_v55, %v25261_v19 }
 0x73a   :  { %v21053_v38 = vpop.permute.xlu1 %11217  ;;  %v8879_v23 = vrot.slane %v8871_v57, %v25261_v19  ;;  %v8808_v57 = vcombine.high %v26118_v63, %v26117_v36  ;;  %v26132_v36 = vcombine.high %v26125_v56, %v26126_v60 }
 0x73b   :  { %11441 = vrot.lane.b32.xlu1 %v26108_v12, %s12813_s20 }
 0x73c   :  { %11459 = vrot.lane.b32.xlu0 %v8770_v30, %s23817_s22  ;;  %v21057_v54 = vpop.permute.xlu0 %11235  ;;  %v26122_v30 = vld [vmem:[#allocation243_spill] sm:$0xff]  ;;  %v8854_v63 = vrot.slane %v26132_v36, %v25261_v19  ;;  %v8822_v39 = vrot.slane %v8808_v57, %v12858_v10 }
 0x73d   :  { %v26123_v12 = vcombine.low %v26121_v33, %v26122_v30  ;;  %v26124_v11 = vcombine.high %v26121_v33, %v26122_v30 }
 0x73e   :  { %v21066_v51 = vpop.permute.xlu1 %11225 }
 0x73f   :  { %11449 = vrot.lane.b32.xlu1 %v26116_v3, %s12814_s21  ;;  %v8824_v3 = vcombine.high %v26113_v25, %v26112_v24  ;;  %v26131_v25 = vcombine.high %v26128_v48, %v26129_v1  ;;  %v26139_v1 = vld [vmem:[#allocation348_spill] sm:$0xff] }
 0x740   :  { %11467 = vrot.lane.b32.xlu0 %v8771_v61, %s12816_s23  ;;  %v21069_v31 = vpop.permute.xlu0 %11243  ;;  %v26127_v61 = vcombine.low %v26125_v56, %v26126_v60  ;;  %v8906_v60 = vcombine.high %v8854_v63, %v8886_v28 }
 0x741   :  { %v8838_v33 = vrot.slane %v8824_v3, %v12858_v10 }
 0x742   :  { %v21082_v53 = vpop.permute.xlu1 %11233  ;;  %v8847_v41 = vrot.slane %v26127_v61, %v25261_v19  ;;  %v26133_v61 = vld [vmem:[#allocation27_spill] sm:$0xff] }
 0x743   :  { %11457 = vrot.lane.b32.xlu1 %v26119_v4, %s23817_s22  ;;  %v8888_v36 = vcombine.high %v8822_v39, %v8838_v33 }
 0x744   :  { %11475 = vrot.lane.b32.xlu0 %v8772_v42, %s12817_s24  ;;  %v21084_v40 = vpop.permute.xlu0 %11251  ;;  %v8903_v4 = vcombine.low %v8847_v41, %v8879_v23  ;;  %v8904_v24 = vcombine.high %v8847_v41, %v8879_v23  ;;  %v8905_v23 = vcombine.low %v8854_v63, %v8886_v28  ;;  %v26134_v41 = vld [vmem:[#allocation25_spill] sm:$0xff] }
 0x745   :  { %v26135_v3 = vcombine.low %v26133_v61, %v26134_v41 }
 0x746   :  { %v21091_v20 = vpop.permute.xlu1 %11241 }
 0x747   :  { %11465 = vrot.lane.b32.xlu1 %v26123_v12, %s12816_s23 }
 0x748   :  { %11483 = vrot.lane.b32.xlu0 %v8773_v52, %s12818_s25  ;;  %v21093_v22 = vpop.permute.xlu0 %11259 }
 0x74a   :  { %v21105_v18 = vpop.permute.xlu1 %11249 }
 0x74b   :  { %11473 = vrot.lane.b32.xlu1 %v26124_v11, %s12817_s24 }
 0x74c   :  { %11491 = vrot.lane.b32.xlu0 %v8774_v45, %s23813_s26  ;;  %v21109_v42 = vpop.permute.xlu0 %11267  ;;  %v8887_v45 = vcombine.low %v8822_v39, %v8838_v33 }
 0x74e   :  { %v21118_v52 = vpop.permute.xlu1 %11257  ;;  %v8895_v48 = vrot.slane %v8887_v45, %v25261_v19 }
 0x74f   :  { %11481 = vrot.lane.b32.xlu1 %v26130_v46, %s12818_s25  ;;  %v26140_v46 = vld [vmem:[#allocation355_spill] sm:$0xff] }
 0x750   :  { %11499 = vrot.lane.b32.xlu0 %v8903_v4, %s12802_s10  ;;  %v21121_v30 = vpop.permute.xlu0 %11275  ;;  %v26138_v4 = vcombine.high %v26133_v61, %v26134_v41  ;;  %v26141_v57 = vcombine.low %v26139_v1, %v26140_v46  ;;  %v26145_v61 = vld [vmem:[#allocation28_spill] sm:$0xff]  ;;  %v26146_v41 = vld [vmem:[#allocation246_spill] sm:$0xff] }
 0x751   :  { %v26147_v45 = vcombine.low %v26145_v61, %v26146_v41  ;;  %v26151_v37 = vcombine.high %v26145_v61, %v26146_v41 }
 0x752   :  { %v21134_v12 = vpop.permute.xlu1 %11265 }
 0x753   :  { %11489 = vrot.lane.b32.xlu1 %v26131_v25, %s23813_s26  ;;  %s26136_s26 = smov 72  }
 0x754   :  { %11507 = vrot.lane.b32.xlu0 %v8904_v24, %s12820_s27  ;;  %v21136_v11 = vpop.permute.xlu0 %11283  ;;  %v8863_v24 = vrot.slane %v26141_v57, %v25261_v19 }
 0x756   :  { %v21143_v55 = vpop.permute.xlu1 %11273  ;;  %v8907_v44 = vcombine.low %v8863_v24, %v8895_v48  ;;  %v8908_v57 = vcombine.high %v8863_v24, %v8895_v48  ;;  %v26154_v48 = vld [vmem:[#allocation181_spill] sm:$0xff]  ;;  %v26155_v24 = vld [vmem:[#allocation475_spill] sm:$0xff] }
 0x757   :  { %11497 = vrot.lane.b32.xlu1 %v26135_v3, %s12802_s10  ;;  %26137 = vst [vmem:[#allocation287_spill] sm:$0xff] %v21143_v55  ;;  %v26144_v3 = vld [vmem:[#allocation426_spill] sm:$0xff] }
 0x758   :  { %11515 = vrot.lane.b32.xlu0 %v8905_v23, %s26136_s26  ;;  %v21145_v56 = vpop.permute.xlu0 %11291  ;;  %v26143_v23 = vld [vmem:[#allocation222_spill] sm:$0xff] }
 0x759   :  { %v8959_v28 = vcombine.low %v26144_v3, %v26143_v23 }
 0x75a   :  { %v21157_v25 = vpop.permute.xlu1 %11281 }
 0x75b   :  { %11505 = vrot.lane.b32.xlu1 %v26138_v4, %s12820_s27  ;;  %26142 = vst [vmem:[#allocation85_spill] sm:$0xff] %v21157_v25  ;;  %v26148_v4 = vld [vmem:[#allocation455_spill] sm:$0xff]  ;;  %v8967_v33 = vrot.slane %v8959_v28, %v12858_v10  ;;  %v8902_v25 = vrot.slane %v8888_v36, %v25261_v19 }
 0x75c   :  { %11523 = vrot.lane.b32.xlu0 %v8906_v60, %s12822_s29  ;;  %v21161_v63 = vpop.permute.xlu0 %11299  ;;  %v8943_v49 = vcombine.low %v26149_v6, %v26148_v4 }
 0x75e   :  { %v21170_v60 = vpop.permute.xlu1 %11289 }
 0x75f   :  { %11513 = vrot.lane.b32.xlu1 %v26147_v45, %s26136_s26  ;;  %26150 = vst [vmem:[#allocation149_spill] sm:$0xff] %v21170_v60  ;;  %v26152_v45 = vcombine.high %v26139_v1, %v26140_v46  ;;  %v26156_v60 = vcombine.low %v26154_v48, %v26155_v24  ;;  %v26159_v46 = vld [vmem:[#allocation45_spill] sm:$0xff] }
 0x760   :  { %11531 = vrot.lane.b32.xlu0 %v8907_v44, %s12823_s30  ;;  %v21173_v39 = vpop.permute.xlu0 %11307  ;;  %v8951_v44 = vrot.slane %v8943_v49, %v12858_v10  ;;  %v26160_v49 = vld [vmem:[#allocation247_spill] sm:$0xff] }
 0x761   :  { %v8870_v55 = vrot.slane %v26152_v45, %v25261_v19  ;;  %v12399_v61 = vsel %vm12119_vm0, %v26156_v60, %v20874_v13  ;;  %v26161_v45 = vcombine.low %v26159_v46, %v26160_v49  ;;  %v26164_v60 = vld [vmem:[#allocation84_spill] sm:$0xff] }
 0x762   :  { %v21186_v28 = vpop.permute.xlu1 %11297  ;;  %v12401_v36 = vsel %vm26157_vm8, %v12399_v61, %v20888_v32  ;;  %v26165_v32 = vld [vmem:[#allocation107_spill] sm:$0xff] }
 0x763   :  { %11521 = vrot.lane.b32.xlu1 %v26151_v37, %s12822_s29  ;;  %26153 = vst [vmem:[#allocation203_spill] sm:$0xff] %v21186_v28  ;;  %v9007_v37 = vcombine.low %v8951_v44, %v8967_v33  ;;  %v8909_v1 = vcombine.low %v8870_v55, %v8902_v25  ;;  %v3735_v24 = vcombine.low %v26165_v32, %v26164_v60  ;;  %v26178_v60 = vld [vmem:[#allocation29_spill] sm:$0xff]  ;;  %v26179_v32 = vld [vmem:[#allocation248_spill] sm:$0xff] }
 0x764   :  { %11539 = vrot.lane.b32.xlu0 %v8908_v57, %s25980_s28  ;;  %v21195_v41 = vpop.permute.xlu0 %11315  ;;  %v12403_v57 = vsel %vm26162_vm1, %v12401_v36, %v20900_v15  ;;  %v26168_v15 = vcombine.high %v26159_v46, %v26160_v49  ;;  %vm26173_vm1 = vcmask 261120   ;;  %v9008_v46 = vcombine.high %v8951_v44, %v8967_v33 }
 0x765   :  { %26158 = vst [vmem:[#allocation22_spill] sm:$0xff] %v21195_v41  ;;  %v12405_v48 = vsel %vm26163_vm3, %v12403_v57, %v20929_v0  ;;  %v8910_v41 = vcombine.high %v8870_v55, %v8902_v25  ;;  %v9015_v0 = vrot.slane %v9007_v37, %v25261_v19  ;;  %v12398_v36 = vsel %vm12119_vm0, %v3735_v24, %v20897_v27  ;;  %v26171_v57 = vld [vmem:[#allocation358_spill] sm:$0xff] }
 0x766   :  { %v21206_v13 = vpop.permute.xlu1 %11305  ;;  %v12407_v61 = vsel %vm26166_vm6, %v12405_v48, %v20940_v5  ;;  %v26170_v5 = vld [vmem:[#allocation352_spill] sm:$0xff]  ;;  %v12400_v55 = vsel %vm26157_vm8, %v12398_v36, %v20921_v62  ;;  %v8960_v27 = vcombine.high %v26144_v3, %v26143_v23  ;;  %vm26174_vm3 = vcmask 97280  }
 0x767   :  { %11529 = vrot.lane.b32.xlu1 %v26161_v45, %s12823_s30  ;;  %v12409_v28 = vsel %vm26167_vm5, %v12407_v61, %v20953_v43  ;;  %v26172_v43 = vcombine.low %v26170_v5, %v26171_v57  ;;  %vm26175_vm6 = vcmask 293888   ;;  %vm26176_vm5 = vcmask 130048  }
 0x768   :  { %11547 = vrot.lane.b32.xlu0 %v8909_v1, %s12825_s3  ;;  %v21214_v45 = vpop.permute.xlu0 %11323  ;;  %v12411_v1 = vsel %vm26169_vm2, %v12409_v28, %v20965_v29  ;;  %v12402_v29 = vsel %vm26174_vm3, %v12400_v55, %v20936_v34  ;;  %vm26177_vm2 = vcmask 326656   ;;  %v26180_v24 = vcombine.low %v26178_v60, %v26179_v32  ;;  %v26200_v55 = vld [vmem:[#allocation151_spill] sm:$0xff] }
 0x769   :  { %v8983_v48 = vrot.slane %v26172_v43, %v25261_v19  ;;  %v12413_v25 = vsel %vm26173_vm1, %v12411_v1, %v20980_v50  ;;  %v12404_v62 = vsel %vm26176_vm5, %v12402_v29, %v20949_v35  ;;  %vm26181_vm8 = vcmask 162816  }
 0x76a   :  { %v12415_v28 = vsel %vm26175_vm6, %v12413_v25, %v20989_v16  ;;  %v12406_v34 = vsel %vm26181_vm8, %v12404_v62, %v20962_v21  ;;  %vm26182_vm1 = vcmask 359424   ;;  %v8944_v23 = vcombine.high %v26149_v6, %v26148_v4 }
 0x76b   :  { %11537 = vrot.lane.b32.xlu1 %v26168_v15, %s25980_s28  ;;  %v12417_v50 = vsel %vm26177_vm2, %v12415_v28, %v21005_v7  ;;  %vm26183_vm3 = vcmask 195584   ;;  %vm26184_vm6 = vcmask 392192   ;;  %v21264_v33 = vrot.slane %v8960_v27, %v12858_v10 }
 0x76c   :  { %11555 = vrot.lane.b32.xlu0 %v8910_v41, %s25827_s2  ;;  %v11332_v49 = vpop.permute.xlu0 %11331  ;;  %v9039_v41 = vcombine.low %v8983_v48, %v9015_v0  ;;  %v12419_v16 = vsel %vm26182_vm1, %v12417_v50, %v21017_v47  ;;  %v12408_v35 = vsel %vm26183_vm3, %v12406_v34, %v20978_v26  ;;  %vm26185_vm5 = vcmask 228352   ;;  %v26211_v50 = vld [vmem:[#allocation359_spill] sm:$0xff] }
 0x76d   :  { %v21234_v37 = vpop.permute.xlu1 %11313  ;;  %v12421_v7 = vsel %vm26184_vm6, %v12419_v16, %v21032_v2  ;;  %v12410_v21 = vsel %vm26185_vm5, %v12408_v35, %v20987_v17  ;;  %vm26186_vm2 = vcmask 424960   ;;  %vm26187_vm8 = vcmask 261120   ;;  %v26215_v16 = vld [vmem:[#allocation287_spill] sm:$0xff]  ;;  %v26217_v35 = vld [vmem:[#allocation85_spill] sm:$0xff] }
 0x76e   :  { %v12423_v47 = vsel %vm26186_vm2, %v12421_v7, %v21041_v9  ;;  %v12412_v6 = vsel %vm26187_vm8, %v12410_v21, %v21001_v14  ;;  %vm26188_vm1 = vcmask 457728   ;;  %v9040_v4 = vcombine.high %v8983_v48, %v9015_v0 }
 0x76f   :  { %11545 = vrot.lane.b32.xlu1 %v26180_v24, %s12825_s3  ;;  %v12425_v26 = vsel %vm26188_vm1, %v12423_v47, %v21057_v54  ;;  %v26189_v44 = vcombine.high %v26178_v60, %v26179_v32  ;;  %v9022_v61 = vrot.slane %v9008_v46, %v25261_v19  ;;  %vm26190_vm3 = vcmask 293888   ;;  %v26214_v32 = vld [vmem:[#allocation22_spill] sm:$0xff] }
 0x770   :  { %11563 = vrot.lane.b32.xlu0 %v9039_v41, %s12827_s5  ;;  %v11340_v2 = vpop.permute.xlu0 %11339  ;;  %v12414_v17 = vsel %vm26190_vm3, %v12412_v6, %v21014_v8  ;;  %vm26191_vm6 = vcmask 490496   ;;  %v26192_v14 = vcombine.high %v26170_v5, %v26171_v57  ;;  %v8958_v15 = vrot.slane %v8944_v23, %v12858_v10  ;;  %v26218_v6 = vld [vmem:[#allocation88_spill] sm:$0xff] }
 0x771   :  { %v21261_v3 = vpop.permute.xlu1 %11321  ;;  %v12427_v9 = vsel %vm26191_vm6, %v12425_v26, %v21069_v31  ;;  %vm26193_vm5 = vcmask 326656   ;;  %vm26194_vm2 = vcmask 523264   ;;  %vm26195_vm8 = vcmask 359424   ;;  %v26219_v26 = vld [vmem:[#allocation114_spill] sm:$0xff] }
 0x772   :  { %v8990_v54 = vrot.slane %v26192_v14, %v25261_v19  ;;  %v12416_v0 = vsel %vm26193_vm5, %v12414_v17, %v21030_v58  ;;  %v12429_v36 = vsel %vm26194_vm2, %v12427_v9, %v21084_v40  ;;  %vm26196_vm1 = vcmask 556032   ;;  %v26199_v40 = vld [vmem:[#allocation86_spill] sm:$0xff] }
 0x773   :  { %11553 = vrot.lane.b32.xlu1 %v26189_v44, %s25827_s2  ;;  %v12418_v8 = vsel %vm26195_vm8, %v12416_v0, %v21039_v59  ;;  %v12431_v31 = vsel %vm26196_vm1, %v12429_v36, %v21093_v22  ;;  %v9023_v5 = vcombine.low %v8958_v15, %v21264_v33  ;;  %vm26197_vm3 = vcmask 392192   ;;  %v26221_v44 = vld [vmem:[#allocation149_spill] sm:$0xff] }
 0x774   :  { %11571 = vrot.lane.b32.xlu0 %v9040_v4, %s25678_s4  ;;  %v12420_v57 = vsel %vm26197_vm3, %v12418_v8, %v21053_v38  ;;  %vm26198_vm6 = vcmask 588800   ;;  %v9041_v48 = vcombine.low %v8990_v54, %v9022_v61  ;;  %v26201_v25 = vcombine.low %v26199_v40, %v26200_v55 }
 0x775   :  { %v11330_v1 = vpop.permute.xlu1 %11329  ;;  %v12433_v58 = vsel %vm26198_vm6, %v12431_v31, %v21109_v42  ;;  %vm26202_vm5 = vcmask 424960   ;;  %vm26203_vm2 = vcmask 621568   ;;  %vm26204_vm8 = vcmask 457728  }
 0x776   :  { %v11348_v43 = vpop.permute.xlu0 %11347  ;;  %v12422_v59 = vsel %vm26202_vm5, %v12420_v57, %v21066_v51  ;;  %v12435_v22 = vsel %vm26203_vm2, %v12433_v58, %v21121_v30  ;;  %vm26205_vm1 = vcmask 654336   ;;  %vm26206_vm3 = vcmask 490496  }
 0x777   :  { %11561 = vrot.lane.b32.xlu1 %v26201_v25, %s12827_s5  ;;  %v12424_v27 = vsel %vm26204_vm8, %v12422_v59, %v21082_v53  ;;  %v12437_v38 = vsel %vm26205_vm1, %v12435_v22, %v21136_v11  ;;  %vm26207_vm6 = vcmask 523264   ;;  %v9042_v53 = vcombine.high %v8990_v54, %v9022_v61  ;;  %v26227_v25 = vld [vmem:[#allocation30_spill] sm:$0xff]  ;;  %v26228_v59 = vld [vmem:[#allocation251_spill] sm:$0xff] }
 0x778   :  { %11579 = vrot.lane.b32.xlu0 %v9041_v48, %s12829_s7  ;;  %v12426_v29 = vsel %vm26206_vm3, %v12424_v27, %v21091_v20  ;;  %v12439_v28 = vsel %vm12179_vm9, %v12437_v38, %v21145_v56  ;;  %v26208_v11 = vcombine.high %v26199_v40, %v26200_v55  ;;  %v9031_v62 = vrot.slane %v9023_v5, %v25261_v19 }
 0x779   :  { %v11338_v42 = vpop.permute.xlu1 %11337  ;;  %v12428_v51 = vsel %vm26207_vm6, %v12426_v29, %v21105_v18  ;;  %v12441_v30 = vsel %vm12182_vm10, %v12439_v28, %v21161_v63  ;;  %vm26209_vm5 = vcmask 556032   ;;  %v26210_v18 = vld [vmem:[#allocation353_spill] sm:$0xff]  ;;  %vm26213_vm2 = vcmask 588800   ;;  %v26233_v28 = vld [vmem:[#allocation428_spill] sm:$0xff] }
 0x77a   :  { %v11356_v46 = vpop.permute.xlu0 %11355  ;;  %v12430_v20 = vsel %vm26209_vm5, %v12428_v51, %v21118_v52  ;;  %v12443_v56 = vsel %vm12185_vm11, %v12441_v30, %v21173_v39  ;;  %v26212_v41 = vcombine.low %v26210_v18, %v26211_v50  ;;  %vm26216_vm8 = vcmask 621568   ;;  %v26234_v30 = vld [vmem:[#allocation74_spill] sm:$0xff] }
 0x77b   :  { %11569 = vrot.lane.b32.xlu1 %v26208_v11, %s25678_s4  ;;  %v12432_v60 = vsel %vm26213_vm2, %v12430_v20, %v21134_v12  ;;  %v12445_v24 = vsel %vm12188_vm12, %v12443_v56, %v26214_v32  ;;  %v9024_v23 = vcombine.high %v8958_v15, %v21264_v33  ;;  %v26220_v4 = vcombine.low %v26218_v6, %v26219_v26  ;;  %v26237_v56 = vld [vmem:[#allocation458_spill] sm:$0xff] }
 0x77c   :  { %v8999_v63 = vrot.slane %v26212_v41, %v25261_v19  ;;  %11587 = vrot.lane.b32.xlu0 %v9042_v53, %s12830_s8  ;;  %v12434_v52 = vsel %vm26216_vm8, %v12432_v60, %v26215_v16  ;;  %v12447_v39 = vsel %vm12191_vm13, %v12445_v24, %v21214_v45  ;;  %v26222_v45 = vld [vmem:[#allocation203_spill] sm:$0xff]  ;;  %vm26223_vm3 = vcmask 982016   ;;  %v26239_v32 = vld [vmem:[#allocation274_spill] sm:$0xff]  ;;  %v26240_v24 = vld [vmem:[#allocation161_spill] sm:$0xff] }
 0x77d   :  { %v11346_v34 = vpop.permute.xlu1 %11345  ;;  %v12436_v7 = vsel %vm26205_vm1, %v12434_v52, %v26217_v35  ;;  %v12449_v21 = vsel %vm12194_vm14, %v12447_v39, %v11332_v49  ;;  %v26224_v8 = vcombine.high %v26218_v6, %v26219_v26  ;;  %v9038_v31 = vrot.slane %v9024_v23, %v25261_v19  ;;  %vm26230_vm5 = vmmov %vm26223_vm3  ;;  %v26241_v16 = vld [vmem:[#allocation10_spill] sm:$0xff]  ;;  %v26242_v52 = vld [vmem:[#allocation115_spill] sm:$0xff] }
 0x77e   :  { %v11364_v12 = vpop.permute.xlu0 %11363  ;;  %v9043_v47 = vcombine.low %v8999_v63, %v9031_v62  ;;  %v12438_v61 = vsel %vm12179_vm9, %v12436_v7, %v26221_v44  ;;  %v12451_v17 = vsel %vm23825_vm15, %v12449_v21, %v11340_v2  ;;  %v9044_v2 = vcombine.high %v8999_v63, %v9031_v62  ;;  %v26244_v35 = vld [vmem:[#allocation111_spill] sm:$0xff]  ;;  %v26245_v7 = vld [vmem:[#allocation242_spill] sm:$0xff] }
 0x77f   :  { %11577 = vrot.lane.b32.xlu1 %v26220_v4, %s12829_s7  ;;  %v12440_v33 = vsel %vm12182_vm10, %v12438_v61, %v26222_v45  ;;  %v12453_v9 = vsel %vm23824_vm4, %v12451_v17, %v11348_v43  ;;  %vm26225_vm6 = vcmask 1014784   ;;  %v26229_v22 = vcombine.low %v26227_v25, %v26228_v59  ;;  %v26249_v6 = vld [vmem:[#allocation366_spill] sm:$0xff]  ;;  %v26251_v17 = vld [vmem:[#allocation32_spill] sm:$0xff] }
 0x780   :  { %11595 = vrot.lane.b32.xlu0 %v9043_v47, %s25546_s6  ;;  %v12442_v14 = vsel %vm12185_vm11, %v12440_v33, %v21206_v13  ;;  %v12455_v54 = vsel %vm23823_vm7, %v12453_v9, %v11356_v46  ;;  %vm26231_vm2 = vmmov %vm26225_vm6  ;;  %v26235_v46 = vld [vmem:[#allocation76_spill] sm:$0xff]  ;;  %v26236_v20 = vcombine.high %v26227_v25, %v26228_v59  ;;  %v26243_v39 = vcombine.low %v26241_v16, %v26242_v52  ;;  %v26248_v47 = vld [vmem:[#allocation361_spill] sm:$0xff] }
 0x781   :  { %v11354_v49 = vpop.permute.xlu1 %11353  ;;  %v12444_v15 = vsel %vm12188_vm12, %v12442_v14, %v21234_v37  ;;  %v12457_v0 = vsel %vm26223_vm3, %v12455_v54, %v11364_v12  ;;  %v26226_v37 = vcombine.high %v26210_v18, %v26211_v50  ;;  %v9144_v53 = vcombine.high %v26235_v46, %v26234_v30  ;;  %v26238_v18 = vld [vmem:[#allocation401_spill] sm:$0xff]  ;;  %v26252_v45 = vld [vmem:[#allocation92_spill] sm:$0xff] }
 0x782   :  { %v11372_v36 = vpop.permute.xlu0 %11371  ;;  %v12446_v5 = vsel %vm12191_vm13, %v12444_v15, %v21261_v3  ;;  %v9080_v50 = vcombine.high %v26238_v18, %v26237_v56  ;;  %v26246_v21 = vcombine.low %v26244_v35, %v26245_v7  ;;  %v26250_v26 = vcombine.high %v26248_v47, %v26249_v6 }
 0x783   :  { %11585 = vrot.lane.b32.xlu1 %v26224_v8, %s12830_s8  ;;  %v12459_v13 = vsel %vm26225_vm6, %v12457_v0, %v11372_v36  ;;  %v9006_v57 = vrot.slane %v26226_v37, %v25261_v19  ;;  %v12448_v58 = vsel %vm12194_vm14, %v12446_v5, %v11330_v1  ;;  %v9158_v23 = vrot.slane %v9144_v53, %v25261_v19  ;;  %v26256_v5 = vld [vmem:[#allocation362_spill] sm:$0xff] }
 0x784   :  { %12658 = vst [vmem:[#allocation5 + $0x60] sm:$0xff] %v12459_v13  ;;  %11603 = vrot.lane.b32.xlu0 %v9044_v2, %s12832_s12  ;;  %v12450_v48 = vsel %vm23825_vm15, %v12448_v58, %v11338_v42  ;;  %v26232_v42 = vld [vmem:[#allocation223_spill] sm:$0xff]  ;;  %v21421_v12 = vrot.slane %v26246_v21, %v25261_v19  ;;  %v9126_v4 = vrot.slane %v26250_v26, %v25261_v19  ;;  %v26272_v26 = vld [vmem:[#allocation369_spill] sm:$0xff]  ;;  %vm26332_vm8 = vcmask 64512  }
 0x785   :  { %v11362_v43 = vpop.permute.xlu1 %11361  ;;  %v12452_v40 = vsel %vm23824_vm4, %v12450_v48, %v11346_v34  ;;  %v9045_v3 = vcombine.low %v9006_v57, %v9038_v31  ;;  %v9096_v51 = vcombine.high %v26233_v28, %v26232_v42  ;;  %v9046_v62 = vcombine.high %v9006_v57, %v9038_v31  ;;  %v26257_v13 = vld [vmem:[#allocation367_spill] sm:$0xff]  ;;  %v26259_v48 = vld [vmem:[#allocation224_spill] sm:$0xff] }
 0x786   :  { %v21382_v55 = vpop.permute.xlu0 %11379  ;;  %v12454_v27 = vsel %vm23823_vm7, %v12452_v40, %v11354_v49  ;;  %v9176_v34 = vcombine.high %v26240_v24, %v26239_v32  ;;  %26247 = vst [vmem:[#allocation351_spill] sm:$0xff] %v21421_v12  ;;  %v9094_v44 = vrot.slane %v9080_v50, %v12858_v10  ;;  %v26253_v33 = vcombine.low %v26251_v17, %v26252_v45  ;;  %v26260_v40 = vld [vmem:[#allocation430_spill] sm:$0xff] }
 0x787   :  { %11593 = vrot.lane.b32.xlu1 %v26229_v22, %s25546_s6  ;;  %v12456_v1 = vsel %vm26230_vm5, %v12454_v27, %v11362_v43  ;;  %v9110_v63 = vrot.slane %v9096_v51, %v12858_v10  ;;  %v9177_v54 = vcombine.low %v9126_v4, %v9158_v23  ;;  %v26255_v15 = vcombine.high %v26241_v16, %v26242_v52  ;;  %v26261_v22 = vld [vmem:[#allocation91_spill] sm:$0xff]  ;;  %v26268_v52 = vld [vmem:[#allocation13_spill] sm:$0xff] }
 0x788   :  { %11611 = vrot.lane.b32.xlu0 %v9045_v3, %s12833_s9  ;;  %v21435_v9 = vrot.slane %v26253_v33, %v25261_v19  ;;  %v9178_v8 = vcombine.high %v9126_v4, %v9158_v23  ;;  %v26258_v37 = vcombine.low %v26256_v5, %v26257_v13  ;;  %v9231_v3 = vcombine.low %v26260_v40, %v26259_v48  ;;  %v26262_v27 = vld [vmem:[#allocation139_spill] sm:$0xff]  ;;  %v26273_v4 = vld [vmem:[#allocation129_spill] sm:$0xff] }
 0x789   :  { %v11370_v38 = vpop.permute.xlu1 %11369  ;;  %v9159_v49 = vcombine.low %v9094_v44, %v9110_v63  ;;  %v9160_v43 = vcombine.high %v9094_v44, %v9110_v63  ;;  %v26266_v53 = vcombine.high %v26261_v22, %v26262_v27  ;;  %v26274_v44 = vcombine.low %v26272_v26, %v26273_v4 }
 0x78a   :  { %v12458_v29 = vsel %vm26231_vm2, %v12456_v1, %v11370_v38  ;;  %v21396_v11 = vpop.permute.xlu0 %11387  ;;  %26254 = vst [vmem:[#allocation288_spill] sm:$0xff] %v21435_v9  ;;  %v4824_v36 = vcombine.high %v21435_v9, %v21421_v12  ;;  %v9135_v57 = vrot.slane %v26258_v37, %v25261_v19  ;;  %v26263_v1 = vcombine.low %v26261_v22, %v26262_v27  ;;  %v26264_v38 = vld [vmem:[#allocation460_spill] sm:$0xff]  ;;  %v26324_v12 = vld [vmem:[#allocation407_spill] sm:$0xff] }
 0x78b   :  { %12650 = vst [vmem:[#allocation5 + $0x20] sm:$0xff] %v12458_v29  ;;  %11601 = vrot.lane.b32.xlu1 %v26236_v20, %s12832_s12  ;;  %v9167_v31 = vrot.slane %v9159_v49, %v25261_v19  ;;  %v26265_v29 = vld [vmem:[#allocation403_spill] sm:$0xff]  ;;  %v9239_v51 = vrot.slane %v9231_v3, %v12858_v10  ;;  %v26267_v20 = vcombine.high %v26256_v5, %v26257_v13  ;;  %vm26337_vm1 = vcmask 97280  }
 0x78c   :  { %11619 = vrot.lane.b32.xlu0 %v9046_v62, %s12834_s11  ;;  %v9215_v42 = vcombine.low %v26265_v29, %v26264_v38  ;;  %v9174_v62 = vrot.slane %v9160_v43, %v25261_v19  ;;  %v9255_v17 = vrot.slane %v26274_v44, %v25261_v19  ;;  %v9232_v33 = vcombine.high %v26260_v40, %v26259_v48 }
 0x78d   :  { %v21405_v41 = vpop.permute.xlu1 %11377  ;;  %v9179_v59 = vcombine.low %v9135_v57, %v9167_v31  ;;  %v9180_v46 = vcombine.high %v9135_v57, %v9167_v31  ;;  %v9142_v56 = vrot.slane %v26267_v20, %v25261_v19  ;;  %v9216_v5 = vcombine.high %v26265_v29, %v26264_v38 }
 0x78e   :  { %v21408_v60 = vpop.permute.xlu0 %11395  ;;  %v9223_v18 = vrot.slane %v9215_v42, %v12858_v10  ;;  %v9246_v37 = vrot.slane %v9232_v33, %v12858_v10  ;;  %v26279_v3 = vcombine.high %v26272_v26, %v26273_v4  ;;  %v26280_v42 = vld [vmem:[#allocation35_spill] sm:$0xff]  ;;  %v26290_v33 = vld [vmem:[#allocation262_spill] sm:$0xff]  ;;  %vm26338_vm3 = vcmask 130048  }
 0x78f   :  { %11609 = vrot.lane.b32.xlu1 %v26243_v39, %s12833_s9  ;;  %v9181_v16 = vcombine.low %v9142_v56, %v9174_v62  ;;  %v26269_v39 = vld [vmem:[#allocation152_spill] sm:$0xff]  ;;  %v9182_v21 = vcombine.high %v9142_v56, %v9174_v62  ;;  %v9230_v22 = vrot.slane %v9216_v5, %v12858_v10  ;;  %vm26341_vm6 = vcmask 162816  }
 0x790   :  { %11627 = vrot.lane.b32.xlu0 %v9176_v34, %s12805_s0  ;;  %v9279_v63 = vcombine.low %v9223_v18, %v9239_v51  ;;  %v26270_v23 = vcombine.low %v26268_v52, %v26269_v39  ;;  %v26271_v47 = vcombine.high %v26268_v52, %v26269_v39  ;;  %v9280_v49 = vcombine.high %v9223_v18, %v9239_v51  ;;  %v26281_v51 = vld [vmem:[#allocation261_spill] sm:$0xff] }
 0x791   :  { %v21429_v61 = vpop.permute.xlu1 %11385  ;;  %v26283_v56 = vcombine.high %v26280_v42, %v26281_v51  ;;  %vm26342_vm5 = vcmask 195584   ;;  %vm26344_vm2 = vcmask 228352  }
 0x792   :  { %v21437_v14 = vpop.permute.xlu0 %11403  ;;  %v9287_v6 = vrot.slane %v9279_v63, %v25261_v19  ;;  %v9294_v40 = vrot.slane %v9280_v49, %v25261_v19  ;;  %v26284_v63 = vld [vmem:[#allocation370_spill] sm:$0xff] }
 0x793   :  { %11617 = vrot.lane.b32.xlu1 %v26255_v15, %s12834_s11 }
 0x794   :  { %11635 = vrot.lane.b32.xlu0 %v9177_v54, %s12808_s15  ;;  %v9311_v15 = vcombine.low %v9255_v17, %v9287_v6  ;;  %v9312_v43 = vcombine.high %v9255_v17, %v9287_v6  ;;  %v26288_v6 = vld [vmem:[#allocation432_spill] sm:$0xff]  ;;  %v26289_v17 = vld [vmem:[#allocation34_spill] sm:$0xff] }
 0x795   :  { %v21444_v0 = vpop.permute.xlu1 %11393  ;;  %v26291_v49 = vcombine.low %v26289_v17, %v26290_v33 }
 0x796   :  { %v21448_v2 = vpop.permute.xlu0 %11411 }
 0x797   :  { %11625 = vrot.lane.b32.xlu1 %v4824_v36, %s12805_s0  ;;  %v26275_v36 = vld [vmem:[#allocation33_spill] sm:$0xff] }
 0x798   :  { %11643 = vrot.lane.b32.xlu0 %v9178_v8, %s12806_s13  ;;  %v26276_v8 = vld [vmem:[#allocation153_spill] sm:$0xff] }
 0x799   :  { %v21457_v58 = vpop.permute.xlu1 %11401  ;;  %v26277_v31 = vcombine.low %v26275_v36, %v26276_v8  ;;  %v26278_v48 = vcombine.high %v26275_v36, %v26276_v8  ;;  %v26293_v36 = vld [vmem:[#allocation405_spill] sm:$0xff] }
 0x79a   :  { %v21461_v25 = vpop.permute.xlu0 %11419 }
 0x79b   :  { %11633 = vrot.lane.b32.xlu1 %v26263_v1, %s12808_s15  ;;  %v9295_v1 = vcombine.low %v9230_v22, %v9246_v37 }
 0x79c   :  { %11651 = vrot.lane.b32.xlu0 %v9179_v59, %s12807_s14  ;;  %v9262_v59 = vrot.slane %v26279_v3, %v25261_v19 }
 0x79d   :  { %v21470_v28 = vpop.permute.xlu1 %11409  ;;  %v9303_v18 = vrot.slane %v9295_v1, %v25261_v19 }
 0x79e   :  { %v21473_v30 = vpop.permute.xlu0 %11427  ;;  %v9313_v29 = vcombine.low %v9262_v59, %v9294_v40  ;;  %v9314_v20 = vcombine.high %v9262_v59, %v9294_v40 }
 0x79f   :  { %11641 = vrot.lane.b32.xlu1 %v26266_v53, %s12806_s13 }
 0x7a0   :  { %11659 = vrot.lane.b32.xlu0 %v9180_v46, %s12809_s16  ;;  %v26282_v46 = vcombine.low %v26280_v42, %v26281_v51 }
 0x7a1   :  { %v21486_v50 = vpop.permute.xlu1 %11417 }
 0x7a2   :  { %v21488_v34 = vpop.permute.xlu0 %11435 }
 0x7a3   :  { %11649 = vrot.lane.b32.xlu1 %v26270_v23, %s12807_s14 }
 0x7a4   :  { %11667 = vrot.lane.b32.xlu0 %v9181_v16, %s12810_s17  ;;  %v26285_v16 = vld [vmem:[#allocation368_spill] sm:$0xff] }
 0x7a5   :  { %v21495_v35 = vpop.permute.xlu1 %11425  ;;  %v26286_v52 = vcombine.low %v26284_v63, %v26285_v16  ;;  %v26295_v3 = vcombine.high %v26284_v63, %v26285_v16 }
 0x7a6   :  { %v21497_v7 = vpop.permute.xlu0 %11443 }
 0x7a7   :  { %11657 = vrot.lane.b32.xlu1 %v26271_v47, %s12809_s16  ;;  %v9271_v39 = vrot.slane %v26286_v52, %v25261_v19  ;;  %v26287_v47 = vld [vmem:[#allocation228_spill] sm:$0xff]  ;;  %v9278_v59 = vrot.slane %v26295_v3, %v25261_v19  ;;  %v26305_v3 = vld [vmem:[#allocation121_spill] sm:$0xff] }
 0x7a8   :  { %11675 = vrot.lane.b32.xlu0 %v9182_v21, %s12811_s18  ;;  %v9296_v21 = vcombine.high %v9230_v22, %v9246_v37  ;;  %v9367_v26 = vcombine.low %v26288_v6, %v26287_v47 }
 0x7a9   :  { %v21509_v45 = vpop.permute.xlu1 %11433  ;;  %v9315_v44 = vcombine.low %v9271_v39, %v9303_v18 }
 0x7aa   :  { %v21513_v54 = vpop.permute.xlu0 %11451  ;;  %v9375_v5 = vrot.slane %v9367_v26, %v12858_v10  ;;  %v9310_v40 = vrot.slane %v9296_v21, %v25261_v19  ;;  %v26301_v21 = vld [vmem:[#allocation373_spill] sm:$0xff]  ;;  %v26302_v26 = vld [vmem:[#allocation322_spill] sm:$0xff] }
 0x7ab   :  { %11665 = vrot.lane.b32.xlu1 %v26277_v31, %s12810_s17 }
 0x7ac   :  { %11683 = vrot.lane.b32.xlu0 %v9311_v15, %s12812_s19  ;;  %v26292_v15 = vld [vmem:[#allocation462_spill] sm:$0xff]  ;;  %v9317_v51 = vcombine.low %v9278_v59, %v9310_v40  ;;  %v9318_v16 = vcombine.high %v9278_v59, %v9310_v40 }
 0x7ad   :  { %v21522_v13 = vpop.permute.xlu1 %11441  ;;  %v9351_v8 = vcombine.low %v26293_v36, %v26292_v15  ;;  %v26304_v40 = vld [vmem:[#allocation94_spill] sm:$0xff] }
 0x7ae   :  { %v21525_v57 = vpop.permute.xlu0 %11459  ;;  %v26306_v59 = vcombine.low %v26304_v40, %v26305_v3 }
 0x7af   :  { %11673 = vrot.lane.b32.xlu1 %v26278_v48, %s12811_s18  ;;  %v26294_v48 = vcombine.high %v26289_v17, %v26290_v33  ;;  %v9359_v22 = vrot.slane %v9351_v8, %v12858_v10 }
 0x7b0   :  { %11691 = vrot.lane.b32.xlu0 %v9312_v43, %s12813_s20  ;;  %v9316_v43 = vcombine.high %v9271_v39, %v9303_v18 }
 0x7b1   :  { %v21538_v27 = vpop.permute.xlu1 %11449  ;;  %v9416_v8 = vcombine.high %v9359_v22, %v9375_v5 }
 0x7b2   :  { %v21540_v38 = vpop.permute.xlu0 %11467 }
 0x7b3   :  { %11681 = vrot.lane.b32.xlu1 %v26282_v46, %s12812_s19  ;;  %v26296_v46 = vld [vmem:[#allocation48_spill] sm:$0xff] }
 0x7b4   :  { %11699 = vrot.lane.b32.xlu0 %v9313_v29, %s12814_s21  ;;  %v9415_v29 = vcombine.low %v9359_v22, %v9375_v5  ;;  %v9430_v5 = vrot.slane %v9416_v8, %v25261_v19 }
 0x7b5   :  { %v21547_v53 = vpop.permute.xlu1 %11457 }
 0x7b6   :  { %v21549_v62 = vpop.permute.xlu0 %11475  ;;  %v9423_v39 = vrot.slane %v9415_v29, %v25261_v19  ;;  %v9352_v29 = vcombine.high %v26293_v36, %v26292_v15  ;;  %v26308_v15 = vcombine.high %v26301_v21, %v26302_v26 }
 0x7b7   :  { %11689 = vrot.lane.b32.xlu1 %v26283_v56, %s12813_s20 }
 0x7b8   :  { %11707 = vrot.lane.b32.xlu0 %v9314_v20, %s23817_s22  ;;  %v26297_v20 = vld [vmem:[#allocation263_spill] sm:$0xff]  ;;  %v9398_v36 = vrot.slane %v26308_v15, %v25261_v19  ;;  %v9366_v22 = vrot.slane %v9352_v29, %v12858_v10 }
 0x7b9   :  { %v21561_v23 = vpop.permute.xlu1 %11465  ;;  %v26298_v56 = vcombine.low %v26296_v46, %v26297_v20  ;;  %v26299_v52 = vcombine.high %v26296_v46, %v26297_v20 }
 0x7ba   :  { %v21565_v4 = vpop.permute.xlu0 %11483 }
 0x7bb   :  { %11697 = vrot.lane.b32.xlu1 %v26291_v49, %s12814_s21  ;;  %v9368_v49 = vcombine.high %v26288_v6, %v26287_v47  ;;  %v26307_v6 = vcombine.high %v26304_v40, %v26305_v3  ;;  %v26314_v3 = vld [vmem:[#allocation374_spill] sm:$0xff] }
 0x7bc   :  { %11715 = vrot.lane.b32.xlu0 %v9315_v44, %s12816_s23  ;;  %v26303_v44 = vcombine.low %v26301_v21, %v26302_v26  ;;  %v9450_v26 = vcombine.high %v9398_v36, %v9430_v5 }
 0x7bd   :  { %v21574_v31 = vpop.permute.xlu1 %11473  ;;  %v9382_v46 = vrot.slane %v9368_v49, %v12858_v10 }
 0x7be   :  { %v21577_v37 = vpop.permute.xlu0 %11491  ;;  %v9391_v17 = vrot.slane %v26303_v44, %v25261_v19  ;;  %v26309_v44 = vld [vmem:[#allocation205_spill] sm:$0xff] }
 0x7bf   :  { %11705 = vrot.lane.b32.xlu1 %v26294_v48, %s23817_s22  ;;  %s26300_s22 = smov 60   ;;  %v9432_v15 = vcombine.high %v9366_v22, %v9382_v46 }
 0x7c0   :  { %11723 = vrot.lane.b32.xlu0 %v9316_v43, %s12817_s24  ;;  %v9447_v48 = vcombine.low %v9391_v17, %v9423_v39  ;;  %v9448_v47 = vcombine.high %v9391_v17, %v9423_v39  ;;  %v9449_v39 = vcombine.low %v9398_v36, %v9430_v5  ;;  %v26310_v17 = vld [vmem:[#allocation136_spill] sm:$0xff] }
 0x7c1   :  { %v21590_v1 = vpop.permute.xlu1 %11481  ;;  %v26311_v49 = vcombine.low %v26309_v44, %v26310_v17 }
 0x7c2   :  { %v21592_v42 = vpop.permute.xlu0 %11499 }
 0x7c3   :  { %11713 = vrot.lane.b32.xlu1 %v26298_v56, %s12816_s23 }
 0x7c4   :  { %11731 = vrot.lane.b32.xlu0 %v9317_v51, %s12818_s25 }
 0x7c5   :  { %v21599_v18 = vpop.permute.xlu1 %11489 }
 0x7c6   :  { %v21601_v63 = vpop.permute.xlu0 %11507 }
 0x7c7   :  { %11721 = vrot.lane.b32.xlu1 %v26299_v52, %s12817_s24 }
 0x7c8   :  { %11739 = vrot.lane.b32.xlu0 %v9318_v16, %s26300_s22  ;;  %v9431_v16 = vcombine.low %v9366_v22, %v9382_v46 }
 0x7c9   :  { %v21613_v33 = vpop.permute.xlu1 %11497 }
 0x7ca   :  { %v21617_v43 = vpop.permute.xlu0 %11515  ;;  %v9439_v40 = vrot.slane %v9431_v16, %v25261_v19 }
 0x7cb   :  { %11729 = vrot.lane.b32.xlu1 %v26306_v59, %s12818_s25  ;;  %v26315_v59 = vld [vmem:[#allocation300_spill] sm:$0xff] }
 0x7cc   :  { %11747 = vrot.lane.b32.xlu0 %v9447_v48, %s12802_s10  ;;  %v26313_v48 = vcombine.high %v26309_v44, %v26310_v17  ;;  %v26316_v29 = vcombine.low %v26314_v3, %v26315_v59  ;;  %v26320_v44 = vld [vmem:[#allocation37_spill] sm:$0xff]  ;;  %v26321_v17 = vld [vmem:[#allocation207_spill] sm:$0xff] }
 0x7cd   :  { %v21626_v51 = vpop.permute.xlu1 %11505  ;;  %v26322_v16 = vcombine.low %v26320_v44, %v26321_v17  ;;  %v26326_v24 = vcombine.high %v26320_v44, %v26321_v17 }
 0x7ce   :  { %v21629_v20 = vpop.permute.xlu0 %11523 }
 0x7cf   :  { %11737 = vrot.lane.b32.xlu1 %v26307_v6, %s26300_s22 }
 0x7d0   :  { %11755 = vrot.lane.b32.xlu0 %v9448_v47, %s12820_s27  ;;  %v9407_v47 = vrot.slane %v26316_v29, %v25261_v19 }
 0x7d1   :  { %v21642_v56 = vpop.permute.xlu1 %11513 }
 0x7d2   :  { %v21644_v52 = vpop.permute.xlu0 %11531  ;;  %v9451_v9 = vcombine.low %v9407_v47, %v9439_v40  ;;  %v9452_v29 = vcombine.high %v9407_v47, %v9439_v40  ;;  %v26329_v40 = vld [vmem:[#allocation142_spill] sm:$0xff]  ;;  %v26330_v47 = vld [vmem:[#allocation52_spill] sm:$0xff] }
 0x7d3   :  { %11745 = vrot.lane.b32.xlu1 %v26311_v49, %s12802_s10  ;;  %v26319_v49 = vld [vmem:[#allocation434_spill] sm:$0xff] }
 0x7d4   :  { %11763 = vrot.lane.b32.xlu0 %v9449_v39, %s26136_s26  ;;  %v26318_v39 = vld [vmem:[#allocation229_spill] sm:$0xff] }
 0x7d5   :  { %v21651_v8 = vpop.permute.xlu1 %11521  ;;  %v9503_v5 = vcombine.low %v26319_v49, %v26318_v39 }
 0x7d6   :  { %26312 = vst [vmem:[#allocation427_spill] sm:$0xff] %v21651_v8  ;;  %v21653_v21 = vpop.permute.xlu0 %11539 }
 0x7d7   :  { %11753 = vrot.lane.b32.xlu1 %v26313_v48, %s12820_s27  ;;  %v26323_v48 = vld [vmem:[#allocation463_spill] sm:$0xff]  ;;  %v9511_v46 = vrot.slane %v9503_v5, %v12858_v10 }
 0x7d8   :  { %11771 = vrot.lane.b32.xlu0 %v9450_v26, %s12822_s29  ;;  %v9487_v32 = vcombine.low %v26324_v12, %v26323_v48 }
 0x7d9   :  { %v21665_v6 = vpop.permute.xlu1 %11529 }
 0x7da   :  { %26317 = vst [vmem:[#allocation11_spill] sm:$0xff] %v21665_v6  ;;  %v21669_v36 = vpop.permute.xlu0 %11547  ;;  %v9446_v6 = vrot.slane %v9432_v15, %v25261_v19 }
 0x7db   :  { %11761 = vrot.lane.b32.xlu1 %v26322_v16, %s26136_s26  ;;  %v26327_v16 = vcombine.high %v26314_v3, %v26315_v59  ;;  %v26334_v59 = vld [vmem:[#allocation36_spill] sm:$0xff] }
 0x7dc   :  { %11779 = vrot.lane.b32.xlu0 %v9451_v9, %s12823_s30  ;;  %v9495_v9 = vrot.slane %v9487_v32, %v12858_v10  ;;  %v26335_v32 = vld [vmem:[#allocation132_spill] sm:$0xff] }
 0x7dd   :  { %v21678_v26 = vpop.permute.xlu1 %11537  ;;  %v9414_v8 = vrot.slane %v26327_v16, %v25261_v19  ;;  %v26336_v16 = vcombine.low %v26334_v59, %v26335_v32 }
 0x7de   :  { %26325 = vst [vmem:[#allocation249_spill] sm:$0xff] %v21678_v26  ;;  %v21681_v22 = vpop.permute.xlu0 %11555  ;;  %v26331_v26 = vcombine.low %v26329_v40, %v26330_v47 }
 0x7df   :  { %11769 = vrot.lane.b32.xlu1 %v26326_v24, %s12822_s29  ;;  %v9551_v24 = vcombine.low %v9495_v9, %v9511_v46  ;;  %v9453_v3 = vcombine.low %v9414_v8, %v9446_v6 }
 0x7e0   :  { %11787 = vrot.lane.b32.xlu0 %v9452_v29, %s25980_s28  ;;  %v12461_v44 = vsel %vm12119_vm0, %v26331_v26, %v21382_v55  ;;  %v26339_v26 = vld [vmem:[#allocation43_spill] sm:$0xff] }
 0x7e1   :  { %v21694_v5 = vpop.permute.xlu1 %11545  ;;  %v12463_v15 = vsel %vm26332_vm8, %v12461_v44, %v21396_v11  ;;  %v26340_v11 = vld [vmem:[#allocation349_spill] sm:$0xff] }
 0x7e2   :  { %26328 = vst [vmem:[#allocation60_spill] sm:$0xff] %v21694_v5  ;;  %v21703_v17 = vpop.permute.xlu0 %11563  ;;  %v12465_v29 = vsel %vm26337_vm1, %v12463_v15, %v21408_v60  ;;  %v4279_v47 = vcombine.low %v26340_v11, %v26339_v26  ;;  %v26343_v60 = vcombine.high %v26334_v59, %v26335_v32  ;;  %vm26348_vm1 = vcmask 261120   ;;  %v26353_v26 = vld [vmem:[#allocation49_spill] sm:$0xff]  ;;  %v26354_v11 = vld [vmem:[#allocation267_spill] sm:$0xff] }
 0x7e3   :  { %26333 = vst [vmem:[#allocation400_spill] sm:$0xff] %v21703_v17  ;;  %11777 = vrot.lane.b32.xlu1 %v26336_v16, %s12823_s30  ;;  %v12467_v40 = vsel %vm26338_vm3, %v12465_v29, %v21437_v14  ;;  %v9454_v17 = vcombine.high %v9414_v8, %v9446_v6  ;;  %v9559_v14 = vrot.slane %v9551_v24, %v25261_v19  ;;  %v26346_v29 = vld [vmem:[#allocation309_spill] sm:$0xff]  ;;  %vm26349_vm3 = vcmask 97280  }
 0x7e4   :  { %11795 = vrot.lane.b32.xlu0 %v9453_v3, %s12825_s3  ;;  %v12469_v44 = vsel %vm26341_vm6, %v12467_v40, %v21448_v2  ;;  %v12460_v15 = vsel %vm12119_vm0, %v4279_v47, %v21405_v41  ;;  %v26345_v2 = vld [vmem:[#allocation378_spill] sm:$0xff]  ;;  %v9504_v41 = vcombine.high %v26319_v49, %v26318_v39  ;;  %vm26350_vm6 = vcmask 293888  }
 0x7e5   :  { %v21714_v55 = vpop.permute.xlu1 %11553  ;;  %v12471_v5 = vsel %vm26342_vm5, %v12469_v44, %v21461_v25  ;;  %v26347_v25 = vcombine.low %v26345_v2, %v26346_v29  ;;  %v12462_v8 = vsel %vm26332_vm8, %v12460_v15, %v21429_v61  ;;  %v9552_v59 = vcombine.high %v9495_v9, %v9511_v46 }
 0x7e6   :  { %v21722_v16 = vpop.permute.xlu0 %11571  ;;  %v12473_v3 = vsel %vm26344_vm2, %v12471_v5, %v21473_v30  ;;  %v12464_v30 = vsel %vm26349_vm3, %v12462_v8, %v21444_v0  ;;  %vm26351_vm5 = vcmask 130048   ;;  %vm26352_vm2 = vcmask 326656   ;;  %v26375_v8 = vld [vmem:[#allocation273_spill] sm:$0xff] }
 0x7e7   :  { %11785 = vrot.lane.b32.xlu1 %v26343_v60, %s25980_s28  ;;  %v9527_v40 = vrot.slane %v26347_v25, %v25261_v19  ;;  %v12475_v6 = vsel %vm26348_vm1, %v12473_v3, %v21488_v34  ;;  %v12466_v61 = vsel %vm26351_vm5, %v12464_v30, %v21457_v58  ;;  %v26355_v47 = vcombine.low %v26353_v26, %v26354_v11 }
 0x7e8   :  { %11803 = vrot.lane.b32.xlu0 %v9454_v17, %s25827_s2  ;;  %v12477_v5 = vsel %vm26350_vm6, %v12475_v6, %v21497_v7  ;;  %vm26356_vm8 = vcmask 162816   ;;  %vm26357_vm1 = vcmask 359424   ;;  %v9488_v39 = vcombine.high %v26324_v12, %v26323_v48 }
 0x7e9   :  { %v21742_v24 = vpop.permute.xlu1 %11561  ;;  %v12479_v34 = vsel %vm26352_vm2, %v12477_v5, %v21513_v54  ;;  %v9583_v17 = vcombine.low %v9527_v40, %v9559_v14  ;;  %v12468_v0 = vsel %vm26356_vm8, %v12466_v61, %v21470_v28  ;;  %vm26358_vm3 = vcmask 195584  }
 0x7ea   :  { %v11580_v32 = vpop.permute.xlu0 %11579  ;;  %v12481_v7 = vsel %vm26357_vm1, %v12479_v34, %v21525_v57  ;;  %v12470_v58 = vsel %vm26358_vm3, %v12468_v0, %v21486_v50  ;;  %vm26359_vm6 = vcmask 392192   ;;  %v21772_v46 = vrot.slane %v9504_v41, %v12858_v10  ;;  %v26386_v34 = vld [vmem:[#allocation310_spill] sm:$0xff] }
 0x7eb   :  { %11793 = vrot.lane.b32.xlu1 %v26355_v47, %s12825_s3  ;;  %v12483_v54 = vsel %vm26359_vm6, %v12481_v7, %v21540_v38  ;;  %vm26360_vm5 = vcmask 228352   ;;  %vm26361_vm2 = vcmask 424960   ;;  %vm26362_vm8 = vcmask 261120   ;;  %v26390_v7 = vld [vmem:[#allocation427_spill] sm:$0xff] }
 0x7ec   :  { %11811 = vrot.lane.b32.xlu0 %v9583_v17, %s12827_s5  ;;  %v12472_v28 = vsel %vm26360_vm5, %v12470_v58, %v21495_v35  ;;  %v12485_v57 = vsel %vm26361_vm2, %v12483_v54, %v21549_v62  ;;  %vm26363_vm1 = vcmask 457728   ;;  %v9584_v48 = vcombine.high %v9527_v40, %v9559_v14  ;;  %v26392_v58 = vld [vmem:[#allocation11_spill] sm:$0xff] }
 0x7ed   :  { %v21769_v49 = vpop.permute.xlu1 %11569  ;;  %v12474_v12 = vsel %vm26362_vm8, %v12472_v28, %v21509_v45  ;;  %v12487_v50 = vsel %vm26363_vm1, %v12485_v57, %v21565_v4  ;;  %v26364_v9 = vcombine.high %v26353_v26, %v26354_v11  ;;  %v9566_v44 = vrot.slane %v9552_v59, %v25261_v19  ;;  %v26389_v11 = vld [vmem:[#allocation400_spill] sm:$0xff] }
 0x7ee   :  { %v11588_v38 = vpop.permute.xlu0 %11587  ;;  %vm26365_vm3 = vcmask 293888   ;;  %vm26366_vm6 = vcmask 490496   ;;  %v26367_v45 = vcombine.high %v26345_v2, %v26346_v29  ;;  %v9502_v60 = vrot.slane %v9488_v39, %v12858_v10 }
 0x7ef   :  { %11801 = vrot.lane.b32.xlu1 %v26364_v9, %s25827_s2  ;;  %v12476_v35 = vsel %vm26365_vm3, %v12474_v12, %v21522_v13  ;;  %v12489_v62 = vsel %vm26366_vm6, %v12487_v50, %v21577_v37  ;;  %vm26368_vm5 = vcmask 326656   ;;  %vm26369_vm2 = vcmask 523264   ;;  %v26393_v12 = vld [vmem:[#allocation50_spill] sm:$0xff]  ;;  %v26394_v50 = vld [vmem:[#allocation157_spill] sm:$0xff] }
 0x7f0   :  { %v9534_v4 = vrot.slane %v26367_v45, %v25261_v19  ;;  %v12478_v14 = vsel %vm26368_vm5, %v12476_v35, %v21538_v27  ;;  %v12491_v15 = vsel %vm26369_vm2, %v12489_v62, %v21592_v42  ;;  %11819 = vrot.lane.b32.xlu0 %v9584_v48, %s25678_s4  ;;  %vm26370_vm8 = vcmask 359424   ;;  %v26374_v42 = vld [vmem:[#allocation95_spill] sm:$0xff]  ;;  %v26396_v9 = vld [vmem:[#allocation249_spill] sm:$0xff] }
 0x7f1   :  { %v11578_v3 = vpop.permute.xlu1 %11577  ;;  %v12480_v13 = vsel %vm26370_vm8, %v12478_v14, %v21547_v53  ;;  %vm26371_vm1 = vcmask 556032   ;;  %v9567_v2 = vcombine.low %v9502_v60, %v21772_v46  ;;  %vm26372_vm3 = vcmask 392192  }
 0x7f2   :  { %v12493_v37 = vsel %vm26371_vm1, %v12491_v15, %v21601_v63  ;;  %v12482_v29 = vsel %vm26372_vm3, %v12480_v13, %v21561_v23  ;;  %vm26373_vm6 = vcmask 588800   ;;  %v11596_v25 = vpop.permute.xlu0 %11595  ;;  %v9585_v40 = vcombine.low %v9534_v4, %v9566_v44 }
 0x7f3   :  { %v12495_v27 = vsel %vm26373_vm6, %v12493_v37, %v21617_v43  ;;  %v26376_v6 = vcombine.low %v26374_v42, %v26375_v8  ;;  %vm26377_vm5 = vcmask 424960   ;;  %vm26378_vm2 = vcmask 621568  }
 0x7f4   :  { %v12484_v53 = vsel %vm26377_vm5, %v12482_v29, %v21574_v31  ;;  %v12497_v63 = vsel %vm26378_vm2, %v12495_v27, %v21629_v20  ;;  %vm26379_vm8 = vcmask 457728   ;;  %vm26380_vm1 = vcmask 654336   ;;  %11827 = vrot.lane.b32.xlu0 %v9585_v40, %s12829_s7 }
 0x7f5   :  { %11809 = vrot.lane.b32.xlu1 %v26376_v6, %s12827_s5  ;;  %v12486_v41 = vsel %vm26379_vm8, %v12484_v53, %v21590_v1  ;;  %v12499_v23 = vsel %vm26380_vm1, %v12497_v63, %v21644_v52  ;;  %v11586_v43 = vpop.permute.xlu1 %11585  ;;  %vm26381_vm3 = vcmask 490496   ;;  %vm26382_vm6 = vcmask 523264   ;;  %v26402_v6 = vld [vmem:[#allocation96_spill] sm:$0xff]  ;;  %v26403_v53 = vld [vmem:[#allocation125_spill] sm:$0xff] }
 0x7f6   :  { %v12488_v30 = vsel %vm26381_vm3, %v12486_v41, %v21599_v18  ;;  %v12501_v5 = vsel %vm12179_vm9, %v12499_v23, %v21653_v21  ;;  %v11604_v59 = vpop.permute.xlu0 %11603  ;;  %v9586_v1 = vcombine.high %v9534_v4, %v9566_v44  ;;  %v26383_v52 = vcombine.high %v26374_v42, %v26375_v8 }
 0x7f7   :  { %v12490_v31 = vsel %vm26382_vm6, %v12488_v30, %v21613_v33  ;;  %v12503_v20 = vsel %vm12182_vm10, %v12501_v5, %v21669_v36  ;;  %v9575_v61 = vrot.slane %v9567_v2, %v25261_v19  ;;  %vm26384_vm5 = vcmask 556032   ;;  %v26385_v33 = vld [vmem:[#allocation323_spill] sm:$0xff]  ;;  %v26408_v5 = vld [vmem:[#allocation436_spill] sm:$0xff] }
 0x7f8   :  { %v12492_v18 = vsel %vm26384_vm5, %v12490_v31, %v21626_v51  ;;  %v12505_v21 = vsel %vm12185_vm11, %v12503_v20, %v21681_v22  ;;  %v26387_v17 = vcombine.low %v26385_v33, %v26386_v34  ;;  %vm26388_vm2 = vcmask 588800   ;;  %11835 = vrot.lane.b32.xlu0 %v9586_v1, %s12830_s8  ;;  %v26409_v20 = vld [vmem:[#allocation423_spill] sm:$0xff] }
 0x7f9   :  { %11817 = vrot.lane.b32.xlu1 %v26383_v52, %s25678_s4  ;;  %v12494_v26 = vsel %vm26388_vm2, %v12492_v18, %v21642_v56  ;;  %v12507_v47 = vsel %vm12188_vm12, %v12505_v21, %v26389_v11  ;;  %v11594_v0 = vpop.permute.xlu1 %11593  ;;  %vm26391_vm8 = vcmask 621568   ;;  %v9568_v39 = vcombine.high %v9502_v60, %v21772_v46  ;;  %v26412_v21 = vld [vmem:[#allocation464_spill] sm:$0xff] }
 0x7fa   :  { %v9543_v36 = vrot.slane %v26387_v17, %v25261_v19  ;;  %v12496_v51 = vsel %vm26391_vm8, %v12494_v26, %v26390_v7  ;;  %v12509_v22 = vsel %vm12191_vm13, %v12507_v47, %v21722_v16  ;;  %v11612_v56 = vpop.permute.xlu0 %11611  ;;  %v26395_v48 = vcombine.low %v26393_v12, %v26394_v50  ;;  %v26397_v16 = vld [vmem:[#allocation60_spill] sm:$0xff]  ;;  %v26415_v47 = vld [vmem:[#allocation447_spill] sm:$0xff] }
 0x7fb   :  { %v12498_v54 = vsel %vm26380_vm1, %v12496_v51, %v26392_v58  ;;  %v12511_v28 = vsel %vm12194_vm14, %v12509_v22, %v11580_v32  ;;  %vm26398_vm3 = vcmask 982016   ;;  %v26399_v13 = vcombine.high %v26393_v12, %v26394_v50  ;;  %v26414_v11 = vld [vmem:[#allocation240_spill] sm:$0xff]  ;;  %v26416_v7 = vld [vmem:[#allocation51_spill] sm:$0xff]  ;;  %v26417_v51 = vld [vmem:[#allocation126_spill] sm:$0xff] }
 0x7fc   :  { %v9587_v57 = vcombine.low %v9543_v36, %v9575_v61  ;;  %v12500_v44 = vsel %vm12179_vm9, %v12498_v54, %v26396_v9  ;;  %v12513_v35 = vsel %vm23825_vm15, %v12511_v28, %v11588_v38  ;;  %v9588_v38 = vcombine.high %v9543_v36, %v9575_v61  ;;  %vm26405_vm5 = vmmov %vm26398_vm3  ;;  %v26419_v58 = vld [vmem:[#allocation208_spill] sm:$0xff]  ;;  %v26420_v54 = vld [vmem:[#allocation266_spill] sm:$0xff] }
 0x7fd   :  { %11825 = vrot.lane.b32.xlu1 %v26395_v48, %s12829_s7  ;;  %v12502_v46 = vsel %vm12182_vm10, %v12500_v44, %v26397_v16  ;;  %v12515_v62 = vsel %vm23824_vm4, %v12513_v35, %v11596_v25  ;;  %v11602_v32 = vpop.permute.xlu1 %11601  ;;  %v9582_v37 = vrot.slane %v9568_v39, %v25261_v19  ;;  %vm26400_vm6 = vcmask 1014784   ;;  %v26424_v12 = vld [vmem:[#allocation313_spill] sm:$0xff]  ;;  %v26427_v16 = vld [vmem:[#allocation39_spill] sm:$0xff] }
 0x7fe   :  { %11843 = vrot.lane.b32.xlu0 %v9587_v57, %s25546_s6  ;;  %v12504_v45 = vsel %vm12185_vm11, %v12502_v46, %v21714_v55  ;;  %v12517_v4 = vsel %vm23823_vm7, %v12515_v62, %v11604_v59  ;;  %v11620_v15 = vpop.permute.xlu0 %11619  ;;  %v26404_v63 = vcombine.low %v26402_v6, %v26403_v53  ;;  %vm26406_vm2 = vmmov %vm26400_vm6  ;;  %v26410_v59 = vld [vmem:[#allocation184_spill] sm:$0xff]  ;;  %v26411_v18 = vcombine.high %v26402_v6, %v26403_v53  ;;  %v26423_v57 = vld [vmem:[#allocation311_spill] sm:$0xff] }
 0x7ff   :  { %v12506_v60 = vsel %vm12188_vm12, %v12504_v45, %v21742_v24  ;;  %v12519_v14 = vsel %vm26398_vm3, %v12517_v4, %v11612_v56  ;;  %v26401_v24 = vcombine.high %v26385_v33, %v26386_v34  ;;  %v9688_v1 = vcombine.high %v26410_v59, %v26409_v20  ;;  %v26413_v33 = vld [vmem:[#allocation409_spill] sm:$0xff] }
 0x800   :  { %v12508_v2 = vsel %vm12191_vm13, %v12506_v60, %v21769_v49  ;;  %v12521_v55 = vsel %vm26400_vm6, %v12519_v14, %v11620_v15  ;;  %v9624_v34 = vcombine.high %v26413_v33, %v26412_v21  ;;  %v26418_v22 = vcombine.low %v26416_v7, %v26417_v51  ;;  %v26426_v35 = vld [vmem:[#allocation21_spill] sm:$0xff] }
 0x801   :  { %11833 = vrot.lane.b32.xlu1 %v26399_v13, %s12830_s8  ;;  %v9550_v29 = vrot.slane %v26401_v24, %v25261_v19  ;;  %v12510_v27 = vsel %vm12194_vm14, %v12508_v2, %v11578_v3  ;;  %12659 = vst [vmem:[#allocation5 + $0x68] sm:$0xff] %v12521_v55  ;;  %v11610_v25 = vpop.permute.xlu1 %11609  ;;  %v9702_v39 = vrot.slane %v9688_v1, %v25261_v19  ;;  %v26431_v2 = vld [vmem:[#allocation379_spill] sm:$0xff]  ;;  %v26432_v55 = vld [vmem:[#allocation326_spill] sm:$0xff]  ;;  %vm26508_vm8 = vcmask 64512  }
 0x802   :  { %11851 = vrot.lane.b32.xlu0 %v9588_v38, %s12832_s12  ;;  %v12512_v40 = vsel %vm23825_vm15, %v12510_v27, %v11586_v43  ;;  %v21890_v8 = vpop.permute.xlu0 %11627  ;;  %v26407_v43 = vld [vmem:[#allocation230_spill] sm:$0xff]  ;;  %v26421_v28 = vcombine.low %v26419_v58, %v26420_v54  ;;  %v26425_v50 = vcombine.high %v26423_v57, %v26424_v12  ;;  %v9638_v9 = vrot.slane %v9624_v34, %v12858_v10 }
 0x803   :  { %v12514_v42 = vsel %vm23824_vm4, %v12512_v40, %v11594_v0  ;;  %v9589_v49 = vcombine.low %v9550_v29, %v9582_v37  ;;  %v9640_v31 = vcombine.high %v26408_v5, %v26407_v43  ;;  %v9590_v61 = vcombine.high %v9550_v29, %v9582_v37  ;;  %v26434_v40 = vld [vmem:[#allocation179_spill] sm:$0xff] }
 0x804   :  { %v12516_v41 = vsel %vm23823_vm7, %v12514_v42, %v11602_v32  ;;  %v9720_v0 = vcombine.high %v26415_v47, %v26414_v11  ;;  %v21929_v56 = vrot.slane %v26421_v28, %v25261_v19  ;;  %v9670_v48 = vrot.slane %v26425_v50, %v25261_v19  ;;  %v26435_v42 = vld [vmem:[#allocation438_spill] sm:$0xff]  ;;  %v26447_v50 = vld [vmem:[#allocation383_spill] sm:$0xff] }
 0x805   :  { %11841 = vrot.lane.b32.xlu1 %v26404_v63, %s25546_s6  ;;  %v12518_v3 = vsel %vm26405_vm5, %v12516_v41, %v11610_v25  ;;  %v11618_v23 = vpop.permute.xlu1 %11617  ;;  %v9654_v36 = vrot.slane %v9640_v31, %v12858_v10  ;;  %v26428_v46 = vcombine.low %v26426_v35, %v26427_v16  ;;  %v26430_v60 = vcombine.high %v26416_v7, %v26417_v51  ;;  %v26436_v63 = vld [vmem:[#allocation190_spill] sm:$0xff]  ;;  %v26437_v41 = vld [vmem:[#allocation279_spill] sm:$0xff] }
 0x806   :  { %11859 = vrot.lane.b32.xlu0 %v9589_v49, %s12833_s9  ;;  %v12520_v30 = vsel %vm26406_vm2, %v12518_v3, %v11618_v23  ;;  %v21904_v52 = vpop.permute.xlu0 %11635  ;;  %26422 = vst [vmem:[#allocation9_spill] sm:$0xff] %v21929_v56  ;;  %v9721_v4 = vcombine.low %v9670_v48, %v9702_v39  ;;  %v9722_v13 = vcombine.high %v9670_v48, %v9702_v39  ;;  %v26439_v23 = vld [vmem:[#allocation156_spill] sm:$0xff]  ;;  %v26443_v51 = vld [vmem:[#allocation191_spill] sm:$0xff]  ;;  %vm26512_vm1 = vcmask 97280  }
 0x807   :  { %12651 = vst [vmem:[#allocation5 + $0x28] sm:$0xff] %v12520_v30  ;;  %v21943_v62 = vrot.slane %v26428_v46, %v25261_v19  ;;  %v9703_v32 = vcombine.low %v9638_v9, %v9654_v36  ;;  %v26433_v24 = vcombine.low %v26431_v2, %v26432_v55  ;;  %v9704_v25 = vcombine.high %v9638_v9, %v9654_v36  ;;  %v26440_v30 = vld [vmem:[#allocation411_spill] sm:$0xff] }
 0x808   :  { %v9775_v49 = vcombine.low %v26435_v42, %v26434_v40  ;;  %v26438_v3 = vcombine.low %v26436_v63, %v26437_v41  ;;  %v9759_v43 = vcombine.low %v26440_v30, %v26439_v23  ;;  %v26441_v1 = vcombine.high %v26436_v63, %v26437_v41  ;;  %v26448_v48 = vld [vmem:[#allocation327_spill] sm:$0xff] }
 0x809   :  { %11849 = vrot.lane.b32.xlu1 %v26411_v18, %s12832_s12  ;;  %v21913_v17 = vpop.permute.xlu1 %11625  ;;  %26429 = vst [vmem:[#allocation150_spill] sm:$0xff] %v21943_v62  ;;  %v5368_v15 = vcombine.high %v21943_v62, %v21929_v56  ;;  %v9711_v37 = vrot.slane %v9703_v32, %v25261_v19  ;;  %v9679_v29 = vrot.slane %v26433_v24, %v25261_v19  ;;  %vm26513_vm3 = vcmask 130048  }
 0x80a   :  { %11867 = vrot.lane.b32.xlu0 %v9590_v61, %s12834_s11  ;;  %v21916_v26 = vpop.permute.xlu0 %11643  ;;  %v9783_v31 = vrot.slane %v9775_v49, %v12858_v10  ;;  %v9718_v61 = vrot.slane %v9704_v25, %v25261_v19  ;;  %v26442_v18 = vcombine.high %v26431_v2, %v26432_v55  ;;  %v9767_v33 = vrot.slane %v9759_v43, %v12858_v10  ;;  %v26455_v43 = vld [vmem:[#allocation194_spill] sm:$0xff] }
 0x80b   :  { %v9723_v53 = vcombine.low %v9679_v29, %v9711_v37  ;;  %v9724_v59 = vcombine.high %v9679_v29, %v9711_v37  ;;  %v26449_v9 = vcombine.low %v26447_v50, %v26448_v48  ;;  %v9776_v46 = vcombine.high %v26435_v42, %v26434_v40 }
 0x80c   :  { %v9686_v21 = vrot.slane %v26442_v18, %v25261_v19  ;;  %v9823_v36 = vcombine.low %v9767_v33, %v9783_v31  ;;  %v9824_v32 = vcombine.high %v9767_v33, %v9783_v31  ;;  %v9760_v2 = vcombine.high %v26440_v30, %v26439_v23  ;;  %v26456_v31 = vld [vmem:[#allocation130_spill] sm:$0xff] }
 0x80d   :  { %11857 = vrot.lane.b32.xlu1 %v26418_v22, %s12833_s9  ;;  %v21937_v44 = vpop.permute.xlu1 %11633  ;;  %v26444_v22 = vld [vmem:[#allocation212_spill] sm:$0xff]  ;;  %v9799_v35 = vrot.slane %v26449_v9, %v25261_v19  ;;  %v9790_v24 = vrot.slane %v9776_v46, %v12858_v10  ;;  %v26454_v49 = vcombine.high %v26447_v50, %v26448_v48  ;;  %v26466_v46 = vld [vmem:[#allocation137_spill] sm:$0xff]  ;;  %vm26516_vm6 = vcmask 162816  }
 0x80e   :  { %11875 = vrot.lane.b32.xlu0 %v9720_v0, %s12805_s0  ;;  %v21945_v45 = vpop.permute.xlu0 %11651  ;;  %v9725_v7 = vcombine.low %v9686_v21, %v9718_v61  ;;  %v26445_v39 = vcombine.low %v26443_v51, %v26444_v22  ;;  %v9726_v28 = vcombine.high %v9686_v21, %v9718_v61  ;;  %v26446_v57 = vcombine.high %v26443_v51, %v26444_v22 }
 0x80f   :  { %v9831_v12 = vrot.slane %v9823_v36, %v25261_v19  ;;  %v9838_v42 = vrot.slane %v9824_v32, %v25261_v19  ;;  %v9774_v63 = vrot.slane %v9760_v2, %v12858_v10  ;;  %v26458_v21 = vcombine.high %v26455_v43, %v26456_v31  ;;  %v26459_v36 = vld [vmem:[#allocation384_spill] sm:$0xff] }
 0x810   :  { %vm26517_vm5 = vcmask 195584   ;;  %vm26519_vm2 = vcmask 228352  }
 0x811   :  { %11865 = vrot.lane.b32.xlu1 %v26430_v60, %s12834_s11  ;;  %v21952_v14 = vpop.permute.xlu1 %11641  ;;  %v9855_v60 = vcombine.low %v9799_v35, %v9831_v12  ;;  %v9856_v25 = vcombine.high %v9799_v35, %v9831_v12  ;;  %v26464_v12 = vld [vmem:[#allocation441_spill] sm:$0xff]  ;;  %v26465_v35 = vld [vmem:[#allocation195_spill] sm:$0xff] }
 0x812   :  { %11883 = vrot.lane.b32.xlu0 %v9721_v4, %s12808_s15  ;;  %v21956_v38 = vpop.permute.xlu0 %11659  ;;  %v26467_v32 = vcombine.low %v26465_v35, %v26466_v46 }
 0x815   :  { %11873 = vrot.lane.b32.xlu1 %v5368_v15, %s12805_s0  ;;  %v21965_v27 = vpop.permute.xlu1 %11649  ;;  %v26450_v15 = vld [vmem:[#allocation192_spill] sm:$0xff]  ;;  %s26462_s0 = smov 44  }
 0x816   :  { %11891 = vrot.lane.b32.xlu0 %v9722_v13, %s12806_s13  ;;  %v21969_v6 = vpop.permute.xlu0 %11667  ;;  %v26451_v13 = vld [vmem:[#allocation280_spill] sm:$0xff] }
 0x817   :  { %v26452_v37 = vcombine.low %v26450_v15, %v26451_v13  ;;  %v26453_v40 = vcombine.high %v26450_v15, %v26451_v13  ;;  %v26469_v15 = vld [vmem:[#allocation413_spill] sm:$0xff] }
 0x819   :  { %11881 = vrot.lane.b32.xlu1 %v26438_v3, %s12808_s15  ;;  %v21978_v5 = vpop.permute.xlu1 %11657  ;;  %v9839_v3 = vcombine.low %v9774_v63, %v9790_v24 }
 0x81a   :  { %11899 = vrot.lane.b32.xlu0 %v9723_v53, %s12807_s14  ;;  %v21981_v20 = vpop.permute.xlu0 %11675  ;;  %v9806_v53 = vrot.slane %v26454_v49, %v25261_v19 }
 0x81b   :  { %v9847_v33 = vrot.slane %v9839_v3, %v25261_v19 }
 0x81c   :  { %v9857_v30 = vcombine.low %v9806_v53, %v9838_v42  ;;  %v9858_v18 = vcombine.high %v9806_v53, %v9838_v42 }
 0x81d   :  { %11889 = vrot.lane.b32.xlu1 %v26441_v1, %s12806_s13  ;;  %v21994_v34 = vpop.permute.xlu1 %11665 }
 0x81e   :  { %11907 = vrot.lane.b32.xlu0 %v9724_v59, %s12809_s16  ;;  %v21996_v0 = vpop.permute.xlu0 %11683  ;;  %v26457_v59 = vcombine.low %v26455_v43, %v26456_v31 }
 0x821   :  { %11897 = vrot.lane.b32.xlu1 %v26445_v39, %s12807_s14  ;;  %v22003_v58 = vpop.permute.xlu1 %11673 }
 0x822   :  { %11915 = vrot.lane.b32.xlu0 %v9725_v7, %s12810_s17  ;;  %v22005_v54 = vpop.permute.xlu0 %11691  ;;  %v26460_v7 = vld [vmem:[#allocation304_spill] sm:$0xff] }
 0x823   :  { %v26461_v51 = vcombine.low %v26459_v36, %v26460_v7  ;;  %v26471_v49 = vcombine.high %v26459_v36, %v26460_v7 }
 0x825   :  { %11905 = vrot.lane.b32.xlu1 %v26446_v57, %s12809_s16  ;;  %v22017_v16 = vpop.permute.xlu1 %11681  ;;  %v9815_v22 = vrot.slane %v26461_v51, %v25261_v19  ;;  %v26463_v57 = vld [vmem:[#allocation473_spill] sm:$0xff]  ;;  %v9822_v53 = vrot.slane %v26471_v49, %v25261_v19  ;;  %v26480_v49 = vld [vmem:[#allocation306_spill] sm:$0xff] }
 0x826   :  { %11923 = vrot.lane.b32.xlu0 %v9726_v28, %s12811_s18  ;;  %v22021_v4 = vpop.permute.xlu0 %11699  ;;  %v9840_v28 = vcombine.high %v9774_v63, %v9790_v24  ;;  %v9911_v50 = vcombine.low %v26464_v12, %v26463_v57 }
 0x827   :  { %v9859_v9 = vcombine.low %v9815_v22, %v9847_v33 }
 0x828   :  { %v9919_v2 = vrot.slane %v9911_v50, %v12858_v10  ;;  %v9854_v42 = vrot.slane %v9840_v28, %v25261_v19  ;;  %v26476_v28 = vld [vmem:[#allocation316_spill] sm:$0xff] }
 0x829   :  { %11913 = vrot.lane.b32.xlu1 %v26452_v37, %s12810_s17  ;;  %v22030_v55 = vpop.permute.xlu1 %11689  ;;  %v26477_v50 = vld [vmem:[#allocation388_spill] sm:$0xff] }
 0x82a   :  { %11931 = vrot.lane.b32.xlu0 %v9855_v60, %s12812_s19  ;;  %v22033_v29 = vpop.permute.xlu0 %11707  ;;  %v26468_v60 = vld [vmem:[#allocation167_spill] sm:$0xff]  ;;  %v9861_v31 = vcombine.low %v9822_v53, %v9854_v42  ;;  %v9862_v7 = vcombine.high %v9822_v53, %v9854_v42  ;;  %v26479_v42 = vld [vmem:[#allocation196_spill] sm:$0xff] }
 0x82b   :  { %v9895_v13 = vcombine.low %v26469_v15, %v26468_v60  ;;  %v26481_v53 = vcombine.low %v26479_v42, %v26480_v49 }
 0x82d   :  { %11921 = vrot.lane.b32.xlu1 %v26453_v40, %s12811_s18  ;;  %v22046_v41 = vpop.permute.xlu1 %11697  ;;  %v26470_v40 = vcombine.high %v26465_v35, %v26466_v46  ;;  %v9903_v63 = vrot.slane %v9895_v13, %v12858_v10 }
 0x82e   :  { %11939 = vrot.lane.b32.xlu0 %v9856_v25, %s12813_s20  ;;  %v22048_v23 = vpop.permute.xlu0 %11715  ;;  %v9860_v25 = vcombine.high %v9815_v22, %v9847_v33 }
 0x82f   :  { %v9960_v13 = vcombine.high %v9903_v63, %v9919_v2 }
 0x831   :  { %11929 = vrot.lane.b32.xlu1 %v26457_v59, %s12812_s19  ;;  %v22055_v1 = vpop.permute.xlu1 %11705  ;;  %v26472_v59 = vld [vmem:[#allocation42_spill] sm:$0xff] }
 0x832   :  { %11947 = vrot.lane.b32.xlu0 %v9857_v30, %s12814_s21  ;;  %v22057_v61 = vpop.permute.xlu0 %11723  ;;  %v9959_v30 = vcombine.low %v9903_v63, %v9919_v2  ;;  %v9974_v2 = vrot.slane %v9960_v13, %v25261_v19 }
 0x834   :  { %v9967_v22 = vrot.slane %v9959_v30, %v25261_v19  ;;  %v9896_v30 = vcombine.high %v26469_v15, %v26468_v60  ;;  %v26483_v60 = vcombine.high %v26476_v28, %v26477_v50 }
 0x835   :  { %11937 = vrot.lane.b32.xlu1 %v26458_v21, %s12813_s20  ;;  %v22069_v39 = vpop.permute.xlu1 %11713 }
 0x836   :  { %11955 = vrot.lane.b32.xlu0 %v9858_v18, %s26462_s0  ;;  %v22073_v48 = vpop.permute.xlu0 %11731  ;;  %v26473_v18 = vld [vmem:[#allocation286_spill] sm:$0xff]  ;;  %v9910_v63 = vrot.slane %v9896_v30, %v12858_v10  ;;  %v9942_v15 = vrot.slane %v26483_v60, %v25261_v19 }
 0x837   :  { %v26474_v21 = vcombine.low %v26472_v59, %v26473_v18  ;;  %v26475_v51 = vcombine.high %v26472_v59, %v26473_v18 }
 0x839   :  { %11945 = vrot.lane.b32.xlu1 %v26467_v32, %s12814_s21  ;;  %v22082_v37 = vpop.permute.xlu1 %11721  ;;  %v9912_v32 = vcombine.high %v26464_v12, %v26463_v57  ;;  %v26482_v12 = vcombine.high %v26479_v42, %v26480_v49  ;;  %v9994_v42 = vcombine.high %v9942_v15, %v9974_v2  ;;  %v26490_v49 = vld [vmem:[#allocation387_spill] sm:$0xff] }
 0x83a   :  { %11963 = vrot.lane.b32.xlu0 %v9859_v9, %s12816_s23  ;;  %v22085_v24 = vpop.permute.xlu0 %11739  ;;  %v26478_v9 = vcombine.low %v26476_v28, %v26477_v50 }
 0x83b   :  { %v9926_v59 = vrot.slane %v9912_v32, %v12858_v10 }
 0x83c   :  { %v9935_v35 = vrot.slane %v26478_v9, %v25261_v19  ;;  %v26485_v9 = vld [vmem:[#allocation41_spill] sm:$0xff] }
 0x83d   :  { %11953 = vrot.lane.b32.xlu1 %v26470_v40, %s26462_s0  ;;  %v22098_v3 = vpop.permute.xlu1 %11729  ;;  %v9976_v60 = vcombine.high %v9910_v63, %v9926_v59 }
 0x83e   :  { %11971 = vrot.lane.b32.xlu0 %v9860_v25, %s12817_s24  ;;  %v22100_v43 = vpop.permute.xlu0 %11747  ;;  %v9991_v40 = vcombine.low %v9935_v35, %v9967_v22  ;;  %v9992_v57 = vcombine.high %v9935_v35, %v9967_v22  ;;  %v9993_v22 = vcombine.low %v9942_v15, %v9974_v2  ;;  %v26486_v35 = vld [vmem:[#allocation117_spill] sm:$0xff] }
 0x83f   :  { %v26487_v32 = vcombine.low %v26485_v9, %v26486_v35  ;;  %v26489_v28 = vcombine.high %v26485_v9, %v26486_v35  ;;  %v26496_v9 = vld [vmem:[#allocation108_spill] sm:$0xff]  ;;  %v26497_v35 = vld [vmem:[#allocation255_spill] sm:$0xff] }
 0x840   :  { %v26502_v47 = vcombine.high %v26496_v9, %v26497_v35 }
 0x841   :  { %11961 = vrot.lane.b32.xlu1 %v26474_v21, %s12816_s23  ;;  %v22107_v33 = vpop.permute.xlu1 %11737 }
 0x842   :  { %11979 = vrot.lane.b32.xlu0 %v9861_v31, %s12818_s25  ;;  %v22109_v36 = vpop.permute.xlu0 %11755 }
 0x845   :  { %11969 = vrot.lane.b32.xlu1 %v26475_v51, %s12817_s24  ;;  %v22121_v46 = vpop.permute.xlu1 %11745 }
 0x846   :  { %11987 = vrot.lane.b32.xlu0 %v9862_v7, %s26300_s22  ;;  %v22125_v25 = vpop.permute.xlu0 %11763  ;;  %v9975_v7 = vcombine.low %v9910_v63, %v9926_v59 }
 0x848   :  { %v9983_v50 = vrot.slane %v9975_v7, %v25261_v19  ;;  %v26498_v7 = vcombine.low %v26496_v9, %v26497_v35  ;;  %v26509_v35 = vld [vmem:[#allocation105_spill] sm:$0xff] }
 0x849   :  { %11977 = vrot.lane.b32.xlu1 %v26481_v53, %s12818_s25  ;;  %v22134_v31 = vpop.permute.xlu1 %11753  ;;  %v26491_v53 = vld [vmem:[#allocation389_spill] sm:$0xff] }
 0x84a   :  { %11995 = vrot.lane.b32.xlu0 %v9991_v40, %s12802_s10  ;;  %v22137_v18 = vpop.permute.xlu0 %11771  ;;  %v26492_v30 = vcombine.low %v26490_v49, %v26491_v53 }
 0x84d   :  { %11985 = vrot.lane.b32.xlu1 %v26482_v12, %s26300_s22  ;;  %v22150_v21 = vpop.permute.xlu1 %11761 }
 0x84e   :  { %12003 = vrot.lane.b32.xlu0 %v9992_v57, %s12820_s27  ;;  %26484 = vst [vmem:[#allocation8_spill] sm:$0xff] %v22150_v21  ;;  %v22152_v51 = vpop.permute.xlu0 %11779  ;;  %v9951_v57 = vrot.slane %v26492_v30, %v25261_v19  ;;  %v26510_v21 = vld [vmem:[#allocation128_spill] sm:$0xff] }
 0x850   :  { %v9995_v62 = vcombine.low %v9951_v57, %v9983_v50  ;;  %v9996_v11 = vcombine.high %v9951_v57, %v9983_v50  ;;  %v26505_v50 = vld [vmem:[#allocation161_spill] sm:$0xff]  ;;  %v26506_v57 = vld [vmem:[#allocation274_spill] sm:$0xff] }
 0x851   :  { %11993 = vrot.lane.b32.xlu1 %v26487_v32, %s12802_s10  ;;  %v22159_v13 = vpop.permute.xlu1 %11769  ;;  %v26495_v32 = vld [vmem:[#allocation443_spill] sm:$0xff] }
 0x852   :  { %12011 = vrot.lane.b32.xlu0 %v9993_v22, %s26136_s26  ;;  %26488 = vst [vmem:[#allocation58_spill] sm:$0xff] %v22159_v13  ;;  %v22161_v40 = vpop.permute.xlu0 %11787  ;;  %v26494_v22 = vld [vmem:[#allocation146_spill] sm:$0xff]  ;;  %v26507_v13 = vcombine.low %v26505_v50, %v26506_v57 }
 0x853   :  { %v10047_v2 = vcombine.low %v26495_v32, %v26494_v22 }
 0x854   :  { %v12523_v9 = vsel %vm12119_vm0, %v26507_v13, %v21890_v8  ;;  %v26514_v13 = vld [vmem:[#allocation351_spill] sm:$0xff] }
 0x855   :  { %12001 = vrot.lane.b32.xlu1 %v26489_v28, %s12820_s27  ;;  %v22173_v12 = vpop.permute.xlu1 %11777  ;;  %v26500_v28 = vld [vmem:[#allocation415_spill] sm:$0xff]  ;;  %v10055_v59 = vrot.slane %v10047_v2, %v12858_v10 }
 0x856   :  { %12019 = vrot.lane.b32.xlu0 %v9994_v42, %s12822_s29  ;;  %26493 = vst [vmem:[#allocation356_spill] sm:$0xff] %v22173_v12  ;;  %v22177_v15 = vpop.permute.xlu0 %11795  ;;  %v26499_v42 = vld [vmem:[#allocation140_spill] sm:$0xff]  ;;  %v9990_v12 = vrot.slane %v9976_v60, %v25261_v19  ;;  %v12525_v60 = vsel %vm26508_vm8, %v12523_v9, %v21904_v52 }
 0x857   :  { %v10031_v56 = vcombine.low %v26500_v28, %v26499_v42  ;;  %v26515_v52 = vld [vmem:[#allocation288_spill] sm:$0xff] }
 0x858   :  { %v4823_v50 = vcombine.low %v26515_v52, %v26514_v13  ;;  %v26528_v52 = vld [vmem:[#allocation109_spill] sm:$0xff] }
 0x859   :  { %12009 = vrot.lane.b32.xlu1 %v26498_v7, %s26136_s26  ;;  %v22186_v30 = vpop.permute.xlu1 %11785  ;;  %v10039_v7 = vrot.slane %v10031_v56, %v12858_v10 }
 0x85a   :  { %12027 = vrot.lane.b32.xlu0 %v9995_v62, %s12823_s30  ;;  %26501 = vst [vmem:[#allocation360_spill] sm:$0xff] %v22186_v30  ;;  %v22189_v63 = vpop.permute.xlu0 %11803  ;;  %v26503_v62 = vcombine.high %v26490_v49, %v26491_v53  ;;  %v26511_v49 = vcombine.low %v26509_v35, %v26510_v21  ;;  %v12527_v53 = vsel %vm26512_vm1, %v12525_v60, %v21916_v26  ;;  %vm26523_vm1 = vcmask 261120  }
 0x85b   :  { %v26518_v26 = vcombine.high %v26509_v35, %v26510_v21  ;;  %v12522_v60 = vsel %vm12119_vm0, %v4823_v50, %v21913_v17  ;;  %v10048_v17 = vcombine.high %v26495_v32, %v26494_v22  ;;  %v10096_v35 = vcombine.high %v10039_v7, %v10055_v59  ;;  %v26529_v50 = vld [vmem:[#allocation160_spill] sm:$0xff] }
 0x85c   :  { %v9958_v30 = vrot.slane %v26503_v62, %v25261_v19  ;;  %v12529_v62 = vsel %vm26513_vm3, %v12527_v53, %v21945_v45  ;;  %v26521_v53 = vld [vmem:[#allocation319_spill] sm:$0xff]  ;;  %vm26524_vm3 = vcmask 97280   ;;  %v10032_v22 = vcombine.high %v26500_v28, %v26499_v42 }
 0x85d   :  { %12017 = vrot.lane.b32.xlu1 %v26502_v47, %s12822_s29  ;;  %v22202_v2 = vpop.permute.xlu1 %11793  ;;  %v10095_v47 = vcombine.low %v10039_v7, %v10055_v59  ;;  %v12531_v57 = vsel %vm26516_vm6, %v12529_v62, %v21956_v38  ;;  %v26520_v38 = vld [vmem:[#allocation392_spill] sm:$0xff]  ;;  %vm26525_vm6 = vcmask 293888   ;;  %v22280_v59 = vrot.slane %v10048_v17, %v12858_v10 }
 0x85e   :  { %12035 = vrot.lane.b32.xlu0 %v9996_v11, %s25980_s28  ;;  %26504 = vst [vmem:[#allocation87_spill] sm:$0xff] %v22202_v2  ;;  %v22211_v56 = vpop.permute.xlu0 %11811  ;;  %v9997_v11 = vcombine.low %v9958_v30, %v9990_v12  ;;  %v12533_v9 = vsel %vm26517_vm5, %v12531_v57, %v21969_v6  ;;  %v9998_v2 = vcombine.high %v9958_v30, %v9990_v12  ;;  %vm26526_vm5 = vcmask 130048  }
 0x85f   :  { %v10103_v45 = vrot.slane %v10095_v47, %v25261_v19  ;;  %v26522_v6 = vcombine.low %v26520_v38, %v26521_v53  ;;  %v12524_v12 = vsel %vm26508_vm8, %v12522_v60, %v21937_v44  ;;  %v26530_v57 = vcombine.low %v26528_v52, %v26529_v50 }
 0x860   :  { %vm26531_vm8 = vcmask 162816   ;;  %v26539_v7 = vcombine.high %v26528_v52, %v26529_v50 }
 0x861   :  { %12025 = vrot.lane.b32.xlu1 %v26511_v49, %s12823_s30  ;;  %v22222_v8 = vpop.permute.xlu1 %11801  ;;  %v10071_v62 = vrot.slane %v26522_v6, %v25261_v19 }
 0x862   :  { %12043 = vrot.lane.b32.xlu0 %v9997_v11, %s12825_s3  ;;  %v22230_v49 = vpop.permute.xlu0 %11819  ;;  %v12535_v11 = vsel %vm26519_vm2, %v12533_v9, %v21981_v20  ;;  %v12526_v20 = vsel %vm26524_vm3, %v12524_v12, %v21952_v14  ;;  %vm26527_vm2 = vcmask 326656   ;;  %vm26533_vm3 = vcmask 195584  }
 0x863   :  { %v12537_v21 = vsel %vm26523_vm1, %v12535_v11, %v21996_v0  ;;  %v12528_v44 = vsel %vm26526_vm5, %v12526_v20, %v21965_v27  ;;  %vm26532_vm1 = vcmask 359424   ;;  %vm26535_vm5 = vcmask 228352  }
 0x864   :  { %v12539_v47 = vsel %vm26525_vm6, %v12537_v21, %v22005_v54  ;;  %v12530_v14 = vsel %vm26531_vm8, %v12528_v44, %v21978_v5  ;;  %vm26534_vm6 = vcmask 392192   ;;  %vm26537_vm8 = vcmask 261120   ;;  %v26561_v44 = vld [vmem:[#allocation394_spill] sm:$0xff] }
 0x865   :  { %12033 = vrot.lane.b32.xlu1 %v26518_v26, %s25980_s28  ;;  %v12541_v0 = vsel %vm26527_vm2, %v12539_v47, %v22021_v4  ;;  %v12532_v27 = vsel %vm26533_vm3, %v12530_v14, %v21994_v34  ;;  %vm26536_vm2 = vcmask 424960   ;;  %v10128_v28 = vcombine.high %v10071_v62, %v10103_v45  ;;  %v26565_v14 = vld [vmem:[#allocation58_spill] sm:$0xff] }
 0x866   :  { %12051 = vrot.lane.b32.xlu0 %v9998_v2, %s25827_s2  ;;  %v11828_v13 = vpop.permute.xlu0 %11827  ;;  %v10127_v2 = vcombine.low %v10071_v62, %v10103_v45  ;;  %v12543_v54 = vsel %vm26532_vm1, %v12541_v0, %v22033_v29  ;;  %v12534_v5 = vsel %vm26535_vm5, %v12532_v27, %v22003_v58  ;;  %vm26538_vm1 = vcmask 457728   ;;  %v26550_v62 = vld [vmem:[#allocation307_spill] sm:$0xff] }
 0x867   :  { %v22250_v30 = vpop.permute.xlu1 %11809  ;;  %v12545_v4 = vsel %vm26534_vm6, %v12543_v54, %v22048_v23  ;;  %v12536_v42 = vsel %vm26537_vm8, %v12534_v5, %v22017_v16  ;;  %v10110_v9 = vrot.slane %v10096_v35, %v25261_v19  ;;  %vm26540_vm3 = vcmask 293888  }
 0x868   :  { %v12547_v29 = vsel %vm26536_vm2, %v12545_v4, %v22057_v61  ;;  %v12538_v58 = vsel %vm26540_vm3, %v12536_v42, %v22030_v55  ;;  %vm26541_vm6 = vcmask 490496   ;;  %v26542_v16 = vcombine.high %v26520_v38, %v26521_v53  ;;  %v26569_v42 = vld [vmem:[#allocation127_spill] sm:$0xff] }
 0x869   :  { %12041 = vrot.lane.b32.xlu1 %v26530_v57, %s12825_s3  ;;  %v12549_v34 = vsel %vm26538_vm1, %v12547_v29, %v22073_v48  ;;  %v10046_v26 = vrot.slane %v10032_v22, %v12858_v10  ;;  %vm26543_vm5 = vcmask 326656   ;;  %vm26544_vm2 = vcmask 523264   ;;  %v26567_v22 = vld [vmem:[#allocation356_spill] sm:$0xff] }
 0x86a   :  { %12059 = vrot.lane.b32.xlu0 %v10127_v2, %s12827_s5  ;;  %v11836_v23 = vpop.permute.xlu0 %11835  ;;  %v12551_v61 = vsel %vm26541_vm6, %v12549_v34, %v22085_v24  ;;  %v10078_v48 = vrot.slane %v26542_v16, %v25261_v19  ;;  %v12540_v45 = vsel %vm26543_vm5, %v12538_v58, %v22046_v41  ;;  %vm26545_vm8 = vcmask 359424   ;;  %v26563_v2 = vld [vmem:[#allocation8_spill] sm:$0xff] }
 0x86b   :  { %v22277_v32 = vpop.permute.xlu1 %11817  ;;  %v12553_v60 = vsel %vm26544_vm2, %v12551_v61, %v22100_v43  ;;  %v12542_v55 = vsel %vm26545_vm8, %v12540_v45, %v22055_v1  ;;  %vm26546_vm1 = vcmask 556032   ;;  %v10111_v38 = vcombine.low %v10046_v26, %v22280_v59  ;;  %v26549_v43 = vld [vmem:[#allocation198_spill] sm:$0xff] }
 0x86c   :  { %v12555_v24 = vsel %vm26546_vm1, %v12553_v60, %v22109_v36  ;;  %vm26547_vm3 = vcmask 392192   ;;  %vm26548_vm6 = vcmask 588800   ;;  %v10129_v6 = vcombine.low %v10078_v48, %v10110_v9 }
 0x86d   :  { %12049 = vrot.lane.b32.xlu1 %v26539_v7, %s25827_s2  ;;  %v12544_v10 = vsel %vm26547_vm3, %v12542_v55, %v22069_v39  ;;  %v12557_v41 = vsel %vm26548_vm6, %v12555_v24, %v22125_v25  ;;  %v26551_v12 = vcombine.low %v26549_v43, %v26550_v62  ;;  %vm26552_vm5 = vcmask 424960  }
 0x86e   :  { %12067 = vrot.lane.b32.xlu0 %v10128_v28, %s25678_s4  ;;  %v12546_v1 = vsel %vm26552_vm5, %v12544_v10, %v22082_v37  ;;  %vm26553_vm2 = vcmask 621568   ;;  %vm26554_vm8 = vcmask 457728   ;;  %vm26555_vm1 = vcmask 654336   ;;  %v26571_v28 = vld [vmem:[#allocation360_spill] sm:$0xff] }
 0x86f   :  { %v11826_v11 = vpop.permute.xlu1 %11825  ;;  %v12559_v36 = vsel %vm26553_vm2, %v12557_v41, %v22137_v18  ;;  %v12548_v21 = vsel %vm26554_vm8, %v12546_v1, %v22098_v3  ;;  %vm26556_vm3 = vcmask 490496   ;;  %vm26557_vm6 = vcmask 523264  }
 0x870   :  { %v11844_v53 = vpop.permute.xlu0 %11843  ;;  %v12561_v39 = vsel %vm26555_vm1, %v12559_v36, %v22152_v51  ;;  %v12550_v17 = vsel %vm26556_vm3, %v12548_v21, %v22107_v33  ;;  %v10130_v3 = vcombine.high %v10078_v48, %v10110_v9  ;;  %v26558_v51 = vcombine.high %v26549_v43, %v26550_v62  ;;  %v26581_v21 = vld [vmem:[#allocation240_spill] sm:$0xff] }
 0x871   :  { %12057 = vrot.lane.b32.xlu1 %v26551_v12, %s12827_s5  ;;  %v12563_v20 = vsel %vm12179_vm9, %v12561_v39, %v22161_v40  ;;  %v12552_v37 = vsel %vm26557_vm6, %v12550_v17, %v22121_v46  ;;  %v10119_v35 = vrot.slane %v10111_v38, %v25261_v19  ;;  %vm26559_vm5 = vcmask 556032   ;;  %v26560_v46 = vld [vmem:[#allocation393_spill] sm:$0xff]  ;;  %v26578_v12 = vld [vmem:[#allocation144_spill] sm:$0xff] }
 0x872   :  { %12075 = vrot.lane.b32.xlu0 %v10129_v6, %s12829_s7  ;;  %v12565_v18 = vsel %vm12182_vm10, %v12563_v20, %v22177_v15  ;;  %v12554_v33 = vsel %vm26559_vm5, %v12552_v37, %v22134_v31  ;;  %v26562_v0 = vcombine.low %v26560_v46, %v26561_v44  ;;  %vm26564_vm2 = vcmask 588800  }
 0x873   :  { %v11834_v25 = vpop.permute.xlu1 %11833  ;;  %v12567_v40 = vsel %vm12185_vm11, %v12565_v18, %v22189_v63  ;;  %v12556_v52 = vsel %vm26564_vm2, %v12554_v33, %v26563_v2  ;;  %vm26566_vm8 = vcmask 621568   ;;  %v10112_v54 = vcombine.high %v10046_v26, %v22280_v59  ;;  %v26588_v33 = vld [vmem:[#allocation150_spill] sm:$0xff] }
 0x874   :  { %v11852_v47 = vpop.permute.xlu0 %11851  ;;  %v10087_v15 = vrot.slane %v26562_v0, %v25261_v19  ;;  %v12569_v50 = vsel %vm12188_vm12, %v12567_v40, %v22211_v56  ;;  %v12558_v31 = vsel %vm26566_vm8, %v12556_v52, %v26565_v14  ;;  %v26568_v56 = vld [vmem:[#allocation199_spill] sm:$0xff]  ;;  %vm26573_vm3 = vcmask 982016  }
 0x875   :  { %12065 = vrot.lane.b32.xlu1 %v26558_v51, %s25678_s4  ;;  %v12571_v63 = vsel %vm12191_vm13, %v12569_v50, %v22230_v49  ;;  %v12560_v27 = vsel %vm26555_vm1, %v12558_v31, %v26567_v22  ;;  %v26570_v34 = vcombine.low %v26568_v56, %v26569_v42  ;;  %v26572_v49 = vld [vmem:[#allocation87_spill] sm:$0xff]  ;;  %v26574_v60 = vcombine.high %v26568_v56, %v26569_v42  ;;  %vm26583_vm5 = vmmov %vm26573_vm3 }
 0x876   :  { %12083 = vrot.lane.b32.xlu0 %v10130_v3, %s12830_s8  ;;  %v12573_v4 = vsel %vm12194_vm14, %v12571_v63, %v11828_v13  ;;  %v10131_v29 = vcombine.low %v10087_v15, %v10119_v35  ;;  %v12562_v7 = vsel %vm12179_vm9, %v12560_v27, %v26571_v28  ;;  %v10126_v55 = vrot.slane %v10112_v54, %v25261_v19  ;;  %v26590_v0 = vld [vmem:[#allocation163_spill] sm:$0xff] }
 0x877   :  { %v11842_v57 = vpop.permute.xlu1 %11841  ;;  %v12575_v9 = vsel %vm23825_vm15, %v12573_v4, %v11836_v23  ;;  %v12564_v59 = vsel %vm12182_vm10, %v12562_v7, %v26572_v49  ;;  %v10132_v23 = vcombine.high %v10087_v15, %v10119_v35  ;;  %vm26575_vm6 = vcmask 1014784   ;;  %v26587_v35 = vld [vmem:[#allocation9_spill] sm:$0xff] }
 0x878   :  { %v11860_v5 = vpop.permute.xlu0 %11859  ;;  %v12577_v58 = vsel %vm23824_vm4, %v12575_v9, %v11844_v53  ;;  %v12566_v61 = vsel %vm12185_vm11, %v12564_v59, %v22222_v8  ;;  %vm26584_vm2 = vmmov %vm26575_vm6  ;;  %vm26586_vm8 = vcmask 64512   ;;  %v5367_v40 = vcombine.low %v26588_v33, %v26587_v35 }
 0x879   :  { %12073 = vrot.lane.b32.xlu1 %v26570_v34, %s12829_s7  ;;  %v12579_v16 = vsel %vm23823_vm7, %v12577_v58, %v11852_v47  ;;  %v12568_v48 = vsel %vm12188_vm12, %v12566_v61, %v22250_v30  ;;  %v26576_v30 = vcombine.high %v26560_v46, %v26561_v44  ;;  %v26589_v44 = vld [vmem:[#allocation201_spill] sm:$0xff]  ;;  %vm26592_vm1 = vcmask 97280  }
 0x87a   :  { %12091 = vrot.lane.b32.xlu0 %v10131_v29, %s25546_s6  ;;  %v12581_v26 = vsel %vm26573_vm3, %v12579_v16, %v11860_v5  ;;  %v12570_v24 = vsel %vm12191_vm13, %v12568_v48, %v22277_v32  ;;  %v26577_v32 = vld [vmem:[#allocation200_spill] sm:$0xff]  ;;  %v26591_v15 = vcombine.low %v26589_v44, %v26590_v0  ;;  %vm26593_vm3 = vmmov %vm26586_vm8  ;;  %v26594_v31 = vcombine.high %v26589_v44, %v26590_v0 }
 0x87b   :  { %v11850_v13 = vpop.permute.xlu1 %11849  ;;  %v10094_v38 = vrot.slane %v26576_v30, %v25261_v19  ;;  %v12572_v10 = vsel %vm12194_vm14, %v12570_v24, %v11826_v11  ;;  %v26579_v1 = vcombine.low %v26577_v32, %v26578_v12  ;;  %v26580_v19 = vld [vmem:[#allocation447_spill] sm:$0xff]  ;;  %v26585_v47 = vcombine.high %v26577_v32, %v26578_v12 }
 0x87c   :  { %v11868_v45 = vpop.permute.xlu0 %11867  ;;  %v12574_v53 = vsel %vm23825_vm15, %v12572_v10, %v11834_v25  ;;  %v26582_v11 = vcombine.low %v26580_v19, %v26581_v21  ;;  %vm26621_vm15 = vcmask 457728  }
 0x87d   :  { %12081 = vrot.lane.b32.xlu1 %v26574_v60, %s12830_s8  ;;  %v12583_v8 = vsel %vm26575_vm6, %v12581_v26, %v11868_v45  ;;  %v12576_v6 = vsel %vm23824_vm4, %v12574_v53, %v11842_v57  ;;  %v10133_v62 = vcombine.low %v10094_v38, %v10126_v55  ;;  %v10134_v18 = vcombine.high %v10094_v38, %v10126_v55 }
 0x87e   :  { %12660 = vst [vmem:[#allocation5 + $0x70] sm:$0xff] %v12583_v8  ;;  %12099 = vrot.lane.b32.xlu0 %v10132_v23, %s12832_s12  ;;  %v12578_v36 = vsel %vm23823_vm7, %v12576_v6, %v11850_v13  ;;  %vm26595_vm6 = vcmask 130048   ;;  %vm26615_vm7 = vcmask 523264  }
 0x87f   :  { %v11858_v41 = vpop.permute.xlu1 %11857 }
 0x880   :  { %v11876_v43 = vpop.permute.xlu0 %11875  ;;  %v12580_v25 = vsel %vm26583_vm5, %v12578_v36, %v11858_v41  ;;  %vm26596_vm5 = vmmov %vm26592_vm1 }
 0x881   :  { %12089 = vrot.lane.b32.xlu1 %v26579_v1, %s25546_s6  ;;  %v12585_v39 = vsel %vm12119_vm0, %v26582_v11, %v11876_v43 }
 0x882   :  { %12107 = vrot.lane.b32.xlu0 %v10133_v62, %s12833_s9 }
 0x883   :  { %v11866_v17 = vpop.permute.xlu1 %11865 }
 0x884   :  { %v12582_v20 = vsel %vm26584_vm2, %v12580_v25, %v11866_v17  ;;  %v11884_v37 = vpop.permute.xlu0 %11883  ;;  %vm26597_vm2 = vcmask 162816  }
 0x885   :  { %12652 = vst [vmem:[#allocation5 + $0x30] sm:$0xff] %v12582_v20  ;;  %12097 = vrot.lane.b32.xlu1 %v26585_v47, %s12832_s12  ;;  %v12587_v3 = vsel %vm26586_vm8, %v12585_v39, %v11884_v37  ;;  %vm26598_vm8 = vmmov %vm26595_vm6 }
 0x886   :  { %12115 = vrot.lane.b32.xlu0 %v10134_v18, %s12834_s11 }
 0x887   :  { %v11874_v51 = vpop.permute.xlu1 %11873 }
 0x888   :  { %v11892_v46 = vpop.permute.xlu0 %11891  ;;  %v12584_v52 = vsel %vm12119_vm0, %v5367_v40, %v11874_v51  ;;  %vm26599_vm0 = vcmask 195584  }
 0x889   :  { %12105 = vrot.lane.b32.xlu1 %v26591_v15, %s12833_s9  ;;  %v12589_v2 = vsel %vm26592_vm1, %v12587_v3, %v11892_v46  ;;  %vm26600_vm1 = vmmov %vm26597_vm2  ;;  %s12835_s9 = smov [#allocation5]  }
 0x88a   :  { %s12667_s13 = sshll.u32 %s12835_s9, 4  ;;  %s12668_s13 = int_to_ptr.vmem [resolvable:$true] %s12667_s13 }
 0x88b   :  { %v11882_v50 = vpop.permute.xlu1 %11881  ;;  %s12776_s14 = scalar_lea.vmem %s12668_s13, 2048  ;;  %p12781_p6 = scmp.lt.s32.totalorder %s12668_s13, %s12668_s13 }
 0x88c   :  { %v12586_v57 = vsel %vm26593_vm3, %v12584_v52, %v11882_v50  ;;  %v11900_v14 = vpop.permute.xlu0 %11899  ;;  %vm26601_vm3 = vcmask 228352   ;;  %p12777_p5 = scmp.ne.s32.totalorder %s12668_s13, %s12776_s14  ;;  %p12782_p7 = scmp.lt.s32.totalorder %s12776_s14, %s12776_s14 }
 0x88d   :  { %12113 = vrot.lane.b32.xlu1 %v26594_v31, %s12834_s11  ;;  %v12591_v63 = vsel %vm26595_vm6, %v12589_v2, %v11900_v14  ;;  %vm26602_vm6 = vmmov %vm26599_vm0 }
 0x88e   :  { %p12783_p8 = por %p12782_p7, %p12781_p6 }
 0x88f   :  { %v11890_v54 = vpop.permute.xlu1 %11889 }
 0x890   :  { %v12588_v22 = vsel %vm26596_vm5, %v12586_v57, %v11890_v54  ;;  %v11908_v27 = vpop.permute.xlu0 %11907  ;;  %vm26603_vm5 = vcmask 261120   ;;  %p12784_p9 = pnand %p12783_p8, %p12777_p5 }
 0x891   :  { %v12593_v4 = vsel %vm26597_vm2, %v12591_v63, %v11908_v27  ;;  %vm26604_vm2 = vmmov %vm26601_vm3 }
 0x893   :  { %v11898_v5 = vpop.permute.xlu1 %11897 }
 0x894   :  { %v12590_v29 = vsel %vm26598_vm8, %v12588_v22, %v11898_v5  ;;  %v11916_v56 = vpop.permute.xlu0 %11915  ;;  %vm26605_vm8 = vcmask 293888  }
 0x895   :  { %v12595_v42 = vsel %vm26599_vm0, %v12593_v4, %v11916_v56  ;;  %vm26606_vm0 = vmmov %vm26603_vm5 }
 0x897   :  { %v11906_v34 = vpop.permute.xlu1 %11905 }
 0x898   :  { %v12592_v28 = vsel %vm26600_vm1, %v12590_v29, %v11906_v34  ;;  %v11924_v7 = vpop.permute.xlu0 %11923  ;;  %vm26607_vm1 = vmmov %vm26605_vm8 }
 0x899   :  { %v12597_v9 = vsel %vm26601_vm3, %v12595_v42, %v11924_v7  ;;  %vm26608_vm3 = vcmask 326656  }
 0x89b   :  { %v11914_v49 = vpop.permute.xlu1 %11913 }
 0x89c   :  { %v12594_v59 = vsel %vm26602_vm6, %v12592_v28, %v11914_v49  ;;  %v11932_v58 = vpop.permute.xlu0 %11931  ;;  %vm26609_vm6 = vcmask 359424  }
 0x89d   :  { %v12599_v13 = vsel %vm26603_vm5, %v12597_v9, %v11932_v58  ;;  %vm26610_vm5 = vcmask 392192   ;;  %vm26616_vm4 = vmmov %vm26609_vm6 }
 0x89f   :  { %v11922_v61 = vpop.permute.xlu1 %11921 }
 0x8a0   :  { %v12596_v16 = vsel %vm26604_vm2, %v12594_v59, %v11922_v61  ;;  %v11940_v48 = vpop.permute.xlu0 %11939  ;;  %vm26611_vm2 = vcmask 424960  }
 0x8a1   :  { %v12601_v26 = vsel %vm26605_vm8, %v12599_v13, %v11940_v48  ;;  %vm26612_vm8 = vcmask 457728  }
 0x8a3   :  { %v11930_v45 = vpop.permute.xlu1 %11929 }
 0x8a4   :  { %v12598_v23 = vsel %vm26606_vm0, %v12596_v16, %v11930_v45  ;;  %v11948_v60 = vpop.permute.xlu0 %11947  ;;  %vm26613_vm0 = vcmask 490496  }
 0x8a5   :  { %v12603_v0 = vsel %vm26608_vm3, %v12601_v26, %v11948_v60 }
 0x8a7   :  { %v11938_v55 = vpop.permute.xlu1 %11937 }
 0x8a8   :  { %v12600_v24 = vsel %vm26607_vm1, %v12598_v23, %v11938_v55  ;;  %v11956_v8 = vpop.permute.xlu0 %11955  ;;  %vm26614_vm1 = vmmov %vm26608_vm3  ;;  %vm26617_vm3 = vcmask 556032  }
 0x8a9   :  { %v12605_v2 = vsel %vm26609_vm6, %v12603_v0, %v11956_v8  ;;  %vm26618_vm6 = vmmov %vm26610_vm5 }
 0x8ab   :  { %v11946_v30 = vpop.permute.xlu1 %11945 }
 0x8ac   :  { %v11964_v38 = vpop.permute.xlu0 %11963  ;;  %v12602_v54 = vsel %vm26614_vm1, %v12600_v24, %v11946_v30  ;;  %vm26625_vm1 = vmmov %vm26617_vm3 }
 0x8ad   :  { %v12607_v52 = vsel %vm26610_vm5, %v12605_v2, %v11964_v38  ;;  %vm26619_vm5 = vcmask 588800  }
 0x8af   :  { %v11954_v10 = vpop.permute.xlu1 %11953 }
 0x8b0   :  { %v11972_v41 = vpop.permute.xlu0 %11971  ;;  %v12604_v4 = vsel %vm26616_vm4, %v12602_v54, %v11954_v10  ;;  %vm26624_vm4 = vcmask 523264  }
 0x8b1   :  { %v12609_v57 = vsel %vm26611_vm2, %v12607_v52, %v11972_v41 }
 0x8b3   :  { %v11962_v53 = vpop.permute.xlu1 %11961 }
 0x8b4   :  { %v11980_v6 = vpop.permute.xlu0 %11979  ;;  %v12606_v29 = vsel %vm26618_vm6, %v12604_v4, %v11962_v53 }
 0x8b5   :  { %v12611_v14 = vsel %vm26612_vm8, %v12609_v57, %v11980_v6  ;;  %vm26620_vm8 = vcmask 621568  }
 0x8b7   :  { %v11970_v43 = vpop.permute.xlu1 %11969 }
 0x8b8   :  { %v11988_v62 = vpop.permute.xlu0 %11987  ;;  %v12608_v34 = vsel %vm26611_vm2, %v12606_v29, %v11970_v43  ;;  %vm26630_vm2 = vcmask 916480  }
 0x8b9   :  { %v12613_v63 = vsel %vm26613_vm0, %v12611_v14, %v11988_v62  ;;  %vm26622_vm0 = vcmask 654336  }
 0x8ba   :  { %vm26628_vm6 = vmmov %vm26622_vm0 }
 0x8bb   :  { %v11978_v32 = vpop.permute.xlu1 %11977 }
 0x8bc   :  { %v11996_v12 = vpop.permute.xlu0 %11995  ;;  %v12610_v7 = vsel %vm26621_vm15, %v12608_v34, %v11978_v32  ;;  %vm26627_vm15 = vmmov %vm26620_vm8 }
 0x8bd   :  { %v12615_v22 = vsel %vm26615_vm7, %v12613_v63, %v11996_v12  ;;  %vm26623_vm7 = vcmask 490496  }
 0x8bf   :  { %v11986_v1 = vpop.permute.xlu1 %11985 }
 0x8c0   :  { %v12004_v36 = vpop.permute.xlu0 %12003  ;;  %v12612_v59 = vsel %vm26623_vm7, %v12610_v7, %v11986_v1  ;;  %vm26633_vm7 = vcmask 1014784  }
 0x8c1   :  { %v12617_v5 = vsel %vm26617_vm3, %v12615_v22, %v12004_v36  ;;  %vm26626_vm3 = vmmov %vm26619_vm5 }
 0x8c3   :  { %v11994_v19 = vpop.permute.xlu1 %11993 }
 0x8c4   :  { %v12012_v21 = vpop.permute.xlu0 %12011  ;;  %v12614_v13 = vsel %vm26624_vm4, %v12612_v59, %v11994_v19  ;;  %vm26638_vm4 = vmmov %vm26633_vm7 }
 0x8c5   :  { %v12619_v56 = vsel %vm26619_vm5, %v12617_v5, %v12012_v21  ;;  %vm26629_vm5 = vcmask 883712  }
 0x8c7   :  { %v12002_v11 = vpop.permute.xlu1 %12001 }
 0x8c8   :  { %v12020_v39 = vpop.permute.xlu0 %12019  ;;  %v12616_v48 = vsel %vm26625_vm1, %v12614_v13, %v12002_v11 }
 0x8c9   :  { %v12621_v28 = vsel %vm26620_vm8, %v12619_v56, %v12020_v39  ;;  %vm26631_vm8 = vcmask 949248  }
 0x8cb   :  { %v12010_v25 = vpop.permute.xlu1 %12009 }
 0x8cc   :  { %v12028_v17 = vpop.permute.xlu0 %12027  ;;  %v12618_v45 = vsel %vm26626_vm3, %v12616_v48, %v12010_v25 }
 0x8cd   :  { %v12623_v9 = vsel %vm26622_vm0, %v12621_v28, %v12028_v17  ;;  %vm26632_vm0 = vcmask 982016  }
 0x8cf   :  { %v12018_v20 = vpop.permute.xlu1 %12017 }
 0x8d0   :  { %v12036_v37 = vpop.permute.xlu0 %12035  ;;  %v12620_v55 = vsel %vm26627_vm15, %v12618_v45, %v12018_v20 }
 0x8d1   :  { %v12625_v58 = vsel %vm12179_vm9, %v12623_v9, %v12036_v37 }
 0x8d3   :  { %v12026_v18 = vpop.permute.xlu1 %12025 }
 0x8d4   :  { %v12044_v47 = vpop.permute.xlu0 %12043  ;;  %v12622_v8 = vsel %vm26628_vm6, %v12620_v55, %v12026_v18 }
 0x8d5   :  { %v12627_v61 = vsel %vm12182_vm10, %v12625_v58, %v12044_v47 }
 0x8d7   :  { %v12034_v3 = vpop.permute.xlu1 %12033 }
 0x8d8   :  { %v12052_v51 = vpop.permute.xlu0 %12051  ;;  %v12624_v10 = vsel %vm12179_vm9, %v12622_v8, %v12034_v3  ;;  %vm26634_vm9 = vmmov %vm26629_vm5 }
 0x8d9   :  { %v12629_v26 = vsel %vm12185_vm11, %v12627_v61, %v12052_v51 }
 0x8db   :  { %v12042_v35 = vpop.permute.xlu1 %12041 }
 0x8dc   :  { %v12060_v33 = vpop.permute.xlu0 %12059  ;;  %v12626_v53 = vsel %vm12182_vm10, %v12624_v10, %v12042_v35  ;;  %vm26635_vm10 = vmmov %vm26630_vm2 }
 0x8dd   :  { %v12631_v23 = vsel %vm12188_vm12, %v12629_v26, %v12060_v33 }
 0x8df   :  { %v12050_v40 = vpop.permute.xlu1 %12049 }
 0x8e0   :  { %v12068_v46 = vpop.permute.xlu0 %12067  ;;  %v12628_v62 = vsel %vm12185_vm11, %v12626_v53, %v12050_v40  ;;  %vm26636_vm11 = vmmov %vm26631_vm8 }
 0x8e1   :  { %v12633_v24 = vsel %vm12191_vm13, %v12631_v23, %v12068_v46 }
 0x8e3   :  { %v12058_v44 = vpop.permute.xlu1 %12057 }
 0x8e4   :  { %v12076_v15 = vpop.permute.xlu0 %12075  ;;  %v12630_v12 = vsel %vm12188_vm12, %v12628_v62, %v12058_v44  ;;  %vm26637_vm12 = vmmov %vm26632_vm0 }
 0x8e5   :  { %v12635_v30 = vsel %vm12194_vm14, %v12633_v24, %v12076_v15 }
 0x8e7   :  { %v12066_v50 = vpop.permute.xlu1 %12065 }
 0x8e8   :  { %v12084_v31 = vpop.permute.xlu0 %12083  ;;  %v12632_v19 = vsel %vm12191_vm13, %v12630_v12, %v12066_v50 }
 0x8e9   :  { %v12637_v41 = vsel %vm26629_vm5, %v12635_v30, %v12084_v31 }
 0x8eb   :  { %v12074_v27 = vpop.permute.xlu1 %12073 }
 0x8ec   :  { %v12092_v42 = vpop.permute.xlu0 %12091  ;;  %v12634_v11 = vsel %vm12194_vm14, %v12632_v19, %v12074_v27 }
 0x8ed   :  { %v12639_v6 = vsel %vm26630_vm2, %v12637_v41, %v12092_v42 }
 0x8ef   :  { %v12082_v49 = vpop.permute.xlu1 %12081 }
 0x8f0   :  { %v12100_v16 = vpop.permute.xlu0 %12099  ;;  %v12636_v25 = vsel %vm26634_vm9, %v12634_v11, %v12082_v49 }
 0x8f1   :  { %v12641_v32 = vsel %vm26631_vm8, %v12639_v6, %v12100_v16 }
 0x8f3   :  { %v12090_v60 = vpop.permute.xlu1 %12089 }
 0x8f4   :  { %v12108_v38 = vpop.permute.xlu0 %12107  ;;  %v12638_v17 = vsel %vm26635_vm10, %v12636_v25, %v12090_v60 }
 0x8f5   :  { %v12643_v1 = vsel %vm26632_vm0, %v12641_v32, %v12108_v38 }
 0x8f7   :  { %v12098_v43 = vpop.permute.xlu1 %12097 }
 0x8f8   :  { %v12116_v36 = vpop.permute.xlu0 %12115  ;;  %v12640_v20 = vsel %vm26636_vm11, %v12638_v17, %v12098_v43 }
 0x8f9   :  { %v12645_v21 = vsel %vm26633_vm7, %v12643_v1, %v12116_v36 }
 0x8fa   :  { %12661 = vst [vmem:[#allocation5 + $0x78] sm:$0xff] %v12645_v21 }
 0x8fb   :  { %v12106_v39 = vpop.permute.xlu1 %12105 }
 0x8fc   :  { %v12642_v37 = vsel %vm26637_vm12, %v12640_v20, %v12106_v39 }
 0x8ff   :  { %v12114_v18 = vpop.permute.xlu1 %12113 }
 0x900   :  { %v12644_v47 = vsel %vm26638_vm4, %v12642_v37, %v12114_v18 }
 0x901   :  { %12653 = vst [vmem:[#allocation5 + $0x38] sm:$0xff] %v12644_v47 }
 0x902   :  { %12787 = shalt.err (!%p12784_p9)
}
 0x903   :  { %s26639_s15 = smov 1024  }
 0x904   :  { %12673 = dma.vmem_to_hbm [thread:$0]  %s12668_s13, 2048, %s22493_s1, [#allocation4], %s26639_s15, %s26639_s15, %s12802_s10  }
 0x905   :  { %12798 = dma.done.wait [#allocation4], 2048  }
 0x906   :  { %12799 = vsyncadd [#allocation4], 4294965248 }
 0x907   :  { %12677 = vsyncpa [#allocation3], 1 }
 0x908   :  { %12678 = vsyncpa [#allocation4], 1 }

</bundles_post_ra>
